<compile_context>
chip_gen: v7x
topology: tpu7x:2x2x1
jax: 0.10.0
libtpu: 0.0.40
codegen_flags: <defaults>
</compile_context>

<pallas_src>
import functools

import jax
import jax.numpy as jnp
from jax.experimental import pallas as pl
from jax.experimental.pallas import tpu as pltpu

# ---------------- model config (scaled-down roberta-base-style encoder) ------
VOCAB = 512
MAX_POS = 64
HIDDEN = 768            # EMBED_SIZE['roberta-base'] -> classifier head input dim
N_LAYERS = 2            # scaled down from 12 layers for a small runnable example
N_HEADS = 12
HEAD_DIM = HIDDEN // N_HEADS
FFN_DIM = 4 * HIDDEN
LN_EPS = 1e-5

# Comfortable headroom under v7x's 64 MiB physical VMEM; also lifts the default
# scoped limits on v5e/v6e so double-buffering stays alive.
VMEM_LIMIT = 48 * 1024 * 1024


# ----------------------------- tiling helpers ---------------------------------
def _pick_tile(dim, candidates):
    """Largest candidate that evenly splits `dim`, else the full dim."""
    for c in candidates:
        if dim > c and dim % c == 0:
            return c
    return dim


def _row_tiles(M, candidates=(1024, 512, 256, 128)):
    """Pick (row_tile, padded_rows). Pads instead of falling back to one huge block."""
    for c in candidates:
        if M >= c and M % c == 0:
            return c, M
    if M <= candidates[-1]:
        mp = -(-M // 8) * 8            # single block, sublane-aligned
        return mp, mp
    tile = candidates[-1]
    return tile, -(-M // tile) * tile  # cdiv-style padding for awkward M


def _pad_rows(x, mp):
    m = x.shape[0]
    return x if m == mp else jnp.pad(x, ((0, mp - m), (0, 0)))


def _ln_rows(x32, g_ref, b_ref, eps):
    mu = jnp.mean(x32, axis=-1, keepdims=True)
    xc = x32 - mu
    var = jnp.mean(xc * xc, axis=-1, keepdims=True)
    return xc * jax.lax.rsqrt(var + eps) * g_ref[...] + b_ref[...]


# ----------------------------- dense (MXU) kernel -----------------------------
def _dense_kernel(x_ref, w_ref, b_ref, o_ref, acc_ref, *, activation):
    @pl.when(pl.program_id(2) == 0)
    def _():
        acc_ref[...] = jnp.zeros_like(acc_ref)

    acc_ref[...] += jnp.dot(x_ref[...], w_ref[...],
                            preferred_element_type=jnp.float32)

    @pl.when(pl.program_id(2) == pl.num_programs(2) - 1)
    def _():
        acc = acc_ref[...] + b_ref[...]
        if activation == "gelu":
            # TODO(synk): HF BERT/RoBERTa use exact (erf) GELU; tanh approx here.
            acc = jax.nn.gelu(acc, approximate=True)
        o_ref[...] = acc.astype(o_ref.dtype)


def dense(x, w, b, activation=None, out_dtype=jnp.bfloat16):
    """y = act(x @ w + b); bf16 operands, f32 accumulation, tiled M/N/K grid."""
    M, K = x.shape
    Kw, N = w.shape
    assert K == Kw
    tm, mp = _row_tiles(M)
    xp = _pad_rows(x, mp)
    tn = _pick_tile(N, (1024, 768, 512))                # lane-dense, 128-aligned
    tk = K if K <= 1024 else _pick_tile(K, (1024, 768, 512))
    kernel = functools.partial(_dense_kernel, activation=activation)
    out = pl.pallas_call(
        kernel,
        out_shape=jax.ShapeDtypeStruct((mp, N), out_dtype),
        grid=(mp // tm, N // tn, K // tk),
        in_specs=[
            pl.BlockSpec((tm, tk), lambda i, j, k: (i, k)),
            pl.BlockSpec((tk, tn), lambda i, j, k: (k, j)),
            pl.BlockSpec((1, tn), lambda i, j, k: (0, j)),
        ],
        out_specs=pl.BlockSpec((tm, tn), lambda i, j, k: (i, j)),
        scratch_shapes=[pltpu.VMEM((tm, tn), jnp.float32)],
        compiler_params=pltpu.CompilerParams(
            dimension_semantics=("parallel", "parallel", "arbitrary"),
            vmem_limit_bytes=VMEM_LIMIT),
    )(xp, w, b.reshape(1, N).astype(jnp.float32))
    return out if mp == M else out[:M]


# ------------- dense + residual + layernorm fused in the epilogue -------------
def _dense_res_ln_kernel(x_ref, w_ref, b_ref, r_ref, g_ref, bb_ref, o_ref,
                         acc_ref, *, eps):
    @pl.when(pl.program_id(1) == 0)
    def _():
        acc_ref[...] = jnp.zeros_like(acc_ref)

    acc_ref[...] += jnp.dot(x_ref[...], w_ref[...],
                            preferred_element_type=jnp.float32)

    @pl.when(pl.program_id(1) == pl.num_programs(1) - 1)
    def _():
        acc = acc_ref[...] + b_ref[...] + r_ref[...].astype(jnp.float32)
        o_ref[...] = _ln_rows(acc, g_ref, bb_ref, eps).astype(o_ref.dtype)


def dense_residual_layernorm(x, w, b, residual, gamma, beta,
                             eps=LN_EPS, out_dtype=jnp.bfloat16):
    """LayerNorm(x @ w + b + residual); LN + residual fused into the matmul epilogue."""
    M, K = x.shape
    Kw, N = w.shape
    assert K == Kw and residual.shape == (M, N)
    assert N % 128 == 0, "fused LN needs the full lane-dense row in the accumulator"
    tm, mp = _row_tiles(M)
    xp = _pad_rows(x, mp)
    rp = _pad_rows(residual, mp)
    tk = K if K <= 1024 else _pick_tile(K, (1024, 768, 512))
    out = pl.pallas_call(
        functools.partial(_dense_res_ln_kernel, eps=eps),
        out_shape=jax.ShapeDtypeStruct((mp, N), out_dtype),
        grid=(mp // tm, K // tk),
        in_specs=[
            pl.BlockSpec((tm, tk), lambda i, k: (i, k)),
            pl.BlockSpec((tk, N), lambda i, k: (k, 0)),
            pl.BlockSpec((1, N), lambda i, k: (0, 0)),
            pl.BlockSpec((tm, N), lambda i, k: (i, 0)),
            pl.BlockSpec((1, N), lambda i, k: (0, 0)),
            pl.BlockSpec((1, N), lambda i, k: (0, 0)),
        ],
        out_specs=pl.BlockSpec((tm, N), lambda i, k: (i, 0)),
        scratch_shapes=[pltpu.VMEM((tm, N), jnp.float32)],
        compiler_params=pltpu.CompilerParams(
            dimension_semantics=("parallel", "arbitrary"),
            vmem_limit_bytes=VMEM_LIMIT),
    )(xp, w, b.reshape(1, N).astype(jnp.float32), rp,
      gamma.reshape(1, N), beta.reshape(1, N))
    return out if mp == M else out[:M]


# --------------------------- standalone layernorm -----------------------------
def _ln_kernel(x_ref, g_ref, b_ref, o_ref, *, eps):
    o_ref[...] = _ln_rows(x_ref[...].astype(jnp.float32),
                          g_ref, b_ref, eps).astype(o_ref.dtype)


def layernorm(x, g, b, eps=LN_EPS, out_dtype=jnp.bfloat16):
    M, D = x.shape
    tm, mp = _row_tiles(M)
    xp = _pad_rows(x, mp)
    row_spec = pl.BlockSpec((tm, D), lambda i: (i, 0))
    vec_spec = pl.BlockSpec((1, D), lambda i: (0, 0))
    out = pl.pallas_call(
        functools.partial(_ln_kernel, eps=eps),
        out_shape=jax.ShapeDtypeStruct((mp, D), out_dtype),
        grid=(mp // tm,),
        in_specs=[row_spec, vec_spec, vec_spec],
        out_specs=row_spec,
        compiler_params=pltpu.CompilerParams(
            dimension_semantics=("parallel",),
            vmem_limit_bytes=VMEM_LIMIT),
    )(xp, g.reshape(1, D), b.reshape(1, D))
    return out if mp == M else out[:M]


# ------------------------------ attention kernel ------------------------------
def _attention_kernel(q_ref, k_ref, v_ref, m_ref, o_ref, *, scale, heads, head_dim):
    # blocks: q/k/v/o -> (1, S, heads*head_dim) bf16 ; m -> (1, 1, S) additive f32
    q = q_ref[0] * scale                  # fold 1/sqrt(Dh) into Q (S*Dh, not S*S)
    k = k_ref[0]
    v = v_ref[0]
    mask = m_ref[0]                       # (1, S) broadcast over query rows
    for h in range(heads):                # small, statically unrolled head loop
        lo = h * head_dim
        qh = q[:, lo:lo + head_dim]
        kh = k[:, lo:lo + head_dim]
        vh = v[:, lo:lo + head_dim]
        # contract Dh directly on the MXU (no explicit k.T), f32 scores
        s = jax.lax.dot_general(qh, kh, (((1,), (1,)), ((), ())),
                                preferred_element_type=jnp.float32)   # (S, S)
        s = s + mask
        s = s - jnp.max(s, axis=-1, keepdims=True)
        p = jnp.exp(s)
        p = p / jnp.sum(p, axis=-1, keepdims=True)       # exact softmax (parity)
        ctx = jnp.dot(p.astype(vh.dtype), vh,
                      preferred_element_type=jnp.float32)             # (S, Dh)
        o_ref[0, :, lo:lo + head_dim] = ctx.astype(o_ref.dtype)


def _pick_heads_per_block(n_heads, head_dim, target=4):
    best = None
    for hb in range(1, n_heads + 1):
        if n_heads % hb == 0 and (hb * head_dim) % 128 == 0:
            best = hb
            if hb >= target:
                break
    assert best is not None, "need a head block whose lane width is a multiple of 128"
    return best


def _qkv_spec(S, width, off):
    def imap(b, j):
        return (b, 0, off + j)
    return pl.BlockSpec((1, S, width), imap)


def attention(qkv, add_mask, *, n_heads=N_HEADS, head_dim=HEAD_DIM):
    """softmax(QK^T/sqrt(d) + mask) V reading the fused (B, S, 3D) QKV directly.

    Q/K/V are selected by BlockSpec column offsets (0, D, 2D) from the same
    array, heads are split inside the kernel, and the context is written
    lane-dense as (B, S, D) so no XLA transposes / masked HBM stores occur.
    """
    B, S, three_d = qkv.shape
    D = n_heads * head_dim
    assert three_d == 3 * D
    hb = _pick_heads_per_block(n_heads, head_dim)
    width = hb * head_dim
    n_hb = n_heads // hb                  # head-block axis (feeds v7x's 2 TCs too)
    # TODO(synk): for long S, switch to a flash-style q-tile x k-tile kernel to
    # cap the S^2 score buffer and fill the MXU M dimension.
    kernel = functools.partial(_attention_kernel, scale=1.0 / (head_dim ** 0.5),
                               heads=hb, head_dim=head_dim)
    return pl.pallas_call(
        kernel,
        out_shape=jax.ShapeDtypeStruct((B, S, D), qkv.dtype),
        grid=(B, n_hb),
        in_specs=[_qkv_spec(S, width, 0),
                  _qkv_spec(S, width, n_hb),
                  _qkv_spec(S, width, 2 * n_hb),
                  pl.BlockSpec((1, 1, S), lambda b, j: (b, 0, 0))],
        out_specs=pl.BlockSpec((1, S, width), lambda b, j: (b, 0, j)),
        compiler_params=pltpu.CompilerParams(
            dimension_semantics=("parallel", "parallel"),
            vmem_limit_bytes=VMEM_LIMIT),
    )(qkv, qkv, qkv, add_mask)


# ----------------------------- model forward ---------------------------------
def bert_classifier_forward(params, input_ids, mask):
    B, S = input_ids.shape
    D = HIDDEN
    M = B * S

    # --- embeddings (gather is JAX glue; normalization runs in Pallas) ---
    # TODO(synk): RoBERTa's padding-offset position ids omitted; using 0..S-1.
    emb = (params["word_emb"][input_ids]
           + params["pos_emb"][:S][None, :, :]
           + params["type_emb"][0][None, None, :])
    h = layernorm(emb.reshape(M, D), params["emb_ln_g"], params["emb_ln_b"])
    # (all nn.Dropout layers are identity in eval mode)

    add_mask = ((1.0 - mask.astype(jnp.float32)) * -1e9).reshape(B, 1, S)

    for lyr in params["layers"]:
        # fused QKV projection; (M,3D)->(B,S,3D) reshape is free (no transpose)
        qkv = dense(h, lyr["wqkv"], lyr["bqkv"]).reshape(B, S, 3 * D)
        ctx = attention(qkv, add_mask).reshape(M, D)        # lane-dense (B,S,D)
        # attention output proj + residual + LayerNorm fused in one epilogue
        h = dense_residual_layernorm(ctx, lyr["wo"], lyr["bo"], residual=h,
                                     gamma=lyr["ln1_g"], beta=lyr["ln1_b"])
        ffn = dense(h, lyr["w1"], lyr["b1"], activation="gelu")
        h = dense_residual_layernorm(ffn, lyr["w2"], lyr["b2"], residual=h,
                                     gamma=lyr["ln2_g"], beta=lyr["ln2_b"])

    seq_out = h.reshape(B, S, D)
    # Pooler + 1-unit classifier head in plain JAX: N=1 Pallas stores are fully
    # lane-masked and launch overhead > compute at this size.
    cls = seq_out[:, 0, :].astype(jnp.float32)                      # (B, D)
    pooled = jnp.tanh(cls @ params["pool_w"] + params["pool_b"])
    # self.dropout(pooled_output) -> identity in eval mode
    logits = pooled @ params["cls_w"] + params["cls_b"]             # (B, 1)
    return logits


# ----------------------------- deterministic init ----------------------------
def init_params(key):
    n_keys = 3 + N_LAYERS * 4 + 2
    keys = iter(jax.random.split(key, n_keys))

    def w(shape, dtype=jnp.float32):
        return (0.02 * jax.random.normal(next(keys), shape,
                                         dtype=jnp.float32)).astype(dtype)

    zeros = lambda s: jnp.zeros(s, jnp.float32)
    ones = lambda s: jnp.ones(s, jnp.float32)

    params = {
        "word_emb": w((VOCAB, HIDDEN)),
        "pos_emb": w((MAX_POS, HIDDEN)),
        "type_emb": w((1, HIDDEN)),
        "emb_ln_g": ones((HIDDEN,)),
        "emb_ln_b": zeros((HIDDEN,)),
        "layers": [],
    }
    for _ in range(N_LAYERS):
        params["layers"].append({
            # fused [wq | wk | wv] along the output dim; bf16 for MXU-native matmuls
            "wqkv": w((HIDDEN, 3 * HIDDEN), jnp.bfloat16),
            "bqkv": zeros((3 * HIDDEN,)),
            "wo": w((HIDDEN, HIDDEN), jnp.bfloat16), "bo": zeros((HIDDEN,)),
            "ln1_g": ones((HIDDEN,)), "ln1_b": zeros((HIDDEN,)),
            "w1": w((HIDDEN, FFN_DIM), jnp.bfloat16), "b1": zeros((FFN_DIM,)),
            "w2": w((FFN_DIM, HIDDEN), jnp.bfloat16), "b2": zeros((HIDDEN,)),
            "ln2_g": ones((HIDDEN,)), "ln2_b": zeros((HIDDEN,)),
        })
    params["pool_w"] = w((HIDDEN, HIDDEN))
    params["pool_b"] = zeros((HIDDEN,))
    params["cls_w"] = w((HIDDEN, 1))
    params["cls_b"] = zeros((1,))
    return params


# ------------------------------------ main ------------------------------------
if __name__ == "__main__":
    key = jax.random.PRNGKey(0)
    pkey, dkey = jax.random.split(key)
    params = init_params(pkey)

    B, S = 2, 8
    input_ids = jax.random.randint(dkey, (B, S), 0, VOCAB, dtype=jnp.int32)
    mask = jnp.array([[1] * S, [1] * (S - 2) + [0, 0]], dtype=jnp.float32)

    logits = jax.jit(bert_classifier_forward)(params, input_ids, mask)
    logits = jax.block_until_ready(logits)
    assert logits.shape == (B, 1) and logits.dtype == jnp.float32
    print("KERNEL_OK")
</pallas_src>

<mosaic_0001>
module attributes {stable_mosaic.version = 11 : i64} {
  func.func @_ln_kernel(%arg0: i32, %arg1: memref<16x768xf32, #tpu.memory_space<vmem>>, %arg2: memref<1x768xf32, #tpu.memory_space<vmem>>, %arg3: memref<1x768xf32, #tpu.memory_space<vmem>>, %arg4: memref<16x768xbf16, #tpu.memory_space<vmem>>) attributes {dimension_semantics = [#tpu.dimension_semantics<parallel>], iteration_bounds = array<i64: 1>, scalar_prefetch = 0 : i64, scratch_operands = 0 : i64, tpu.core_type = #tpu.core_type<tc>, window_params = [{transform_indices = @transform_0, window_bounds = array<i64: 16, 768>}, {pipeline_mode = #tpu.pipeline_mode<synchronous>, transform_indices = @transform_1, window_bounds = array<i64: 1, 768>}, {pipeline_mode = #tpu.pipeline_mode<synchronous>, transform_indices = @transform_2, window_bounds = array<i64: 1, 768>}, {transform_indices = @transform_3, window_bounds = array<i64: 16, 768>}]} {
    %c0 = arith.constant 0 : index
    %c0_0 = arith.constant 0 : index
    %0 = vector.load %arg1[%c0, %c0_0] : memref<16x768xf32, #tpu.memory_space<vmem>>, vector<16x768xf32>
    %cst = arith.constant dense<0.000000e+00> : vector<16xf32>
    %1 = vector.multi_reduction <add>, %0, %cst [1] : vector<16x768xf32> to vector<16xf32>
    %2 = vector.shape_cast %1 : vector<16xf32> to vector<16x1xf32>
    %cst_1 = arith.constant 7.680000e+02 : f32
    %3 = vector.broadcast %cst_1 : f32 to vector<16x1xf32>
    %4 = arith.divf %2, %3 : vector<16x1xf32>
    %5 = vector.broadcast %4 : vector<16x1xf32> to vector<16x768xf32>
    %6 = arith.subf %0, %5 : vector<16x768xf32>
    %7 = arith.mulf %6, %6 : vector<16x768xf32>
    %cst_2 = arith.constant dense<0.000000e+00> : vector<16xf32>
    %8 = vector.multi_reduction <add>, %7, %cst_2 [1] : vector<16x768xf32> to vector<16xf32>
    %9 = vector.shape_cast %8 : vector<16xf32> to vector<16x1xf32>
    %cst_3 = arith.constant 7.680000e+02 : f32
    %10 = vector.broadcast %cst_3 : f32 to vector<16x1xf32>
    %11 = arith.divf %9, %10 : vector<16x1xf32>
    %cst_4 = arith.constant 9.99999974E-6 : f32
    %12 = vector.broadcast %cst_4 : f32 to vector<16x1xf32>
    %13 = arith.addf %11, %12 : vector<16x1xf32>
    %14 = math.rsqrt %13 : vector<16x1xf32>
    %15 = vector.broadcast %14 : vector<16x1xf32> to vector<16x768xf32>
    %16 = arith.mulf %6, %15 : vector<16x768xf32>
    %c0_5 = arith.constant 0 : index
    %c0_6 = arith.constant 0 : index
    %17 = vector.load %arg2[%c0_5, %c0_6] : memref<1x768xf32, #tpu.memory_space<vmem>>, vector<1x768xf32>
    %18 = vector.broadcast %17 : vector<1x768xf32> to vector<16x768xf32>
    %19 = arith.mulf %16, %18 : vector<16x768xf32>
    %c0_7 = arith.constant 0 : index
    %c0_8 = arith.constant 0 : index
    %20 = vector.load %arg3[%c0_7, %c0_8] : memref<1x768xf32, #tpu.memory_space<vmem>>, vector<1x768xf32>
    %21 = vector.broadcast %20 : vector<1x768xf32> to vector<16x768xf32>
    %22 = arith.addf %19, %21 : vector<16x768xf32>
    %23 = arith.truncf %22 : vector<16x768xf32> to vector<16x768xbf16>
    %c0_9 = arith.constant 0 : index
    %c0_10 = arith.constant 0 : index
    %24 = vector.load %arg4[%c0_9, %c0_10] : memref<16x768xbf16, #tpu.memory_space<vmem>>, vector<16x768xbf16>
    tpu.vector_store %arg4[%c0_9, %c0_10], %23 {strides = array<i32>} : memref<16x768xbf16, #tpu.memory_space<vmem>>, vector<16x768xbf16>,
    return
  }
  func.func @transform_0(%arg0: i32) -> (i32, i32) {
    %c0_i32 = arith.constant 0 : i32
    %c0_i32_0 = arith.constant 0 : i32
    return %arg0, %c0_i32 : i32, i32
  }
  func.func @transform_1(%arg0: i32) -> (i32, i32) {
    %c0_i32 = arith.constant 0 : i32
    %c0_i32_0 = arith.constant 0 : i32
    %c0_i32_1 = arith.constant 0 : i32
    return %c0_i32, %c0_i32_0 : i32, i32
  }
  func.func @transform_2(%arg0: i32) -> (i32, i32) {
    %c0_i32 = arith.constant 0 : i32
    %c0_i32_0 = arith.constant 0 : i32
    %c0_i32_1 = arith.constant 0 : i32
    return %c0_i32, %c0_i32_0 : i32, i32
  }
  func.func @transform_3(%arg0: i32) -> (i32, i32) {
    %c0_i32 = arith.constant 0 : i32
    %c0_i32_0 = arith.constant 0 : i32
    return %arg0, %c0_i32 : i32, i32
  }
}

module attributes {stable_mosaic.version = 11 : i64} {
  func.func @_attention_kernel(%arg0: i32, %arg1: i32, %arg2: memref<1x8x256xbf16, #tpu.memory_space<vmem>>, %arg3: memref<1x8x256xbf16, #tpu.memory_space<vmem>>, %arg4: memref<1x8x256xbf16, #tpu.memory_space<vmem>>, %arg5: memref<1x1x8xf32, #tpu.memory_space<vmem>>, %arg6: memref<1x8x256xbf16, #tpu.memory_space<vmem>>) attributes {dimension_semantics = [#tpu.dimension_semantics<parallel>, #tpu.dimension_semantics<parallel>], iteration_bounds = array<i64: 2, 3>, scalar_prefetch = 0 : i64, scratch_operands = 0 : i64, tpu.core_type = #tpu.core_type<tc>, window_params = [{transform_indices = @transform_0, window_bounds = array<i64: 1, 8, 256>}, {transform_indices = @transform_1, window_bounds = array<i64: 1, 8, 256>}, {transform_indices = @transform_2, window_bounds = array<i64: 1, 8, 256>}, {transform_indices = @transform_3, window_bounds = array<i64: 1, 1, 8>}, {transform_indices = @transform_4, window_bounds = array<i64: 1, 8, 256>}]} {
    %c0 = arith.constant 0 : index
    %c0_0 = arith.constant 0 : index
    %c0_1 = arith.constant 0 : index
    %0 = vector.load %arg2[%c0, %c0_0, %c0_1] : memref<1x8x256xbf16, #tpu.memory_space<vmem>>, vector<1x8x256xbf16>
    %1 = vector.shape_cast %0 : vector<1x8x256xbf16> to vector<8x256xbf16>
    %cst = arith.constant 1.250000e-01 : bf16
    %2 = vector.broadcast %cst : bf16 to vector<8x256xbf16>
    %3 = arith.mulf %1, %2 : vector<8x256xbf16>
    %c0_2 = arith.constant 0 : index
    %c0_3 = arith.constant 0 : index
    %c0_4 = arith.constant 0 : index
    %4 = vector.load %arg3[%c0_2, %c0_3, %c0_4] : memref<1x8x256xbf16, #tpu.memory_space<vmem>>, vector<1x8x256xbf16>
    %5 = vector.shape_cast %4 : vector<1x8x256xbf16> to vector<8x256xbf16>
    %c0_5 = arith.constant 0 : index
    %c0_6 = arith.constant 0 : index
    %c0_7 = arith.constant 0 : index
    %6 = vector.load %arg4[%c0_5, %c0_6, %c0_7] : memref<1x8x256xbf16, #tpu.memory_space<vmem>>, vector<1x8x256xbf16>
    %7 = vector.shape_cast %6 : vector<1x8x256xbf16> to vector<8x256xbf16>
    %c0_8 = arith.constant 0 : index
    %c0_9 = arith.constant 0 : index
    %c0_10 = arith.constant 0 : index
    %8 = vector.load %arg5[%c0_8, %c0_9, %c0_10] : memref<1x1x8xf32, #tpu.memory_space<vmem>>, vector<1x1x8xf32>
    %9 = vector.shape_cast %8 : vector<1x1x8xf32> to vector<1x8xf32>
    %10 = vector.extract_strided_slice %3 {offsets = [0, 0], sizes = [8, 64], strides = [1, 1]} : vector<8x256xbf16> to vector<8x64xbf16>
    %11 = vector.extract_strided_slice %5 {offsets = [0, 0], sizes = [8, 64], strides = [1, 1]} : vector<8x256xbf16> to vector<8x64xbf16>
    %12 = vector.extract_strided_slice %7 {offsets = [0, 0], sizes = [8, 64], strides = [1, 1]} : vector<8x256xbf16> to vector<8x64xbf16>
    %cst_11 = arith.constant dense<0.000000e+00> : vector<8x8xf32>
    %13 = tpu.matmul %10, %11, %cst_11 {dimension_numbers = #tpu.dot_dimension_numbers<[1], [1], [0], [0], [0, 0, 1, 0], [], []>} : vector<8x64xbf16>, vector<8x64xbf16>, vector<8x8xf32> -> vector<8x8xf32>
    %14 = vector.broadcast %9 : vector<1x8xf32> to vector<8x8xf32>
    %15 = arith.addf %13, %14 : vector<8x8xf32>
    %cst_12 = arith.constant dense<0xFF800000> : vector<8xf32>
    %16 = vector.multi_reduction <maximumf>, %15, %cst_12 [1] : vector<8x8xf32> to vector<8xf32>
    %17 = vector.shape_cast %16 : vector<8xf32> to vector<8x1xf32>
    %18 = vector.broadcast %17 : vector<8x1xf32> to vector<8x8xf32>
    %19 = arith.subf %15, %18 : vector<8x8xf32>
    %20 = math.exp %19 : vector<8x8xf32>
    %cst_13 = arith.constant dense<0.000000e+00> : vector<8xf32>
    %21 = vector.multi_reduction <add>, %20, %cst_13 [1] : vector<8x8xf32> to vector<8xf32>
    %22 = vector.shape_cast %21 : vector<8xf32> to vector<8x1xf32>
    %23 = vector.broadcast %22 : vector<8x1xf32> to vector<8x8xf32>
    %24 = arith.divf %20, %23 : vector<8x8xf32>
    %25 = arith.truncf %24 : vector<8x8xf32> to vector<8x8xbf16>
    %cst_14 = arith.constant dense<0.000000e+00> : vector<8x64xf32>
    %26 = tpu.matmul %25, %12, %cst_14 {dimension_numbers = #tpu.dot_dimension_numbers<[1], [0], [0], [1], [0, 0, 1, 1], [], []>} : vector<8x8xbf16>, vector<8x64xbf16>, vector<8x64xf32> -> vector<8x64xf32>
    %27 = arith.truncf %26 : vector<8x64xf32> to vector<8x64xbf16>
    %c0_15 = arith.constant 0 : index
    %c0_16 = arith.constant 0 : index
    %c0_17 = arith.constant 0 : index
    %28 = vector.load %arg6[%c0_15, %c0_16, %c0_17] : memref<1x8x256xbf16, #tpu.memory_space<vmem>>, vector<1x8x64xbf16>
    %29 = vector.shape_cast %28 : vector<1x8x64xbf16> to vector<8x64xbf16>
    %30 = vector.shape_cast %27 : vector<8x64xbf16> to vector<1x8x64xbf16>
    tpu.vector_store %arg6[%c0_15, %c0_16, %c0_17], %30 {strides = array<i32>} : memref<1x8x256xbf16, #tpu.memory_space<vmem>>, vector<1x8x64xbf16>,
    %31 = vector.extract_strided_slice %3 {offsets = [0, 64], sizes = [8, 64], strides = [1, 1]} : vector<8x256xbf16> to vector<8x64xbf16>
    %32 = vector.extract_strided_slice %5 {offsets = [0, 64], sizes = [8, 64], strides = [1, 1]} : vector<8x256xbf16> to vector<8x64xbf16>
    %33 = vector.extract_strided_slice %7 {offsets = [0, 64], sizes = [8, 64], strides = [1, 1]} : vector<8x256xbf16> to vector<8x64xbf16>
    %cst_18 = arith.constant dense<0.000000e+00> : vector<8x8xf32>
    %34 = tpu.matmul %31, %32, %cst_18 {dimension_numbers = #tpu.dot_dimension_numbers<[1], [1], [0], [0], [0, 0, 1, 0], [], []>} : vector<8x64xbf16>, vector<8x64xbf16>, vector<8x8xf32> -> vector<8x8xf32>
    %35 = vector.broadcast %9 : vector<1x8xf32> to vector<8x8xf32>
    %36 = arith.addf %34, %35 : vector<8x8xf32>
    %cst_19 = arith.constant dense<0xFF800000> : vector<8xf32>
    %37 = vector.multi_reduction <maximumf>, %36, %cst_19 [1] : vector<8x8xf32> to vector<8xf32>
    %38 = vector.shape_cast %37 : vector<8xf32> to vector<8x1xf32>
    %39 = vector.broadcast %38 : vector<8x1xf32> to vector<8x8xf32>
    %40 = arith.subf %36, %39 : vector<8x8xf32>
    %41 = math.exp %40 : vector<8x8xf32>
    %cst_20 = arith.constant dense<0.000000e+00> : vector<8xf32>
    %42 = vector.multi_reduction <add>, %41, %cst_20 [1] : vector<8x8xf32> to vector<8xf32>
    %43 = vector.shape_cast %42 : vector<8xf32> to vector<8x1xf32>
    %44 = vector.broadcast %43 : vector<8x1xf32> to vector<8x8xf32>
    %45 = arith.divf %41, %44 : vector<8x8xf32>
    %46 = arith.truncf %45 : vector<8x8xf32> to vector<8x8xbf16>
    %cst_21 = arith.constant dense<0.000000e+00> : vector<8x64xf32>
    %47 = tpu.matmul %46, %33, %cst_21 {dimension_numbers = #tpu.dot_dimension_numbers<[1], [0], [0], [1], [0, 0, 1, 1], [], []>} : vector<8x8xbf16>, vector<8x64xbf16>, vector<8x64xf32> -> vector<8x64xf32>
    %48 = arith.truncf %47 : vector<8x64xf32> to vector<8x64xbf16>
    %c0_22 = arith.constant 0 : index
    %c0_23 = arith.constant 0 : index
    %c64 = arith.constant 64 : index
    %49 = vector.load %arg6[%c0_22, %c0_23, %c64] : memref<1x8x256xbf16, #tpu.memory_space<vmem>>, vector<1x8x64xbf16>
    %50 = vector.shape_cast %49 : vector<1x8x64xbf16> to vector<8x64xbf16>
    %51 = vector.shape_cast %48 : vector<8x64xbf16> to vector<1x8x64xbf16>
    tpu.vector_store %arg6[%c0_22, %c0_23, %c64], %51 {strides = array<i32>} : memref<1x8x256xbf16, #tpu.memory_space<vmem>>, vector<1x8x64xbf16>,
    %52 = vector.extract_strided_slice %3 {offsets = [0, 128], sizes = [8, 64], strides = [1, 1]} : vector<8x256xbf16> to vector<8x64xbf16>
    %53 = vector.extract_strided_slice %5 {offsets = [0, 128], sizes = [8, 64], strides = [1, 1]} : vector<8x256xbf16> to vector<8x64xbf16>
    %54 = vector.extract_strided_slice %7 {offsets = [0, 128], sizes = [8, 64], strides = [1, 1]} : vector<8x256xbf16> to vector<8x64xbf16>
    %cst_24 = arith.constant dense<0.000000e+00> : vector<8x8xf32>
    %55 = tpu.matmul %52, %53, %cst_24 {dimension_numbers = #tpu.dot_dimension_numbers<[1], [1], [0], [0], [0, 0, 1, 0], [], []>} : vector<8x64xbf16>, vector<8x64xbf16>, vector<8x8xf32> -> vector<8x8xf32>
    %56 = vector.broadcast %9 : vector<1x8xf32> to vector<8x8xf32>
    %57 = arith.addf %55, %56 : vector<8x8xf32>
    %cst_25 = arith.constant dense<0xFF800000> : vector<8xf32>
    %58 = vector.multi_reduction <maximumf>, %57, %cst_25 [1] : vector<8x8xf32> to vector<8xf32>
    %59 = vector.shape_cast %58 : vector<8xf32> to vector<8x1xf32>
    %60 = vector.broadcast %59 : vector<8x1xf32> to vector<8x8xf32>
    %61 = arith.subf %57, %60 : vector<8x8xf32>
    %62 = math.exp %61 : vector<8x8xf32>
    %cst_26 = arith.constant dense<0.000000e+00> : vector<8xf32>
    %63 = vector.multi_reduction <add>, %62, %cst_26 [1] : vector<8x8xf32> to vector<8xf32>
    %64 = vector.shape_cast %63 : vector<8xf32> to vector<8x1xf32>
    %65 = vector.broadcast %64 : vector<8x1xf32> to vector<8x8xf32>
    %66 = arith.divf %62, %65 : vector<8x8xf32>
    %67 = arith.truncf %66 : vector<8x8xf32> to vector<8x8xbf16>
    %cst_27 = arith.constant dense<0.000000e+00> : vector<8x64xf32>
    %68 = tpu.matmul %67, %54, %cst_27 {dimension_numbers = #tpu.dot_dimension_numbers<[1], [0], [0], [1], [0, 0, 1, 1], [], []>} : vector<8x8xbf16>, vector<8x64xbf16>, vector<8x64xf32> -> vector<8x64xf32>
    %69 = arith.truncf %68 : vector<8x64xf32> to vector<8x64xbf16>
    %c0_28 = arith.constant 0 : index
    %c0_29 = arith.constant 0 : index
    %c128 = arith.constant 128 : index
    %70 = vector.load %arg6[%c0_28, %c0_29, %c128] : memref<1x8x256xbf16, #tpu.memory_space<vmem>>, vector<1x8x64xbf16>
    %71 = vector.shape_cast %70 : vector<1x8x64xbf16> to vector<8x64xbf16>
    %72 = vector.shape_cast %69 : vector<8x64xbf16> to vector<1x8x64xbf16>
    tpu.vector_store %arg6[%c0_28, %c0_29, %c128], %72 {strides = array<i32>} : memref<1x8x256xbf16, #tpu.memory_space<vmem>>, vector<1x8x64xbf16>,
    %73 = vector.extract_strided_slice %3 {offsets = [0, 192], sizes = [8, 64], strides = [1, 1]} : vector<8x256xbf16> to vector<8x64xbf16>
    %74 = vector.extract_strided_slice %5 {offsets = [0, 192], sizes = [8, 64], strides = [1, 1]} : vector<8x256xbf16> to vector<8x64xbf16>
    %75 = vector.extract_strided_slice %7 {offsets = [0, 192], sizes = [8, 64], strides = [1, 1]} : vector<8x256xbf16> to vector<8x64xbf16>
    %cst_30 = arith.constant dense<0.000000e+00> : vector<8x8xf32>
    %76 = tpu.matmul %73, %74, %cst_30 {dimension_numbers = #tpu.dot_dimension_numbers<[1], [1], [0], [0], [0, 0, 1, 0], [], []>} : vector<8x64xbf16>, vector<8x64xbf16>, vector<8x8xf32> -> vector<8x8xf32>
    %77 = vector.broadcast %9 : vector<1x8xf32> to vector<8x8xf32>
    %78 = arith.addf %76, %77 : vector<8x8xf32>
    %cst_31 = arith.constant dense<0xFF800000> : vector<8xf32>
    %79 = vector.multi_reduction <maximumf>, %78, %cst_31 [1] : vector<8x8xf32> to vector<8xf32>
    %80 = vector.shape_cast %79 : vector<8xf32> to vector<8x1xf32>
    %81 = vector.broadcast %80 : vector<8x1xf32> to vector<8x8xf32>
    %82 = arith.subf %78, %81 : vector<8x8xf32>
    %83 = math.exp %82 : vector<8x8xf32>
    %cst_32 = arith.constant dense<0.000000e+00> : vector<8xf32>
    %84 = vector.multi_reduction <add>, %83, %cst_32 [1] : vector<8x8xf32> to vector<8xf32>
    %85 = vector.shape_cast %84 : vector<8xf32> to vector<8x1xf32>
    %86 = vector.broadcast %85 : vector<8x1xf32> to vector<8x8xf32>
    %87 = arith.divf %83, %86 : vector<8x8xf32>
    %88 = arith.truncf %87 : vector<8x8xf32> to vector<8x8xbf16>
    %cst_33 = arith.constant dense<0.000000e+00> : vector<8x64xf32>
    %89 = tpu.matmul %88, %75, %cst_33 {dimension_numbers = #tpu.dot_dimension_numbers<[1], [0], [0], [1], [0, 0, 1, 1], [], []>} : vector<8x8xbf16>, vector<8x64xbf16>, vector<8x64xf32> -> vector<8x64xf32>
    %90 = arith.truncf %89 : vector<8x64xf32> to vector<8x64xbf16>
    %c0_34 = arith.constant 0 : index
    %c0_35 = arith.constant 0 : index
    %c192 = arith.constant 192 : index
    %91 = vector.load %arg6[%c0_34, %c0_35, %c192] : memref<1x8x256xbf16, #tpu.memory_space<vmem>>, vector<1x8x64xbf16>
    %92 = vector.shape_cast %91 : vector<1x8x64xbf16> to vector<8x64xbf16>
    %93 = vector.shape_cast %90 : vector<8x64xbf16> to vector<1x8x64xbf16>
    tpu.vector_store %arg6[%c0_34, %c0_35, %c192], %93 {strides = array<i32>} : memref<1x8x256xbf16, #tpu.memory_space<vmem>>, vector<1x8x64xbf16>,
    return
  }
  func.func @transform_0(%arg0: i32, %arg1: i32) -> (i32, i32, i32) {
    %c0_i32 = arith.constant 0 : i32
    %0 = arith.addi %c0_i32, %arg1 : i32
    %c0_i32_0 = arith.constant 0 : i32
    %c0_i32_1 = arith.constant 0 : i32
    return %arg0, %c0_i32_0, %0 : i32, i32, i32
  }
  func.func @transform_1(%arg0: i32, %arg1: i32) -> (i32, i32, i32) {
    %c3_i32 = arith.constant 3 : i32
    %0 = arith.addi %c3_i32, %arg1 : i32
    %c0_i32 = arith.constant 0 : i32
    %c0_i32_0 = arith.constant 0 : i32
    return %arg0, %c0_i32, %0 : i32, i32, i32
  }
  func.func @transform_2(%arg0: i32, %arg1: i32) -> (i32, i32, i32) {
    %c6_i32 = arith.constant 6 : i32
    %0 = arith.addi %c6_i32, %arg1 : i32
    %c0_i32 = arith.constant 0 : i32
    %c0_i32_0 = arith.constant 0 : i32
    return %arg0, %c0_i32, %0 : i32, i32, i32
  }
  func.func @transform_3(%arg0: i32, %arg1: i32) -> (i32, i32, i32) {
    %c0_i32 = arith.constant 0 : i32
    %c0_i32_0 = arith.constant 0 : i32
    %c0_i32_1 = arith.constant 0 : i32
    return %arg0, %c0_i32, %c0_i32_0 : i32, i32, i32
  }
  func.func @transform_4(%arg0: i32, %arg1: i32) -> (i32, i32, i32) {
    %c0_i32 = arith.constant 0 : i32
    %c0_i32_0 = arith.constant 0 : i32
    return %arg0, %c0_i32, %arg1 : i32, i32, i32
  }
}

module attributes {stable_mosaic.version = 11 : i64} {
  func.func @_dense_kernel(%arg0: i32, %arg1: i32, %arg2: i32, %arg3: memref<16x768xbf16, #tpu.memory_space<vmem>>, %arg4: memref<768x768xbf16, #tpu.memory_space<vmem>>, %arg5: memref<1x768xf32, #tpu.memory_space<vmem>>, %arg6: memref<16x768xbf16, #tpu.memory_space<vmem>>, %arg7: memref<16x768xf32, #tpu.memory_space<vmem>>) attributes {dimension_semantics = [#tpu.dimension_semantics<parallel>, #tpu.dimension_semantics<parallel>, #tpu.dimension_semantics<arbitrary>], iteration_bounds = array<i64: 1, 3, 1>, scalar_prefetch = 0 : i64, scratch_operands = 1 : i64, tpu.core_type = #tpu.core_type<tc>, window_params = [{transform_indices = @transform_0, window_bounds = array<i64: 16, 768>}, {transform_indices = @transform_1, window_bounds = array<i64: 768, 768>}, {transform_indices = @transform_2, window_bounds = array<i64: 1, 768>}, {transform_indices = @transform_3, window_bounds = array<i64: 16, 768>}]} {
    %c0_i32 = arith.constant 0 : i32
    %0 = arith.cmpi eq, %arg2, %c0_i32 : i32
    %1 = arith.extui %0 : i1 to i32
    %c0_i32_0 = arith.constant 0 : i32
    %2 = arith.cmpi ne, %1, %c0_i32_0 : i32
    scf.if %2 {
      %cst_10 = arith.constant 0.000000e+00 : f32
      %12 = vector.broadcast %cst_10 : f32 to vector<16x768xf32>
      %c0_11 = arith.constant 0 : index
      %c0_12 = arith.constant 0 : index
      %13 = vector.load %arg7[%c0_11, %c0_12] : memref<16x768xf32, #tpu.memory_space<vmem>>, vector<16x768xf32>
      tpu.vector_store %arg7[%c0_11, %c0_12], %12 {strides = array<i32>} : memref<16x768xf32, #tpu.memory_space<vmem>>, vector<16x768xf32>,
    } else {
    }
    %c0 = arith.constant 0 : index
    %c0_1 = arith.constant 0 : index
    %3 = vector.load %arg7[%c0, %c0_1] : memref<16x768xf32, #tpu.memory_space<vmem>>, vector<16x768xf32>
    %c0_2 = arith.constant 0 : index
    %c0_3 = arith.constant 0 : index
    %4 = vector.load %arg3[%c0_2, %c0_3] : memref<16x768xbf16, #tpu.memory_space<vmem>>, vector<16x768xbf16>
    %c0_4 = arith.constant 0 : index
    %c0_5 = arith.constant 0 : index
    %5 = vector.load %arg4[%c0_4, %c0_5] : memref<768x768xbf16, #tpu.memory_space<vmem>>, vector<768x768xbf16>
    %cst = arith.constant dense<0.000000e+00> : vector<16x768xf32>
    %6 = tpu.matmul %4, %5, %cst {dimension_numbers = #tpu.dot_dimension_numbers<[1], [0], [0], [1], [0, 0, 1, 1], [], []>} : vector<16x768xbf16>, vector<768x768xbf16>, vector<16x768xf32> -> vector<16x768xf32>
    %7 = arith.addf %3, %6 : vector<16x768xf32>
    %c0_6 = arith.constant 0 : index
    %c0_7 = arith.constant 0 : index
    %8 = vector.load %arg7[%c0_6, %c0_7] : memref<16x768xf32, #tpu.memory_space<vmem>>, vector<16x768xf32>
    tpu.vector_store %arg7[%c0_6, %c0_7], %7 {strides = array<i32>} : memref<16x768xf32, #tpu.memory_space<vmem>>, vector<16x768xf32>,
    %c0_i32_8 = arith.constant 0 : i32
    %9 = arith.cmpi eq, %arg2, %c0_i32_8 : i32
    %10 = arith.extui %9 : i1 to i32
    %c0_i32_9 = arith.constant 0 : i32
    %11 = arith.cmpi ne, %10, %c0_i32_9 : i32
    scf.if %11 {
      %c0_10 = arith.constant 0 : index
      %c0_11 = arith.constant 0 : index
      %12 = vector.load %arg7[%c0_10, %c0_11] : memref<16x768xf32, #tpu.memory_space<vmem>>, vector<16x768xf32>
      %c0_12 = arith.constant 0 : index
      %c0_13 = arith.constant 0 : index
      %13 = vector.load %arg5[%c0_12, %c0_13] : memref<1x768xf32, #tpu.memory_space<vmem>>, vector<1x768xf32>
      %14 = vector.broadcast %13 : vector<1x768xf32> to vector<16x768xf32>
      %15 = arith.addf %12, %14 : vector<16x768xf32>
      %16 = arith.truncf %15 : vector<16x768xf32> to vector<16x768xbf16>
      %c0_14 = arith.constant 0 : index
      %c0_15 = arith.constant 0 : index
      %17 = vector.load %arg6[%c0_14, %c0_15] : memref<16x768xbf16, #tpu.memory_space<vmem>>, vector<16x768xbf16>
      tpu.vector_store %arg6[%c0_14, %c0_15], %16 {strides = array<i32>} : memref<16x768xbf16, #tpu.memory_space<vmem>>, vector<16x768xbf16>,
    } else {
    }
    return
  }
  func.func @transform_0(%arg0: i32, %arg1: i32, %arg2: i32) -> (i32, i32) {
    %c0_i32 = arith.constant 0 : i32
    return %arg0, %arg2 : i32, i32
  }
  func.func @transform_1(%arg0: i32, %arg1: i32, %arg2: i32) -> (i32, i32) {
    %c0_i32 = arith.constant 0 : i32
    return %arg2, %arg1 : i32, i32
  }
  func.func @transform_2(%arg0: i32, %arg1: i32, %arg2: i32) -> (i32, i32) {
    %c0_i32 = arith.constant 0 : i32
    %c0_i32_0 = arith.constant 0 : i32
    return %c0_i32, %arg1 : i32, i32
  }
  func.func @transform_3(%arg0: i32, %arg1: i32, %arg2: i32) -> (i32, i32) {
    %c0_i32 = arith.constant 0 : i32
    return %arg0, %arg1 : i32, i32
  }
}

module attributes {stable_mosaic.version = 11 : i64} {
  func.func @_dense_res_ln_kernel(%arg0: i32, %arg1: i32, %arg2: memref<16x768xbf16, #tpu.memory_space<vmem>>, %arg3: memref<768x768xbf16, #tpu.memory_space<vmem>>, %arg4: memref<1x768xf32, #tpu.memory_space<vmem>>, %arg5: memref<16x768xbf16, #tpu.memory_space<vmem>>, %arg6: memref<1x768xf32, #tpu.memory_space<vmem>>, %arg7: memref<1x768xf32, #tpu.memory_space<vmem>>, %arg8: memref<16x768xbf16, #tpu.memory_space<vmem>>, %arg9: memref<16x768xf32, #tpu.memory_space<vmem>>) attributes {dimension_semantics = [#tpu.dimension_semantics<parallel>, #tpu.dimension_semantics<arbitrary>], iteration_bounds = array<i64: 1, 1>, scalar_prefetch = 0 : i64, scratch_operands = 1 : i64, tpu.core_type = #tpu.core_type<tc>, window_params = [{transform_indices = @transform_0, window_bounds = array<i64: 16, 768>}, {transform_indices = @transform_1, window_bounds = array<i64: 768, 768>}, {pipeline_mode = #tpu.pipeline_mode<synchronous>, transform_indices = @transform_2, window_bounds = array<i64: 1, 768>}, {transform_indices = @transform_3, window_bounds = array<i64: 16, 768>}, {pipeline_mode = #tpu.pipeline_mode<synchronous>, transform_indices = @transform_4, window_bounds = array<i64: 1, 768>}, {pipeline_mode = #tpu.pipeline_mode<synchronous>, transform_indices = @transform_5, window_bounds = array<i64: 1, 768>}, {transform_indices = @transform_6, window_bounds = array<i64: 16, 768>}]} {
    %c0_i32 = arith.constant 0 : i32
    %0 = arith.cmpi eq, %arg1, %c0_i32 : i32
    %1 = arith.extui %0 : i1 to i32
    %c0_i32_0 = arith.constant 0 : i32
    %2 = arith.cmpi ne, %1, %c0_i32_0 : i32
    scf.if %2 {
      %cst_10 = arith.constant 0.000000e+00 : f32
      %12 = vector.broadcast %cst_10 : f32 to vector<16x768xf32>
      %c0_11 = arith.constant 0 : index
      %c0_12 = arith.constant 0 : index
      %13 = vector.load %arg9[%c0_11, %c0_12] : memref<16x768xf32, #tpu.memory_space<vmem>>, vector<16x768xf32>
      tpu.vector_store %arg9[%c0_11, %c0_12], %12 {strides = array<i32>} : memref<16x768xf32, #tpu.memory_space<vmem>>, vector<16x768xf32>,
    } else {
    }
    %c0 = arith.constant 0 : index
    %c0_1 = arith.constant 0 : index
    %3 = vector.load %arg9[%c0, %c0_1] : memref<16x768xf32, #tpu.memory_space<vmem>>, vector<16x768xf32>
    %c0_2 = arith.constant 0 : index
    %c0_3 = arith.constant 0 : index
    %4 = vector.load %arg2[%c0_2, %c0_3] : memref<16x768xbf16, #tpu.memory_space<vmem>>, vector<16x768xbf16>
    %c0_4 = arith.constant 0 : index
    %c0_5 = arith.constant 0 : index
    %5 = vector.load %arg3[%c0_4, %c0_5] : memref<768x768xbf16, #tpu.memory_space<vmem>>, vector<768x768xbf16>
    %cst = arith.constant dense<0.000000e+00> : vector<16x768xf32>
    %6 = tpu.matmul %4, %5, %cst {dimension_numbers = #tpu.dot_dimension_numbers<[1], [0], [0], [1], [0, 0, 1, 1], [], []>} : vector<16x768xbf16>, vector<768x768xbf16>, vector<16x768xf32> -> vector<16x768xf32>
    %7 = arith.addf %3, %6 : vector<16x768xf32>
    %c0_6 = arith.constant 0 : index
    %c0_7 = arith.constant 0 : index
    %8 = vector.load %arg9[%c0_6, %c0_7] : memref<16x768xf32, #tpu.memory_space<vmem>>, vector<16x768xf32>
    tpu.vector_store %arg9[%c0_6, %c0_7], %7 {strides = array<i32>} : memref<16x768xf32, #tpu.memory_space<vmem>>, vector<16x768xf32>,
    %c0_i32_8 = arith.constant 0 : i32
    %9 = arith.cmpi eq, %arg1, %c0_i32_8 : i32
    %10 = arith.extui %9 : i1 to i32
    %c0_i32_9 = arith.constant 0 : i32
    %11 = arith.cmpi ne, %10, %c0_i32_9 : i32
    scf.if %11 {
      %c0_10 = arith.constant 0 : index
      %c0_11 = arith.constant 0 : index
      %12 = vector.load %arg9[%c0_10, %c0_11] : memref<16x768xf32, #tpu.memory_space<vmem>>, vector<16x768xf32>
      %c0_12 = arith.constant 0 : index
      %c0_13 = arith.constant 0 : index
      %13 = vector.load %arg4[%c0_12, %c0_13] : memref<1x768xf32, #tpu.memory_space<vmem>>, vector<1x768xf32>
      %14 = vector.broadcast %13 : vector<1x768xf32> to vector<16x768xf32>
      %15 = arith.addf %12, %14 : vector<16x768xf32>
      %c0_14 = arith.constant 0 : index
      %c0_15 = arith.constant 0 : index
      %16 = vector.load %arg5[%c0_14, %c0_15] : memref<16x768xbf16, #tpu.memory_space<vmem>>, vector<16x768xbf16>
      %17 = arith.extf %16 : vector<16x768xbf16> to vector<16x768xf32>
      %18 = arith.addf %15, %17 : vector<16x768xf32>
      %cst_16 = arith.constant dense<0.000000e+00> : vector<16xf32>
      %19 = vector.multi_reduction <add>, %18, %cst_16 [1] : vector<16x768xf32> to vector<16xf32>
      %20 = vector.shape_cast %19 : vector<16xf32> to vector<16x1xf32>
      %cst_17 = arith.constant 7.680000e+02 : f32
      %21 = vector.broadcast %cst_17 : f32 to vector<16x1xf32>
      %22 = arith.divf %20, %21 : vector<16x1xf32>
      %23 = vector.broadcast %22 : vector<16x1xf32> to vector<16x768xf32>
      %24 = arith.subf %18, %23 : vector<16x768xf32>
      %25 = arith.mulf %24, %24 : vector<16x768xf32>
      %cst_18 = arith.constant dense<0.000000e+00> : vector<16xf32>
      %26 = vector.multi_reduction <add>, %25, %cst_18 [1] : vector<16x768xf32> to vector<16xf32>
      %27 = vector.shape_cast %26 : vector<16xf32> to vector<16x1xf32>
      %cst_19 = arith.constant 7.680000e+02 : f32
      %28 = vector.broadcast %cst_19 : f32 to vector<16x1xf32>
      %29 = arith.divf %27, %28 : vector<16x1xf32>
      %cst_20 = arith.constant 9.99999974E-6 : f32
      %30 = vector.broadcast %cst_20 : f32 to vector<16x1xf32>
      %31 = arith.addf %29, %30 : vector<16x1xf32>
      %32 = math.rsqrt %31 : vector<16x1xf32>
      %33 = vector.broadcast %32 : vector<16x1xf32> to vector<16x768xf32>
      %34 = arith.mulf %24, %33 : vector<16x768xf32>
      %c0_21 = arith.constant 0 : index
      %c0_22 = arith.constant 0 : index
      %35 = vector.load %arg6[%c0_21, %c0_22] : memref<1x768xf32, #tpu.memory_space<vmem>>, vector<1x768xf32>
      %36 = vector.broadcast %35 : vector<1x768xf32> to vector<16x768xf32>
      %37 = arith.mulf %34, %36 : vector<16x768xf32>
      %c0_23 = arith.constant 0 : index
      %c0_24 = arith.constant 0 : index
      %38 = vector.load %arg7[%c0_23, %c0_24] : memref<1x768xf32, #tpu.memory_space<vmem>>, vector<1x768xf32>
      %39 = vector.broadcast %38 : vector<1x768xf32> to vector<16x768xf32>
      %40 = arith.addf %37, %39 : vector<16x768xf32>
      %41 = arith.truncf %40 : vector<16x768xf32> to vector<16x768xbf16>
      %c0_25 = arith.constant 0 : index
      %c0_26 = arith.constant 0 : index
      %42 = vector.load %arg8[%c0_25, %c0_26] : memref<16x768xbf16, #tpu.memory_space<vmem>>, vector<16x768xbf16>
      tpu.vector_store %arg8[%c0_25, %c0_26], %41 {strides = array<i32>} : memref<16x768xbf16, #tpu.memory_space<vmem>>, vector<16x768xbf16>,
    } else {
    }
    return
  }
  func.func @transform_0(%arg0: i32, %arg1: i32) -> (i32, i32) {
    %c0_i32 = arith.constant 0 : i32
    return %arg0, %arg1 : i32, i32
  }
  func.func @transform_1(%arg0: i32, %arg1: i32) -> (i32, i32) {
    %c0_i32 = arith.constant 0 : i32
    %c0_i32_0 = arith.constant 0 : i32
    return %arg1, %c0_i32 : i32, i32
  }
  func.func @transform_2(%arg0: i32, %arg1: i32) -> (i32, i32) {
    %c0_i32 = arith.constant 0 : i32
    %c0_i32_0 = arith.constant 0 : i32
    %c0_i32_1 = arith.constant 0 : i32
    return %c0_i32, %c0_i32_0 : i32, i32
  }
  func.func @transform_3(%arg0: i32, %arg1: i32) -> (i32, i32) {
    %c0_i32 = arith.constant 0 : i32
    %c0_i32_0 = arith.constant 0 : i32
    return %arg0, %c0_i32 : i32, i32
  }
  func.func @transform_4(%arg0: i32, %arg1: i32) -> (i32, i32) {
    %c0_i32 = arith.constant 0 : i32
    %c0_i32_0 = arith.constant 0 : i32
    %c0_i32_1 = arith.constant 0 : i32
    return %c0_i32, %c0_i32_0 : i32, i32
  }
  func.func @transform_5(%arg0: i32, %arg1: i32) -> (i32, i32) {
    %c0_i32 = arith.constant 0 : i32
    %c0_i32_0 = arith.constant 0 : i32
    %c0_i32_1 = arith.constant 0 : i32
    return %c0_i32, %c0_i32_0 : i32, i32
  }
  func.func @transform_6(%arg0: i32, %arg1: i32) -> (i32, i32) {
    %c0_i32 = arith.constant 0 : i32
    %c0_i32_0 = arith.constant 0 : i32
    return %arg0, %c0_i32 : i32, i32
  }
}

module attributes {stable_mosaic.version = 11 : i64} {
  func.func @_dense_kernel(%arg0: i32, %arg1: i32, %arg2: i32, %arg3: memref<16x768xbf16, #tpu.memory_space<vmem>>, %arg4: memref<768x1024xbf16, #tpu.memory_space<vmem>>, %arg5: memref<1x1024xf32, #tpu.memory_space<vmem>>, %arg6: memref<16x1024xbf16, #tpu.memory_space<vmem>>, %arg7: memref<16x1024xf32, #tpu.memory_space<vmem>>) attributes {dimension_semantics = [#tpu.dimension_semantics<parallel>, #tpu.dimension_semantics<parallel>, #tpu.dimension_semantics<arbitrary>], iteration_bounds = array<i64: 1, 3, 1>, scalar_prefetch = 0 : i64, scratch_operands = 1 : i64, tpu.core_type = #tpu.core_type<tc>, window_params = [{transform_indices = @transform_0, window_bounds = array<i64: 16, 768>}, {transform_indices = @transform_1, window_bounds = array<i64: 768, 1024>}, {transform_indices = @transform_2, window_bounds = array<i64: 1, 1024>}, {transform_indices = @transform_3, window_bounds = array<i64: 16, 1024>}]} {
    %c0_i32 = arith.constant 0 : i32
    %0 = arith.cmpi eq, %arg2, %c0_i32 : i32
    %1 = arith.extui %0 : i1 to i32
    %c0_i32_0 = arith.constant 0 : i32
    %2 = arith.cmpi ne, %1, %c0_i32_0 : i32
    scf.if %2 {
      %cst_10 = arith.constant 0.000000e+00 : f32
      %12 = vector.broadcast %cst_10 : f32 to vector<16x1024xf32>
      %c0_11 = arith.constant 0 : index
      %c0_12 = arith.constant 0 : index
      %13 = vector.load %arg7[%c0_11, %c0_12] : memref<16x1024xf32, #tpu.memory_space<vmem>>, vector<16x1024xf32>
      tpu.vector_store %arg7[%c0_11, %c0_12], %12 {strides = array<i32>} : memref<16x1024xf32, #tpu.memory_space<vmem>>, vector<16x1024xf32>,
    } else {
    }
    %c0 = arith.constant 0 : index
    %c0_1 = arith.constant 0 : index
    %3 = vector.load %arg7[%c0, %c0_1] : memref<16x1024xf32, #tpu.memory_space<vmem>>, vector<16x1024xf32>
    %c0_2 = arith.constant 0 : index
    %c0_3 = arith.constant 0 : index
    %4 = vector.load %arg3[%c0_2, %c0_3] : memref<16x768xbf16, #tpu.memory_space<vmem>>, vector<16x768xbf16>
    %c0_4 = arith.constant 0 : index
    %c0_5 = arith.constant 0 : index
    %5 = vector.load %arg4[%c0_4, %c0_5] : memref<768x1024xbf16, #tpu.memory_space<vmem>>, vector<768x1024xbf16>
    %cst = arith.constant dense<0.000000e+00> : vector<16x1024xf32>
    %6 = tpu.matmul %4, %5, %cst {dimension_numbers = #tpu.dot_dimension_numbers<[1], [0], [0], [1], [0, 0, 1, 1], [], []>} : vector<16x768xbf16>, vector<768x1024xbf16>, vector<16x1024xf32> -> vector<16x1024xf32>
    %7 = arith.addf %3, %6 : vector<16x1024xf32>
    %c0_6 = arith.constant 0 : index
    %c0_7 = arith.constant 0 : index
    %8 = vector.load %arg7[%c0_6, %c0_7] : memref<16x1024xf32, #tpu.memory_space<vmem>>, vector<16x1024xf32>
    tpu.vector_store %arg7[%c0_6, %c0_7], %7 {strides = array<i32>} : memref<16x1024xf32, #tpu.memory_space<vmem>>, vector<16x1024xf32>,
    %c0_i32_8 = arith.constant 0 : i32
    %9 = arith.cmpi eq, %arg2, %c0_i32_8 : i32
    %10 = arith.extui %9 : i1 to i32
    %c0_i32_9 = arith.constant 0 : i32
    %11 = arith.cmpi ne, %10, %c0_i32_9 : i32
    scf.if %11 {
      %c0_10 = arith.constant 0 : index
      %c0_11 = arith.constant 0 : index
      %12 = vector.load %arg7[%c0_10, %c0_11] : memref<16x1024xf32, #tpu.memory_space<vmem>>, vector<16x1024xf32>
      %c0_12 = arith.constant 0 : index
      %c0_13 = arith.constant 0 : index
      %13 = vector.load %arg5[%c0_12, %c0_13] : memref<1x1024xf32, #tpu.memory_space<vmem>>, vector<1x1024xf32>
      %14 = vector.broadcast %13 : vector<1x1024xf32> to vector<16x1024xf32>
      %15 = arith.addf %12, %14 : vector<16x1024xf32>
      %16 = arith.mulf %15, %15 : vector<16x1024xf32>
      %17 = arith.mulf %15, %16 : vector<16x1024xf32>
      %cst_14 = arith.constant 4.471500e-02 : f32
      %18 = vector.broadcast %cst_14 : f32 to vector<16x1024xf32>
      %19 = arith.mulf %18, %17 : vector<16x1024xf32>
      %20 = arith.addf %15, %19 : vector<16x1024xf32>
      %cst_15 = arith.constant 0.797884583 : f32
      %21 = vector.broadcast %cst_15 : f32 to vector<16x1024xf32>
      %22 = arith.mulf %21, %20 : vector<16x1024xf32>
      %23 = math.tanh %22 : vector<16x1024xf32>
      %cst_16 = arith.constant 1.000000e+00 : f32
      %24 = vector.broadcast %cst_16 : f32 to vector<16x1024xf32>
      %25 = arith.addf %24, %23 : vector<16x1024xf32>
      %cst_17 = arith.constant 5.000000e-01 : f32
      %26 = vector.broadcast %cst_17 : f32 to vector<16x1024xf32>
      %27 = arith.mulf %26, %25 : vector<16x1024xf32>
      %28 = arith.mulf %15, %27 : vector<16x1024xf32>
      %29 = arith.truncf %28 : vector<16x1024xf32> to vector<16x1024xbf16>
      %c0_18 = arith.constant 0 : index
      %c0_19 = arith.constant 0 : index
      %30 = vector.load %arg6[%c0_18, %c0_19] : memref<16x1024xbf16, #tpu.memory_space<vmem>>, vector<16x1024xbf16>
      tpu.vector_store %arg6[%c0_18, %c0_19], %29 {strides = array<i32>} : memref<16x1024xbf16, #tpu.memory_space<vmem>>, vector<16x1024xbf16>,
    } else {
    }
    return
  }
  func.func @transform_0(%arg0: i32, %arg1: i32, %arg2: i32) -> (i32, i32) {
    %c0_i32 = arith.constant 0 : i32
    return %arg0, %arg2 : i32, i32
  }
  func.func @transform_1(%arg0: i32, %arg1: i32, %arg2: i32) -> (i32, i32) {
    %c0_i32 = arith.constant 0 : i32
    return %arg2, %arg1 : i32, i32
  }
  func.func @transform_2(%arg0: i32, %arg1: i32, %arg2: i32) -> (i32, i32) {
    %c0_i32 = arith.constant 0 : i32
    %c0_i32_0 = arith.constant 0 : i32
    return %c0_i32, %arg1 : i32, i32
  }
  func.func @transform_3(%arg0: i32, %arg1: i32, %arg2: i32) -> (i32, i32) {
    %c0_i32 = arith.constant 0 : i32
    return %arg0, %arg1 : i32, i32
  }
}

module attributes {stable_mosaic.version = 11 : i64} {
  func.func @_dense_res_ln_kernel(%arg0: i32, %arg1: i32, %arg2: memref<16x1024xbf16, #tpu.memory_space<vmem>>, %arg3: memref<1024x768xbf16, #tpu.memory_space<vmem>>, %arg4: memref<1x768xf32, #tpu.memory_space<vmem>>, %arg5: memref<16x768xbf16, #tpu.memory_space<vmem>>, %arg6: memref<1x768xf32, #tpu.memory_space<vmem>>, %arg7: memref<1x768xf32, #tpu.memory_space<vmem>>, %arg8: memref<16x768xbf16, #tpu.memory_space<vmem>>, %arg9: memref<16x768xf32, #tpu.memory_space<vmem>>) attributes {dimension_semantics = [#tpu.dimension_semantics<parallel>, #tpu.dimension_semantics<arbitrary>], iteration_bounds = array<i64: 1, 3>, scalar_prefetch = 0 : i64, scratch_operands = 1 : i64, tpu.core_type = #tpu.core_type<tc>, window_params = [{transform_indices = @transform_0, window_bounds = array<i64: 16, 1024>}, {transform_indices = @transform_1, window_bounds = array<i64: 1024, 768>}, {pipeline_mode = #tpu.pipeline_mode<synchronous>, transform_indices = @transform_2, window_bounds = array<i64: 1, 768>}, {transform_indices = @transform_3, window_bounds = array<i64: 16, 768>}, {pipeline_mode = #tpu.pipeline_mode<synchronous>, transform_indices = @transform_4, window_bounds = array<i64: 1, 768>}, {pipeline_mode = #tpu.pipeline_mode<synchronous>, transform_indices = @transform_5, window_bounds = array<i64: 1, 768>}, {transform_indices = @transform_6, window_bounds = array<i64: 16, 768>}]} {
    %c0_i32 = arith.constant 0 : i32
    %0 = arith.cmpi eq, %arg1, %c0_i32 : i32
    %1 = arith.extui %0 : i1 to i32
    %c0_i32_0 = arith.constant 0 : i32
    %2 = arith.cmpi ne, %1, %c0_i32_0 : i32
    scf.if %2 {
      %cst_9 = arith.constant 0.000000e+00 : f32
      %12 = vector.broadcast %cst_9 : f32 to vector<16x768xf32>
      %c0_10 = arith.constant 0 : index
      %c0_11 = arith.constant 0 : index
      %13 = vector.load %arg9[%c0_10, %c0_11] : memref<16x768xf32, #tpu.memory_space<vmem>>, vector<16x768xf32>
      tpu.vector_store %arg9[%c0_10, %c0_11], %12 {strides = array<i32>} : memref<16x768xf32, #tpu.memory_space<vmem>>, vector<16x768xf32>,
    } else {
    }
    %c0 = arith.constant 0 : index
    %c0_1 = arith.constant 0 : index
    %3 = vector.load %arg9[%c0, %c0_1] : memref<16x768xf32, #tpu.memory_space<vmem>>, vector<16x768xf32>
    %c0_2 = arith.constant 0 : index
    %c0_3 = arith.constant 0 : index
    %4 = vector.load %arg2[%c0_2, %c0_3] : memref<16x1024xbf16, #tpu.memory_space<vmem>>, vector<16x1024xbf16>
    %c0_4 = arith.constant 0 : index
    %c0_5 = arith.constant 0 : index
    %5 = vector.load %arg3[%c0_4, %c0_5] : memref<1024x768xbf16, #tpu.memory_space<vmem>>, vector<1024x768xbf16>
    %cst = arith.constant dense<0.000000e+00> : vector<16x768xf32>
    %6 = tpu.matmul %4, %5, %cst {dimension_numbers = #tpu.dot_dimension_numbers<[1], [0], [0], [1], [0, 0, 1, 1], [], []>} : vector<16x1024xbf16>, vector<1024x768xbf16>, vector<16x768xf32> -> vector<16x768xf32>
    %7 = arith.addf %3, %6 : vector<16x768xf32>
    %c0_6 = arith.constant 0 : index
    %c0_7 = arith.constant 0 : index
    %8 = vector.load %arg9[%c0_6, %c0_7] : memref<16x768xf32, #tpu.memory_space<vmem>>, vector<16x768xf32>
    tpu.vector_store %arg9[%c0_6, %c0_7], %7 {strides = array<i32>} : memref<16x768xf32, #tpu.memory_space<vmem>>, vector<16x768xf32>,
    %c2_i32 = arith.constant 2 : i32
    %9 = arith.cmpi eq, %arg1, %c2_i32 : i32
    %10 = arith.extui %9 : i1 to i32
    %c0_i32_8 = arith.constant 0 : i32
    %11 = arith.cmpi ne, %10, %c0_i32_8 : i32
    scf.if %11 {
      %c0_9 = arith.constant 0 : index
      %c0_10 = arith.constant 0 : index
      %12 = vector.load %arg9[%c0_9, %c0_10] : memref<16x768xf32, #tpu.memory_space<vmem>>, vector<16x768xf32>
      %c0_11 = arith.constant 0 : index
      %c0_12 = arith.constant 0 : index
      %13 = vector.load %arg4[%c0_11, %c0_12] : memref<1x768xf32, #tpu.memory_space<vmem>>, vector<1x768xf32>
      %14 = vector.broadcast %13 : vector<1x768xf32> to vector<16x768xf32>
      %15 = arith.addf %12, %14 : vector<16x768xf32>
      %c0_13 = arith.constant 0 : index
      %c0_14 = arith.constant 0 : index
      %16 = vector.load %arg5[%c0_13, %c0_14] : memref<16x768xbf16, #tpu.memory_space<vmem>>, vector<16x768xbf16>
      %17 = arith.extf %16 : vector<16x768xbf16> to vector<16x768xf32>
      %18 = arith.addf %15, %17 : vector<16x768xf32>
      %cst_15 = arith.constant dense<0.000000e+00> : vector<16xf32>
      %19 = vector.multi_reduction <add>, %18, %cst_15 [1] : vector<16x768xf32> to vector<16xf32>
      %20 = vector.shape_cast %19 : vector<16xf32> to vector<16x1xf32>
      %cst_16 = arith.constant 7.680000e+02 : f32
      %21 = vector.broadcast %cst_16 : f32 to vector<16x1xf32>
      %22 = arith.divf %20, %21 : vector<16x1xf32>
      %23 = vector.broadcast %22 : vector<16x1xf32> to vector<16x768xf32>
      %24 = arith.subf %18, %23 : vector<16x768xf32>
      %25 = arith.mulf %24, %24 : vector<16x768xf32>
      %cst_17 = arith.constant dense<0.000000e+00> : vector<16xf32>
      %26 = vector.multi_reduction <add>, %25, %cst_17 [1] : vector<16x768xf32> to vector<16xf32>
      %27 = vector.shape_cast %26 : vector<16xf32> to vector<16x1xf32>
      %cst_18 = arith.constant 7.680000e+02 : f32
      %28 = vector.broadcast %cst_18 : f32 to vector<16x1xf32>
      %29 = arith.divf %27, %28 : vector<16x1xf32>
      %cst_19 = arith.constant 9.99999974E-6 : f32
      %30 = vector.broadcast %cst_19 : f32 to vector<16x1xf32>
      %31 = arith.addf %29, %30 : vector<16x1xf32>
      %32 = math.rsqrt %31 : vector<16x1xf32>
      %33 = vector.broadcast %32 : vector<16x1xf32> to vector<16x768xf32>
      %34 = arith.mulf %24, %33 : vector<16x768xf32>
      %c0_20 = arith.constant 0 : index
      %c0_21 = arith.constant 0 : index
      %35 = vector.load %arg6[%c0_20, %c0_21] : memref<1x768xf32, #tpu.memory_space<vmem>>, vector<1x768xf32>
      %36 = vector.broadcast %35 : vector<1x768xf32> to vector<16x768xf32>
      %37 = arith.mulf %34, %36 : vector<16x768xf32>
      %c0_22 = arith.constant 0 : index
      %c0_23 = arith.constant 0 : index
      %38 = vector.load %arg7[%c0_22, %c0_23] : memref<1x768xf32, #tpu.memory_space<vmem>>, vector<1x768xf32>
      %39 = vector.broadcast %38 : vector<1x768xf32> to vector<16x768xf32>
      %40 = arith.addf %37, %39 : vector<16x768xf32>
      %41 = arith.truncf %40 : vector<16x768xf32> to vector<16x768xbf16>
      %c0_24 = arith.constant 0 : index
      %c0_25 = arith.constant 0 : index
      %42 = vector.load %arg8[%c0_24, %c0_25] : memref<16x768xbf16, #tpu.memory_space<vmem>>, vector<16x768xbf16>
      tpu.vector_store %arg8[%c0_24, %c0_25], %41 {strides = array<i32>} : memref<16x768xbf16, #tpu.memory_space<vmem>>, vector<16x768xbf16>,
    } else {
    }
    return
  }
  func.func @transform_0(%arg0: i32, %arg1: i32) -> (i32, i32) {
    %c0_i32 = arith.constant 0 : i32
    return %arg0, %arg1 : i32, i32
  }
  func.func @transform_1(%arg0: i32, %arg1: i32) -> (i32, i32) {
    %c0_i32 = arith.constant 0 : i32
    %c0_i32_0 = arith.constant 0 : i32
    return %arg1, %c0_i32 : i32, i32
  }
  func.func @transform_2(%arg0: i32, %arg1: i32) -> (i32, i32) {
    %c0_i32 = arith.constant 0 : i32
    %c0_i32_0 = arith.constant 0 : i32
    %c0_i32_1 = arith.constant 0 : i32
    return %c0_i32, %c0_i32_0 : i32, i32
  }
  func.func @transform_3(%arg0: i32, %arg1: i32) -> (i32, i32) {
    %c0_i32 = arith.constant 0 : i32
    %c0_i32_0 = arith.constant 0 : i32
    return %arg0, %c0_i32 : i32, i32
  }
  func.func @transform_4(%arg0: i32, %arg1: i32) -> (i32, i32) {
    %c0_i32 = arith.constant 0 : i32
    %c0_i32_0 = arith.constant 0 : i32
    %c0_i32_1 = arith.constant 0 : i32
    return %c0_i32, %c0_i32_0 : i32, i32
  }
  func.func @transform_5(%arg0: i32, %arg1: i32) -> (i32, i32) {
    %c0_i32 = arith.constant 0 : i32
    %c0_i32_0 = arith.constant 0 : i32
    %c0_i32_1 = arith.constant 0 : i32
    return %c0_i32, %c0_i32_0 : i32, i32
  }
  func.func @transform_6(%arg0: i32, %arg1: i32) -> (i32, i32) {
    %c0_i32 = arith.constant 0 : i32
    %c0_i32_0 = arith.constant 0 : i32
    return %arg0, %c0_i32 : i32, i32
  }
}

module attributes {stable_mosaic.version = 11 : i64} {
  func.func @_dense_res_ln_kernel(%arg0: i32, %arg1: i32, %arg2: memref<16x768xbf16, #tpu.memory_space<vmem>>, %arg3: memref<768x768xbf16, #tpu.memory_space<vmem>>, %arg4: memref<1x768xf32, #tpu.memory_space<vmem>>, %arg5: memref<16x768xbf16, #tpu.memory_space<vmem>>, %arg6: memref<1x768xf32, #tpu.memory_space<vmem>>, %arg7: memref<1x768xf32, #tpu.memory_space<vmem>>, %arg8: memref<16x768xbf16, #tpu.memory_space<vmem>>, %arg9: memref<16x768xf32, #tpu.memory_space<vmem>>) attributes {dimension_semantics = [#tpu.dimension_semantics<parallel>, #tpu.dimension_semantics<arbitrary>], iteration_bounds = array<i64: 1, 1>, scalar_prefetch = 0 : i64, scratch_operands = 1 : i64, tpu.core_type = #tpu.core_type<tc>, window_params = [{transform_indices = @transform_0, window_bounds = array<i64: 16, 768>}, {transform_indices = @transform_1, window_bounds = array<i64: 768, 768>}, {pipeline_mode = #tpu.pipeline_mode<synchronous>, transform_indices = @transform_2, window_bounds = array<i64: 1, 768>}, {transform_indices = @transform_3, window_bounds = array<i64: 16, 768>}, {pipeline_mode = #tpu.pipeline_mode<synchronous>, transform_indices = @transform_4, window_bounds = array<i64: 1, 768>}, {pipeline_mode = #tpu.pipeline_mode<synchronous>, transform_indices = @transform_5, window_bounds = array<i64: 1, 768>}, {transform_indices = @transform_6, window_bounds = array<i64: 16, 768>}]} {
    %c0_i32 = arith.constant 0 : i32
    %0 = arith.cmpi eq, %arg1, %c0_i32 : i32
    %1 = arith.extui %0 : i1 to i32
    %c0_i32_0 = arith.constant 0 : i32
    %2 = arith.cmpi ne, %1, %c0_i32_0 : i32
    scf.if %2 {
      %cst_10 = arith.constant 0.000000e+00 : f32
      %12 = vector.broadcast %cst_10 : f32 to vector<16x768xf32>
      %c0_11 = arith.constant 0 : index
      %c0_12 = arith.constant 0 : index
      %13 = vector.load %arg9[%c0_11, %c0_12] : memref<16x768xf32, #tpu.memory_space<vmem>>, vector<16x768xf32>
      tpu.vector_store %arg9[%c0_11, %c0_12], %12 {strides = array<i32>} : memref<16x768xf32, #tpu.memory_space<vmem>>, vector<16x768xf32>,
    } else {
    }
    %c0 = arith.constant 0 : index
    %c0_1 = arith.constant 0 : index
    %3 = vector.load %arg9[%c0, %c0_1] : memref<16x768xf32, #tpu.memory_space<vmem>>, vector<16x768xf32>
    %c0_2 = arith.constant 0 : index
    %c0_3 = arith.constant 0 : index
    %4 = vector.load %arg2[%c0_2, %c0_3] : memref<16x768xbf16, #tpu.memory_space<vmem>>, vector<16x768xbf16>
    %c0_4 = arith.constant 0 : index
    %c0_5 = arith.constant 0 : index
    %5 = vector.load %arg3[%c0_4, %c0_5] : memref<768x768xbf16, #tpu.memory_space<vmem>>, vector<768x768xbf16>
    %cst = arith.constant dense<0.000000e+00> : vector<16x768xf32>
    %6 = tpu.matmul %4, %5, %cst {dimension_numbers = #tpu.dot_dimension_numbers<[1], [0], [0], [1], [0, 0, 1, 1], [], []>} : vector<16x768xbf16>, vector<768x768xbf16>, vector<16x768xf32> -> vector<16x768xf32>
    %7 = arith.addf %3, %6 : vector<16x768xf32>
    %c0_6 = arith.constant 0 : index
    %c0_7 = arith.constant 0 : index
    %8 = vector.load %arg9[%c0_6, %c0_7] : memref<16x768xf32, #tpu.memory_space<vmem>>, vector<16x768xf32>
    tpu.vector_store %arg9[%c0_6, %c0_7], %7 {strides = array<i32>} : memref<16x768xf32, #tpu.memory_space<vmem>>, vector<16x768xf32>,
    %c0_i32_8 = arith.constant 0 : i32
    %9 = arith.cmpi eq, %arg1, %c0_i32_8 : i32
    %10 = arith.extui %9 : i1 to i32
    %c0_i32_9 = arith.constant 0 : i32
    %11 = arith.cmpi ne, %10, %c0_i32_9 : i32
    scf.if %11 {
      %c0_10 = arith.constant 0 : index
      %c0_11 = arith.constant 0 : index
      %12 = vector.load %arg9[%c0_10, %c0_11] : memref<16x768xf32, #tpu.memory_space<vmem>>, vector<16x768xf32>
      %c0_12 = arith.constant 0 : index
      %c0_13 = arith.constant 0 : index
      %13 = vector.load %arg4[%c0_12, %c0_13] : memref<1x768xf32, #tpu.memory_space<vmem>>, vector<1x768xf32>
      %14 = vector.broadcast %13 : vector<1x768xf32> to vector<16x768xf32>
      %15 = arith.addf %12, %14 : vector<16x768xf32>
      %c0_14 = arith.constant 0 : index
      %c0_15 = arith.constant 0 : index
      %16 = vector.load %arg5[%c0_14, %c0_15] : memref<16x768xbf16, #tpu.memory_space<vmem>>, vector<16x768xbf16>
      %17 = arith.extf %16 : vector<16x768xbf16> to vector<16x768xf32>
      %18 = arith.addf %15, %17 : vector<16x768xf32>
      %cst_16 = arith.constant dense<0.000000e+00> : vector<16xf32>
      %19 = vector.multi_reduction <add>, %18, %cst_16 [1] : vector<16x768xf32> to vector<16xf32>
      %20 = vector.shape_cast %19 : vector<16xf32> to vector<16x1xf32>
      %cst_17 = arith.constant 7.680000e+02 : f32
      %21 = vector.broadcast %cst_17 : f32 to vector<16x1xf32>
      %22 = arith.divf %20, %21 : vector<16x1xf32>
      %23 = vector.broadcast %22 : vector<16x1xf32> to vector<16x768xf32>
      %24 = arith.subf %18, %23 : vector<16x768xf32>
      %25 = arith.mulf %24, %24 : vector<16x768xf32>
      %cst_18 = arith.constant dense<0.000000e+00> : vector<16xf32>
      %26 = vector.multi_reduction <add>, %25, %cst_18 [1] : vector<16x768xf32> to vector<16xf32>
      %27 = vector.shape_cast %26 : vector<16xf32> to vector<16x1xf32>
      %cst_19 = arith.constant 7.680000e+02 : f32
      %28 = vector.broadcast %cst_19 : f32 to vector<16x1xf32>
      %29 = arith.divf %27, %28 : vector<16x1xf32>
      %cst_20 = arith.constant 9.99999974E-6 : f32
      %30 = vector.broadcast %cst_20 : f32 to vector<16x1xf32>
      %31 = arith.addf %29, %30 : vector<16x1xf32>
      %32 = math.rsqrt %31 : vector<16x1xf32>
      %33 = vector.broadcast %32 : vector<16x1xf32> to vector<16x768xf32>
      %34 = arith.mulf %24, %33 : vector<16x768xf32>
      %c0_21 = arith.constant 0 : index
      %c0_22 = arith.constant 0 : index
      %35 = vector.load %arg6[%c0_21, %c0_22] : memref<1x768xf32, #tpu.memory_space<vmem>>, vector<1x768xf32>
      %36 = vector.broadcast %35 : vector<1x768xf32> to vector<16x768xf32>
      %37 = arith.mulf %34, %36 : vector<16x768xf32>
      %c0_23 = arith.constant 0 : index
      %c0_24 = arith.constant 0 : index
      %38 = vector.load %arg7[%c0_23, %c0_24] : memref<1x768xf32, #tpu.memory_space<vmem>>, vector<1x768xf32>
      %39 = vector.broadcast %38 : vector<1x768xf32> to vector<16x768xf32>
      %40 = arith.addf %37, %39 : vector<16x768xf32>
      %41 = arith.truncf %40 : vector<16x768xf32> to vector<16x768xbf16>
      %c0_25 = arith.constant 0 : index
      %c0_26 = arith.constant 0 : index
      %42 = vector.load %arg8[%c0_25, %c0_26] : memref<16x768xbf16, #tpu.memory_space<vmem>>, vector<16x768xbf16>
      tpu.vector_store %arg8[%c0_25, %c0_26], %41 {strides = array<i32>} : memref<16x768xbf16, #tpu.memory_space<vmem>>, vector<16x768xbf16>,
    } else {
    }
    return
  }
  func.func @transform_0(%arg0: i32, %arg1: i32) -> (i32, i32) {
    %c0_i32 = arith.constant 0 : i32
    return %arg0, %arg1 : i32, i32
  }
  func.func @transform_1(%arg0: i32, %arg1: i32) -> (i32, i32) {
    %c0_i32 = arith.constant 0 : i32
    %c0_i32_0 = arith.constant 0 : i32
    return %arg1, %c0_i32 : i32, i32
  }
  func.func @transform_2(%arg0: i32, %arg1: i32) -> (i32, i32) {
    %c0_i32 = arith.constant 0 : i32
    %c0_i32_0 = arith.constant 0 : i32
    %c0_i32_1 = arith.constant 0 : i32
    return %c0_i32, %c0_i32_0 : i32, i32
  }
  func.func @transform_3(%arg0: i32, %arg1: i32) -> (i32, i32) {
    %c0_i32 = arith.constant 0 : i32
    %c0_i32_0 = arith.constant 0 : i32
    return %arg0, %c0_i32 : i32, i32
  }
  func.func @transform_4(%arg0: i32, %arg1: i32) -> (i32, i32) {
    %c0_i32 = arith.constant 0 : i32
    %c0_i32_0 = arith.constant 0 : i32
    %c0_i32_1 = arith.constant 0 : i32
    return %c0_i32, %c0_i32_0 : i32, i32
  }
  func.func @transform_5(%arg0: i32, %arg1: i32) -> (i32, i32) {
    %c0_i32 = arith.constant 0 : i32
    %c0_i32_0 = arith.constant 0 : i32
    %c0_i32_1 = arith.constant 0 : i32
    return %c0_i32, %c0_i32_0 : i32, i32
  }
  func.func @transform_6(%arg0: i32, %arg1: i32) -> (i32, i32) {
    %c0_i32 = arith.constant 0 : i32
    %c0_i32_0 = arith.constant 0 : i32
    return %arg0, %c0_i32 : i32, i32
  }
}

</mosaic_0001>

<bundles_post_ra>
// kernel: bert_classifier_forward.13
= control target key start
LH: loop header
LB: loop body
LE: loop exit
PB: predicated region body
PF: predicated region fallthrough
CT: control target
= control target key end

     0   :  { %s1186_s15 = smov 0   ;;  %s1188_s16 = smov 0   ;;  %s1341_s0 = inlined_call_operand.vmem [shape: bf16[2,8,2304], index: 0, kind: input, shape index: {}, may-alias: {0,1,2}]   ;;  %s1342_s1 = inlined_call_operand.vmem [shape: bf16[2,8,2304], index: 1, kind: input, shape index: {}, may-alias: {0,1,2}]   ;;  %s1343_s2 = inlined_call_operand.vmem [shape: bf16[2,8,2304], index: 2, kind: input, shape index: {}, may-alias: {0,1,2}]   ;;  %s1344_s3 = inlined_call_operand.vmem [shape: f32[2,1,8], index: 3, kind: input, shape index: {}]   ;;  %s1345_s4 = inlined_call_operand.vmem [shape: bf16[2,8,768], index: 4, kind: output, shape index: {}]  }
   0x1   :  { %s1190_s17 = smov 0   ;;  %s1192_s18 = smov 0  }
   0x2   :  { %s1194_s19 = smov 0  }
   0x3 LB: > { %s23_s20 = sadd.s32 1, %s1148_s17  ;;  %s26_s21 = sadd.s32 1, %s1152_s18  ;;  %s1156_s19 = sphi %s1194_s19, %s14_s19   ;;  %s1152_s18 = sphi %s1192_s18, %s1349_s18   ;;  %s1148_s17 = sphi %s1190_s17, %s1348_s17   ;;  %s1144_s16 = sphi %s1188_s16, %s1347_s16   ;;  %s1140_s15 = sphi %s1186_s15, %s1346_s15  }
   0x4   : > { %p24_p0 = scmp.ge.s32.totalorder %s23_s20, 3  ;;  %p957_p1 = scmp.ge.s32.totalorder %s1156_s19, 1 }
   0x5   : > { %p233_p2 = scmp.lt.s32.totalorder %s1156_s19, 7 }
   0x6   : > { %s1351_s20 = smov (%p24_p0, %s23_s20), 0  ;;  %s1353_s21 = smov (!%p24_p0, %s26_s21), %s1152_s18 }
   0x7   : > { %p234_p3 = pnand %p957_p1, %p233_p2  ;;  %p28_p4 = scmp.ge.s32.totalorder %s1353_s21, 2 }
   0x8   : > { %s1216_s22 = sshll.u32 (!%p234_p3), %s1140_s15, 1  ;;  %p291_p5 = scmp.lt.s32.totalorder (!%p234_p3), %s1144_s16, 1  ;;  %v1158_v0 = vmov (!%p234_p3), 0.0   ;;  %vm1159_vm0 = vmmov (!%p234_p3), 0   ;;  %vm350_vm1 = vcmask (!%p234_p3), 523264   ;;  %vm397_vm2 = vcmask (!%p234_p3), 64512  }
   0x9   : > { %s1355_s21 = smov (%p28_p4, %s1353_s21), 0  ;;  %237 = sbr.rel (%p234_p3) target bundleno = 1445 (0x5a5), region = 36 }
   0xa   : > { %1007 = vmatprep.subr.bf16.mxu0 (!%p234_p3), %v1158_v0  ;;  %s986_s23 = sadd.s32 (!%p234_p3), 6, %s1216_s22  ;;  %1009 = vmatprep.mubr.msk.bf16.mxu0 (!%p234_p3), %vm1159_vm0, %v1158_v0  ;;  %p293_p6 = scmp.lt.s32.totalorder (!%p234_p3), %s1216_s22, 17  ;;  %vm413_vm3 = vcmask (!%p234_p3), 1043456   ;;  %vm458_vm4 = vcmask (!%p234_p3), 519168   ;;  %vm586_vm5 = vcmask (!%p234_p3), 1043968  }
   0xb   : > { %1013 = vmatprep.subr.bf16.mxu1 (!%p234_p3), %v1158_v0  ;;  %1015 = vmatprep.mubr.msk.bf16.mxu1 (!%p234_p3), %vm1159_vm0, %v1158_v0  ;;  %p304_p7 = scmp.lt.s32.totalorder (!%p234_p3), %s986_s23, 17  ;;  %s1160_s13 = smov (!%p234_p3), 64  }
   0xc   : > { %s988_s14 = sadd.s32 (!%p234_p3), 12, %s1216_s22  ;;  %p330_p9 = scmp.lt.s32.totalorder (!%p234_p3), %s1216_s22, 5 }
   0xd   : > { %p316_p8 = scmp.lt.s32.totalorder (!%p234_p3), %s988_s14, 17 }
  0x10   : > { %s1357_s16 = smov (!%p291_p5, %s1144_s16), 1  ;;  %s1359_s23 = smov (!%p304_p7, %s986_s23), 17 }
  0x11   : > { %s1229_s24 = smul.u32 18, %s1357_s16  ;;  %s326_s12 = scalar_lea.vmem %s1344_s3, %s1357_s16 }
  0x12   : > { %s294_s25 = scalar_select %p293_p6, %s1216_s22, 17  ;;  %v1249_v5 = vld [vmem:[%s326_s12] ss:$0 sm:$0xff] }
  0x13   : > { %s307_s26 = sadd.s32 %s1229_s24, %s1359_s23  ;;  %s1361_s14 = smov (!%p316_p8, %s988_s14), 17 }
  0x14   : > { %s961_s27 = sshll.u32 %s307_s26, 2  ;;  %s296_s28 = sadd.s32 %s1229_s24, %s294_s25 }
  0x15   : > { %s309_s5 = scalar_lea.vmem %s1342_s1, %s961_s27  ;;  %s959_s6 = sshll.u32 %s296_s28, 2 }
  0x16   : > { %v341_v1 = vld [vmem:[%s309_s5] sm:$0xff]  ;;  %s298_s9 = scalar_lea.vmem %s1341_s0, %s959_s6  ;;  %s319_s15 = sadd.s32 %s1229_s24, %s1361_s14 }
  0x17   : > { %v355_v2 = vsel %vm350_vm1, %v341_v1, 0  ;;  %v339_v3 = vld [vmem:[%s298_s9] sm:$0xff]  ;;  %v970_v12 = vcombine.low %v341_v1, %v341_v1  ;;  %s963_s23 = sshll.u32 %s319_s15, 2  ;;  %v976_v20 = vcombine.high %v341_v1, %v341_v1  ;;  %s1056_s24 = smul.u32 6, %s1357_s16 }
  0x18   : > { %1008 = vmatpush3.bf16.xpose.msra.mxu0 %v355_v2  ;;  %v340_v4 = vmul.bf16 1040203264, %v339_v3  ;;  %s321_s27 = scalar_lea.vmem %s1343_s2, %s963_s23  ;;  %s1363_s22 = smov (!%p330_p9, %s1216_s22), 5 }
  0x19   : > { %1025 = vmatprep.subr.bf16.mxu0 %v1158_v0  ;;  %468 = vrot.lane.b32.xlu1 %v970_v12, %s1160_s13  ;;  %v1262_v21 = vld [vmem:[%s321_s27] sm:$0xff]  ;;  %v596_v30 = vsel %vm350_vm1, %v976_v20, 0  ;;  %s333_s28 = sadd.s32 %s1056_s24, %s1363_s22 }
  0x1a   : > { %v969_v13 = vcombine.low %v340_v4, %v340_v4  ;;  %v975_v14 = vcombine.high %v340_v4, %v340_v4  ;;  %v415_v22 = vsel %vm413_vm3, %v1262_v21, 0  ;;  %s965_s29 = sshll.u32 %s333_s28, 2  ;;  %v972_v57 = vcombine.low %v1262_v21, %v1262_v21 }
  0x1b   : > { %1014 = vmatpush3.bf16.msra.mxu1 %v415_v22  ;;  %s1289_s6 = scalar_lea.vmem %s1345_s4, %s965_s29  ;;  %v978_v12 = vcombine.high %v1262_v21, %v1262_v21 }
  0x1c   : > { %1019 = vmatprep.subr.bf16.mxu1 %v1158_v0 }
  0x1d   : > { %463 = vrot.lane.b32.xlu1 %v969_v13, %s1160_s13 }
  0x1f   : > { %1010 = vmatmul.mubr.msk.bf16.vlgmr.msra.gmra.mrb[0].mxu0 %vm350_vm1, %v340_v4 }
  0x20   : > { %1027 = vmatprep.mubr.msk.bf16.mxu0 %vm1159_vm0, %v1158_v0 }
  0x21   : > { %700 = vrot.lane.b32.xlu1 %v975_v14, %s1160_s13 }
  0x8b   : > { %v469_v25 = vpop.permute.xlu1 %468 }
  0x8c   : > { %v474_v27 = vsel %vm350_vm1, %v469_v25, 0 }
  0x8f   : > { %v464_v29 = vpop.permute.xlu1 %463 }
  0x93   : > { %v701_v33 = vpop.permute.xlu1 %700 }
  0xf2   : > { %v391_v6 = vpop.f32.mrb[0].mxu0 }
  0xf3   : > { %v392_v7 = vadd.f32 %v1249_v5, %v391_v6  ;;  %v1011_v8 = vpop.f32.mrb[1].mxu0 }
  0xf4   : > { %v394_v9 = vpop.f32.mrb[2].mxu0 }
  0xf5   : > { %v1012_v10 = vpop.f32.mrb[3].mxu0  ;;  %v398_v11 = vsel %vm397_vm2, %v392_v7, -inf }
  0xf6   : > { %399 = vmax.xlane.f32.xlu0 %v398_v11 }
 0x183   : > { %v400_v15 = vpop.xlane.xlu0 %399 }
 0x184   : > { %v401_v16 = vsub.f32 %v392_v7, %v400_v15 }
 0x186   : > { %v402_v17 = vmul.f32 1.442695, %v401_v16 }
 0x188   : > { %1102 = vpow2.f32 %v402_v17 }
 0x192   : > { %v1103_v18 = vpop.eup %1102 }
 0x193   : > { %v404_v19 = vsel %vm397_vm2, %v1103_v18, 0.0 }
 0x194   : > { %405 = vadd.xlane.f32.xlu0 %v404_v19 }
 0x1aa   : > { %702 = vrot.lane.b32.xlu0 %v976_v20, %s1160_s13 }
 0x221   : > { %v406_v23 = vpop.xlane.xlu0 %405 }
 0x222   : > { %1104 = vrcp.f32 %v406_v23 }
 0x225   : > { %v703_v31 = vpop.permute.xlu0 %702 }
 0x226   : > { %v708_v32 = vsel %vm350_vm1, %v703_v31, 0 }
 0x22c   : > { %v1105_v24 = vpop.eup %1104 }
 0x22d   : > { %v408_v26 = vmul.f32 %v1105_v24, %v1103_v18  ;;  %v656_v18 = vsel %vm413_vm3, %v978_v12, 0 }
 0x22f   : > { %v409_v28 = vpack.c.bf16 %v408_v26, %v408_v26 }
 0x231   : > { %1016 = vmatmul.mubr.msk.bf16.vlgmr.msra.gmra.mrb[0].mxu1 %vm397_vm2, %v409_v28 }
 0x232   : > { %1020 = vmatpush3.bf16.xpose.msra.mxu1 %v474_v27  ;;  %1021 = vmatprep.mubr.msk.bf16.mxu1 %vm1159_vm0, %v1158_v0 }
 0x233   : > { %1031 = vmatprep.subr.bf16.mxu1 %v1158_v0 }
 0x239   : > { %1022 = vmatmul.mubr.msk.bf16.vlgmr.msra.gmra.mrb[4].mxu1 %vm350_vm1, %v464_v29 }
 0x23a   : > { %1032 = vmatpush3.bf16.xpose.msra.mxu1 %v596_v30  ;;  %1033 = vmatprep.mubr.msk.bf16.mxu1 %vm1159_vm0, %v1158_v0 }
 0x23b   : > { %1043 = vmatprep.subr.bf16.mxu1 %v1158_v0 }
 0x241   : > { %1034 = vmatmul.mubr.msk.bf16.vlgmr.msra.gmra.mrb[8].mxu1 %vm350_vm1, %v975_v14 }
 0x242   : > { %1044 = vmatpush3.bf16.xpose.msra.mxu1 %v708_v32  ;;  %1045 = vmatprep.mubr.msk.bf16.mxu1 %vm1159_vm0, %v1158_v0 }
 0x249   : > { %1046 = vmatmul.mubr.msk.bf16.vlgmr.msra.gmra.mrb[12].mxu1 %vm350_vm1, %v701_v33 }
 0x304   : > { %v451_v34 = vpop.f32.mrb[0].mxu1 }
 0x305   : > { %v457_v35 = vpack.c.bf16 %v451_v34, %v451_v34  ;;  %v1017_v36 = vpop.f32.mrb[1].mxu1 }
 0x306   : > { %v454_v37 = vpop.f32.mrb[2].mxu1 }
 0x307   : > { %459 = vst.msk [vmem:[%s1289_s6] sm:$0xf] %vm458_vm4, %v457_v35  ;;  %v1018_v38 = vpop.f32.mrb[3].mxu1 }
 0x30c   : > { %v510_v39 = vpop.f32.mrb[4].mxu1 }
 0x30d   : > { %v511_v40 = vadd.f32 %v1249_v5, %v510_v39  ;;  %v1023_v41 = vpop.f32.mrb[5].mxu1 }
 0x30e   : > { %v513_v42 = vpop.f32.mrb[6].mxu1 }
 0x30f   : > { %v1024_v43 = vpop.f32.mrb[7].mxu1  ;;  %v516_v44 = vsel %vm397_vm2, %v511_v40, -inf }
 0x310   : > { %517 = vmax.xlane.f32.xlu1 %v516_v44 }
 0x314   : > { %v632_v45 = vpop.f32.mrb[8].mxu1 }
 0x315   : > { %v633_v46 = vadd.f32 %v1249_v5, %v632_v45  ;;  %v1035_v47 = vpop.f32.mrb[9].mxu1 }
 0x316   : > { %v635_v48 = vpop.f32.mrb[10].mxu1 }
 0x317   : > { %v1036_v49 = vpop.f32.mrb[11].mxu1  ;;  %v638_v50 = vsel %vm397_vm2, %v633_v46, -inf }
 0x318   : > { %639 = vmax.xlane.f32.xlu0 %v638_v50 }
 0x31c   : > { %v744_v51 = vpop.f32.mrb[12].mxu1 }
 0x31d   : > { %v745_v52 = vadd.f32 %v1249_v5, %v744_v51  ;;  %v1047_v53 = vpop.f32.mrb[13].mxu1 }
 0x31e   : > { %v747_v54 = vpop.f32.mrb[14].mxu1 }
 0x31f   : > { %v1048_v55 = vpop.f32.mrb[15].mxu1  ;;  %v750_v56 = vsel %vm397_vm2, %v745_v52, -inf }
 0x320   : > { %751 = vmax.xlane.f32.xlu1 %v750_v56 }
 0x32e   : > { %531 = vrot.lane.b32.xlu0 %v972_v57, %s1160_s13 }
 0x39d   : > { %v518_v58 = vpop.xlane.xlu1 %517 }
 0x39e   : > { %v519_v59 = vsub.f32 %v511_v40, %v518_v58 }
 0x3a0   : > { %v520_v60 = vmul.f32 1.442695, %v519_v59 }
 0x3a2   : > { %1106 = vpow2.f32 %v520_v60 }
 0x3a5   : > { %v640_v61 = vpop.xlane.xlu0 %639 }
 0x3a6   : > { %v641_v62 = vsub.f32 %v633_v46, %v640_v61 }
 0x3a8   : > { %v642_v63 = vmul.f32 1.442695, %v641_v62 }
 0x3a9   : > { %v532_v10 = vpop.permute.xlu0 %531 }
 0x3aa   : > { %1108 = vpow2.f32 %v642_v63  ;;  %v537_v11 = vsel %vm413_vm3, %v532_v10, 0 }
 0x3ab   : > { %1026 = vmatpush3.bf16.msra.mxu0 %v537_v11 }
 0x3ac   : > { %v1107_v1 = vpop.eup %1106  ;;  %1037 = vmatprep.subr.bf16.mxu0 %v1158_v0 }
 0x3ad   : > { %v752_v2 = vpop.xlane.xlu1 %751  ;;  %v522_v3 = vsel %vm397_vm2, %v1107_v1, 0.0 }
 0x3ae   : > { %v753_v4 = vsub.f32 %v745_v52, %v752_v2  ;;  %523 = vadd.xlane.f32.xlu1 %v522_v3 }
 0x3b0   : > { %v754_v5 = vmul.f32 1.442695, %v753_v4 }
 0x3b2   : > { %1110 = vpow2.f32 %v754_v5 }
 0x3b4   : > { %v1109_v6 = vpop.eup %1108 }
 0x3b5   : > { %v644_v7 = vsel %vm397_vm2, %v1109_v6, 0.0 }
 0x3b6   : > { %645 = vadd.xlane.f32.xlu1 %v644_v7 }
 0x3bc   : > { %v1111_v8 = vpop.eup %1110 }
 0x3bd   : > { %v756_v9 = vsel %vm397_vm2, %v1111_v8, 0.0 }
 0x3be   : > { %757 = vadd.xlane.f32.xlu1 %v756_v9 }
 0x3cf   : > { %762 = vrot.lane.b32.xlu1 %v978_v12, %s1160_s13 }
 0x43b   : > { %v524_v13 = vpop.xlane.xlu1 %523 }
 0x43c   : > { %1112 = vrcp.f32 %v524_v13 }
 0x443   : > { %v646_v14 = vpop.xlane.xlu1 %645 }
 0x444   : > { %1114 = vrcp.f32 %v646_v14 }
 0x446   : > { %v1113_v15 = vpop.eup %1112 }
 0x447   : > { %v526_v16 = vmul.f32 %v1113_v15, %v1107_v1 }
 0x449   : > { %v527_v17 = vpack.c.bf16 %v526_v16, %v526_v16 }
 0x44b   : > { %v758_v19 = vpop.xlane.xlu1 %757  ;;  %1028 = vmatmul.mubr.msk.bf16.vlgmr.msra.gmra.mrb[4].mxu0 %vm397_vm2, %v527_v17 }
 0x44c   : > { %1116 = vrcp.f32 %v758_v19  ;;  %1038 = vmatpush3.bf16.msra.mxu0 %v656_v18  ;;  %1039 = vmatprep.mubr.msk.bf16.mxu0 %vm1159_vm0, %v1158_v0 }
 0x44d   : > { %1049 = vmatprep.subr.bf16.mxu0 %v1158_v0 }
 0x44e   : > { %v1115_v20 = vpop.eup %1114 }
 0x44f   : > { %v648_v21 = vmul.f32 %v1115_v20, %v1109_v6  ;;  %v763_v22 = vpop.permute.xlu1 %762 }
 0x450   : > { %v768_v23 = vsel %vm413_vm3, %v763_v22, 0 }
 0x451   : > { %v649_v24 = vpack.c.bf16 %v648_v21, %v648_v21 }
 0x453   : > { %1040 = vmatmul.mubr.msk.bf16.vlgmr.msra.gmra.mrb[8].mxu0 %vm397_vm2, %v649_v24 }
 0x454   : > { %1050 = vmatpush3.bf16.msra.mxu0 %v768_v23  ;;  %1051 = vmatprep.mubr.msk.bf16.mxu0 %vm1159_vm0, %v1158_v0 }
 0x456   : > { %v1117_v25 = vpop.eup %1116 }
 0x457   : > { %v760_v26 = vmul.f32 %v1117_v25, %v1111_v8 }
 0x459   : > { %v761_v27 = vpack.c.bf16 %v760_v26, %v760_v26 }
 0x45b   : > { %1052 = vmatmul.mubr.msk.bf16.vlgmr.msra.gmra.mrb[12].mxu0 %vm397_vm2, %v761_v27 }
 0x51e   : > { %v573_v28 = vpop.f32.mrb[4].mxu0 }
 0x51f   : > { %v989_v29 = vpack.c.bf16 %v573_v28, %v573_v28  ;;  %v1029_v30 = vpop.f32.mrb[5].mxu0 }
 0x520   : > { %v576_v31 = vpop.f32.mrb[6].mxu0 }
 0x521   : > { %583 = vrot.lane.b32.xlu1 %v989_v29, %s1160_s13  ;;  %v1030_v32 = vpop.f32.mrb[7].mxu0 }
 0x526   : > { %v692_v33 = vpop.f32.mrb[8].mxu0 }
 0x527   : > { %v698_v34 = vpack.c.bf16 %v692_v33, %v692_v33  ;;  %v1041_v35 = vpop.f32.mrb[9].mxu0 }
 0x528   : > { %v695_v36 = vpop.f32.mrb[10].mxu0 }
 0x529   : > { %699 = vst.msk [vmem:[%s1289_s6 + $0x4] sm:$0xf] %vm458_vm4, %v698_v34  ;;  %v1042_v0 = vpop.f32.mrb[11].mxu0 }
 0x52e   : > { %v804_v37 = vpop.f32.mrb[12].mxu0 }
 0x52f   : > { %v990_v38 = vpack.c.bf16 %v804_v37, %v804_v37  ;;  %v1053_v39 = vpop.f32.mrb[13].mxu0 }
 0x530   : > { %v807_v40 = vpop.f32.mrb[14].mxu0 }
 0x531   : > { %814 = vrot.lane.b32.xlu0 %v990_v38, %s1160_s13  ;;  %v1054_v41 = vpop.f32.mrb[15].mxu0 }
 0x593   : > { %v584_v42 = vpop.permute.xlu1 %583 }
 0x594   : > { %587 = vst.msk [vmem:[%s1289_s6] sm:$0xf] %vm586_vm5, %v584_v42 }
 0x5a3   : > { %v815_v43 = vpop.permute.xlu0 %814 }
 0x5a4   : > { %817 = vst.msk [vmem:[%s1289_s6 + $0x4] sm:$0xf] %vm586_vm5, %v815_v43 }
 0x5a5 PF: > { %s14_s19 = sadd.s32 1, %s1156_s19   ;;  %s1346_s15 = smov %s1148_s17 }
 0x5a6   : > { %p11_p10 = scmp.ge.s32.totalorder %s14_s19, 8   ;;  %s1347_s16 = smov %s1152_s18 }
 0x5a7   : > { %s1348_s17 = smov %s1351_s20  ;;  %s1349_s18 = smov %s1355_s21 }
 0x5a8   :  { %13 = sbr.rel (!%p11_p10) target bundleno = 3 (0x3), region = 75 }

// kernel: bert_classifier_forward.11
= control target key start
LH: loop header
LB: loop body
LE: loop exit
PB: predicated region body
PF: predicated region fallthrough
CT: control target
= control target key end

     0   :  { %v101_v61 = vlaneseq  ;;  %s384_s0 = inlined_call_operand.vmem [shape: f32[16,768], index: 0, kind: input, shape index: {}]   ;;  %s385_s1 = inlined_call_operand.vmem [shape: f32[1,768], index: 1, kind: input, shape index: {}]   ;;  %s386_s2 = inlined_call_operand.vmem [shape: f32[1,768], index: 2, kind: input, shape index: {}]   ;;  %s387_s3 = inlined_call_operand.vmem [shape: bf16[16,768], index: 3, kind: output, shape index: {}]  }
   0x1   :  { %v14_v0 = vld [vmem:[%s384_s0] sm:$0xff]  ;;  %v15_v1 = vld [vmem:[%s384_s0 + $0x8] sm:$0xff]  ;;  %v16_v2 = vld [vmem:[%s384_s0 + $0x10] sm:$0xff] }
   0x2   :  { %v17_v3 = vld [vmem:[%s384_s0 + $0x18] sm:$0xff]  ;;  %v26_v4 = vadd.f32 %v15_v1, %v14_v0  ;;  %v20_v5 = vld [vmem:[%s384_s0 + $0x30] sm:$0xff]  ;;  %v22_v7 = vld [vmem:[%s384_s0 + $0x40] sm:$0xff] }
   0x3   :  { %v21_v6 = vld [vmem:[%s384_s0 + $0x38] sm:$0xff]  ;;  %v18_v10 = vld [vmem:[%s384_s0 + $0x20] sm:$0xff]  ;;  %v23_v11 = vld [vmem:[%s384_s0 + $0x48] sm:$0xff] }
   0x4   :  { %v27_v8 = vadd.f32 %v26_v4, %v16_v2  ;;  %v33_v9 = vadd.f32 %v21_v6, %v20_v5  ;;  %v19_v14 = vld [vmem:[%s384_s0 + $0x28] sm:$0xff]  ;;  %v24_v15 = vld [vmem:[%s384_s0 + $0x50] sm:$0xff]  ;;  %v25_v18 = vld [vmem:[%s384_s0 + $0x58] sm:$0xff] }
   0x6   :  { %v28_v12 = vadd.f32 %v27_v8, %v17_v3  ;;  %v34_v13 = vadd.f32 %v33_v9, %v22_v7 }
   0x8   :  { %v29_v16 = vadd.f32 %v28_v12, %v18_v10  ;;  %v35_v17 = vadd.f32 %v34_v13, %v23_v11 }
   0xa   :  { %v30_v19 = vadd.f32 %v29_v16, %v19_v14  ;;  %v36_v20 = vadd.f32 %v35_v17, %v24_v15 }
   0xc   :  { %31 = vadd.xlane.f32.xlu0 %v30_v19  ;;  %v37_v21 = vadd.f32 %v36_v20, %v25_v18 }
  0x10   :  { %38 = vadd.xlane.f32.xlu0 %v37_v21 }
  0x99   :  { %v32_v22 = vpop.xlane.xlu0 %31 }
  0x9a   :  { %v41_v23 = vmul.f32 0.0013020834, %v32_v22 }
  0x9c   :  { %v305_v24 = vsub.f32 %v14_v0, %v41_v23  ;;  %v307_v25 = vsub.f32 %v15_v1, %v41_v23  ;;  %v309_v26 = vsub.f32 %v16_v2, %v41_v23  ;;  %v311_v28 = vsub.f32 %v17_v3, %v41_v23 }
  0x9d   :  { %v39_v27 = vpop.xlane.xlu0 %38  ;;  %v317_v32 = vsub.f32 %v18_v10, %v41_v23  ;;  %v48_v38 = vsub.f32 %v19_v14, %v41_v23  ;;  %v102_v1 = vshrl.u32 %v101_v61, 7 }
  0x9e   :  { %v42_v29 = vmul.f32 0.0013020834, %v39_v27  ;;  %v55_v30 = vmul.f32 %v305_v24, %v305_v24  ;;  %v56_v31 = vmul.f32 %v307_v25, %v307_v25  ;;  %v57_v33 = vmul.f32 %v309_v26, %v309_v26 }
  0x9f   :  { %v58_v39 = vmul.f32 %v311_v28, %v311_v28  ;;  %v59_v44 = vmul.f32 %v317_v32, %v317_v32  ;;  %v60_v49 = vmul.f32 %v48_v38, %v48_v38  ;;  %v103_v4 = vsub.s32 0, %v102_v1 }
  0xa0   :  { %v67_v34 = vadd.f32 %v56_v31, %v55_v30  ;;  %v321_v35 = vsub.f32 %v20_v5, %v42_v29  ;;  %v323_v36 = vsub.f32 %v21_v6, %v42_v29  ;;  %v325_v37 = vsub.f32 %v22_v7, %v42_v29  ;;  %v99_v6 = vld [vmem:[%s385_s1] sm:$0x3f] }
  0xa1   :  { %v329_v41 = vsub.f32 %v23_v11, %v42_v29  ;;  %v337_v46 = vsub.f32 %v24_v15, %v42_v29  ;;  %v341_v51 = vsub.f32 %v25_v18, %v42_v29  ;;  %v107_v5 = vsub.s32 1, %v102_v1  ;;  %v143_v11 = vld [vmem:[%s386_s2] sm:$0x3f] }
  0xa2   :  { %v68_v40 = vadd.f32 %v67_v34, %v57_v33  ;;  %v61_v42 = vmul.f32 %v321_v35, %v321_v35  ;;  %v62_v43 = vmul.f32 %v323_v36, %v323_v36  ;;  %v63_v47 = vmul.f32 %v325_v37, %v325_v37 }
  0xa3   :  { %v64_v52 = vmul.f32 %v329_v41, %v329_v41  ;;  %v65_v55 = vmul.f32 %v337_v46, %v337_v46  ;;  %v66_v57 = vmul.f32 %v341_v51, %v341_v51  ;;  %v111_v7 = vsub.s32 2, %v102_v1 }
  0xa4   :  { %v69_v45 = vadd.f32 %v68_v40, %v58_v39  ;;  %v74_v48 = vadd.f32 %v62_v43, %v61_v42  ;;  %v115_v8 = vsub.s32 3, %v102_v1  ;;  %v119_v9 = vsub.s32 4, %v102_v1 }
  0xa5   :  { %v123_v10 = vsub.s32 5, %v102_v1  ;;  %v104_v12 = vrot.slane %v99_v6, %v103_v4  ;;  %v108_v13 = vrot.slane %v99_v6, %v107_v5  ;;  %v112_v14 = vrot.slane %v99_v6, %v111_v7 }
  0xa6   :  { %v70_v50 = vadd.f32 %v69_v45, %v59_v44  ;;  %v75_v53 = vadd.f32 %v74_v48, %v63_v47  ;;  %v116_v15 = vrot.slane %v99_v6, %v115_v8  ;;  %v120_v16 = vrot.slane %v99_v6, %v119_v9 }
  0xa7   :  { %v124_v17 = vrot.slane %v99_v6, %v123_v10  ;;  %v148_v19 = vrot.slane %v143_v11, %v103_v4  ;;  %v152_v20 = vrot.slane %v143_v11, %v107_v5  ;;  %v156_v21 = vrot.slane %v143_v11, %v111_v7 }
  0xa8   :  { %v71_v54 = vadd.f32 %v70_v50, %v60_v49  ;;  %v76_v56 = vadd.f32 %v75_v53, %v64_v52  ;;  %v160_v22 = vrot.slane %v143_v11, %v115_v8  ;;  %v164_v31 = vrot.slane %v143_v11, %v119_v9 }
  0xa9   :  { %v168_v33 = vrot.slane %v143_v11, %v123_v10 }
  0xaa   :  { %72 = vadd.xlane.f32.xlu1 %v71_v54  ;;  %v77_v58 = vadd.f32 %v76_v56, %v65_v55 }
  0xac   :  { %v78_v59 = vadd.f32 %v77_v58, %v66_v57 }
  0xae   :  { %79 = vadd.xlane.f32.xlu1 %v78_v59 }
 0x137   :  { %v73_v60 = vpop.xlane.xlu1 %72 }
 0x138   :  { %v81_v62 = vmul.f32 0.0013020834, %v73_v60 }
 0x13a   :  { %v83_v63 = vadd.f32 1e-05, %v81_v62 }
 0x13b   :  { %v80_v0 = vpop.xlane.xlu1 %79 }
 0x13c   :  { %245 = vrsqrt.f32 %v83_v63  ;;  %v82_v2 = vmul.f32 0.0013020834, %v80_v0 }
 0x13e   :  { %v84_v3 = vadd.f32 1e-05, %v82_v2 }
 0x140   :  { %247 = vrsqrt.f32 %v84_v3 }
 0x146   :  { %v246_v18 = vpop.eup %245 }
 0x147   :  { %v87_v23 = vmul.f32 %v246_v18, %v305_v24  ;;  %v88_v27 = vmul.f32 %v246_v18, %v307_v25  ;;  %v89_v29 = vmul.f32 %v246_v18, %v309_v26  ;;  %v90_v30 = vmul.f32 %v246_v18, %v311_v28 }
 0x148   :  { %v91_v34 = vmul.f32 %v246_v18, %v317_v32  ;;  %v92_v39 = vmul.f32 %v246_v18, %v48_v38 }
 0x149   :  { %v131_v40 = vmul.f32 %v104_v12, %v87_v23  ;;  %v132_v42 = vmul.f32 %v108_v13, %v88_v27  ;;  %v133_v43 = vmul.f32 %v112_v14, %v89_v29  ;;  %v134_v44 = vmul.f32 %v116_v15, %v90_v30 }
 0x14a   :  { %v248_v45 = vpop.eup %247  ;;  %v135_v47 = vmul.f32 %v120_v16, %v91_v34  ;;  %v136_v48 = vmul.f32 %v124_v17, %v92_v39 }
 0x14b   :  { %v175_v49 = vadd.f32 %v148_v19, %v131_v40  ;;  %v176_v24 = vadd.f32 %v152_v20, %v132_v42  ;;  %v177_v50 = vadd.f32 %v156_v21, %v133_v43  ;;  %v178_v25 = vadd.f32 %v160_v22, %v134_v44 }
 0x14c   :  { %v179_v52 = vadd.f32 %v164_v31, %v135_v47  ;;  %v180_v26 = vadd.f32 %v168_v33, %v136_v48  ;;  %v93_v28 = vmul.f32 %v248_v45, %v321_v35  ;;  %v94_v53 = vmul.f32 %v248_v45, %v323_v36 }
 0x14d   :  { %v239_v54 = vpack.c.bf16 %v176_v24, %v175_v49  ;;  %v240_v32 = vpack.c.bf16 %v178_v25, %v177_v50  ;;  %v95_v38 = vmul.f32 %v248_v45, %v325_v37  ;;  %v96_v55 = vmul.f32 %v248_v45, %v329_v41 }
 0x14e   :  { %v241_v56 = vpack.c.bf16 %v180_v26, %v179_v52  ;;  %v97_v57 = vmul.f32 %v248_v45, %v337_v46  ;;  %v98_v58 = vmul.f32 %v248_v45, %v341_v51  ;;  %v137_v59 = vmul.f32 %v104_v12, %v93_v28 }
 0x14f   :  { %223 = vst [vmem:[%s387_s3] sm:$0xff] %v239_v54  ;;  %224 = vst [vmem:[%s387_s3 + $0x8] sm:$0xff] %v240_v32  ;;  %v138_v35 = vmul.f32 %v108_v13, %v94_v53  ;;  %v139_v36 = vmul.f32 %v112_v14, %v95_v38  ;;  %v140_v60 = vmul.f32 %v116_v15, %v96_v55 }
 0x150   :  { %225 = vst [vmem:[%s387_s3 + $0x10] sm:$0xff] %v241_v56  ;;  %v141_v37 = vmul.f32 %v120_v16, %v97_v57  ;;  %v142_v41 = vmul.f32 %v124_v17, %v98_v58  ;;  %v181_v46 = vadd.f32 %v148_v19, %v137_v59 }
 0x151   :  { %v182_v51 = vadd.f32 %v152_v20, %v138_v35  ;;  %v183_v61 = vadd.f32 %v156_v21, %v139_v36  ;;  %v184_v62 = vadd.f32 %v160_v22, %v140_v60 }
 0x152   :  { %v185_v63 = vadd.f32 %v164_v31, %v141_v37  ;;  %v186_v0 = vadd.f32 %v168_v33, %v142_v41 }
 0x153   :  { %v242_v1 = vpack.c.bf16 %v182_v51, %v181_v46  ;;  %v243_v2 = vpack.c.bf16 %v184_v62, %v183_v61 }
 0x154   :  { %v244_v3 = vpack.c.bf16 %v186_v0, %v185_v63 }
 0x155   :  { %226 = vst [vmem:[%s387_s3 + $0x18] sm:$0xff] %v242_v1  ;;  %227 = vst [vmem:[%s387_s3 + $0x20] sm:$0xff] %v243_v2 }
 0x156   :  { %228 = vst [vmem:[%s387_s3 + $0x28] sm:$0xff] %v244_v3 }

// kernel: bert_classifier_forward.12
= control target key start
LH: loop header
LB: loop body
LE: loop exit
PB: predicated region body
PF: predicated region fallthrough
CT: control target
= control target key end

     0   :  { %8 = vsyncpa [#allocation4], 0  ;;  %s4176_s0 = inlined_call_operand.vmem [shape: bf16[16,768], index: 0, kind: input, shape index: {}]   ;;  %s4177_s1 = inlined_call_operand.hbm [shape: bf16[768,2304], index: 1, kind: input, shape index: {}]   ;;  %s4178_s2 = inlined_call_operand.vmem [shape: f32[1,2304], index: 2, kind: input, shape index: {}]   ;;  %s4179_s3 = inlined_call_operand.vmem [shape: bf16[16,2304], index: 3, kind: output, shape index: {}]  }
   0x1   :  { %10 = vsyncpa [#allocation4 + $0x1], 0  ;;  %s3680_s12 = smov 0   ;;  %s3682_s13 = smov 0  }
   0x2   :  { %s3684_s14 = smov 0   ;;  %s3686_s15 = smov 0  }
   0x3   :  { %s3688_s16 = smov 0   ;;  %s3690_s17 = smov 0  }
   0x4 LB: > { %s2728_s18 = sadd.s32 4294967295, %s3654_s17   ;;  %s31_s19 = sadd.s32 1, %s3650_s16  ;;  %s3654_s17 = sphi %s3690_s17, %s16_s17   ;;  %s3650_s16 = sphi %s3688_s16, %s4190_s16   ;;  %s3646_s15 = sphi %s3686_s15, %s4189_s15   ;;  %s3642_s14 = sphi %s3684_s14, %s4188_s14   ;;  %s3638_s13 = sphi %s3682_s13, %s4187_s13   ;;  %s3634_s12 = sphi %s3680_s12, %s4186_s12  }
   0x5   : > { %p33_p0 = scmp.ge.s32.totalorder %s31_s19, 3  ;;  %s72_s20 = sadd.s32 1, %s3642_s14 }
   0x6   : > { %p79_p1 = scmp.ne.s32.totalorder %s3642_s14, %s3638_s13  ;;  %p80_p2 = scmp.eq.s32.totalorder %s3654_s17, 0 }
   0x7   : > { %s4192_s19 = smov (%p33_p0, %s31_s19), 0  ;;  %p85_p4 = scmp.ne.s32.totalorder %s3638_s13, %s3634_s12 }
   0x8   : > { %p3716_p3 = por %p80_p2, %p79_p1  ;;  %s68_s22 = ssub.s32 %s3650_s16, %s4192_s19 }
   0x9   : > { %p86_p5 = scmp.eq.s32.totalorder %s2728_s18, 0  ;;  %p70_p6 = scmp.eq.s32.totalorder %s68_s22, 0 }
   0xa   : > { %p137_p7 = scmp.eq.s32.totalorder %s2728_s18, 2  ;;  %p3079_p10 = scmp.lt.s32.totalorder %s3654_s17, 3 }
   0xb   : > { %p3723_p8 = por %p86_p5, %p85_p4  ;;  %s178_s26 = sand.u32 1, %s3642_s14  }
   0xc   : > { %s3728_s24 = scalar_select %p70_p6, %s3642_s14, %s72_s20  }
   0xd   : > { %p3730_p9 = por %p137_p7, %p79_p1  ;;  %s3038_s27 = smul.u32 384, %s3650_s16 }
   0xe   : > { %s3070_s28 = smul.u32 2304, %s178_s26  ;;  %p3744_p11 = pnand %p3079_p10, %p3716_p3 }
   0xf   : > { %s4182_s25 = scalar_select %p3730_p9, 1, 0 }
  0x10   : > { %s3740_s4 = scalar_lea.hbm %s4177_s1, %s3038_s27  ;;  %s182_s6 = scalar_lea.vmem [#allocation3], %s3070_s28 }
  0x11   : > { %s192_s7 = sshll.u32 %s182_s6, 4  ;;  %s3751_s8 = scalar_lea.sflag [#allocation4], %s178_s26  ;;  %s3748_s7 = int_to_ptr.vmem [resolvable:$true] %s192_s7 }
  0x12   : > { %s3574_s9 = scalar_lea.hbm %s3740_s4, 36864  ;;  %p3576_p0 = pneg %p3744_p11 }
  0x13   : > { %p3575_p13 = scmp.ne.s32.totalorder %s3740_s4, %s3574_s9  ;;  %s3579_s12 = scalar_lea.hbm %s4177_s1, 110592 }
  0x14   : > { %p3580_p3 = scmp.lt.u32.totalorder %s3740_s4, %s4177_s1  ;;  %p3581_p4 = scmp.lt.u32.totalorder %s3579_s12, %s3574_s9 }
  0x15   : > { %p3577_p1 = pnand %p3576_p0, %p3575_p13  ;;  %p3583_p6 = scmp.lt.u32.totalorder %s3574_s9, %s3740_s4 }
  0x16   : > { %p3582_p5 = por %p3581_p4, %p3580_p3 }
  0x17   : > { %p3578_p2 = pneg %p3577_p1 }
  0x18   : > { %p3584_p7 = por %p3583_p6, %p3582_p5 }
  0x1a   : > { %p3585_p10 = pnand %p3584_p7, %p3578_p2 }
  0x1c   : > { %3588 = shalt.err (!%p3585_p10)
}
  0x1d   : > { %s3589_s21 = scalar_lea.vmem %s3748_s7, 36864  ;;  %s3656_s22 = smov [#allocation3]  }
  0x1e   : > { %p3590_p13 = scmp.ne.s32.totalorder %s3748_s7, %s3589_s21  ;;  %s3594_s26 = sshll.u32 %s3656_s22, 4  ;;  %s3595_s26 = int_to_ptr.vmem [resolvable:$false] %s3594_s26 }
  0x1f   : > { %s3596_s27 = scalar_lea.vmem %s3595_s26, 73728  ;;  %p3597_p9 = scmp.lt.s32.totalorder %s3748_s7, %s3595_s26 }
  0x20   : > { %p3592_p1 = pnand %p3590_p13, %p3576_p0  ;;  %p3598_p3 = scmp.lt.s32.totalorder %s3596_s27, %s3589_s21 }
  0x22   : > { %p3593_p12 = pneg %p3592_p1  ;;  %p3599_p4 = por %p3598_p3, %p3597_p9 }
  0x24   : > { %p3600_p5 = pnand %p3599_p4, %p3593_p12 }
  0x26   : > { %3603 = shalt.err (!%p3600_p5)
}
  0x27   : > { %s3657_s28 = smov 1152   ;;  %s3658_s29 = smov 384  }
  0x28   : > { %s3659_s30 = smov 24   ;;  %p208_p0 = scmp.lt.s32.totalorder %s3654_s17, 4 }
  0x29   : > { %3078 = dma.hbm_to_vmem [thread:$0]  (!%p3744_p11), %s3740_s4, 36864, %s3748_s7, %s3751_s8, %s3657_s28, %s3658_s29, %s3659_s30  }
  0x2a   : > { %p4184_p2 = scmp.ge.s32.totalorder %s3654_s17, 1 }
  0x2c   : > { %p209_p6 = pnand %p4184_p2, %p208_p0 }
  0x2d   : > { %s3783_s6 = sand.u32 (!%p209_p6), 1, %s3638_s13  }
  0x2e   : > { %212 = sbr.rel (%p209_p6) target bundleno = 604 (0x25c), region = 32  ;;  %s215_s10 = scalar_lea.sflag (!%p209_p6), [#allocation4], %s3783_s6 }
  0x2f   : > { %s3071_s9 = smul.u32 (!%p209_p6), 2304, %s3783_s6 }
  0x31   : > { %s3787_s11 = scalar_lea.vmem (!%p209_p6), [#allocation3], %s3071_s9 }
  0x35   : > { %3629 = dma.done.wait (%p3723_p8), %s215_s10, 36864  }
  0x36   : > { %3631 = vsyncadd (%p3723_p8), %s215_s10, 4294930432  ;;  %v3131_v0 = vld [vmem:[%s3787_s11 + $0x4] ss:$24 sps:$4 sm:$0xff]   ;;  %v3135_v2 = vld [vmem:[%s3787_s11] ss:$24 sps:$4 sm:$0xff]   ;;  %s268_s10 = smul.u32 6, %s3646_s15 }
  0x37   : > { %v3133_v1 = vld [vmem:[%s3787_s11 + $0x304] ss:$24 sps:$4 sm:$0xff]   ;;  %2067 = vmatprep.subr.bf16.mxu1 %v3131_v0  ;;  %v3136_v3 = vld [vmem:[%s3787_s11 + $0x300] ss:$24 sps:$4 sm:$0xff]   ;;  %v3137_v4 = vld [vmem:[%s3787_s11 + $0x34] ss:$24 sps:$4 sm:$0xff]  }
  0x38   : > { %2110 = vmatprep.subr.bf16.mxu0 %v3133_v1  ;;  %2068 = vmatpush1.bf16.msra.mxu1 %v3135_v2  ;;  %v3139_v5 = vld [vmem:[%s3787_s11 + $0x334] ss:$24 sps:$4 sm:$0xff]   ;;  %v3141_v6 = vld [vmem:[%s3787_s11 + $0x30] ss:$24 sps:$4 sm:$0xff]   ;;  %v3143_v8 = vld [vmem:[%s3787_s11 + $0x64] ss:$24 sps:$4 sm:$0xff]  }
  0x39   : > { %2111 = vmatpush1.bf16.msra.mxu0 %v3136_v3  ;;  %2069 = vmatprep.subr.bf16.mxu1 %v3137_v4  ;;  %v3142_v7 = vld [vmem:[%s3787_s11 + $0x330] ss:$24 sps:$4 sm:$0xff]   ;;  %v3145_v9 = vld [vmem:[%s3787_s11 + $0x364] ss:$24 sps:$4 sm:$0xff]   ;;  %v3147_v10 = vld [vmem:[%s3787_s11 + $0x60] ss:$24 sps:$4 sm:$0xff]  }
  0x3a   : > { %2112 = vmatprep.subr.bf16.mxu0 %v3139_v5  ;;  %v3148_v11 = vld [vmem:[%s3787_s11 + $0x360] ss:$24 sps:$4 sm:$0xff]   ;;  %v3149_v12 = vld [vmem:[%s3787_s11 + $0x94] ss:$24 sps:$4 sm:$0xff]   ;;  %v3153_v14 = vld [vmem:[%s3787_s11 + $0x90] ss:$24 sps:$4 sm:$0xff]  }
  0x3b   : > { %v3151_v13 = vld [vmem:[%s3787_s11 + $0x394] ss:$24 sps:$4 sm:$0xff]   ;;  %v3154_v15 = vld [vmem:[%s3787_s11 + $0x390] ss:$24 sps:$4 sm:$0xff]   ;;  %v3155_v16 = vld [vmem:[%s3787_s11 + $0xc4] ss:$24 sps:$4 sm:$0xff]  }
  0x3c   : > { %2070 = vmatpush1.bf16.msra.mxu1 %v3141_v6  ;;  %v3157_v17 = vld [vmem:[%s3787_s11 + $0x3c4] ss:$24 sps:$4 sm:$0xff]   ;;  %v3159_v18 = vld [vmem:[%s3787_s11 + $0xc0] ss:$24 sps:$4 sm:$0xff]   ;;  %v3161_v20 = vld [vmem:[%s3787_s11 + $0xf4] ss:$24 sps:$4 sm:$0xff]  }
  0x3d   : > { %2113 = vmatpush1.bf16.msra.mxu0 %v3142_v7  ;;  %2071 = vmatprep.subr.bf16.mxu1 %v3143_v8  ;;  %v3160_v19 = vld [vmem:[%s3787_s11 + $0x3c0] ss:$24 sps:$4 sm:$0xff]   ;;  %v3163_v21 = vld [vmem:[%s3787_s11 + $0x3f4] ss:$24 sps:$4 sm:$0xff]   ;;  %v3165_v22 = vld [vmem:[%s3787_s11 + $0xf0] ss:$24 sps:$4 sm:$0xff]  }
  0x3e   : > { %2114 = vmatprep.subr.bf16.mxu0 %v3145_v9  ;;  %v3166_v23 = vld [vmem:[%s3787_s11 + $0x3f0] ss:$24 sps:$4 sm:$0xff]   ;;  %v3167_v24 = vld [vmem:[%s3787_s11 + $0x124] ss:$24 sps:$4 sm:$0xff]   ;;  %v3171_v26 = vld [vmem:[%s3787_s11 + $0x120] ss:$24 sps:$4 sm:$0xff]  }
  0x3f   : > { %v3169_v25 = vld [vmem:[%s3787_s11 + $0x424] ss:$24 sps:$4 sm:$0xff]   ;;  %v3172_v27 = vld [vmem:[%s3787_s11 + $0x420] ss:$24 sps:$4 sm:$0xff]   ;;  %v3173_v28 = vld [vmem:[%s3787_s11 + $0x154] ss:$24 sps:$4 sm:$0xff]  }
  0x40   : > { %2072 = vmatpush1.bf16.msra.mxu1 %v3147_v10  ;;  %v3175_v29 = vld [vmem:[%s3787_s11 + $0x454] ss:$24 sps:$4 sm:$0xff]   ;;  %v3177_v30 = vld [vmem:[%s3787_s11 + $0x150] ss:$24 sps:$4 sm:$0xff]   ;;  %v3179_v32 = vld [vmem:[%s3787_s11 + $0x184] ss:$24 sps:$4 sm:$0xff]  }
  0x41   : > { %2115 = vmatpush1.bf16.msra.mxu0 %v3148_v11  ;;  %2073 = vmatprep.subr.bf16.mxu1 %v3149_v12  ;;  %v3178_v31 = vld [vmem:[%s3787_s11 + $0x450] ss:$24 sps:$4 sm:$0xff]   ;;  %v3181_v33 = vld [vmem:[%s3787_s11 + $0x484] ss:$24 sps:$4 sm:$0xff]   ;;  %v3183_v34 = vld [vmem:[%s3787_s11 + $0x180] ss:$24 sps:$4 sm:$0xff]  }
  0x42   : > { %2116 = vmatprep.subr.bf16.mxu0 %v3151_v13  ;;  %v3184_v35 = vld [vmem:[%s3787_s11 + $0x480] ss:$24 sps:$4 sm:$0xff]   ;;  %v3185_v36 = vld [vmem:[%s3787_s11 + $0x1b4] ss:$24 sps:$4 sm:$0xff]   ;;  %v3189_v38 = vld [vmem:[%s3787_s11 + $0x1b0] ss:$24 sps:$4 sm:$0xff]  }
  0x43   : > { %v3187_v37 = vld [vmem:[%s3787_s11 + $0x4b4] ss:$24 sps:$4 sm:$0xff]   ;;  %v3190_v39 = vld [vmem:[%s3787_s11 + $0x4b0] ss:$24 sps:$4 sm:$0xff]   ;;  %v3191_v40 = vld [vmem:[%s3787_s11 + $0x1e4] ss:$24 sps:$4 sm:$0xff]  }
  0x44   : > { %2074 = vmatpush1.bf16.msra.mxu1 %v3153_v14  ;;  %v3193_v41 = vld [vmem:[%s3787_s11 + $0x4e4] ss:$24 sps:$4 sm:$0xff]   ;;  %v3195_v42 = vld [vmem:[%s3787_s11 + $0x1e0] ss:$24 sps:$4 sm:$0xff]   ;;  %v3197_v44 = vld [vmem:[%s3787_s11 + $0x214] ss:$24 sps:$4 sm:$0xff]  }
  0x45   : > { %2117 = vmatpush1.bf16.msra.mxu0 %v3154_v15  ;;  %2075 = vmatprep.subr.bf16.mxu1 %v3155_v16  ;;  %v3196_v43 = vld [vmem:[%s3787_s11 + $0x4e0] ss:$24 sps:$4 sm:$0xff]   ;;  %v3199_v45 = vld [vmem:[%s3787_s11 + $0x514] ss:$24 sps:$4 sm:$0xff]   ;;  %v3201_v46 = vld [vmem:[%s3787_s11 + $0x210] ss:$24 sps:$4 sm:$0xff]  }
  0x46   : > { %2118 = vmatprep.subr.bf16.mxu0 %v3157_v17  ;;  %v3202_v47 = vld [vmem:[%s3787_s11 + $0x510] ss:$24 sps:$4 sm:$0xff]   ;;  %v3844_v48 = vld [vmem:[%s4176_s0 + $0x4] ss:$24 sps:$4 sm:$0xff]   ;;  %v3207_v52 = vld [vmem:[%s3787_s11 + $0x240] ss:$24 sps:$4 sm:$0xff]  }
  0x47   : > { %v3849_v49 = vld [vmem:[%s4176_s0 + $0xc] ss:$24 sps:$4 sm:$0xff]   ;;  %2099 = vmatprep.mubr.bf16.mxu1 %v3844_v48  ;;  %v3208_v53 = vld [vmem:[%s3787_s11 + $0x540] ss:$24 sps:$4 sm:$0xff]   ;;  %v3213_v56 = vld [vmem:[%s3787_s11 + $0x270] ss:$24 sps:$4 sm:$0xff]  }
  0x48   : > { %2076 = vmatpush1.bf16.msra.mxu1 %v3159_v18  ;;  %v3203_v50 = vld [vmem:[%s3787_s11 + $0x244] ss:$24 sps:$4 sm:$0xff]   ;;  %2142 = vmatprep.mubr.bf16.mxu0 %v3849_v49  ;;  %v3209_v54 = vld [vmem:[%s3787_s11 + $0x274] ss:$24 sps:$4 sm:$0xff]   ;;  %v3214_v57 = vld [vmem:[%s3787_s11 + $0x570] ss:$24 sps:$4 sm:$0xff]  }
  0x49   : > { %2119 = vmatpush1.bf16.msra.mxu0 %v3160_v19  ;;  %2077 = vmatprep.subr.bf16.mxu1 %v3161_v20  ;;  %v3205_v51 = vld [vmem:[%s3787_s11 + $0x544] ss:$24 sps:$4 sm:$0xff]   ;;  %v3211_v55 = vld [vmem:[%s3787_s11 + $0x574] ss:$24 sps:$4 sm:$0xff]   ;;  %v3219_v60 = vld [vmem:[%s3787_s11 + $0x2a0] ss:$24 sps:$4 sm:$0xff]  }
  0x4a   : > { %2120 = vmatprep.subr.bf16.mxu0 %v3163_v21  ;;  %v3215_v58 = vld [vmem:[%s3787_s11 + $0x2a4] ss:$24 sps:$4 sm:$0xff]   ;;  %v3220_v61 = vld [vmem:[%s3787_s11 + $0x5a0] ss:$24 sps:$4 sm:$0xff]   ;;  %v3221_v62 = vld [vmem:[%s3787_s11 + $0x2d4] ss:$24 sps:$4 sm:$0xff]  }
  0x4b   : > { %v3217_v59 = vld [vmem:[%s3787_s11 + $0x5a4] ss:$24 sps:$4 sm:$0xff]   ;;  %v3223_v63 = vld [vmem:[%s3787_s11 + $0x5d4] ss:$24 sps:$4 sm:$0xff]   ;;  %v3225_v0 = vld [vmem:[%s3787_s11 + $0x2d0] ss:$24 sps:$4 sm:$0xff]  }
  0x4c   : > { %2078 = vmatpush1.bf16.msra.mxu1 %v3165_v22  ;;  %v3226_v1 = vld [vmem:[%s3787_s11 + $0x5d0] ss:$24 sps:$4 sm:$0xff]   ;;  %v3233_v2 = vld [vmem:[%s3787_s11 + $0x604] ss:$24 sps:$4 sm:$0xff]   ;;  %v3231_v4 = vld [vmem:[%s3787_s11 + $0x600] ss:$24 sps:$4 sm:$0xff]  }
  0x4d   : > { %2121 = vmatpush1.bf16.msra.mxu0 %v3166_v23  ;;  %2079 = vmatprep.subr.bf16.mxu1 %v3167_v24  ;;  %v3236_v3 = vld [vmem:[%s3787_s11 + $0xc] ss:$24 sps:$4 sm:$0xff]   ;;  %v3234_v5 = vld [vmem:[%s3787_s11 + $0x8] ss:$24 sps:$4 sm:$0xff]   ;;  %v3244_v9 = vld [vmem:[%s3787_s11 + $0x3c] ss:$24 sps:$4 sm:$0xff]  }
  0x4e   : > { %2122 = vmatprep.subr.bf16.mxu0 %v3169_v25  ;;  %v3876_v6 = vld [vmem:[%s4176_s0] ss:$24 sps:$4 sm:$0xff]   ;;  %v3241_v8 = vld [vmem:[%s3787_s11 + $0x634] ss:$24 sps:$4 sm:$0xff]   ;;  %v3239_v10 = vld [vmem:[%s3787_s11 + $0x630] ss:$24 sps:$4 sm:$0xff]  }
  0x4f   : > { %v3881_v7 = vld [vmem:[%s4176_s0 + $0x8] ss:$24 sps:$4 sm:$0xff]   ;;  %v3242_v11 = vld [vmem:[%s3787_s11 + $0x38] ss:$24 sps:$4 sm:$0xff]   ;;  %v3247_v12 = vld [vmem:[%s3787_s11 + $0x664] ss:$24 sps:$4 sm:$0xff]  }
  0x50   : > { %2080 = vmatpush1.bf16.msra.mxu1 %v3171_v26  ;;  %v3250_v13 = vld [vmem:[%s3787_s11 + $0x6c] ss:$24 sps:$4 sm:$0xff]   ;;  %v3245_v14 = vld [vmem:[%s3787_s11 + $0x660] ss:$24 sps:$4 sm:$0xff]   ;;  %v3256_v17 = vld [vmem:[%s3787_s11 + $0x9c] ss:$24 sps:$4 sm:$0xff]  }
  0x51   : > { %2123 = vmatpush1.bf16.msra.mxu0 %v3172_v27  ;;  %2081 = vmatprep.subr.bf16.mxu1 %v3173_v28  ;;  %v3248_v15 = vld [vmem:[%s3787_s11 + $0x68] ss:$24 sps:$4 sm:$0xff]   ;;  %v3253_v16 = vld [vmem:[%s3787_s11 + $0x694] ss:$24 sps:$4 sm:$0xff]   ;;  %v3254_v19 = vld [vmem:[%s3787_s11 + $0x98] ss:$24 sps:$4 sm:$0xff]  }
  0x52   : > { %2124 = vmatprep.subr.bf16.mxu0 %v3175_v29  ;;  %v3251_v18 = vld [vmem:[%s3787_s11 + $0x690] ss:$24 sps:$4 sm:$0xff]   ;;  %v3259_v20 = vld [vmem:[%s3787_s11 + $0x6c4] ss:$24 sps:$4 sm:$0xff]   ;;  %v3257_v22 = vld [vmem:[%s3787_s11 + $0x6c0] ss:$24 sps:$4 sm:$0xff]  }
  0x53   : > { %v3262_v21 = vld [vmem:[%s3787_s11 + $0xcc] ss:$24 sps:$4 sm:$0xff]   ;;  %v3260_v23 = vld [vmem:[%s3787_s11 + $0xc8] ss:$24 sps:$4 sm:$0xff]   ;;  %v3268_v25 = vld [vmem:[%s3787_s11 + $0xfc] ss:$24 sps:$4 sm:$0xff]  }
  0x54   : > { %2082 = vmatpush1.bf16.msra.mxu1 %v3177_v30  ;;  %v3265_v24 = vld [vmem:[%s3787_s11 + $0x6f4] ss:$24 sps:$4 sm:$0xff]   ;;  %v3263_v26 = vld [vmem:[%s3787_s11 + $0x6f0] ss:$24 sps:$4 sm:$0xff]   ;;  %v3271_v28 = vld [vmem:[%s3787_s11 + $0x724] ss:$24 sps:$4 sm:$0xff]  }
  0x55   : > { %2125 = vmatpush1.bf16.msra.mxu0 %v3178_v31  ;;  %2083 = vmatprep.subr.bf16.mxu1 %v3179_v32  ;;  %v3266_v27 = vld [vmem:[%s3787_s11 + $0xf8] ss:$24 sps:$4 sm:$0xff]   ;;  %v3274_v29 = vld [vmem:[%s3787_s11 + $0x12c] ss:$24 sps:$4 sm:$0xff]   ;;  %v3272_v31 = vld [vmem:[%s3787_s11 + $0x128] ss:$24 sps:$4 sm:$0xff]  }
  0x56   : > { %2126 = vmatprep.subr.bf16.mxu0 %v3181_v33  ;;  %v3269_v30 = vld [vmem:[%s3787_s11 + $0x720] ss:$24 sps:$4 sm:$0xff]   ;;  %v3277_v32 = vld [vmem:[%s3787_s11 + $0x754] ss:$24 sps:$4 sm:$0xff]   ;;  %p269_p8 = scmp.lt.s32.totalorder %s268_s10, 17  ;;  %p4185_p9 = scmp.ne.s32.totalorder %s4182_s25, 0 }
  0x57   : > { %v3280_v33 = vld [vmem:[%s3787_s11 + $0x15c] ss:$24 sps:$4 sm:$0xff]  }
  0x58   : > { %2084 = vmatpush1.bf16.msra.mxu1 %v3183_v34  ;;  %v3915_v34 = vld [vmem:[%s4176_s0 + $0x14] ss:$24 sps:$4 sm:$0xff]   ;;  %s4194_s10 = smov (!%p269_p8, %s268_s10), 17 }
  0x59   : > { %2127 = vmatpush1.bf16.msra.mxu0 %v3184_v35  ;;  %2085 = vmatprep.subr.bf16.mxu1 %v3185_v36  ;;  %v3275_v35 = vld [vmem:[%s3787_s11 + $0x750] ss:$24 sps:$4 sm:$0xff]   ;;  %s271_s5 = scalar_lea.vmem %s4178_s2, %s4194_s10 }
  0x5a   : > { %2128 = vmatprep.subr.bf16.mxu0 %v3187_v37  ;;  %v3278_v36 = vld [vmem:[%s3787_s11 + $0x158] ss:$24 sps:$4 sm:$0xff]   ;;  %v3283_v37 = vld [vmem:[%s3787_s11 + $0x784] ss:$24 sps:$4 sm:$0xff]  }
  0x5c   : > { %2086 = vmatpush1.bf16.msra.mxu1 %v3189_v38  ;;  %v3286_v38 = vld [vmem:[%s3787_s11 + $0x18c] ss:$24 sps:$4 sm:$0xff]  }
  0x5d   : > { %2129 = vmatpush1.bf16.msra.mxu0 %v3190_v39  ;;  %2087 = vmatprep.subr.bf16.mxu1 %v3191_v40  ;;  %v3281_v39 = vld [vmem:[%s3787_s11 + $0x780] ss:$24 sps:$4 sm:$0xff]  }
  0x5e   : > { %2130 = vmatprep.subr.bf16.mxu0 %v3193_v41  ;;  %v3284_v40 = vld [vmem:[%s3787_s11 + $0x188] ss:$24 sps:$4 sm:$0xff]   ;;  %v3289_v41 = vld [vmem:[%s3787_s11 + $0x7b4] ss:$24 sps:$4 sm:$0xff]  }
  0x60   : > { %2088 = vmatpush1.bf16.msra.mxu1 %v3195_v42  ;;  %v3292_v42 = vld [vmem:[%s3787_s11 + $0x1bc] ss:$24 sps:$4 sm:$0xff]  }
  0x61   : > { %2131 = vmatpush1.bf16.msra.mxu0 %v3196_v43  ;;  %2089 = vmatprep.subr.bf16.mxu1 %v3197_v44  ;;  %v3287_v43 = vld [vmem:[%s3787_s11 + $0x7b0] ss:$24 sps:$4 sm:$0xff]  }
  0x62   : > { %2132 = vmatprep.subr.bf16.mxu0 %v3199_v45  ;;  %v3290_v44 = vld [vmem:[%s3787_s11 + $0x1b8] ss:$24 sps:$4 sm:$0xff]   ;;  %v3295_v45 = vld [vmem:[%s3787_s11 + $0x7e4] ss:$24 sps:$4 sm:$0xff]  }
  0x64   : > { %2090 = vmatpush1.bf16.msra.mxu1 %v3201_v46  ;;  %v3298_v46 = vld [vmem:[%s3787_s11 + $0x1ec] ss:$24 sps:$4 sm:$0xff]  }
  0x65   : > { %2133 = vmatpush1.bf16.msra.mxu0 %v3202_v47  ;;  %2091 = vmatprep.subr.bf16.mxu1 %v3203_v50  ;;  %v3293_v47 = vld [vmem:[%s3787_s11 + $0x7e0] ss:$24 sps:$4 sm:$0xff]  }
  0x66   : > { %2134 = vmatprep.subr.bf16.mxu0 %v3205_v51  ;;  %v3296_v50 = vld [vmem:[%s3787_s11 + $0x1e8] ss:$24 sps:$4 sm:$0xff]   ;;  %v3301_v51 = vld [vmem:[%s3787_s11 + $0x814] ss:$24 sps:$4 sm:$0xff]  }
  0x68   : > { %2092 = vmatpush1.bf16.msra.mxu1 %v3207_v52  ;;  %v3304_v52 = vld [vmem:[%s3787_s11 + $0x21c] ss:$24 sps:$4 sm:$0xff]  }
  0x69   : > { %2135 = vmatpush1.bf16.msra.mxu0 %v3208_v53  ;;  %2093 = vmatprep.subr.bf16.mxu1 %v3209_v54  ;;  %v3299_v53 = vld [vmem:[%s3787_s11 + $0x810] ss:$24 sps:$4 sm:$0xff]  }
  0x6a   : > { %2136 = vmatprep.subr.bf16.mxu0 %v3211_v55  ;;  %v3302_v54 = vld [vmem:[%s3787_s11 + $0x218] ss:$24 sps:$4 sm:$0xff]   ;;  %v3307_v55 = vld [vmem:[%s3787_s11 + $0x844] ss:$24 sps:$4 sm:$0xff]  }
  0x6c   : > { %2094 = vmatpush1.bf16.msra.mxu1 %v3213_v56  ;;  %v3310_v56 = vld [vmem:[%s3787_s11 + $0x24c] ss:$24 sps:$4 sm:$0xff]  }
  0x6d   : > { %2137 = vmatpush1.bf16.msra.mxu0 %v3214_v57  ;;  %2095 = vmatprep.subr.bf16.mxu1 %v3215_v58  ;;  %v3305_v57 = vld [vmem:[%s3787_s11 + $0x840] ss:$24 sps:$4 sm:$0xff]  }
  0x6e   : > { %2138 = vmatprep.subr.bf16.mxu0 %v3217_v59  ;;  %v3308_v58 = vld [vmem:[%s3787_s11 + $0x248] ss:$24 sps:$4 sm:$0xff]   ;;  %v3313_v59 = vld [vmem:[%s3787_s11 + $0x874] ss:$24 sps:$4 sm:$0xff]  }
  0x70   : > { %2096 = vmatpush1.bf16.msra.mxu1 %v3219_v60  ;;  %v3316_v60 = vld [vmem:[%s3787_s11 + $0x27c] ss:$24 sps:$4 sm:$0xff]  }
  0x71   : > { %2139 = vmatpush1.bf16.msra.mxu0 %v3220_v61  ;;  %2097 = vmatprep.subr.bf16.mxu1 %v3221_v62  ;;  %v3311_v61 = vld [vmem:[%s3787_s11 + $0x870] ss:$24 sps:$4 sm:$0xff]  }
  0x72   : > { %2140 = vmatprep.subr.bf16.mxu0 %v3223_v63  ;;  %v3314_v62 = vld [vmem:[%s3787_s11 + $0x278] ss:$24 sps:$4 sm:$0xff]   ;;  %v3319_v63 = vld [vmem:[%s3787_s11 + $0x8a4] ss:$24 sps:$4 sm:$0xff]  }
  0x74   : > { %2098 = vmatpush1.bf16.msra.mxu1 %v3225_v0  ;;  %v3322_v0 = vld [vmem:[%s3787_s11 + $0x2ac] ss:$24 sps:$4 sm:$0xff]  }
  0x75   : > { %2141 = vmatpush1.bf16.msra.mxu0 %v3226_v1  ;;  %2196 = vmatprep.subr.bf16.mxu1 %v3236_v3  ;;  %v3317_v1 = vld [vmem:[%s3787_s11 + $0x8a0] ss:$24 sps:$4 sm:$0xff]   ;;  %v3325_v3 = vld [vmem:[%s3787_s11 + $0x8d4] ss:$24 sps:$4 sm:$0xff]  }
  0x76   : > { %2153 = vmatprep.subr.bf16.mxu0 %v3233_v2  ;;  %v3320_v2 = vld [vmem:[%s3787_s11 + $0x2a8] ss:$24 sps:$4 sm:$0xff]  }
  0x77   : > { %2100 = vmatmul.mubr.bf16.vlgmr.msra.gmra.mrb[0].mxu1 %v3876_v6 }
  0x78   : > { %2143 = vmatmul.mubr.bf16.vlgmr.msra.gmra.mrb[0].mxu0 %v3881_v7  ;;  %2197 = vmatpush1.bf16.msra.mxu1 %v3234_v5  ;;  %v3323_v5 = vld [vmem:[%s3787_s11 + $0x8d0] ss:$24 sps:$4 sm:$0xff]  }
  0x79   : > { %2154 = vmatpush1.bf16.msra.mxu0 %v3231_v4  ;;  %2198 = vmatprep.subr.bf16.mxu1 %v3244_v9  ;;  %v3328_v4 = vld [vmem:[%s3787_s11 + $0x2dc] ss:$24 sps:$4 sm:$0xff]   ;;  %v3334_v9 = vld [vmem:[%s3787_s11 + $0x30c] ss:$24 sps:$4 sm:$0xff]  }
  0x7a   : > { %2155 = vmatprep.subr.bf16.mxu0 %v3241_v8  ;;  %2228 = vmatprep.mubr.bf16.mxu1 %v3844_v48  ;;  %v3326_v8 = vld [vmem:[%s3787_s11 + $0x2d8] ss:$24 sps:$4 sm:$0xff]  }
  0x7b   : > { %2185 = vmatprep.mubr.bf16.mxu0 %v3915_v34 }
  0x7c   : > { %2199 = vmatpush1.bf16.msra.mxu1 %v3242_v11  ;;  %v3957_v11 = vld [vmem:[%s4176_s0 + $0x10] ss:$24 sps:$4 sm:$0xff]  }
  0x7d   : > { %2156 = vmatpush1.bf16.msra.mxu0 %v3239_v10  ;;  %2200 = vmatprep.subr.bf16.mxu1 %v3250_v13  ;;  %v3337_v10 = vld [vmem:[%s3787_s11 + $0x14] ss:$24 sps:$4 sm:$0xff]   ;;  %v3335_v13 = vld [vmem:[%s3787_s11 + $0x10] ss:$24 sps:$4 sm:$0xff]  }
  0x7e   : > { %2157 = vmatprep.subr.bf16.mxu0 %v3247_v12  ;;  %v3332_v12 = vld [vmem:[%s3787_s11 + $0x308] ss:$24 sps:$4 sm:$0xff]  }
  0x80   : > { %2201 = vmatpush1.bf16.msra.mxu1 %v3248_v15  ;;  %v3343_v15 = vld [vmem:[%s3787_s11 + $0x44] ss:$24 sps:$4 sm:$0xff]  }
  0x81   : > { %2158 = vmatpush1.bf16.msra.mxu0 %v3245_v14  ;;  %2202 = vmatprep.subr.bf16.mxu1 %v3256_v17  ;;  %v3340_v14 = vld [vmem:[%s3787_s11 + $0x33c] ss:$24 sps:$4 sm:$0xff]   ;;  %v3341_v17 = vld [vmem:[%s3787_s11 + $0x40] ss:$24 sps:$4 sm:$0xff]  }
  0x82   : > { %2159 = vmatprep.subr.bf16.mxu0 %v3253_v16  ;;  %v3338_v16 = vld [vmem:[%s3787_s11 + $0x338] ss:$24 sps:$4 sm:$0xff]  }
  0x84   : > { %2203 = vmatpush1.bf16.msra.mxu1 %v3254_v19  ;;  %v3349_v19 = vld [vmem:[%s3787_s11 + $0x74] ss:$24 sps:$4 sm:$0xff]  }
  0x85   : > { %2160 = vmatpush1.bf16.msra.mxu0 %v3251_v18  ;;  %2204 = vmatprep.subr.bf16.mxu1 %v3262_v21  ;;  %v3346_v18 = vld [vmem:[%s3787_s11 + $0x36c] ss:$24 sps:$4 sm:$0xff]   ;;  %v3347_v21 = vld [vmem:[%s3787_s11 + $0x70] ss:$24 sps:$4 sm:$0xff]  }
  0x86   : > { %2161 = vmatprep.subr.bf16.mxu0 %v3259_v20  ;;  %v3344_v20 = vld [vmem:[%s3787_s11 + $0x368] ss:$24 sps:$4 sm:$0xff]  }
  0x88   : > { %2205 = vmatpush1.bf16.msra.mxu1 %v3260_v23  ;;  %v3355_v23 = vld [vmem:[%s3787_s11 + $0xa4] ss:$24 sps:$4 sm:$0xff]  }
  0x89   : > { %2162 = vmatpush1.bf16.msra.mxu0 %v3257_v22  ;;  %2206 = vmatprep.subr.bf16.mxu1 %v3268_v25  ;;  %v3352_v22 = vld [vmem:[%s3787_s11 + $0x39c] ss:$24 sps:$4 sm:$0xff]   ;;  %v3353_v25 = vld [vmem:[%s3787_s11 + $0xa0] ss:$24 sps:$4 sm:$0xff]  }
  0x8a   : > { %2163 = vmatprep.subr.bf16.mxu0 %v3265_v24  ;;  %v3350_v24 = vld [vmem:[%s3787_s11 + $0x398] ss:$24 sps:$4 sm:$0xff]  }
  0x8c   : > { %2207 = vmatpush1.bf16.msra.mxu1 %v3266_v27  ;;  %v3359_v27 = vld [vmem:[%s3787_s11 + $0xd0] ss:$24 sps:$4 sm:$0xff]  }
  0x8d   : > { %2164 = vmatpush1.bf16.msra.mxu0 %v3263_v26  ;;  %2208 = vmatprep.subr.bf16.mxu1 %v3274_v29  ;;  %v3356_v26 = vld [vmem:[%s3787_s11 + $0x3c8] ss:$24 sps:$4 sm:$0xff]   ;;  %v3367_v29 = vld [vmem:[%s3787_s11 + $0x104] ss:$24 sps:$4 sm:$0xff]  }
  0x8e   : > { %2165 = vmatprep.subr.bf16.mxu0 %v3271_v28  ;;  %v3364_v28 = vld [vmem:[%s3787_s11 + $0x3fc] ss:$24 sps:$4 sm:$0xff]  }
  0x90   : > { %2209 = vmatpush1.bf16.msra.mxu1 %v3272_v31  ;;  %v3365_v31 = vld [vmem:[%s3787_s11 + $0x100] ss:$24 sps:$4 sm:$0xff]  }
  0x91   : > { %2166 = vmatpush1.bf16.msra.mxu0 %v3269_v30  ;;  %2210 = vmatprep.subr.bf16.mxu1 %v3280_v33  ;;  %v3362_v30 = vld [vmem:[%s3787_s11 + $0x3f8] ss:$24 sps:$4 sm:$0xff]   ;;  %v3373_v33 = vld [vmem:[%s3787_s11 + $0x134] ss:$24 sps:$4 sm:$0xff]  }
  0x92   : > { %2167 = vmatprep.subr.bf16.mxu0 %v3277_v32  ;;  %v3370_v32 = vld [vmem:[%s3787_s11 + $0x42c] ss:$24 sps:$4 sm:$0xff]  }
  0x94   : > { %2211 = vmatpush1.bf16.msra.mxu1 %v3278_v36  ;;  %v3371_v36 = vld [vmem:[%s3787_s11 + $0x130] ss:$24 sps:$4 sm:$0xff]  }
  0x95   : > { %2168 = vmatpush1.bf16.msra.mxu0 %v3275_v35  ;;  %2212 = vmatprep.subr.bf16.mxu1 %v3286_v38  ;;  %v3368_v35 = vld [vmem:[%s3787_s11 + $0x428] ss:$24 sps:$4 sm:$0xff]   ;;  %v3379_v38 = vld [vmem:[%s3787_s11 + $0x164] ss:$24 sps:$4 sm:$0xff]  }
  0x96   : > { %2169 = vmatprep.subr.bf16.mxu0 %v3283_v37  ;;  %v3376_v37 = vld [vmem:[%s3787_s11 + $0x45c] ss:$24 sps:$4 sm:$0xff]  }
  0x98   : > { %2213 = vmatpush1.bf16.msra.mxu1 %v3284_v40  ;;  %v3377_v40 = vld [vmem:[%s3787_s11 + $0x160] ss:$24 sps:$4 sm:$0xff]  }
  0x99   : > { %2170 = vmatpush1.bf16.msra.mxu0 %v3281_v39  ;;  %2214 = vmatprep.subr.bf16.mxu1 %v3292_v42  ;;  %v3374_v39 = vld [vmem:[%s3787_s11 + $0x458] ss:$24 sps:$4 sm:$0xff]   ;;  %v3385_v42 = vld [vmem:[%s3787_s11 + $0x194] ss:$24 sps:$4 sm:$0xff]  }
  0x9a   : > { %2171 = vmatprep.subr.bf16.mxu0 %v3289_v41  ;;  %v3382_v41 = vld [vmem:[%s3787_s11 + $0x48c] ss:$24 sps:$4 sm:$0xff]  }
  0x9c   : > { %2215 = vmatpush1.bf16.msra.mxu1 %v3290_v44  ;;  %v3383_v44 = vld [vmem:[%s3787_s11 + $0x190] ss:$24 sps:$4 sm:$0xff]  }
  0x9d   : > { %2172 = vmatpush1.bf16.msra.mxu0 %v3287_v43  ;;  %2216 = vmatprep.subr.bf16.mxu1 %v3298_v46  ;;  %v3380_v43 = vld [vmem:[%s3787_s11 + $0x488] ss:$24 sps:$4 sm:$0xff]   ;;  %v3391_v46 = vld [vmem:[%s3787_s11 + $0x1c4] ss:$24 sps:$4 sm:$0xff]  }
  0x9e   : > { %2173 = vmatprep.subr.bf16.mxu0 %v3295_v45  ;;  %v3388_v45 = vld [vmem:[%s3787_s11 + $0x4bc] ss:$24 sps:$4 sm:$0xff]  }
  0xa0   : > { %2217 = vmatpush1.bf16.msra.mxu1 %v3296_v50  ;;  %v3389_v50 = vld [vmem:[%s3787_s11 + $0x1c0] ss:$24 sps:$4 sm:$0xff]  }
  0xa1   : > { %2174 = vmatpush1.bf16.msra.mxu0 %v3293_v47  ;;  %2218 = vmatprep.subr.bf16.mxu1 %v3304_v52  ;;  %v3386_v47 = vld [vmem:[%s3787_s11 + $0x4b8] ss:$24 sps:$4 sm:$0xff]   ;;  %v3397_v52 = vld [vmem:[%s3787_s11 + $0x1f4] ss:$24 sps:$4 sm:$0xff]  }
  0xa2   : > { %2175 = vmatprep.subr.bf16.mxu0 %v3301_v51  ;;  %v3394_v51 = vld [vmem:[%s3787_s11 + $0x4ec] ss:$24 sps:$4 sm:$0xff]  }
  0xa4   : > { %2219 = vmatpush1.bf16.msra.mxu1 %v3302_v54  ;;  %v3395_v54 = vld [vmem:[%s3787_s11 + $0x1f0] ss:$24 sps:$4 sm:$0xff]  }
  0xa5   : > { %2176 = vmatpush1.bf16.msra.mxu0 %v3299_v53  ;;  %2220 = vmatprep.subr.bf16.mxu1 %v3310_v56  ;;  %v3392_v53 = vld [vmem:[%s3787_s11 + $0x4e8] ss:$24 sps:$4 sm:$0xff]   ;;  %v3403_v56 = vld [vmem:[%s3787_s11 + $0x224] ss:$24 sps:$4 sm:$0xff]  }
  0xa6   : > { %2177 = vmatprep.subr.bf16.mxu0 %v3307_v55  ;;  %v3400_v55 = vld [vmem:[%s3787_s11 + $0x51c] ss:$24 sps:$4 sm:$0xff]  }
  0xa8   : > { %2221 = vmatpush1.bf16.msra.mxu1 %v3308_v58  ;;  %v3401_v58 = vld [vmem:[%s3787_s11 + $0x220] ss:$24 sps:$4 sm:$0xff]  }
  0xa9   : > { %2178 = vmatpush1.bf16.msra.mxu0 %v3305_v57  ;;  %2222 = vmatprep.subr.bf16.mxu1 %v3316_v60  ;;  %v3398_v57 = vld [vmem:[%s3787_s11 + $0x518] ss:$24 sps:$4 sm:$0xff]   ;;  %v3409_v60 = vld [vmem:[%s3787_s11 + $0x254] ss:$24 sps:$4 sm:$0xff]  }
  0xaa   : > { %2179 = vmatprep.subr.bf16.mxu0 %v3313_v59  ;;  %v3406_v59 = vld [vmem:[%s3787_s11 + $0x54c] ss:$24 sps:$4 sm:$0xff]  }
  0xac   : > { %2223 = vmatpush1.bf16.msra.mxu1 %v3314_v62  ;;  %v3407_v62 = vld [vmem:[%s3787_s11 + $0x250] ss:$24 sps:$4 sm:$0xff]  }
  0xad   : > { %2180 = vmatpush1.bf16.msra.mxu0 %v3311_v61  ;;  %2224 = vmatprep.subr.bf16.mxu1 %v3322_v0  ;;  %v3404_v61 = vld [vmem:[%s3787_s11 + $0x548] ss:$24 sps:$4 sm:$0xff]   ;;  %v3415_v0 = vld [vmem:[%s3787_s11 + $0x284] ss:$24 sps:$4 sm:$0xff]  }
  0xae   : > { %2181 = vmatprep.subr.bf16.mxu0 %v3319_v63  ;;  %v3412_v63 = vld [vmem:[%s3787_s11 + $0x57c] ss:$24 sps:$4 sm:$0xff]  }
  0xb0   : > { %2225 = vmatpush1.bf16.msra.mxu1 %v3320_v2  ;;  %v3413_v2 = vld [vmem:[%s3787_s11 + $0x280] ss:$24 sps:$4 sm:$0xff]  }
  0xb1   : > { %2182 = vmatpush1.bf16.msra.mxu0 %v3317_v1  ;;  %2226 = vmatprep.subr.bf16.mxu1 %v3328_v4  ;;  %v3410_v1 = vld [vmem:[%s3787_s11 + $0x578] ss:$24 sps:$4 sm:$0xff]   ;;  %v3421_v4 = vld [vmem:[%s3787_s11 + $0x2b4] ss:$24 sps:$4 sm:$0xff]  }
  0xb2   : > { %2183 = vmatprep.subr.bf16.mxu0 %v3325_v3  ;;  %v3418_v3 = vld [vmem:[%s3787_s11 + $0x5ac] ss:$24 sps:$4 sm:$0xff]  }
  0xb4   : > { %2227 = vmatpush1.bf16.msra.mxu1 %v3326_v8  ;;  %v3419_v8 = vld [vmem:[%s3787_s11 + $0x2b0] ss:$24 sps:$4 sm:$0xff]  }
  0xb5   : > { %2184 = vmatpush1.bf16.msra.mxu0 %v3323_v5  ;;  %2239 = vmatprep.subr.bf16.mxu1 %v3334_v9  ;;  %v3416_v5 = vld [vmem:[%s3787_s11 + $0x5a8] ss:$24 sps:$4 sm:$0xff]   ;;  %v3424_v9 = vld [vmem:[%s3787_s11 + $0x5dc] ss:$24 sps:$4 sm:$0xff]  }
  0xb6   : > { %2325 = vmatprep.subr.bf16.mxu0 %v3337_v10  ;;  %v3427_v10 = vld [vmem:[%s3787_s11 + $0x2e4] ss:$24 sps:$4 sm:$0xff]  }
  0xb7   : > { %2229 = vmatmul.mubr.bf16.vlgmr.msra.gmra.mrb[4].mxu1 %v3876_v6 }
  0xb8   : > { %2186 = vmatmul.mubr.bf16.vlgmr.msra.gmra.mrb[0].mxu0 %v3957_v11  ;;  %2240 = vmatpush1.bf16.msra.mxu1 %v3332_v12  ;;  %v3422_v12 = vld [vmem:[%s3787_s11 + $0x5d8] ss:$24 sps:$4 sm:$0xff]  }
  0xb9   : > { %2326 = vmatpush1.bf16.msra.mxu0 %v3335_v13  ;;  %2241 = vmatprep.subr.bf16.mxu1 %v3340_v14  ;;  %v3425_v13 = vld [vmem:[%s3787_s11 + $0x2e0] ss:$24 sps:$4 sm:$0xff]   ;;  %v3430_v14 = vld [vmem:[%s3787_s11 + $0x60c] ss:$24 sps:$4 sm:$0xff]  }
  0xba   : > { %2327 = vmatprep.subr.bf16.mxu0 %v3343_v15  ;;  %2271 = vmatprep.mubr.bf16.mxu1 %v3849_v49  ;;  %v3361_v49 = vld [vmem:[%s3787_s11 + $0xd4] ss:$24 sps:$4 sm:$0xff]  }
  0xbb   : > { %2357 = vmatprep.mubr.bf16.mxu0 %v3844_v48  ;;  %v3358_v48 = vld [vmem:[%s3787_s11 + $0x3cc] ss:$24 sps:$4 sm:$0xff]  }
  0xbc   : > { %2242 = vmatpush1.bf16.msra.mxu1 %v3338_v16  ;;  %v3433_v15 = vld [vmem:[%s3787_s11 + $0x314] ss:$24 sps:$4 sm:$0xff]   ;;  %v3428_v16 = vld [vmem:[%s3787_s11 + $0x608] ss:$24 sps:$4 sm:$0xff]  }
  0xbd   : > { %2328 = vmatpush1.bf16.msra.mxu0 %v3341_v17  ;;  %2243 = vmatprep.subr.bf16.mxu1 %v3346_v18  ;;  %v3431_v17 = vld [vmem:[%s3787_s11 + $0x310] ss:$24 sps:$4 sm:$0xff]   ;;  %v3436_v18 = vld [vmem:[%s3787_s11 + $0x63c] ss:$24 sps:$4 sm:$0xff]  }
  0xbe   : > { %2329 = vmatprep.subr.bf16.mxu0 %v3349_v19  ;;  %v3439_v19 = vld [vmem:[%s3787_s11 + $0x344] ss:$24 sps:$4 sm:$0xff]  }
  0xc0   : > { %2244 = vmatpush1.bf16.msra.mxu1 %v3344_v20  ;;  %v3434_v20 = vld [vmem:[%s3787_s11 + $0x638] ss:$24 sps:$4 sm:$0xff]  }
  0xc1   : > { %2330 = vmatpush1.bf16.msra.mxu0 %v3347_v21  ;;  %2245 = vmatprep.subr.bf16.mxu1 %v3352_v22  ;;  %v3437_v21 = vld [vmem:[%s3787_s11 + $0x340] ss:$24 sps:$4 sm:$0xff]   ;;  %v3442_v22 = vld [vmem:[%s3787_s11 + $0x66c] ss:$24 sps:$4 sm:$0xff]  }
  0xc2   : > { %2331 = vmatprep.subr.bf16.mxu0 %v3355_v23  ;;  %v3445_v23 = vld [vmem:[%s3787_s11 + $0x374] ss:$24 sps:$4 sm:$0xff]  }
  0xc4   : > { %2246 = vmatpush1.bf16.msra.mxu1 %v3350_v24  ;;  %v3443_v24 = vld [vmem:[%s3787_s11 + $0x370] ss:$24 sps:$4 sm:$0xff]  }
  0xc5   : > { %2332 = vmatpush1.bf16.msra.mxu0 %v3353_v25  ;;  %2247 = vmatprep.subr.bf16.mxu1 %v3358_v48  ;;  %v3448_v25 = vld [vmem:[%s3787_s11 + $0x69c] ss:$24 sps:$4 sm:$0xff]  }
  0xc6   : > { %2333 = vmatprep.subr.bf16.mxu0 %v3361_v49  ;;  %v3451_v48 = vld [vmem:[%s3787_s11 + $0x3a4] ss:$24 sps:$4 sm:$0xff]   ;;  %v3446_v49 = vld [vmem:[%s3787_s11 + $0x698] ss:$24 sps:$4 sm:$0xff]  }
  0xc8   : > { %2248 = vmatpush1.bf16.msra.mxu1 %v3356_v26  ;;  %v3449_v26 = vld [vmem:[%s3787_s11 + $0x3a0] ss:$24 sps:$4 sm:$0xff]  }
  0xc9   : > { %2334 = vmatpush1.bf16.msra.mxu0 %v3359_v27  ;;  %2249 = vmatprep.subr.bf16.mxu1 %v3364_v28  ;;  %v3454_v27 = vld [vmem:[%s3787_s11 + $0x6cc] ss:$24 sps:$4 sm:$0xff]  }
  0xca   : > { %2335 = vmatprep.subr.bf16.mxu0 %v3367_v29  ;;  %v3457_v28 = vld [vmem:[%s3787_s11 + $0x3d4] ss:$24 sps:$4 sm:$0xff]   ;;  %v3452_v29 = vld [vmem:[%s3787_s11 + $0x6c8] ss:$24 sps:$4 sm:$0xff]  }
  0xcc   : > { %2250 = vmatpush1.bf16.msra.mxu1 %v3362_v30  ;;  %v3455_v30 = vld [vmem:[%s3787_s11 + $0x3d0] ss:$24 sps:$4 sm:$0xff]  }
  0xcd   : > { %2336 = vmatpush1.bf16.msra.mxu0 %v3365_v31  ;;  %2251 = vmatprep.subr.bf16.mxu1 %v3370_v32  ;;  %v3460_v31 = vld [vmem:[%s3787_s11 + $0x6fc] ss:$24 sps:$4 sm:$0xff]  }
  0xce   : > { %2337 = vmatprep.subr.bf16.mxu0 %v3373_v33  ;;  %v3463_v32 = vld [vmem:[%s3787_s11 + $0x404] ss:$24 sps:$4 sm:$0xff]   ;;  %v3458_v33 = vld [vmem:[%s3787_s11 + $0x6f8] ss:$24 sps:$4 sm:$0xff]  }
  0xd0   : > { %2252 = vmatpush1.bf16.msra.mxu1 %v3368_v35  ;;  %v3461_v35 = vld [vmem:[%s3787_s11 + $0x400] ss:$24 sps:$4 sm:$0xff]  }
  0xd1   : > { %2338 = vmatpush1.bf16.msra.mxu0 %v3371_v36  ;;  %2253 = vmatprep.subr.bf16.mxu1 %v3376_v37  ;;  %v3466_v36 = vld [vmem:[%s3787_s11 + $0x72c] ss:$24 sps:$4 sm:$0xff]  }
  0xd2   : > { %2339 = vmatprep.subr.bf16.mxu0 %v3379_v38  ;;  %v3469_v37 = vld [vmem:[%s3787_s11 + $0x434] ss:$24 sps:$4 sm:$0xff]   ;;  %v3464_v38 = vld [vmem:[%s3787_s11 + $0x728] ss:$24 sps:$4 sm:$0xff]  }
  0xd4   : > { %2254 = vmatpush1.bf16.msra.mxu1 %v3374_v39  ;;  %v3467_v39 = vld [vmem:[%s3787_s11 + $0x430] ss:$24 sps:$4 sm:$0xff]  }
  0xd5   : > { %2340 = vmatpush1.bf16.msra.mxu0 %v3377_v40  ;;  %2255 = vmatprep.subr.bf16.mxu1 %v3382_v41  ;;  %v3472_v40 = vld [vmem:[%s3787_s11 + $0x75c] ss:$24 sps:$4 sm:$0xff]  }
  0xd6   : > { %2341 = vmatprep.subr.bf16.mxu0 %v3385_v42  ;;  %v3475_v41 = vld [vmem:[%s3787_s11 + $0x464] ss:$24 sps:$4 sm:$0xff]   ;;  %v3470_v42 = vld [vmem:[%s3787_s11 + $0x758] ss:$24 sps:$4 sm:$0xff]  }
  0xd8   : > { %2256 = vmatpush1.bf16.msra.mxu1 %v3380_v43  ;;  %v3473_v43 = vld [vmem:[%s3787_s11 + $0x460] ss:$24 sps:$4 sm:$0xff]  }
  0xd9   : > { %2342 = vmatpush1.bf16.msra.mxu0 %v3383_v44  ;;  %2257 = vmatprep.subr.bf16.mxu1 %v3388_v45  ;;  %v3478_v44 = vld [vmem:[%s3787_s11 + $0x78c] ss:$24 sps:$4 sm:$0xff]  }
  0xda   : > { %2343 = vmatprep.subr.bf16.mxu0 %v3391_v46  ;;  %v3481_v45 = vld [vmem:[%s3787_s11 + $0x494] ss:$24 sps:$4 sm:$0xff]   ;;  %v3476_v46 = vld [vmem:[%s3787_s11 + $0x788] ss:$24 sps:$4 sm:$0xff]  }
  0xdc   : > { %2258 = vmatpush1.bf16.msra.mxu1 %v3386_v47  ;;  %v3479_v47 = vld [vmem:[%s3787_s11 + $0x490] ss:$24 sps:$4 sm:$0xff]  }
  0xdd   : > { %2344 = vmatpush1.bf16.msra.mxu0 %v3389_v50  ;;  %2259 = vmatprep.subr.bf16.mxu1 %v3394_v51  ;;  %v3484_v50 = vld [vmem:[%s3787_s11 + $0x7bc] ss:$24 sps:$4 sm:$0xff]  }
  0xde   : > { %2345 = vmatprep.subr.bf16.mxu0 %v3397_v52  ;;  %v3487_v51 = vld [vmem:[%s3787_s11 + $0x4c4] ss:$24 sps:$4 sm:$0xff]   ;;  %v3482_v52 = vld [vmem:[%s3787_s11 + $0x7b8] ss:$24 sps:$4 sm:$0xff]  }
  0xe0   : > { %2260 = vmatpush1.bf16.msra.mxu1 %v3392_v53  ;;  %v3485_v53 = vld [vmem:[%s3787_s11 + $0x4c0] ss:$24 sps:$4 sm:$0xff]  }
  0xe1   : > { %2346 = vmatpush1.bf16.msra.mxu0 %v3395_v54  ;;  %2261 = vmatprep.subr.bf16.mxu1 %v3400_v55  ;;  %v3490_v54 = vld [vmem:[%s3787_s11 + $0x7ec] ss:$24 sps:$4 sm:$0xff]  }
  0xe2   : > { %2347 = vmatprep.subr.bf16.mxu0 %v3403_v56  ;;  %v3493_v55 = vld [vmem:[%s3787_s11 + $0x4f4] ss:$24 sps:$4 sm:$0xff]   ;;  %v3488_v56 = vld [vmem:[%s3787_s11 + $0x7e8] ss:$24 sps:$4 sm:$0xff]  }
  0xe4   : > { %2262 = vmatpush1.bf16.msra.mxu1 %v3398_v57  ;;  %v3491_v57 = vld [vmem:[%s3787_s11 + $0x4f0] ss:$24 sps:$4 sm:$0xff]  }
  0xe5   : > { %2348 = vmatpush1.bf16.msra.mxu0 %v3401_v58  ;;  %2263 = vmatprep.subr.bf16.mxu1 %v3406_v59  ;;  %v3496_v58 = vld [vmem:[%s3787_s11 + $0x81c] ss:$24 sps:$4 sm:$0xff]  }
  0xe6   : > { %2349 = vmatprep.subr.bf16.mxu0 %v3409_v60  ;;  %v3499_v59 = vld [vmem:[%s3787_s11 + $0x524] ss:$24 sps:$4 sm:$0xff]   ;;  %v3494_v60 = vld [vmem:[%s3787_s11 + $0x818] ss:$24 sps:$4 sm:$0xff]  }
  0xe8   : > { %2264 = vmatpush1.bf16.msra.mxu1 %v3404_v61  ;;  %v3497_v61 = vld [vmem:[%s3787_s11 + $0x520] ss:$24 sps:$4 sm:$0xff]  }
  0xe9   : > { %2350 = vmatpush1.bf16.msra.mxu0 %v3407_v62  ;;  %2265 = vmatprep.subr.bf16.mxu1 %v3412_v63  ;;  %v3502_v62 = vld [vmem:[%s3787_s11 + $0x84c] ss:$24 sps:$4 sm:$0xff]  }
  0xea   : > { %2351 = vmatprep.subr.bf16.mxu0 %v3415_v0  ;;  %v3505_v63 = vld [vmem:[%s3787_s11 + $0x554] ss:$24 sps:$4 sm:$0xff]   ;;  %v3500_v0 = vld [vmem:[%s3787_s11 + $0x848] ss:$24 sps:$4 sm:$0xff]  }
  0xec   : > { %2266 = vmatpush1.bf16.msra.mxu1 %v3410_v1  ;;  %v3503_v1 = vld [vmem:[%s3787_s11 + $0x550] ss:$24 sps:$4 sm:$0xff]  }
  0xed   : > { %2352 = vmatpush1.bf16.msra.mxu0 %v3413_v2  ;;  %2267 = vmatprep.subr.bf16.mxu1 %v3418_v3  ;;  %v3508_v2 = vld [vmem:[%s3787_s11 + $0x87c] ss:$24 sps:$4 sm:$0xff]  }
  0xee   : > { %2353 = vmatprep.subr.bf16.mxu0 %v3421_v4  ;;  %v3511_v3 = vld [vmem:[%s3787_s11 + $0x584] ss:$24 sps:$4 sm:$0xff]   ;;  %v3506_v4 = vld [vmem:[%s3787_s11 + $0x878] ss:$24 sps:$4 sm:$0xff]  }
  0xf0   : > { %2268 = vmatpush1.bf16.msra.mxu1 %v3416_v5  ;;  %v3509_v5 = vld [vmem:[%s3787_s11 + $0x580] ss:$24 sps:$4 sm:$0xff]  }
  0xf1   : > { %2354 = vmatpush1.bf16.msra.mxu0 %v3419_v8  ;;  %2269 = vmatprep.subr.bf16.mxu1 %v3424_v9  ;;  %v3514_v8 = vld [vmem:[%s3787_s11 + $0x8ac] ss:$24 sps:$4 sm:$0xff]  }
  0xf2   : > { %2355 = vmatprep.subr.bf16.mxu0 %v3427_v10  ;;  %v3517_v9 = vld [vmem:[%s3787_s11 + $0x5b4] ss:$24 sps:$4 sm:$0xff]   ;;  %v3512_v10 = vld [vmem:[%s3787_s11 + $0x8a8] ss:$24 sps:$4 sm:$0xff]  }
  0xf4   : > { %2270 = vmatpush1.bf16.msra.mxu1 %v3422_v12  ;;  %v3515_v12 = vld [vmem:[%s3787_s11 + $0x5b0] ss:$24 sps:$4 sm:$0xff]  }
  0xf5   : > { %2356 = vmatpush1.bf16.msra.mxu0 %v3425_v13  ;;  %2282 = vmatprep.subr.bf16.mxu1 %v3430_v14  ;;  %v3520_v13 = vld [vmem:[%s3787_s11 + $0x8dc] ss:$24 sps:$4 sm:$0xff]  }
  0xf6   : > { %2368 = vmatprep.subr.bf16.mxu0 %v3433_v15  ;;  %v3523_v14 = vld [vmem:[%s3787_s11 + $0x5e4] ss:$24 sps:$4 sm:$0xff]   ;;  %v3518_v15 = vld [vmem:[%s3787_s11 + $0x8d8] ss:$24 sps:$4 sm:$0xff]  }
  0xf7   : > { %2272 = vmatmul.mubr.bf16.vlgmr.msra.gmra.mrb[4].mxu1 %v3881_v7  ;;  %v3572_v7 = vld [vmem:[%s4176_s0 + $0xc] ss:$24 sps:$4 sm:$0xff]  }
  0xf8   : > { %2358 = vmatmul.mubr.bf16.vlgmr.msra.gmra.mrb[4].mxu0 %v3876_v6  ;;  %2283 = vmatpush1.bf16.msra.mxu1 %v3428_v16  ;;  %v3440_v6 = vld [vmem:[%s3787_s11 + $0x668] ss:$24 sps:$4 sm:$0xff]  }
  0xf9   : > { %2369 = vmatpush1.bf16.msra.mxu0 %v3431_v17  ;;  %2284 = vmatprep.subr.bf16.mxu1 %v3436_v18  ;;  %v3521_v16 = vld [vmem:[%s3787_s11 + $0x5e0] ss:$24 sps:$4 sm:$0xff]   ;;  %v3526_v17 = vld [vmem:[%s3787_s11 + $0x614] ss:$24 sps:$4 sm:$0xff]   ;;  %v3524_v18 = vld [vmem:[%s3787_s11 + $0x610] ss:$24 sps:$4 sm:$0xff]  }
  0xfa   : > { %2370 = vmatprep.subr.bf16.mxu0 %v3439_v19  ;;  %2314 = vmatprep.mubr.bf16.mxu1 %v3915_v34  ;;  %v3529_v19 = vld [vmem:[%s3787_s11 + $0x644] ss:$24 sps:$4 sm:$0xff]  }
  0xfb   : > { %2400 = vmatprep.mubr.bf16.mxu0 %v3572_v7  ;;  %v3535_v7 = vld [vmem:[%s3787_s11 + $0x6a4] ss:$24 sps:$4 sm:$0xff]  }
  0xfc   : > { %2285 = vmatpush1.bf16.msra.mxu1 %v3434_v20  ;;  %v3573_v20 = vld [vmem:[%s4176_s0 + $0x8] ss:$24 sps:$4 sm:$0xff]  }
  0xfd   : > { %2371 = vmatpush1.bf16.msra.mxu0 %v3437_v21  ;;  %2286 = vmatprep.subr.bf16.mxu1 %v3442_v22  ;;  %v3527_v21 = vld [vmem:[%s3787_s11 + $0x640] ss:$24 sps:$4 sm:$0xff]   ;;  %v3532_v22 = vld [vmem:[%s3787_s11 + $0x674] ss:$24 sps:$4 sm:$0xff]  }
  0xfe   : > { %2372 = vmatprep.subr.bf16.mxu0 %v3445_v23  ;;  %v3530_v23 = vld [vmem:[%s3787_s11 + $0x670] ss:$24 sps:$4 sm:$0xff]  }
 0x100   : > { %2287 = vmatpush1.bf16.msra.mxu1 %v3440_v6  ;;  %v3533_v6 = vld [vmem:[%s3787_s11 + $0x6a0] ss:$24 sps:$4 sm:$0xff]  }
 0x101   : > { %2373 = vmatpush1.bf16.msra.mxu0 %v3443_v24  ;;  %2288 = vmatprep.subr.bf16.mxu1 %v3448_v25  ;;  %v3538_v24 = vld [vmem:[%s3787_s11 + $0x6d4] ss:$24 sps:$4 sm:$0xff]   ;;  %v3536_v25 = vld [vmem:[%s3787_s11 + $0x6d0] ss:$24 sps:$4 sm:$0xff]  }
 0x102   : > { %2374 = vmatprep.subr.bf16.mxu0 %v3451_v48  ;;  %v3541_v48 = vld [vmem:[%s3787_s11 + $0x704] ss:$24 sps:$4 sm:$0xff]  }
 0x104   : > { %2289 = vmatpush1.bf16.msra.mxu1 %v3446_v49  ;;  %v3544_v49 = vld [vmem:[%s3787_s11 + $0x734] ss:$24 sps:$4 sm:$0xff]  }
 0x105   : > { %2375 = vmatpush1.bf16.msra.mxu0 %v3449_v26  ;;  %2290 = vmatprep.subr.bf16.mxu1 %v3454_v27 }
 0x106   : > { %2376 = vmatprep.subr.bf16.mxu0 %v3457_v28  ;;  %v3542_v28 = vld [vmem:[%s3787_s11 + $0x730] ss:$24 sps:$4 sm:$0xff]  }
 0x108   : > { %2291 = vmatpush1.bf16.msra.mxu1 %v3452_v29 }
 0x109   : > { %2377 = vmatpush1.bf16.msra.mxu0 %v3455_v30  ;;  %2292 = vmatprep.subr.bf16.mxu1 %v3460_v31  ;;  %v3547_v30 = vld [vmem:[%s3787_s11 + $0x764] ss:$24 sps:$4 sm:$0xff]  }
 0x10a   : > { %2378 = vmatprep.subr.bf16.mxu0 %v3463_v32  ;;  %v3545_v32 = vld [vmem:[%s3787_s11 + $0x760] ss:$24 sps:$4 sm:$0xff]  }
 0x10c   : > { %2293 = vmatpush1.bf16.msra.mxu1 %v3458_v33  ;;  %v3550_v33 = vld [vmem:[%s3787_s11 + $0x794] ss:$24 sps:$4 sm:$0xff]  }
 0x10d   : > { %2379 = vmatpush1.bf16.msra.mxu0 %v3461_v35  ;;  %2294 = vmatprep.subr.bf16.mxu1 %v3466_v36  ;;  %v3548_v35 = vld [vmem:[%s3787_s11 + $0x790] ss:$24 sps:$4 sm:$0xff]   ;;  %v3553_v36 = vld [vmem:[%s3787_s11 + $0x7c4] ss:$24 sps:$4 sm:$0xff]  }
 0x10e   : > { %2380 = vmatprep.subr.bf16.mxu0 %v3469_v37  ;;  %v3551_v37 = vld [vmem:[%s3787_s11 + $0x7c0] ss:$24 sps:$4 sm:$0xff]  }
 0x110   : > { %2295 = vmatpush1.bf16.msra.mxu1 %v3464_v38  ;;  %v3556_v38 = vld [vmem:[%s3787_s11 + $0x7f4] ss:$24 sps:$4 sm:$0xff]  }
 0x111   : > { %2381 = vmatpush1.bf16.msra.mxu0 %v3467_v39  ;;  %2296 = vmatprep.subr.bf16.mxu1 %v3472_v40  ;;  %v3554_v39 = vld [vmem:[%s3787_s11 + $0x7f0] ss:$24 sps:$4 sm:$0xff]   ;;  %v3559_v40 = vld [vmem:[%s3787_s11 + $0x824] ss:$24 sps:$4 sm:$0xff]  }
 0x112   : > { %2382 = vmatprep.subr.bf16.mxu0 %v3475_v41  ;;  %v3557_v41 = vld [vmem:[%s3787_s11 + $0x820] ss:$24 sps:$4 sm:$0xff]  }
 0x114   : > { %2297 = vmatpush1.bf16.msra.mxu1 %v3470_v42  ;;  %v3562_v42 = vld [vmem:[%s3787_s11 + $0x854] ss:$24 sps:$4 sm:$0xff]  }
 0x115   : > { %2383 = vmatpush1.bf16.msra.mxu0 %v3473_v43  ;;  %2298 = vmatprep.subr.bf16.mxu1 %v3478_v44  ;;  %v3560_v43 = vld [vmem:[%s3787_s11 + $0x850] ss:$24 sps:$4 sm:$0xff]   ;;  %v3565_v44 = vld [vmem:[%s3787_s11 + $0x884] ss:$24 sps:$4 sm:$0xff]  }
 0x116   : > { %2384 = vmatprep.subr.bf16.mxu0 %v3481_v45  ;;  %v3563_v45 = vld [vmem:[%s3787_s11 + $0x880] ss:$24 sps:$4 sm:$0xff]  }
 0x118   : > { %2299 = vmatpush1.bf16.msra.mxu1 %v3476_v46  ;;  %v3568_v46 = vld [vmem:[%s3787_s11 + $0x8b4] ss:$24 sps:$4 sm:$0xff]  }
 0x119   : > { %2385 = vmatpush1.bf16.msra.mxu0 %v3479_v47  ;;  %2300 = vmatprep.subr.bf16.mxu1 %v3484_v50  ;;  %v3566_v47 = vld [vmem:[%s3787_s11 + $0x8b0] ss:$24 sps:$4 sm:$0xff]   ;;  %v3571_v50 = vld [vmem:[%s3787_s11 + $0x8e4] ss:$24 sps:$4 sm:$0xff]  }
 0x11a   : > { %2386 = vmatprep.subr.bf16.mxu0 %v3487_v51  ;;  %v3569_v51 = vld [vmem:[%s3787_s11 + $0x8e0] ss:$24 sps:$4 sm:$0xff]  }
 0x11c   : > { %2301 = vmatpush1.bf16.msra.mxu1 %v3482_v52  ;;  %v2495_v52 = vlaneseq }
 0x11d   : > { %2387 = vmatpush1.bf16.msra.mxu0 %v3485_v53  ;;  %2302 = vmatprep.subr.bf16.mxu1 %v3490_v54 }
 0x11e   : > { %2388 = vmatprep.subr.bf16.mxu0 %v3493_v55  ;;  %v2496_v53 = vshrl.u32 %v2495_v52, 7  ;;  %v2493_v55 = vld [vmem:[%s271_s5] sm:$0x3f] }
 0x120   : > { %2303 = vmatpush1.bf16.msra.mxu1 %v3488_v56  ;;  %v2497_v54 = vsub.s32 0, %v2496_v53  ;;  %v2501_v56 = vsub.s32 1, %v2496_v53 }
 0x121   : > { %2389 = vmatpush1.bf16.msra.mxu0 %v3491_v57  ;;  %2304 = vmatprep.subr.bf16.mxu1 %v3496_v58 }
 0x122   : > { %2390 = vmatprep.subr.bf16.mxu0 %v3499_v59  ;;  %v2498_v57 = vrot.slane %v2493_v55, %v2497_v54  ;;  %v2502_v59 = vrot.slane %v2493_v55, %v2501_v56 }
 0x124   : > { %2305 = vmatpush1.bf16.msra.mxu1 %v3494_v60 }
 0x125   : > { %2391 = vmatpush1.bf16.msra.mxu0 %v3497_v61  ;;  %2306 = vmatprep.subr.bf16.mxu1 %v3502_v62 }
 0x126   : > { %2392 = vmatprep.subr.bf16.mxu0 %v3505_v63 }
 0x128   : > { %2307 = vmatpush1.bf16.msra.mxu1 %v3500_v0 }
 0x129   : > { %2393 = vmatpush1.bf16.msra.mxu0 %v3503_v1  ;;  %2308 = vmatprep.subr.bf16.mxu1 %v3508_v2 }
 0x12a   : > { %2394 = vmatprep.subr.bf16.mxu0 %v3511_v3 }
 0x12c   : > { %2309 = vmatpush1.bf16.msra.mxu1 %v3506_v4 }
 0x12d   : > { %2395 = vmatpush1.bf16.msra.mxu0 %v3509_v5  ;;  %2310 = vmatprep.subr.bf16.mxu1 %v3514_v8 }
 0x12e   : > { %2396 = vmatprep.subr.bf16.mxu0 %v3517_v9 }
 0x130   : > { %2311 = vmatpush1.bf16.msra.mxu1 %v3512_v10  ;;  %v2505_v10 = vsub.s32 2, %v2496_v53 }
 0x131   : > { %2397 = vmatpush1.bf16.msra.mxu0 %v3515_v12  ;;  %2312 = vmatprep.subr.bf16.mxu1 %v3520_v13  ;;  %v2509_v12 = vsub.s32 3, %v2496_v53 }
 0x132   : > { %2398 = vmatprep.subr.bf16.mxu0 %v3523_v14  ;;  %v2506_v13 = vrot.slane %v2493_v55, %v2505_v10 }
 0x133   : > { %v2510_v14 = vrot.slane %v2493_v55, %v2509_v12 }
 0x134   : > { %2313 = vmatpush1.bf16.msra.mxu1 %v3518_v15 }
 0x135   : > { %2399 = vmatpush1.bf16.msra.mxu0 %v3521_v16 }
 0x136   : > { %2411 = vmatprep.subr.bf16.mxu0 %v3526_v17 }
 0x137   : > { %2315 = vmatmul.mubr.bf16.vlgmr.msra.gmra.mrb[4].mxu1 %v3957_v11 }
 0x138   : > { %2401 = vmatmul.mubr.bf16.vlgmr.msra.gmra.mrb[4].mxu0 %v3573_v20 }
 0x139   : > { %2412 = vmatpush1.bf16.msra.mxu0 %v3524_v18  ;;  %2443 = vmatprep.mubr.bf16.mxu0 %v3915_v34  ;;  %v3539_v34 = vld [vmem:[%s3787_s11 + $0x700] ss:$24 sps:$4 sm:$0xff]   ;;  %s3072_s11 = smul.u32 48, %s3783_s6 }
 0x13a   : > { %2413 = vmatprep.subr.bf16.mxu0 %v3529_v19  ;;  %s3045_s6 = smul.u32 (%p4185_p9), 24, %s3646_s15 }
 0x13b   : > { %s4138_s7 = scalar_lea.vmem [#allocation5], %s3072_s11 }
 0x13c   : > { %s2591_s18 = scalar_lea.vmem (%p4185_p9), %s4179_s3, %s3045_s6 }
 0x13d   : > { %2414 = vmatpush1.bf16.msra.mxu0 %v3527_v21 }
 0x13e   : > { %2415 = vmatprep.subr.bf16.mxu0 %v3532_v22 }
 0x141   : > { %2416 = vmatpush1.bf16.msra.mxu0 %v3530_v23 }
 0x142   : > { %2417 = vmatprep.subr.bf16.mxu0 %v3535_v7 }
 0x145   : > { %2418 = vmatpush1.bf16.msra.mxu0 %v3533_v6  ;;  %v2513_v6 = vsub.s32 4, %v2496_v53 }
 0x146   : > { %2419 = vmatprep.subr.bf16.mxu0 %v3538_v24  ;;  %v2517_v24 = vsub.s32 5, %v2496_v53 }
 0x149   : > { %2420 = vmatpush1.bf16.msra.mxu0 %v3536_v25  ;;  %v2514_v25 = vrot.slane %v2493_v55, %v2513_v6 }
 0x14a   : > { %2421 = vmatprep.subr.bf16.mxu0 %v3541_v48  ;;  %v2101_v26 = vpop.f32.mrb[0].mxu1  ;;  %v2518_v48 = vrot.slane %v2493_v55, %v2517_v24 }
 0x14b   : > { %v2103_v27 = vpop.f32.mrb[1].mxu1 }
 0x14c   : > { %v2105_v29 = vpop.f32.mrb[2].mxu1 }
 0x14d   : > { %2422 = vmatpush1.bf16.msra.mxu0 %v3539_v34  ;;  %v2107_v31 = vpop.f32.mrb[3].mxu1 }
 0x14e   : > { %2423 = vmatprep.subr.bf16.mxu0 %v3544_v49 }
 0x151   : > { %2424 = vmatpush1.bf16.msra.mxu0 %v3542_v28 }
 0x152   : > { %2425 = vmatprep.subr.bf16.mxu0 %v3547_v30 }
 0x155   : > { %2426 = vmatpush1.bf16.msra.mxu0 %v3545_v32 }
 0x156   : > { %2427 = vmatprep.subr.bf16.mxu0 %v3550_v33 }
 0x159   : > { %2428 = vmatpush1.bf16.msra.mxu0 %v3548_v35 }
 0x15a   : > { %2429 = vmatprep.subr.bf16.mxu0 %v3553_v36 }
 0x15d   : > { %2430 = vmatpush1.bf16.msra.mxu0 %v3551_v37 }
 0x15e   : > { %2431 = vmatprep.subr.bf16.mxu0 %v3556_v38 }
 0x161   : > { %2432 = vmatpush1.bf16.msra.mxu0 %v3554_v39 }
 0x162   : > { %2433 = vmatprep.subr.bf16.mxu0 %v3559_v40 }
 0x165   : > { %2434 = vmatpush1.bf16.msra.mxu0 %v3557_v41 }
 0x166   : > { %2435 = vmatprep.subr.bf16.mxu0 %v3562_v42 }
 0x169   : > { %2436 = vmatpush1.bf16.msra.mxu0 %v3560_v43 }
 0x16a   : > { %2437 = vmatprep.subr.bf16.mxu0 %v3565_v44 }
 0x16d   : > { %2438 = vmatpush1.bf16.msra.mxu0 %v3563_v45 }
 0x16e   : > { %2439 = vmatprep.subr.bf16.mxu0 %v3568_v46 }
 0x171   : > { %2440 = vmatpush1.bf16.msra.mxu0 %v3566_v47 }
 0x172   : > { %2441 = vmatprep.subr.bf16.mxu0 %v3571_v50 }
 0x175   : > { %2442 = vmatpush1.bf16.msra.mxu0 %v3569_v51 }
 0x178   : > { %2444 = vmatmul.mubr.bf16.vlgmr.msra.gmra.mrb[4].mxu0 %v3957_v11 }
 0x18b   : > { %v2187_v58 = vpop.f32.mrb[0].mxu0 }
 0x18c   : > { %v3046_v60 = vadd.f32 %v2187_v58, %v2101_v26  ;;  %v2189_v61 = vpop.f32.mrb[1].mxu0 }
 0x18d   : > { %v3047_v62 = vadd.f32 %v2189_v61, %v2103_v27  ;;  %v2191_v11 = vpop.f32.mrb[2].mxu0 }
 0x18e   : > { %v2525_v63 = vadd.f32 %v3046_v60, %v2498_v57  ;;  %v3048_v0 = vadd.f32 %v2191_v11, %v2105_v29  ;;  %v2193_v1 = vpop.f32.mrb[3].mxu0 }
 0x18f   : > { %v2526_v2 = vadd.f32 %v3047_v62, %v2502_v59  ;;  %v3049_v3 = vadd.f32 %v2193_v1, %v2107_v31 }
 0x190   : > { %v2531_v4 = vadd.f32 %v3048_v0, %v2498_v57 }
 0x191   : > { %v3039_v5 = vpack.c.bf16 %v2526_v2, %v2525_v63  ;;  %v2532_v8 = vadd.f32 %v3049_v3, %v2502_v59 }
 0x193   : > { %2573 = vst [vmem:[%s4138_s7] sm:$0xff] %v3039_v5  ;;  %v3042_v9 = vpack.c.bf16 %v2532_v8, %v2531_v4 }
 0x195   : > { %2576 = vst [vmem:[%s4138_s7 + $0x18] sm:$0xff] %v3042_v9 }
 0x19a   : > { %v2604_v35 = vld [vmem:[%s4138_s7] sm:$0xff] (%p4185_p9) }
 0x19b   : > { %2605 = vst [vmem:[%s2591_s18] sm:$0xff] (%p4185_p9), %v2604_v35 }
 0x19c   : > { %v2610_v38 = vld [vmem:[%s4138_s7 + $0x18] sm:$0xff] (%p4185_p9) }
 0x19d   : > { %2611 = vst [vmem:[%s2591_s18 + $0x48] sm:$0xff] (%p4185_p9), %v2610_v38 }
 0x20a   : > { %v2316_v15 = vpop.f32.mrb[4].mxu1 }
 0x20b   : > { %v2527_v16 = vadd.f32 %v2506_v13, %v2316_v15  ;;  %v2318_v17 = vpop.f32.mrb[5].mxu1 }
 0x20c   : > { %v2528_v18 = vadd.f32 %v2510_v14, %v2318_v17  ;;  %v2320_v19 = vpop.f32.mrb[6].mxu1 }
 0x20d   : > { %v2533_v20 = vadd.f32 %v2506_v13, %v2320_v19  ;;  %v2322_v21 = vpop.f32.mrb[7].mxu1 }
 0x20e   : > { %v3040_v22 = vpack.c.bf16 %v2528_v18, %v2527_v16  ;;  %v2534_v23 = vadd.f32 %v2510_v14, %v2322_v21 }
 0x210   : > { %2574 = vst [vmem:[%s4138_s7 + $0x8] sm:$0xff] %v3040_v22  ;;  %v3043_v7 = vpack.c.bf16 %v2534_v23, %v2533_v20 }
 0x212   : > { %2577 = vst [vmem:[%s4138_s7 + $0x20] sm:$0xff] %v3043_v7 }
 0x217   : > { %v2606_v36 = vld [vmem:[%s4138_s7 + $0x8] sm:$0xff] (%p4185_p9) }
 0x218   : > { %2607 = vst [vmem:[%s2591_s18 + $0x8] sm:$0xff] (%p4185_p9), %v2606_v36 }
 0x219   : > { %v2612_v39 = vld [vmem:[%s4138_s7 + $0x20] sm:$0xff] (%p4185_p9) }
 0x21a   : > { %2613 = vst [vmem:[%s2591_s18 + $0x50] sm:$0xff] (%p4185_p9), %v2612_v39 }
 0x24b   : > { %v2445_v34 = vpop.f32.mrb[4].mxu0 }
 0x24c   : > { %v2529_v49 = vadd.f32 %v2514_v25, %v2445_v34  ;;  %v2447_v26 = vpop.f32.mrb[5].mxu0 }
 0x24d   : > { %v2530_v27 = vadd.f32 %v2518_v48, %v2447_v26  ;;  %v2449_v28 = vpop.f32.mrb[6].mxu0  ;;  %2585 = sbr.rel (!%p4185_p9) target bundleno = 604 (0x25c), region = 48 }
 0x24e   : > { %v2535_v29 = vadd.f32 %v2514_v25, %v2449_v28  ;;  %v2451_v30 = vpop.f32.mrb[7].mxu0 }
 0x24f   : > { %v3041_v31 = vpack.c.bf16 %v2530_v27, %v2529_v49  ;;  %v2536_v32 = vadd.f32 %v2518_v48, %v2451_v30 }
 0x251   : > { %2575 = vst [vmem:[%s4138_s7 + $0x10] sm:$0xff] %v3041_v31  ;;  %v3044_v33 = vpack.c.bf16 %v2536_v32, %v2535_v29 }
 0x253   : > { %2578 = vst [vmem:[%s4138_s7 + $0x28] sm:$0xff] %v3044_v33 }
 0x258   : > { %v2608_v37 = vld [vmem:[%s4138_s7 + $0x10] sm:$0xff] }
 0x259   : > { %2609 = vst [vmem:[%s2591_s18 + $0x10] sm:$0xff] %v2608_v37 }
 0x25a   : > { %v2614_v40 = vld [vmem:[%s4138_s7 + $0x28] sm:$0xff] }
 0x25b   : > { %2615 = vst [vmem:[%s2591_s18 + $0x58] sm:$0xff] %v2614_v40 }
 0x25c PF: > { %s16_s17 = sadd.s32 1, %s3654_s17   ;;  %s4186_s12 = smov %s3638_s13 }
 0x25d   : > { %p13_p11 = scmp.ge.s32.totalorder %s16_s17, 5   ;;  %s4187_s13 = smov %s3642_s14 }
 0x25e   : > { %s4188_s14 = smov %s3728_s24  ;;  %s4189_s15 = smov %s3650_s16 }
 0x25f   : > { %s4190_s16 = smov %s4192_s19  ;;  %15 = sbr.rel (!%p13_p11) target bundleno = 4 (0x4), region = 109 }
 0x266   :  { %2631 = vsyncpa [#allocation4], 1 }
 0x267   :  { %2633 = vsyncpa [#allocation4 + $0x1], 1 }

// kernel: bert_classifier_forward.14
= control target key start
LH: loop header
LB: loop body
LE: loop exit
PB: predicated region body
PF: predicated region fallthrough
CT: control target
= control target key end

     0   :  { %s4355_s1 = inlined_call_operand.vmem [shape: bf16[768,768], index: 1, kind: input, shape index: {}]   ;;  %s4356_s0 = inlined_call_operand.vmem [shape: bf16[16,768], index: 0, kind: input, shape index: {}]   ;;  %s4357_s2 = inlined_call_operand.vmem [shape: f32[1,768], index: 2, kind: input, shape index: {}]   ;;  %s4358_s3 = inlined_call_operand.vmem [shape: bf16[16,768], index: 3, kind: input, shape index: {}]   ;;  %s4359_s4 = inlined_call_operand.vmem [shape: f32[1,768], index: 4, kind: input, shape index: {}]   ;;  %s4360_s5 = inlined_call_operand.vmem [shape: f32[1,768], index: 5, kind: input, shape index: {}]   ;;  %s4361_s6 = inlined_call_operand.vmem [shape: bf16[16,768], index: 6, kind: output, shape index: {}]  }
   0x1   :  { %v2852_v0 = vld [vmem:[%s4355_s1 + $0x4] ss:$24 sps:$4 sm:$0xff]   ;;  %v2856_v2 = vld [vmem:[%s4355_s1] ss:$24 sps:$4 sm:$0xff]   ;;  %v2858_v4 = vld [vmem:[%s4355_s1 + $0x34] ss:$24 sps:$4 sm:$0xff]  }
   0x2   :  { %v2854_v1 = vld [vmem:[%s4355_s1 + $0x304] ss:$24 sps:$4 sm:$0xff]   ;;  %1815 = vmatprep.subr.bf16.mxu1 %v2852_v0  ;;  %v2857_v3 = vld [vmem:[%s4355_s1 + $0x300] ss:$24 sps:$4 sm:$0xff]   ;;  %v2860_v5 = vld [vmem:[%s4355_s1 + $0x334] ss:$24 sps:$4 sm:$0xff]  }
   0x3   :  { %1858 = vmatprep.subr.bf16.mxu0 %v2854_v1  ;;  %1816 = vmatpush1.bf16.msra.mxu1 %v2856_v2  ;;  %v2862_v6 = vld [vmem:[%s4355_s1 + $0x30] ss:$24 sps:$4 sm:$0xff]   ;;  %v2864_v8 = vld [vmem:[%s4355_s1 + $0x64] ss:$24 sps:$4 sm:$0xff]   ;;  %v2868_v10 = vld [vmem:[%s4355_s1 + $0x60] ss:$24 sps:$4 sm:$0xff]  }
   0x4   :  { %1859 = vmatpush1.bf16.msra.mxu0 %v2857_v3  ;;  %1817 = vmatprep.subr.bf16.mxu1 %v2858_v4  ;;  %v2863_v7 = vld [vmem:[%s4355_s1 + $0x330] ss:$24 sps:$4 sm:$0xff]   ;;  %v2866_v9 = vld [vmem:[%s4355_s1 + $0x364] ss:$24 sps:$4 sm:$0xff]   ;;  %v2869_v11 = vld [vmem:[%s4355_s1 + $0x360] ss:$24 sps:$4 sm:$0xff]  }
   0x5   :  { %1860 = vmatprep.subr.bf16.mxu0 %v2860_v5  ;;  %v2870_v12 = vld [vmem:[%s4355_s1 + $0x94] ss:$24 sps:$4 sm:$0xff]   ;;  %v2874_v14 = vld [vmem:[%s4355_s1 + $0x90] ss:$24 sps:$4 sm:$0xff]   ;;  %v2876_v16 = vld [vmem:[%s4355_s1 + $0xc4] ss:$24 sps:$4 sm:$0xff]  }
   0x6   :  { %v2872_v13 = vld [vmem:[%s4355_s1 + $0x394] ss:$24 sps:$4 sm:$0xff]   ;;  %v2875_v15 = vld [vmem:[%s4355_s1 + $0x390] ss:$24 sps:$4 sm:$0xff]   ;;  %v2878_v17 = vld [vmem:[%s4355_s1 + $0x3c4] ss:$24 sps:$4 sm:$0xff]  }
   0x7   :  { %1818 = vmatpush1.bf16.msra.mxu1 %v2862_v6  ;;  %v2880_v18 = vld [vmem:[%s4355_s1 + $0xc0] ss:$24 sps:$4 sm:$0xff]   ;;  %v2882_v20 = vld [vmem:[%s4355_s1 + $0xf4] ss:$24 sps:$4 sm:$0xff]   ;;  %v2886_v22 = vld [vmem:[%s4355_s1 + $0xf0] ss:$24 sps:$4 sm:$0xff]  }
   0x8   :  { %1861 = vmatpush1.bf16.msra.mxu0 %v2863_v7  ;;  %1819 = vmatprep.subr.bf16.mxu1 %v2864_v8  ;;  %v2881_v19 = vld [vmem:[%s4355_s1 + $0x3c0] ss:$24 sps:$4 sm:$0xff]   ;;  %v2884_v21 = vld [vmem:[%s4355_s1 + $0x3f4] ss:$24 sps:$4 sm:$0xff]   ;;  %v2887_v23 = vld [vmem:[%s4355_s1 + $0x3f0] ss:$24 sps:$4 sm:$0xff]  }
   0x9   :  { %1862 = vmatprep.subr.bf16.mxu0 %v2866_v9  ;;  %v2888_v24 = vld [vmem:[%s4355_s1 + $0x124] ss:$24 sps:$4 sm:$0xff]   ;;  %v2892_v26 = vld [vmem:[%s4355_s1 + $0x120] ss:$24 sps:$4 sm:$0xff]   ;;  %v2894_v28 = vld [vmem:[%s4355_s1 + $0x154] ss:$24 sps:$4 sm:$0xff]  }
   0xa   :  { %v2890_v25 = vld [vmem:[%s4355_s1 + $0x424] ss:$24 sps:$4 sm:$0xff]   ;;  %v2893_v27 = vld [vmem:[%s4355_s1 + $0x420] ss:$24 sps:$4 sm:$0xff]   ;;  %v2896_v29 = vld [vmem:[%s4355_s1 + $0x454] ss:$24 sps:$4 sm:$0xff]  }
   0xb   :  { %1820 = vmatpush1.bf16.msra.mxu1 %v2868_v10  ;;  %v2898_v30 = vld [vmem:[%s4355_s1 + $0x150] ss:$24 sps:$4 sm:$0xff]   ;;  %v2900_v32 = vld [vmem:[%s4355_s1 + $0x184] ss:$24 sps:$4 sm:$0xff]   ;;  %v2904_v34 = vld [vmem:[%s4355_s1 + $0x180] ss:$24 sps:$4 sm:$0xff]  }
   0xc   :  { %1863 = vmatpush1.bf16.msra.mxu0 %v2869_v11  ;;  %1821 = vmatprep.subr.bf16.mxu1 %v2870_v12  ;;  %v2899_v31 = vld [vmem:[%s4355_s1 + $0x450] ss:$24 sps:$4 sm:$0xff]   ;;  %v2902_v33 = vld [vmem:[%s4355_s1 + $0x484] ss:$24 sps:$4 sm:$0xff]   ;;  %v2905_v35 = vld [vmem:[%s4355_s1 + $0x480] ss:$24 sps:$4 sm:$0xff]  }
   0xd   :  { %1864 = vmatprep.subr.bf16.mxu0 %v2872_v13  ;;  %v2906_v36 = vld [vmem:[%s4355_s1 + $0x1b4] ss:$24 sps:$4 sm:$0xff]   ;;  %v2910_v38 = vld [vmem:[%s4355_s1 + $0x1b0] ss:$24 sps:$4 sm:$0xff]   ;;  %v2912_v40 = vld [vmem:[%s4355_s1 + $0x1e4] ss:$24 sps:$4 sm:$0xff]  }
   0xe   :  { %v2908_v37 = vld [vmem:[%s4355_s1 + $0x4b4] ss:$24 sps:$4 sm:$0xff]   ;;  %v2911_v39 = vld [vmem:[%s4355_s1 + $0x4b0] ss:$24 sps:$4 sm:$0xff]   ;;  %v2914_v41 = vld [vmem:[%s4355_s1 + $0x4e4] ss:$24 sps:$4 sm:$0xff]  }
   0xf   :  { %1822 = vmatpush1.bf16.msra.mxu1 %v2874_v14  ;;  %v2916_v42 = vld [vmem:[%s4355_s1 + $0x1e0] ss:$24 sps:$4 sm:$0xff]   ;;  %v2918_v44 = vld [vmem:[%s4355_s1 + $0x214] ss:$24 sps:$4 sm:$0xff]   ;;  %v2922_v46 = vld [vmem:[%s4355_s1 + $0x210] ss:$24 sps:$4 sm:$0xff]  }
  0x10   :  { %1865 = vmatpush1.bf16.msra.mxu0 %v2875_v15  ;;  %1823 = vmatprep.subr.bf16.mxu1 %v2876_v16  ;;  %v2917_v43 = vld [vmem:[%s4355_s1 + $0x4e0] ss:$24 sps:$4 sm:$0xff]   ;;  %v2920_v45 = vld [vmem:[%s4355_s1 + $0x514] ss:$24 sps:$4 sm:$0xff]   ;;  %v2923_v47 = vld [vmem:[%s4355_s1 + $0x510] ss:$24 sps:$4 sm:$0xff]  }
  0x11   :  { %1866 = vmatprep.subr.bf16.mxu0 %v2878_v17  ;;  %v3481_v48 = vld [vmem:[%s4356_s0 + $0x4] ss:$24 sps:$4 sm:$0xff]   ;;  %v2928_v52 = vld [vmem:[%s4355_s1 + $0x240] ss:$24 sps:$4 sm:$0xff]   ;;  %v2930_v54 = vld [vmem:[%s4355_s1 + $0x274] ss:$24 sps:$4 sm:$0xff]  }
  0x12   :  { %v3486_v49 = vld [vmem:[%s4356_s0 + $0xc] ss:$24 sps:$4 sm:$0xff]   ;;  %1847 = vmatprep.mubr.bf16.mxu1 %v3481_v48  ;;  %v2929_v53 = vld [vmem:[%s4355_s1 + $0x540] ss:$24 sps:$4 sm:$0xff]   ;;  %v2934_v56 = vld [vmem:[%s4355_s1 + $0x270] ss:$24 sps:$4 sm:$0xff]  }
  0x13   :  { %1824 = vmatpush1.bf16.msra.mxu1 %v2880_v18  ;;  %v2924_v50 = vld [vmem:[%s4355_s1 + $0x244] ss:$24 sps:$4 sm:$0xff]   ;;  %1890 = vmatprep.mubr.bf16.mxu0 %v3486_v49  ;;  %v2932_v55 = vld [vmem:[%s4355_s1 + $0x574] ss:$24 sps:$4 sm:$0xff]   ;;  %v2935_v57 = vld [vmem:[%s4355_s1 + $0x570] ss:$24 sps:$4 sm:$0xff]  }
  0x14   :  { %1867 = vmatpush1.bf16.msra.mxu0 %v2881_v19  ;;  %1825 = vmatprep.subr.bf16.mxu1 %v2882_v20  ;;  %v2926_v51 = vld [vmem:[%s4355_s1 + $0x544] ss:$24 sps:$4 sm:$0xff]   ;;  %v2940_v60 = vld [vmem:[%s4355_s1 + $0x2a0] ss:$24 sps:$4 sm:$0xff]   ;;  %v2942_v62 = vld [vmem:[%s4355_s1 + $0x2d4] ss:$24 sps:$4 sm:$0xff]  }
  0x15   :  { %1868 = vmatprep.subr.bf16.mxu0 %v2884_v21  ;;  %v2936_v58 = vld [vmem:[%s4355_s1 + $0x2a4] ss:$24 sps:$4 sm:$0xff]   ;;  %v2941_v61 = vld [vmem:[%s4355_s1 + $0x5a0] ss:$24 sps:$4 sm:$0xff]   ;;  %v2944_v63 = vld [vmem:[%s4355_s1 + $0x5d4] ss:$24 sps:$4 sm:$0xff]  }
  0x16   :  { %v2938_v59 = vld [vmem:[%s4355_s1 + $0x5a4] ss:$24 sps:$4 sm:$0xff]   ;;  %v2946_v0 = vld [vmem:[%s4355_s1 + $0x2d0] ss:$24 sps:$4 sm:$0xff]   ;;  %v2952_v4 = vld [vmem:[%s4355_s1 + $0x600] ss:$24 sps:$4 sm:$0xff]  }
  0x17   :  { %1826 = vmatpush1.bf16.msra.mxu1 %v2886_v22  ;;  %v2947_v1 = vld [vmem:[%s4355_s1 + $0x5d0] ss:$24 sps:$4 sm:$0xff]   ;;  %v2954_v2 = vld [vmem:[%s4355_s1 + $0x604] ss:$24 sps:$4 sm:$0xff]   ;;  %v3553_v6 = vld [vmem:[%s4356_s0] ss:$24 sps:$4 sm:$0xff]  }
  0x18   :  { %1869 = vmatpush1.bf16.msra.mxu0 %v2887_v23  ;;  %1827 = vmatprep.subr.bf16.mxu1 %v2888_v24  ;;  %v2957_v3 = vld [vmem:[%s4355_s1 + $0xc] ss:$24 sps:$4 sm:$0xff]   ;;  %v2955_v5 = vld [vmem:[%s4355_s1 + $0x8] ss:$24 sps:$4 sm:$0xff]   ;;  %v2965_v9 = vld [vmem:[%s4355_s1 + $0x3c] ss:$24 sps:$4 sm:$0xff]  }
  0x19   :  { %1870 = vmatprep.subr.bf16.mxu0 %v2890_v25  ;;  %v3558_v7 = vld [vmem:[%s4356_s0 + $0x8] ss:$24 sps:$4 sm:$0xff]   ;;  %v2962_v8 = vld [vmem:[%s4355_s1 + $0x634] ss:$24 sps:$4 sm:$0xff]   ;;  %v2963_v11 = vld [vmem:[%s4355_s1 + $0x38] ss:$24 sps:$4 sm:$0xff]  }
  0x1a   :  { %v2960_v10 = vld [vmem:[%s4355_s1 + $0x630] ss:$24 sps:$4 sm:$0xff]   ;;  %v2968_v12 = vld [vmem:[%s4355_s1 + $0x664] ss:$24 sps:$4 sm:$0xff]   ;;  %v2966_v14 = vld [vmem:[%s4355_s1 + $0x660] ss:$24 sps:$4 sm:$0xff]  }
  0x1b   :  { %1828 = vmatpush1.bf16.msra.mxu1 %v2892_v26  ;;  %v2971_v13 = vld [vmem:[%s4355_s1 + $0x6c] ss:$24 sps:$4 sm:$0xff]   ;;  %v2969_v15 = vld [vmem:[%s4355_s1 + $0x68] ss:$24 sps:$4 sm:$0xff]   ;;  %v2977_v17 = vld [vmem:[%s4355_s1 + $0x9c] ss:$24 sps:$4 sm:$0xff]  }
  0x1c   :  { %1871 = vmatpush1.bf16.msra.mxu0 %v2893_v27  ;;  %1829 = vmatprep.subr.bf16.mxu1 %v2894_v28  ;;  %v2974_v16 = vld [vmem:[%s4355_s1 + $0x694] ss:$24 sps:$4 sm:$0xff]   ;;  %v2972_v18 = vld [vmem:[%s4355_s1 + $0x690] ss:$24 sps:$4 sm:$0xff]   ;;  %v2980_v20 = vld [vmem:[%s4355_s1 + $0x6c4] ss:$24 sps:$4 sm:$0xff]  }
  0x1d   :  { %1872 = vmatprep.subr.bf16.mxu0 %v2896_v29  ;;  %v2975_v19 = vld [vmem:[%s4355_s1 + $0x98] ss:$24 sps:$4 sm:$0xff]   ;;  %v2983_v21 = vld [vmem:[%s4355_s1 + $0xcc] ss:$24 sps:$4 sm:$0xff]   ;;  %v2981_v23 = vld [vmem:[%s4355_s1 + $0xc8] ss:$24 sps:$4 sm:$0xff]  }
  0x1e   :  { %v2978_v22 = vld [vmem:[%s4355_s1 + $0x6c0] ss:$24 sps:$4 sm:$0xff]   ;;  %v2986_v24 = vld [vmem:[%s4355_s1 + $0x6f4] ss:$24 sps:$4 sm:$0xff]   ;;  %v2984_v26 = vld [vmem:[%s4355_s1 + $0x6f0] ss:$24 sps:$4 sm:$0xff]  }
  0x1f   :  { %1830 = vmatpush1.bf16.msra.mxu1 %v2898_v30  ;;  %v2989_v25 = vld [vmem:[%s4355_s1 + $0xfc] ss:$24 sps:$4 sm:$0xff]   ;;  %v2987_v27 = vld [vmem:[%s4355_s1 + $0xf8] ss:$24 sps:$4 sm:$0xff]   ;;  %v2995_v29 = vld [vmem:[%s4355_s1 + $0x12c] ss:$24 sps:$4 sm:$0xff]  }
  0x20   :  { %1873 = vmatpush1.bf16.msra.mxu0 %v2899_v31  ;;  %1831 = vmatprep.subr.bf16.mxu1 %v2900_v32  ;;  %v2992_v28 = vld [vmem:[%s4355_s1 + $0x724] ss:$24 sps:$4 sm:$0xff]   ;;  %v2990_v30 = vld [vmem:[%s4355_s1 + $0x720] ss:$24 sps:$4 sm:$0xff]   ;;  %v2998_v32 = vld [vmem:[%s4355_s1 + $0x754] ss:$24 sps:$4 sm:$0xff]  }
  0x21   :  { %1874 = vmatprep.subr.bf16.mxu0 %v2902_v33  ;;  %v2993_v31 = vld [vmem:[%s4355_s1 + $0x128] ss:$24 sps:$4 sm:$0xff]   ;;  %v3001_v33 = vld [vmem:[%s4355_s1 + $0x15c] ss:$24 sps:$4 sm:$0xff]  }
  0x23   :  { %1832 = vmatpush1.bf16.msra.mxu1 %v2904_v34  ;;  %v3644_v34 = vld [vmem:[%s4356_s0 + $0x14] ss:$24 sps:$4 sm:$0xff]  }
  0x24   :  { %1875 = vmatpush1.bf16.msra.mxu0 %v2905_v35  ;;  %1833 = vmatprep.subr.bf16.mxu1 %v2906_v36  ;;  %v2996_v35 = vld [vmem:[%s4355_s1 + $0x750] ss:$24 sps:$4 sm:$0xff]  }
  0x25   :  { %1876 = vmatprep.subr.bf16.mxu0 %v2908_v37  ;;  %v2999_v36 = vld [vmem:[%s4355_s1 + $0x158] ss:$24 sps:$4 sm:$0xff]   ;;  %v3004_v37 = vld [vmem:[%s4355_s1 + $0x784] ss:$24 sps:$4 sm:$0xff]  }
  0x27   :  { %1834 = vmatpush1.bf16.msra.mxu1 %v2910_v38  ;;  %v3007_v38 = vld [vmem:[%s4355_s1 + $0x18c] ss:$24 sps:$4 sm:$0xff]  }
  0x28   :  { %1877 = vmatpush1.bf16.msra.mxu0 %v2911_v39  ;;  %1835 = vmatprep.subr.bf16.mxu1 %v2912_v40  ;;  %v3002_v39 = vld [vmem:[%s4355_s1 + $0x780] ss:$24 sps:$4 sm:$0xff]  }
  0x29   :  { %1878 = vmatprep.subr.bf16.mxu0 %v2914_v41  ;;  %v3005_v40 = vld [vmem:[%s4355_s1 + $0x188] ss:$24 sps:$4 sm:$0xff]   ;;  %v3010_v41 = vld [vmem:[%s4355_s1 + $0x7b4] ss:$24 sps:$4 sm:$0xff]  }
  0x2b   :  { %1836 = vmatpush1.bf16.msra.mxu1 %v2916_v42  ;;  %v3013_v42 = vld [vmem:[%s4355_s1 + $0x1bc] ss:$24 sps:$4 sm:$0xff]  }
  0x2c   :  { %1879 = vmatpush1.bf16.msra.mxu0 %v2917_v43  ;;  %1837 = vmatprep.subr.bf16.mxu1 %v2918_v44  ;;  %v3008_v43 = vld [vmem:[%s4355_s1 + $0x7b0] ss:$24 sps:$4 sm:$0xff]  }
  0x2d   :  { %1880 = vmatprep.subr.bf16.mxu0 %v2920_v45  ;;  %v3011_v44 = vld [vmem:[%s4355_s1 + $0x1b8] ss:$24 sps:$4 sm:$0xff]   ;;  %v3016_v45 = vld [vmem:[%s4355_s1 + $0x7e4] ss:$24 sps:$4 sm:$0xff]  }
  0x2f   :  { %1838 = vmatpush1.bf16.msra.mxu1 %v2922_v46  ;;  %v3019_v46 = vld [vmem:[%s4355_s1 + $0x1ec] ss:$24 sps:$4 sm:$0xff]  }
  0x30   :  { %1881 = vmatpush1.bf16.msra.mxu0 %v2923_v47  ;;  %1839 = vmatprep.subr.bf16.mxu1 %v2924_v50  ;;  %v3014_v47 = vld [vmem:[%s4355_s1 + $0x7e0] ss:$24 sps:$4 sm:$0xff]  }
  0x31   :  { %1882 = vmatprep.subr.bf16.mxu0 %v2926_v51  ;;  %v3017_v50 = vld [vmem:[%s4355_s1 + $0x1e8] ss:$24 sps:$4 sm:$0xff]   ;;  %v3022_v51 = vld [vmem:[%s4355_s1 + $0x814] ss:$24 sps:$4 sm:$0xff]  }
  0x33   :  { %1840 = vmatpush1.bf16.msra.mxu1 %v2928_v52  ;;  %v3025_v52 = vld [vmem:[%s4355_s1 + $0x21c] ss:$24 sps:$4 sm:$0xff]  }
  0x34   :  { %1883 = vmatpush1.bf16.msra.mxu0 %v2929_v53  ;;  %1841 = vmatprep.subr.bf16.mxu1 %v2930_v54  ;;  %v3020_v53 = vld [vmem:[%s4355_s1 + $0x810] ss:$24 sps:$4 sm:$0xff]  }
  0x35   :  { %1884 = vmatprep.subr.bf16.mxu0 %v2932_v55  ;;  %v3023_v54 = vld [vmem:[%s4355_s1 + $0x218] ss:$24 sps:$4 sm:$0xff]   ;;  %v3028_v55 = vld [vmem:[%s4355_s1 + $0x844] ss:$24 sps:$4 sm:$0xff]  }
  0x37   :  { %1842 = vmatpush1.bf16.msra.mxu1 %v2934_v56  ;;  %v3031_v56 = vld [vmem:[%s4355_s1 + $0x24c] ss:$24 sps:$4 sm:$0xff]  }
  0x38   :  { %1885 = vmatpush1.bf16.msra.mxu0 %v2935_v57  ;;  %1843 = vmatprep.subr.bf16.mxu1 %v2936_v58  ;;  %v3026_v57 = vld [vmem:[%s4355_s1 + $0x840] ss:$24 sps:$4 sm:$0xff]  }
  0x39   :  { %1886 = vmatprep.subr.bf16.mxu0 %v2938_v59  ;;  %v3029_v58 = vld [vmem:[%s4355_s1 + $0x248] ss:$24 sps:$4 sm:$0xff]   ;;  %v3034_v59 = vld [vmem:[%s4355_s1 + $0x874] ss:$24 sps:$4 sm:$0xff]  }
  0x3b   :  { %1844 = vmatpush1.bf16.msra.mxu1 %v2940_v60  ;;  %v3037_v60 = vld [vmem:[%s4355_s1 + $0x27c] ss:$24 sps:$4 sm:$0xff]  }
  0x3c   :  { %1887 = vmatpush1.bf16.msra.mxu0 %v2941_v61  ;;  %1845 = vmatprep.subr.bf16.mxu1 %v2942_v62  ;;  %v3032_v61 = vld [vmem:[%s4355_s1 + $0x870] ss:$24 sps:$4 sm:$0xff]  }
  0x3d   :  { %1888 = vmatprep.subr.bf16.mxu0 %v2944_v63  ;;  %v3035_v62 = vld [vmem:[%s4355_s1 + $0x278] ss:$24 sps:$4 sm:$0xff]   ;;  %v3040_v63 = vld [vmem:[%s4355_s1 + $0x8a4] ss:$24 sps:$4 sm:$0xff]  }
  0x3f   :  { %1846 = vmatpush1.bf16.msra.mxu1 %v2946_v0  ;;  %v3043_v0 = vld [vmem:[%s4355_s1 + $0x2ac] ss:$24 sps:$4 sm:$0xff]  }
  0x40   :  { %1889 = vmatpush1.bf16.msra.mxu0 %v2947_v1  ;;  %1944 = vmatprep.subr.bf16.mxu1 %v2957_v3  ;;  %v3038_v1 = vld [vmem:[%s4355_s1 + $0x8a0] ss:$24 sps:$4 sm:$0xff]   ;;  %v3046_v3 = vld [vmem:[%s4355_s1 + $0x8d4] ss:$24 sps:$4 sm:$0xff]  }
  0x41   :  { %1901 = vmatprep.subr.bf16.mxu0 %v2954_v2  ;;  %v3041_v2 = vld [vmem:[%s4355_s1 + $0x2a8] ss:$24 sps:$4 sm:$0xff]  }
  0x42   :  { %1848 = vmatmul.mubr.bf16.vlgmr.msra.gmra.mrb[0].mxu1 %v3553_v6 }
  0x43   :  { %1891 = vmatmul.mubr.bf16.vlgmr.msra.gmra.mrb[0].mxu0 %v3558_v7  ;;  %1945 = vmatpush1.bf16.msra.mxu1 %v2955_v5  ;;  %v3044_v5 = vld [vmem:[%s4355_s1 + $0x8d0] ss:$24 sps:$4 sm:$0xff]  }
  0x44   :  { %1902 = vmatpush1.bf16.msra.mxu0 %v2952_v4  ;;  %1946 = vmatprep.subr.bf16.mxu1 %v2965_v9  ;;  %v3049_v4 = vld [vmem:[%s4355_s1 + $0x2dc] ss:$24 sps:$4 sm:$0xff]   ;;  %v3055_v9 = vld [vmem:[%s4355_s1 + $0x30c] ss:$24 sps:$4 sm:$0xff]  }
  0x45   :  { %1903 = vmatprep.subr.bf16.mxu0 %v2962_v8  ;;  %1976 = vmatprep.mubr.bf16.mxu1 %v3481_v48  ;;  %v3047_v8 = vld [vmem:[%s4355_s1 + $0x2d8] ss:$24 sps:$4 sm:$0xff]  }
  0x46   :  { %1933 = vmatprep.mubr.bf16.mxu0 %v3644_v34 }
  0x47   :  { %1947 = vmatpush1.bf16.msra.mxu1 %v2963_v11  ;;  %v3758_v11 = vld [vmem:[%s4356_s0 + $0x10] ss:$24 sps:$4 sm:$0xff]  }
  0x48   :  { %1904 = vmatpush1.bf16.msra.mxu0 %v2960_v10  ;;  %1948 = vmatprep.subr.bf16.mxu1 %v2971_v13  ;;  %v3058_v10 = vld [vmem:[%s4355_s1 + $0x14] ss:$24 sps:$4 sm:$0xff]   ;;  %v3056_v13 = vld [vmem:[%s4355_s1 + $0x10] ss:$24 sps:$4 sm:$0xff]  }
  0x49   :  { %1905 = vmatprep.subr.bf16.mxu0 %v2968_v12  ;;  %v3053_v12 = vld [vmem:[%s4355_s1 + $0x308] ss:$24 sps:$4 sm:$0xff]  }
  0x4b   :  { %1949 = vmatpush1.bf16.msra.mxu1 %v2969_v15  ;;  %v3064_v15 = vld [vmem:[%s4355_s1 + $0x44] ss:$24 sps:$4 sm:$0xff]  }
  0x4c   :  { %1906 = vmatpush1.bf16.msra.mxu0 %v2966_v14  ;;  %1950 = vmatprep.subr.bf16.mxu1 %v2977_v17  ;;  %v3061_v14 = vld [vmem:[%s4355_s1 + $0x33c] ss:$24 sps:$4 sm:$0xff]   ;;  %v3062_v17 = vld [vmem:[%s4355_s1 + $0x40] ss:$24 sps:$4 sm:$0xff]  }
  0x4d   :  { %1907 = vmatprep.subr.bf16.mxu0 %v2974_v16  ;;  %v3059_v16 = vld [vmem:[%s4355_s1 + $0x338] ss:$24 sps:$4 sm:$0xff]  }
  0x4f   :  { %1951 = vmatpush1.bf16.msra.mxu1 %v2975_v19  ;;  %v3070_v19 = vld [vmem:[%s4355_s1 + $0x74] ss:$24 sps:$4 sm:$0xff]  }
  0x50   :  { %1908 = vmatpush1.bf16.msra.mxu0 %v2972_v18  ;;  %1952 = vmatprep.subr.bf16.mxu1 %v2983_v21  ;;  %v3067_v18 = vld [vmem:[%s4355_s1 + $0x36c] ss:$24 sps:$4 sm:$0xff]   ;;  %v3068_v21 = vld [vmem:[%s4355_s1 + $0x70] ss:$24 sps:$4 sm:$0xff]  }
  0x51   :  { %1909 = vmatprep.subr.bf16.mxu0 %v2980_v20  ;;  %v3065_v20 = vld [vmem:[%s4355_s1 + $0x368] ss:$24 sps:$4 sm:$0xff]  }
  0x53   :  { %1953 = vmatpush1.bf16.msra.mxu1 %v2981_v23  ;;  %v3074_v23 = vld [vmem:[%s4355_s1 + $0xa0] ss:$24 sps:$4 sm:$0xff]  }
  0x54   :  { %1910 = vmatpush1.bf16.msra.mxu0 %v2978_v22  ;;  %1954 = vmatprep.subr.bf16.mxu1 %v2989_v25  ;;  %v3073_v22 = vld [vmem:[%s4355_s1 + $0x39c] ss:$24 sps:$4 sm:$0xff]  }
  0x55   :  { %1911 = vmatprep.subr.bf16.mxu0 %v2986_v24  ;;  %v3079_v24 = vld [vmem:[%s4355_s1 + $0x3cc] ss:$24 sps:$4 sm:$0xff]  }
  0x56   :  { %v3082_v25 = vld [vmem:[%s4355_s1 + $0xd4] ss:$24 sps:$4 sm:$0xff]  }
  0x57   :  { %1955 = vmatpush1.bf16.msra.mxu1 %v2987_v27  ;;  %v3080_v27 = vld [vmem:[%s4355_s1 + $0xd0] ss:$24 sps:$4 sm:$0xff]  }
  0x58   :  { %1912 = vmatpush1.bf16.msra.mxu0 %v2984_v26  ;;  %1956 = vmatprep.subr.bf16.mxu1 %v2995_v29  ;;  %v3077_v26 = vld [vmem:[%s4355_s1 + $0x3c8] ss:$24 sps:$4 sm:$0xff]   ;;  %v3088_v29 = vld [vmem:[%s4355_s1 + $0x104] ss:$24 sps:$4 sm:$0xff]  }
  0x59   :  { %1913 = vmatprep.subr.bf16.mxu0 %v2992_v28  ;;  %v3085_v28 = vld [vmem:[%s4355_s1 + $0x3fc] ss:$24 sps:$4 sm:$0xff]  }
  0x5b   :  { %1957 = vmatpush1.bf16.msra.mxu1 %v2993_v31  ;;  %v3086_v31 = vld [vmem:[%s4355_s1 + $0x100] ss:$24 sps:$4 sm:$0xff]  }
  0x5c   :  { %1914 = vmatpush1.bf16.msra.mxu0 %v2990_v30  ;;  %1958 = vmatprep.subr.bf16.mxu1 %v3001_v33  ;;  %v3083_v30 = vld [vmem:[%s4355_s1 + $0x3f8] ss:$24 sps:$4 sm:$0xff]   ;;  %v3094_v33 = vld [vmem:[%s4355_s1 + $0x134] ss:$24 sps:$4 sm:$0xff]  }
  0x5d   :  { %1915 = vmatprep.subr.bf16.mxu0 %v2998_v32  ;;  %v3091_v32 = vld [vmem:[%s4355_s1 + $0x42c] ss:$24 sps:$4 sm:$0xff]  }
  0x5f   :  { %1959 = vmatpush1.bf16.msra.mxu1 %v2999_v36  ;;  %v3092_v36 = vld [vmem:[%s4355_s1 + $0x130] ss:$24 sps:$4 sm:$0xff]  }
  0x60   :  { %1916 = vmatpush1.bf16.msra.mxu0 %v2996_v35  ;;  %1960 = vmatprep.subr.bf16.mxu1 %v3007_v38  ;;  %v3089_v35 = vld [vmem:[%s4355_s1 + $0x428] ss:$24 sps:$4 sm:$0xff]   ;;  %v3100_v38 = vld [vmem:[%s4355_s1 + $0x164] ss:$24 sps:$4 sm:$0xff]  }
  0x61   :  { %1917 = vmatprep.subr.bf16.mxu0 %v3004_v37  ;;  %v3097_v37 = vld [vmem:[%s4355_s1 + $0x45c] ss:$24 sps:$4 sm:$0xff]  }
  0x63   :  { %1961 = vmatpush1.bf16.msra.mxu1 %v3005_v40  ;;  %v3098_v40 = vld [vmem:[%s4355_s1 + $0x160] ss:$24 sps:$4 sm:$0xff]  }
  0x64   :  { %1918 = vmatpush1.bf16.msra.mxu0 %v3002_v39  ;;  %1962 = vmatprep.subr.bf16.mxu1 %v3013_v42  ;;  %v3095_v39 = vld [vmem:[%s4355_s1 + $0x458] ss:$24 sps:$4 sm:$0xff]   ;;  %v3106_v42 = vld [vmem:[%s4355_s1 + $0x194] ss:$24 sps:$4 sm:$0xff]  }
  0x65   :  { %1919 = vmatprep.subr.bf16.mxu0 %v3010_v41  ;;  %v3103_v41 = vld [vmem:[%s4355_s1 + $0x48c] ss:$24 sps:$4 sm:$0xff]  }
  0x67   :  { %1963 = vmatpush1.bf16.msra.mxu1 %v3011_v44  ;;  %v3104_v44 = vld [vmem:[%s4355_s1 + $0x190] ss:$24 sps:$4 sm:$0xff]  }
  0x68   :  { %1920 = vmatpush1.bf16.msra.mxu0 %v3008_v43  ;;  %1964 = vmatprep.subr.bf16.mxu1 %v3019_v46  ;;  %v3101_v43 = vld [vmem:[%s4355_s1 + $0x488] ss:$24 sps:$4 sm:$0xff]   ;;  %v3112_v46 = vld [vmem:[%s4355_s1 + $0x1c4] ss:$24 sps:$4 sm:$0xff]  }
  0x69   :  { %1921 = vmatprep.subr.bf16.mxu0 %v3016_v45  ;;  %v3109_v45 = vld [vmem:[%s4355_s1 + $0x4bc] ss:$24 sps:$4 sm:$0xff]  }
  0x6b   :  { %1965 = vmatpush1.bf16.msra.mxu1 %v3017_v50  ;;  %v3110_v50 = vld [vmem:[%s4355_s1 + $0x1c0] ss:$24 sps:$4 sm:$0xff]  }
  0x6c   :  { %1922 = vmatpush1.bf16.msra.mxu0 %v3014_v47  ;;  %1966 = vmatprep.subr.bf16.mxu1 %v3025_v52  ;;  %v3107_v47 = vld [vmem:[%s4355_s1 + $0x4b8] ss:$24 sps:$4 sm:$0xff]   ;;  %v3118_v52 = vld [vmem:[%s4355_s1 + $0x1f4] ss:$24 sps:$4 sm:$0xff]  }
  0x6d   :  { %1923 = vmatprep.subr.bf16.mxu0 %v3022_v51  ;;  %v3115_v51 = vld [vmem:[%s4355_s1 + $0x4ec] ss:$24 sps:$4 sm:$0xff]  }
  0x6f   :  { %1967 = vmatpush1.bf16.msra.mxu1 %v3023_v54  ;;  %v3116_v54 = vld [vmem:[%s4355_s1 + $0x1f0] ss:$24 sps:$4 sm:$0xff]  }
  0x70   :  { %1924 = vmatpush1.bf16.msra.mxu0 %v3020_v53  ;;  %1968 = vmatprep.subr.bf16.mxu1 %v3031_v56  ;;  %v3113_v53 = vld [vmem:[%s4355_s1 + $0x4e8] ss:$24 sps:$4 sm:$0xff]   ;;  %v3124_v56 = vld [vmem:[%s4355_s1 + $0x224] ss:$24 sps:$4 sm:$0xff]  }
  0x71   :  { %1925 = vmatprep.subr.bf16.mxu0 %v3028_v55  ;;  %v3121_v55 = vld [vmem:[%s4355_s1 + $0x51c] ss:$24 sps:$4 sm:$0xff]  }
  0x73   :  { %1969 = vmatpush1.bf16.msra.mxu1 %v3029_v58  ;;  %v3122_v58 = vld [vmem:[%s4355_s1 + $0x220] ss:$24 sps:$4 sm:$0xff]  }
  0x74   :  { %1926 = vmatpush1.bf16.msra.mxu0 %v3026_v57  ;;  %1970 = vmatprep.subr.bf16.mxu1 %v3037_v60  ;;  %v3119_v57 = vld [vmem:[%s4355_s1 + $0x518] ss:$24 sps:$4 sm:$0xff]   ;;  %v3130_v60 = vld [vmem:[%s4355_s1 + $0x254] ss:$24 sps:$4 sm:$0xff]  }
  0x75   :  { %1927 = vmatprep.subr.bf16.mxu0 %v3034_v59  ;;  %v3127_v59 = vld [vmem:[%s4355_s1 + $0x54c] ss:$24 sps:$4 sm:$0xff]  }
  0x77   :  { %1971 = vmatpush1.bf16.msra.mxu1 %v3035_v62  ;;  %v3128_v62 = vld [vmem:[%s4355_s1 + $0x250] ss:$24 sps:$4 sm:$0xff]  }
  0x78   :  { %1928 = vmatpush1.bf16.msra.mxu0 %v3032_v61  ;;  %1972 = vmatprep.subr.bf16.mxu1 %v3043_v0  ;;  %v3125_v61 = vld [vmem:[%s4355_s1 + $0x548] ss:$24 sps:$4 sm:$0xff]   ;;  %v3136_v0 = vld [vmem:[%s4355_s1 + $0x284] ss:$24 sps:$4 sm:$0xff]  }
  0x79   :  { %1929 = vmatprep.subr.bf16.mxu0 %v3040_v63  ;;  %v3133_v63 = vld [vmem:[%s4355_s1 + $0x57c] ss:$24 sps:$4 sm:$0xff]  }
  0x7b   :  { %1973 = vmatpush1.bf16.msra.mxu1 %v3041_v2  ;;  %v3134_v2 = vld [vmem:[%s4355_s1 + $0x280] ss:$24 sps:$4 sm:$0xff]  }
  0x7c   :  { %1930 = vmatpush1.bf16.msra.mxu0 %v3038_v1  ;;  %1974 = vmatprep.subr.bf16.mxu1 %v3049_v4  ;;  %v3131_v1 = vld [vmem:[%s4355_s1 + $0x578] ss:$24 sps:$4 sm:$0xff]   ;;  %v3142_v4 = vld [vmem:[%s4355_s1 + $0x2b4] ss:$24 sps:$4 sm:$0xff]  }
  0x7d   :  { %1931 = vmatprep.subr.bf16.mxu0 %v3046_v3  ;;  %v3139_v3 = vld [vmem:[%s4355_s1 + $0x5ac] ss:$24 sps:$4 sm:$0xff]  }
  0x7f   :  { %1975 = vmatpush1.bf16.msra.mxu1 %v3047_v8  ;;  %v3140_v8 = vld [vmem:[%s4355_s1 + $0x2b0] ss:$24 sps:$4 sm:$0xff]  }
  0x80   :  { %1932 = vmatpush1.bf16.msra.mxu0 %v3044_v5  ;;  %1987 = vmatprep.subr.bf16.mxu1 %v3055_v9  ;;  %v3137_v5 = vld [vmem:[%s4355_s1 + $0x5a8] ss:$24 sps:$4 sm:$0xff]   ;;  %v3145_v9 = vld [vmem:[%s4355_s1 + $0x5dc] ss:$24 sps:$4 sm:$0xff]  }
  0x81   :  { %2073 = vmatprep.subr.bf16.mxu0 %v3058_v10  ;;  %v3148_v10 = vld [vmem:[%s4355_s1 + $0x2e4] ss:$24 sps:$4 sm:$0xff]  }
  0x82   :  { %1977 = vmatmul.mubr.bf16.vlgmr.msra.gmra.mrb[4].mxu1 %v3553_v6 }
  0x83   :  { %1934 = vmatmul.mubr.bf16.vlgmr.msra.gmra.mrb[0].mxu0 %v3758_v11  ;;  %1988 = vmatpush1.bf16.msra.mxu1 %v3053_v12  ;;  %v3143_v12 = vld [vmem:[%s4355_s1 + $0x5d8] ss:$24 sps:$4 sm:$0xff]  }
  0x84   :  { %2074 = vmatpush1.bf16.msra.mxu0 %v3056_v13  ;;  %1989 = vmatprep.subr.bf16.mxu1 %v3061_v14  ;;  %v3146_v13 = vld [vmem:[%s4355_s1 + $0x2e0] ss:$24 sps:$4 sm:$0xff]   ;;  %v3151_v14 = vld [vmem:[%s4355_s1 + $0x60c] ss:$24 sps:$4 sm:$0xff]  }
  0x85   :  { %2075 = vmatprep.subr.bf16.mxu0 %v3064_v15  ;;  %2019 = vmatprep.mubr.bf16.mxu1 %v3486_v49  ;;  %v3071_v49 = vld [vmem:[%s4355_s1 + $0x398] ss:$24 sps:$4 sm:$0xff]   ;;  %v3154_v15 = vld [vmem:[%s4355_s1 + $0x314] ss:$24 sps:$4 sm:$0xff]  }
  0x86   :  { %2105 = vmatprep.mubr.bf16.mxu0 %v3481_v48  ;;  %v3076_v48 = vld [vmem:[%s4355_s1 + $0xa4] ss:$24 sps:$4 sm:$0xff]  }
  0x87   :  { %1990 = vmatpush1.bf16.msra.mxu1 %v3059_v16  ;;  %v3149_v16 = vld [vmem:[%s4355_s1 + $0x608] ss:$24 sps:$4 sm:$0xff]  }
  0x88   :  { %2076 = vmatpush1.bf16.msra.mxu0 %v3062_v17  ;;  %1991 = vmatprep.subr.bf16.mxu1 %v3067_v18  ;;  %v3152_v17 = vld [vmem:[%s4355_s1 + $0x310] ss:$24 sps:$4 sm:$0xff]   ;;  %v3157_v18 = vld [vmem:[%s4355_s1 + $0x63c] ss:$24 sps:$4 sm:$0xff]  }
  0x89   :  { %2077 = vmatprep.subr.bf16.mxu0 %v3070_v19  ;;  %v3160_v19 = vld [vmem:[%s4355_s1 + $0x344] ss:$24 sps:$4 sm:$0xff]  }
  0x8b   :  { %1992 = vmatpush1.bf16.msra.mxu1 %v3065_v20  ;;  %v3155_v20 = vld [vmem:[%s4355_s1 + $0x638] ss:$24 sps:$4 sm:$0xff]  }
  0x8c   :  { %2078 = vmatpush1.bf16.msra.mxu0 %v3068_v21  ;;  %1993 = vmatprep.subr.bf16.mxu1 %v3073_v22  ;;  %v3158_v21 = vld [vmem:[%s4355_s1 + $0x340] ss:$24 sps:$4 sm:$0xff]   ;;  %v3163_v22 = vld [vmem:[%s4355_s1 + $0x66c] ss:$24 sps:$4 sm:$0xff]  }
  0x8d   :  { %2079 = vmatprep.subr.bf16.mxu0 %v3076_v48  ;;  %v3161_v48 = vld [vmem:[%s4355_s1 + $0x668] ss:$24 sps:$4 sm:$0xff]  }
  0x8f   :  { %1994 = vmatpush1.bf16.msra.mxu1 %v3071_v49  ;;  %v3164_v49 = vld [vmem:[%s4355_s1 + $0x370] ss:$24 sps:$4 sm:$0xff]  }
  0x90   :  { %2080 = vmatpush1.bf16.msra.mxu0 %v3074_v23  ;;  %1995 = vmatprep.subr.bf16.mxu1 %v3079_v24  ;;  %v3169_v23 = vld [vmem:[%s4355_s1 + $0x69c] ss:$24 sps:$4 sm:$0xff]  }
  0x91   :  { %2081 = vmatprep.subr.bf16.mxu0 %v3082_v25  ;;  %v3172_v24 = vld [vmem:[%s4355_s1 + $0x3a4] ss:$24 sps:$4 sm:$0xff]   ;;  %v3167_v25 = vld [vmem:[%s4355_s1 + $0x698] ss:$24 sps:$4 sm:$0xff]  }
  0x93   :  { %1996 = vmatpush1.bf16.msra.mxu1 %v3077_v26  ;;  %v3170_v26 = vld [vmem:[%s4355_s1 + $0x3a0] ss:$24 sps:$4 sm:$0xff]  }
  0x94   :  { %2082 = vmatpush1.bf16.msra.mxu0 %v3080_v27  ;;  %1997 = vmatprep.subr.bf16.mxu1 %v3085_v28  ;;  %v3175_v27 = vld [vmem:[%s4355_s1 + $0x6cc] ss:$24 sps:$4 sm:$0xff]  }
  0x95   :  { %2083 = vmatprep.subr.bf16.mxu0 %v3088_v29  ;;  %v3178_v28 = vld [vmem:[%s4355_s1 + $0x3d4] ss:$24 sps:$4 sm:$0xff]   ;;  %v3173_v29 = vld [vmem:[%s4355_s1 + $0x6c8] ss:$24 sps:$4 sm:$0xff]  }
  0x97   :  { %1998 = vmatpush1.bf16.msra.mxu1 %v3083_v30  ;;  %v3176_v30 = vld [vmem:[%s4355_s1 + $0x3d0] ss:$24 sps:$4 sm:$0xff]  }
  0x98   :  { %2084 = vmatpush1.bf16.msra.mxu0 %v3086_v31  ;;  %1999 = vmatprep.subr.bf16.mxu1 %v3091_v32  ;;  %v3181_v31 = vld [vmem:[%s4355_s1 + $0x6fc] ss:$24 sps:$4 sm:$0xff]  }
  0x99   :  { %2085 = vmatprep.subr.bf16.mxu0 %v3094_v33  ;;  %v3184_v32 = vld [vmem:[%s4355_s1 + $0x404] ss:$24 sps:$4 sm:$0xff]   ;;  %v3179_v33 = vld [vmem:[%s4355_s1 + $0x6f8] ss:$24 sps:$4 sm:$0xff]  }
  0x9b   :  { %2000 = vmatpush1.bf16.msra.mxu1 %v3089_v35  ;;  %v3182_v35 = vld [vmem:[%s4355_s1 + $0x400] ss:$24 sps:$4 sm:$0xff]  }
  0x9c   :  { %2086 = vmatpush1.bf16.msra.mxu0 %v3092_v36  ;;  %2001 = vmatprep.subr.bf16.mxu1 %v3097_v37  ;;  %v3187_v36 = vld [vmem:[%s4355_s1 + $0x72c] ss:$24 sps:$4 sm:$0xff]  }
  0x9d   :  { %2087 = vmatprep.subr.bf16.mxu0 %v3100_v38  ;;  %v3190_v37 = vld [vmem:[%s4355_s1 + $0x434] ss:$24 sps:$4 sm:$0xff]   ;;  %v3185_v38 = vld [vmem:[%s4355_s1 + $0x728] ss:$24 sps:$4 sm:$0xff]  }
  0x9f   :  { %2002 = vmatpush1.bf16.msra.mxu1 %v3095_v39  ;;  %v3188_v39 = vld [vmem:[%s4355_s1 + $0x430] ss:$24 sps:$4 sm:$0xff]  }
  0xa0   :  { %2088 = vmatpush1.bf16.msra.mxu0 %v3098_v40  ;;  %2003 = vmatprep.subr.bf16.mxu1 %v3103_v41  ;;  %v3193_v40 = vld [vmem:[%s4355_s1 + $0x75c] ss:$24 sps:$4 sm:$0xff]  }
  0xa1   :  { %2089 = vmatprep.subr.bf16.mxu0 %v3106_v42  ;;  %v3196_v41 = vld [vmem:[%s4355_s1 + $0x464] ss:$24 sps:$4 sm:$0xff]   ;;  %v3191_v42 = vld [vmem:[%s4355_s1 + $0x758] ss:$24 sps:$4 sm:$0xff]  }
  0xa3   :  { %2004 = vmatpush1.bf16.msra.mxu1 %v3101_v43  ;;  %v3194_v43 = vld [vmem:[%s4355_s1 + $0x460] ss:$24 sps:$4 sm:$0xff]  }
  0xa4   :  { %2090 = vmatpush1.bf16.msra.mxu0 %v3104_v44  ;;  %2005 = vmatprep.subr.bf16.mxu1 %v3109_v45  ;;  %v3199_v44 = vld [vmem:[%s4355_s1 + $0x78c] ss:$24 sps:$4 sm:$0xff]  }
  0xa5   :  { %2091 = vmatprep.subr.bf16.mxu0 %v3112_v46  ;;  %v3202_v45 = vld [vmem:[%s4355_s1 + $0x494] ss:$24 sps:$4 sm:$0xff]   ;;  %v3197_v46 = vld [vmem:[%s4355_s1 + $0x788] ss:$24 sps:$4 sm:$0xff]  }
  0xa7   :  { %2006 = vmatpush1.bf16.msra.mxu1 %v3107_v47  ;;  %v3200_v47 = vld [vmem:[%s4355_s1 + $0x490] ss:$24 sps:$4 sm:$0xff]  }
  0xa8   :  { %2092 = vmatpush1.bf16.msra.mxu0 %v3110_v50  ;;  %2007 = vmatprep.subr.bf16.mxu1 %v3115_v51  ;;  %v3205_v50 = vld [vmem:[%s4355_s1 + $0x7bc] ss:$24 sps:$4 sm:$0xff]  }
  0xa9   :  { %2093 = vmatprep.subr.bf16.mxu0 %v3118_v52  ;;  %v3208_v51 = vld [vmem:[%s4355_s1 + $0x4c4] ss:$24 sps:$4 sm:$0xff]   ;;  %v3203_v52 = vld [vmem:[%s4355_s1 + $0x7b8] ss:$24 sps:$4 sm:$0xff]  }
  0xab   :  { %2008 = vmatpush1.bf16.msra.mxu1 %v3113_v53  ;;  %v3206_v53 = vld [vmem:[%s4355_s1 + $0x4c0] ss:$24 sps:$4 sm:$0xff]  }
  0xac   :  { %2094 = vmatpush1.bf16.msra.mxu0 %v3116_v54  ;;  %2009 = vmatprep.subr.bf16.mxu1 %v3121_v55  ;;  %v3211_v54 = vld [vmem:[%s4355_s1 + $0x7ec] ss:$24 sps:$4 sm:$0xff]  }
  0xad   :  { %2095 = vmatprep.subr.bf16.mxu0 %v3124_v56  ;;  %v3214_v55 = vld [vmem:[%s4355_s1 + $0x4f4] ss:$24 sps:$4 sm:$0xff]   ;;  %v3209_v56 = vld [vmem:[%s4355_s1 + $0x7e8] ss:$24 sps:$4 sm:$0xff]  }
  0xaf   :  { %2010 = vmatpush1.bf16.msra.mxu1 %v3119_v57  ;;  %v3212_v57 = vld [vmem:[%s4355_s1 + $0x4f0] ss:$24 sps:$4 sm:$0xff]  }
  0xb0   :  { %2096 = vmatpush1.bf16.msra.mxu0 %v3122_v58  ;;  %2011 = vmatprep.subr.bf16.mxu1 %v3127_v59  ;;  %v3217_v58 = vld [vmem:[%s4355_s1 + $0x81c] ss:$24 sps:$4 sm:$0xff]  }
  0xb1   :  { %2097 = vmatprep.subr.bf16.mxu0 %v3130_v60  ;;  %v3220_v59 = vld [vmem:[%s4355_s1 + $0x524] ss:$24 sps:$4 sm:$0xff]   ;;  %v3215_v60 = vld [vmem:[%s4355_s1 + $0x818] ss:$24 sps:$4 sm:$0xff]  }
  0xb3   :  { %2012 = vmatpush1.bf16.msra.mxu1 %v3125_v61  ;;  %v3218_v61 = vld [vmem:[%s4355_s1 + $0x520] ss:$24 sps:$4 sm:$0xff]  }
  0xb4   :  { %2098 = vmatpush1.bf16.msra.mxu0 %v3128_v62  ;;  %2013 = vmatprep.subr.bf16.mxu1 %v3133_v63  ;;  %v3223_v62 = vld [vmem:[%s4355_s1 + $0x84c] ss:$24 sps:$4 sm:$0xff]  }
  0xb5   :  { %2099 = vmatprep.subr.bf16.mxu0 %v3136_v0  ;;  %v3226_v63 = vld [vmem:[%s4355_s1 + $0x554] ss:$24 sps:$4 sm:$0xff]   ;;  %v3221_v0 = vld [vmem:[%s4355_s1 + $0x848] ss:$24 sps:$4 sm:$0xff]  }
  0xb7   :  { %2014 = vmatpush1.bf16.msra.mxu1 %v3131_v1  ;;  %v3224_v1 = vld [vmem:[%s4355_s1 + $0x550] ss:$24 sps:$4 sm:$0xff]  }
  0xb8   :  { %2100 = vmatpush1.bf16.msra.mxu0 %v3134_v2  ;;  %2015 = vmatprep.subr.bf16.mxu1 %v3139_v3  ;;  %v3229_v2 = vld [vmem:[%s4355_s1 + $0x87c] ss:$24 sps:$4 sm:$0xff]  }
  0xb9   :  { %2101 = vmatprep.subr.bf16.mxu0 %v3142_v4  ;;  %v3232_v3 = vld [vmem:[%s4355_s1 + $0x584] ss:$24 sps:$4 sm:$0xff]   ;;  %v3227_v4 = vld [vmem:[%s4355_s1 + $0x878] ss:$24 sps:$4 sm:$0xff]  }
  0xbb   :  { %2016 = vmatpush1.bf16.msra.mxu1 %v3137_v5  ;;  %v3230_v5 = vld [vmem:[%s4355_s1 + $0x580] ss:$24 sps:$4 sm:$0xff]  }
  0xbc   :  { %2102 = vmatpush1.bf16.msra.mxu0 %v3140_v8  ;;  %2017 = vmatprep.subr.bf16.mxu1 %v3145_v9  ;;  %v3235_v8 = vld [vmem:[%s4355_s1 + $0x8ac] ss:$24 sps:$4 sm:$0xff]  }
  0xbd   :  { %2103 = vmatprep.subr.bf16.mxu0 %v3148_v10  ;;  %v3238_v9 = vld [vmem:[%s4355_s1 + $0x5b4] ss:$24 sps:$4 sm:$0xff]   ;;  %v3233_v10 = vld [vmem:[%s4355_s1 + $0x8a8] ss:$24 sps:$4 sm:$0xff]  }
  0xbf   :  { %2018 = vmatpush1.bf16.msra.mxu1 %v3143_v12  ;;  %v3236_v12 = vld [vmem:[%s4355_s1 + $0x5b0] ss:$24 sps:$4 sm:$0xff]  }
  0xc0   :  { %2104 = vmatpush1.bf16.msra.mxu0 %v3146_v13  ;;  %2030 = vmatprep.subr.bf16.mxu1 %v3151_v14  ;;  %v3241_v13 = vld [vmem:[%s4355_s1 + $0x8dc] ss:$24 sps:$4 sm:$0xff]  }
  0xc1   :  { %2116 = vmatprep.subr.bf16.mxu0 %v3154_v15  ;;  %v3244_v14 = vld [vmem:[%s4355_s1 + $0x5e4] ss:$24 sps:$4 sm:$0xff]   ;;  %v3239_v15 = vld [vmem:[%s4355_s1 + $0x8d8] ss:$24 sps:$4 sm:$0xff]  }
  0xc2   :  { %2020 = vmatmul.mubr.bf16.vlgmr.msra.gmra.mrb[4].mxu1 %v3558_v7  ;;  %v3297_v7 = vld [vmem:[%s4356_s0 + $0xc] ss:$24 sps:$4 sm:$0xff]  }
  0xc3   :  { %2106 = vmatmul.mubr.bf16.vlgmr.msra.gmra.mrb[4].mxu0 %v3553_v6  ;;  %2031 = vmatpush1.bf16.msra.mxu1 %v3149_v16  ;;  %v3166_v6 = vld [vmem:[%s4355_s1 + $0x374] ss:$24 sps:$4 sm:$0xff]   ;;  %v3242_v16 = vld [vmem:[%s4355_s1 + $0x5e0] ss:$24 sps:$4 sm:$0xff]  }
  0xc4   :  { %2117 = vmatpush1.bf16.msra.mxu0 %v3152_v17  ;;  %2032 = vmatprep.subr.bf16.mxu1 %v3157_v18  ;;  %v3247_v17 = vld [vmem:[%s4355_s1 + $0x614] ss:$24 sps:$4 sm:$0xff]   ;;  %v3245_v18 = vld [vmem:[%s4355_s1 + $0x610] ss:$24 sps:$4 sm:$0xff]  }
  0xc5   :  { %2118 = vmatprep.subr.bf16.mxu0 %v3160_v19  ;;  %2062 = vmatprep.mubr.bf16.mxu1 %v3644_v34  ;;  %v3250_v19 = vld [vmem:[%s4355_s1 + $0x644] ss:$24 sps:$4 sm:$0xff]  }
  0xc6   :  { %2148 = vmatprep.mubr.bf16.mxu0 %v3297_v7  ;;  %v3256_v7 = vld [vmem:[%s4355_s1 + $0x6a4] ss:$24 sps:$4 sm:$0xff]  }
  0xc7   :  { %2033 = vmatpush1.bf16.msra.mxu1 %v3155_v20  ;;  %v3298_v20 = vld [vmem:[%s4356_s0 + $0x8] ss:$24 sps:$4 sm:$0xff]  }
  0xc8   :  { %2119 = vmatpush1.bf16.msra.mxu0 %v3158_v21  ;;  %2034 = vmatprep.subr.bf16.mxu1 %v3163_v22  ;;  %v3248_v21 = vld [vmem:[%s4355_s1 + $0x640] ss:$24 sps:$4 sm:$0xff]   ;;  %v3253_v22 = vld [vmem:[%s4355_s1 + $0x674] ss:$24 sps:$4 sm:$0xff]  }
  0xc9   :  { %2120 = vmatprep.subr.bf16.mxu0 %v3166_v6  ;;  %v3251_v6 = vld [vmem:[%s4355_s1 + $0x670] ss:$24 sps:$4 sm:$0xff]  }
  0xcb   :  { %2035 = vmatpush1.bf16.msra.mxu1 %v3161_v48  ;;  %v3259_v48 = vld [vmem:[%s4355_s1 + $0x6d4] ss:$24 sps:$4 sm:$0xff]  }
  0xcc   :  { %2121 = vmatpush1.bf16.msra.mxu0 %v3164_v49  ;;  %2036 = vmatprep.subr.bf16.mxu1 %v3169_v23  ;;  %v3257_v49 = vld [vmem:[%s4355_s1 + $0x6d0] ss:$24 sps:$4 sm:$0xff]   ;;  %v3262_v23 = vld [vmem:[%s4355_s1 + $0x704] ss:$24 sps:$4 sm:$0xff]  }
  0xcd   :  { %2122 = vmatprep.subr.bf16.mxu0 %v3172_v24  ;;  %v3260_v24 = vld [vmem:[%s4355_s1 + $0x700] ss:$24 sps:$4 sm:$0xff]  }
  0xcf   :  { %2037 = vmatpush1.bf16.msra.mxu1 %v3167_v25  ;;  %v3265_v25 = vld [vmem:[%s4355_s1 + $0x734] ss:$24 sps:$4 sm:$0xff]  }
  0xd0   :  { %2123 = vmatpush1.bf16.msra.mxu0 %v3170_v26  ;;  %2038 = vmatprep.subr.bf16.mxu1 %v3175_v27 }
  0xd1   :  { %2124 = vmatprep.subr.bf16.mxu0 %v3178_v28  ;;  %v3263_v28 = vld [vmem:[%s4355_s1 + $0x730] ss:$24 sps:$4 sm:$0xff]  }
  0xd3   :  { %2039 = vmatpush1.bf16.msra.mxu1 %v3173_v29 }
  0xd4   :  { %2125 = vmatpush1.bf16.msra.mxu0 %v3176_v30  ;;  %2040 = vmatprep.subr.bf16.mxu1 %v3181_v31  ;;  %v3268_v30 = vld [vmem:[%s4355_s1 + $0x764] ss:$24 sps:$4 sm:$0xff]  }
  0xd5   :  { %2126 = vmatprep.subr.bf16.mxu0 %v3184_v32  ;;  %v3266_v32 = vld [vmem:[%s4355_s1 + $0x760] ss:$24 sps:$4 sm:$0xff]  }
  0xd7   :  { %2041 = vmatpush1.bf16.msra.mxu1 %v3179_v33  ;;  %v3271_v33 = vld [vmem:[%s4355_s1 + $0x794] ss:$24 sps:$4 sm:$0xff]  }
  0xd8   :  { %2127 = vmatpush1.bf16.msra.mxu0 %v3182_v35  ;;  %2042 = vmatprep.subr.bf16.mxu1 %v3187_v36  ;;  %v3269_v35 = vld [vmem:[%s4355_s1 + $0x790] ss:$24 sps:$4 sm:$0xff]   ;;  %v3274_v36 = vld [vmem:[%s4355_s1 + $0x7c4] ss:$24 sps:$4 sm:$0xff]  }
  0xd9   :  { %2128 = vmatprep.subr.bf16.mxu0 %v3190_v37  ;;  %v3272_v37 = vld [vmem:[%s4355_s1 + $0x7c0] ss:$24 sps:$4 sm:$0xff]  }
  0xdb   :  { %2043 = vmatpush1.bf16.msra.mxu1 %v3185_v38  ;;  %v3277_v38 = vld [vmem:[%s4355_s1 + $0x7f4] ss:$24 sps:$4 sm:$0xff]  }
  0xdc   :  { %2129 = vmatpush1.bf16.msra.mxu0 %v3188_v39  ;;  %2044 = vmatprep.subr.bf16.mxu1 %v3193_v40  ;;  %v3275_v39 = vld [vmem:[%s4355_s1 + $0x7f0] ss:$24 sps:$4 sm:$0xff]   ;;  %v3280_v40 = vld [vmem:[%s4355_s1 + $0x824] ss:$24 sps:$4 sm:$0xff]  }
  0xdd   :  { %2130 = vmatprep.subr.bf16.mxu0 %v3196_v41  ;;  %v3278_v41 = vld [vmem:[%s4355_s1 + $0x820] ss:$24 sps:$4 sm:$0xff]  }
  0xdf   :  { %2045 = vmatpush1.bf16.msra.mxu1 %v3191_v42  ;;  %v3283_v42 = vld [vmem:[%s4355_s1 + $0x854] ss:$24 sps:$4 sm:$0xff]  }
  0xe0   :  { %2131 = vmatpush1.bf16.msra.mxu0 %v3194_v43  ;;  %2046 = vmatprep.subr.bf16.mxu1 %v3199_v44  ;;  %v3281_v43 = vld [vmem:[%s4355_s1 + $0x850] ss:$24 sps:$4 sm:$0xff]   ;;  %v3286_v44 = vld [vmem:[%s4355_s1 + $0x884] ss:$24 sps:$4 sm:$0xff]  }
  0xe1   :  { %2132 = vmatprep.subr.bf16.mxu0 %v3202_v45  ;;  %v3284_v45 = vld [vmem:[%s4355_s1 + $0x880] ss:$24 sps:$4 sm:$0xff]  }
  0xe3   :  { %2047 = vmatpush1.bf16.msra.mxu1 %v3197_v46  ;;  %v3289_v46 = vld [vmem:[%s4355_s1 + $0x8b4] ss:$24 sps:$4 sm:$0xff]  }
  0xe4   :  { %2133 = vmatpush1.bf16.msra.mxu0 %v3200_v47  ;;  %2048 = vmatprep.subr.bf16.mxu1 %v3205_v50  ;;  %v3287_v47 = vld [vmem:[%s4355_s1 + $0x8b0] ss:$24 sps:$4 sm:$0xff]   ;;  %v3292_v50 = vld [vmem:[%s4355_s1 + $0x8e4] ss:$24 sps:$4 sm:$0xff]  }
  0xe5   :  { %2134 = vmatprep.subr.bf16.mxu0 %v3208_v51  ;;  %v3290_v51 = vld [vmem:[%s4355_s1 + $0x8e0] ss:$24 sps:$4 sm:$0xff]  }
  0xe7   :  { %2049 = vmatpush1.bf16.msra.mxu1 %v3203_v52 }
  0xe8   :  { %2135 = vmatpush1.bf16.msra.mxu0 %v3206_v53  ;;  %2050 = vmatprep.subr.bf16.mxu1 %v3211_v54 }
  0xe9   :  { %2136 = vmatprep.subr.bf16.mxu0 %v3214_v55 }
  0xeb   :  { %2051 = vmatpush1.bf16.msra.mxu1 %v3209_v56 }
  0xec   :  { %2137 = vmatpush1.bf16.msra.mxu0 %v3212_v57  ;;  %2052 = vmatprep.subr.bf16.mxu1 %v3217_v58 }
  0xed   :  { %2138 = vmatprep.subr.bf16.mxu0 %v3220_v59 }
  0xef   :  { %2053 = vmatpush1.bf16.msra.mxu1 %v3215_v60 }
  0xf0   :  { %2139 = vmatpush1.bf16.msra.mxu0 %v3218_v61  ;;  %2054 = vmatprep.subr.bf16.mxu1 %v3223_v62 }
  0xf1   :  { %2140 = vmatprep.subr.bf16.mxu0 %v3226_v63 }
  0xf3   :  { %2055 = vmatpush1.bf16.msra.mxu1 %v3221_v0  ;;  %v2243_v0 = vlaneseq }
  0xf4   :  { %2141 = vmatpush1.bf16.msra.mxu0 %v3224_v1  ;;  %2056 = vmatprep.subr.bf16.mxu1 %v3229_v2 }
  0xf5   :  { %2142 = vmatprep.subr.bf16.mxu0 %v3232_v3  ;;  %v2244_v1 = vshrl.u32 %v2243_v0, 7 }
  0xf7   :  { %2057 = vmatpush1.bf16.msra.mxu1 %v3227_v4  ;;  %v4250_v2 = vsub.s32 0, %v2244_v1  ;;  %v4252_v3 = vsub.s32 1, %v2244_v1  ;;  %v4257_v4 = vsub.s32 2, %v2244_v1 }
  0xf8   :  { %2143 = vmatpush1.bf16.msra.mxu0 %v3230_v5  ;;  %2058 = vmatprep.subr.bf16.mxu1 %v3235_v8 }
  0xf9   :  { %2144 = vmatprep.subr.bf16.mxu0 %v3238_v9  ;;  %v2285_v9 = vld [vmem:[%s4358_s3] sm:$0xff] }
  0xfb   :  { %2059 = vmatpush1.bf16.msra.mxu1 %v3233_v10  ;;  %v4264_v10 = vsub.s32 3, %v2244_v1 }
  0xfc   :  { %2145 = vmatpush1.bf16.msra.mxu0 %v3236_v12  ;;  %2060 = vmatprep.subr.bf16.mxu1 %v3241_v13  ;;  %v2288_v12 = vld [vmem:[%s4358_s3 + $0x18] sm:$0xff] }
  0xfd   :  { %2146 = vmatprep.subr.bf16.mxu0 %v3244_v14  ;;  %v2286_v14 = vld [vmem:[%s4358_s3 + $0x8] sm:$0xff] }
  0xff   :  { %2061 = vmatpush1.bf16.msra.mxu1 %v3239_v15 }
 0x100   :  { %2147 = vmatpush1.bf16.msra.mxu0 %v3242_v16  ;;  %v2291_v16 = vunpack.c.l.bf16 %v2285_v9 }
 0x101   :  { %2159 = vmatprep.subr.bf16.mxu0 %v3247_v17 }
 0x102   :  { %2063 = vmatmul.mubr.bf16.vlgmr.msra.gmra.mrb[4].mxu1 %v3758_v11 }
 0x103   :  { %2149 = vmatmul.mubr.bf16.vlgmr.msra.gmra.mrb[4].mxu0 %v3298_v20  ;;  %v2297_v20 = vunpack.c.l.bf16 %v2288_v12 }
 0x104   :  { %2160 = vmatpush1.bf16.msra.mxu0 %v3245_v18  ;;  %2191 = vmatprep.mubr.bf16.mxu0 %v3644_v34  ;;  %v3254_v34 = vld [vmem:[%s4355_s1 + $0x6a0] ss:$24 sps:$4 sm:$0xff]   ;;  %v2292_v18 = vunpack.c.h.bf16 %v2285_v9 }
 0x105   :  { %2161 = vmatprep.subr.bf16.mxu0 %v3250_v19  ;;  %v2289_v19 = vld [vmem:[%s4358_s3 + $0x20] sm:$0xff] }
 0x108   :  { %2162 = vmatpush1.bf16.msra.mxu0 %v3248_v21  ;;  %v2298_v21 = vunpack.c.h.bf16 %v2288_v12 }
 0x109   :  { %2163 = vmatprep.subr.bf16.mxu0 %v3253_v22 }
 0x10c   :  { %2164 = vmatpush1.bf16.msra.mxu0 %v3251_v6 }
 0x10d   :  { %2165 = vmatprep.subr.bf16.mxu0 %v3256_v7 }
 0x110   :  { %2166 = vmatpush1.bf16.msra.mxu0 %v3254_v34 }
 0x111   :  { %2167 = vmatprep.subr.bf16.mxu0 %v3259_v48  ;;  %v2293_v48 = vunpack.c.l.bf16 %v2286_v14 }
 0x114   :  { %2168 = vmatpush1.bf16.msra.mxu0 %v3257_v49  ;;  %v2299_v49 = vunpack.c.l.bf16 %v2289_v19 }
 0x115   :  { %2169 = vmatprep.subr.bf16.mxu0 %v3262_v23  ;;  %v1849_v26 = vpop.f32.mrb[0].mxu1 }
 0x116   :  { %v1851_v27 = vpop.f32.mrb[1].mxu1 }
 0x117   :  { %v1853_v29 = vpop.f32.mrb[2].mxu1 }
 0x118   :  { %2170 = vmatpush1.bf16.msra.mxu0 %v3260_v24  ;;  %v1855_v31 = vpop.f32.mrb[3].mxu1 }
 0x119   :  { %2171 = vmatprep.subr.bf16.mxu0 %v3265_v25 }
 0x11c   :  { %2172 = vmatpush1.bf16.msra.mxu0 %v3263_v28  ;;  %v4279_v28 = vsub.s32 5, %v2244_v1 }
 0x11d   :  { %2173 = vmatprep.subr.bf16.mxu0 %v3268_v30 }
 0x120   :  { %2174 = vmatpush1.bf16.msra.mxu0 %v3266_v32 }
 0x121   :  { %2175 = vmatprep.subr.bf16.mxu0 %v3271_v33  ;;  %v2300_v33 = vunpack.c.h.bf16 %v2289_v19 }
 0x124   :  { %2176 = vmatpush1.bf16.msra.mxu0 %v3269_v35  ;;  %v2287_v35 = vld [vmem:[%s4358_s3 + $0x10] sm:$0xff] }
 0x125   :  { %2177 = vmatprep.subr.bf16.mxu0 %v3274_v36 }
 0x128   :  { %2178 = vmatpush1.bf16.msra.mxu0 %v3272_v37 }
 0x129   :  { %2179 = vmatprep.subr.bf16.mxu0 %v3277_v38 }
 0x12c   :  { %2180 = vmatpush1.bf16.msra.mxu0 %v3275_v39 }
 0x12d   :  { %2181 = vmatprep.subr.bf16.mxu0 %v3280_v40 }
 0x130   :  { %2182 = vmatpush1.bf16.msra.mxu0 %v3278_v41  ;;  %v2290_v41 = vld [vmem:[%s4358_s3 + $0x28] sm:$0xff] }
 0x131   :  { %2183 = vmatprep.subr.bf16.mxu0 %v3283_v42 }
 0x134   :  { %2184 = vmatpush1.bf16.msra.mxu0 %v3281_v43 }
 0x135   :  { %2185 = vmatprep.subr.bf16.mxu0 %v3286_v44 }
 0x138   :  { %2186 = vmatpush1.bf16.msra.mxu0 %v3284_v45  ;;  %v2295_v45 = vunpack.c.l.bf16 %v2287_v35 }
 0x139   :  { %2187 = vmatprep.subr.bf16.mxu0 %v3289_v46 }
 0x13c   :  { %2188 = vmatpush1.bf16.msra.mxu0 %v3287_v47  ;;  %v2296_v47 = vunpack.c.h.bf16 %v2287_v35 }
 0x13d   :  { %2189 = vmatprep.subr.bf16.mxu0 %v3292_v50 }
 0x140   :  { %2190 = vmatpush1.bf16.msra.mxu0 %v3290_v51 }
 0x143   :  { %2192 = vmatmul.mubr.bf16.vlgmr.msra.gmra.mrb[4].mxu0 %v3758_v11  ;;  %v2241_v11 = vld [vmem:[%s4357_s2] sm:$0x3f] }
 0x144   :  { %v2246_v5 = vrot.slane %v2241_v11, %v4250_v2  ;;  %v2250_v8 = vrot.slane %v2241_v11, %v4252_v3  ;;  %v2254_v13 = vrot.slane %v2241_v11, %v4257_v4  ;;  %v2258_v22 = vrot.slane %v2241_v11, %v4264_v10 }
 0x145   :  { %v2266_v40 = vrot.slane %v2241_v11, %v4279_v28 }
 0x156   :  { %v1935_v52 = vpop.f32.mrb[0].mxu0 }
 0x157   :  { %v2828_v53 = vadd.f32 %v1935_v52, %v1849_v26  ;;  %v1937_v54 = vpop.f32.mrb[1].mxu0  ;;  %v4277_v26 = vsub.s32 4, %v2244_v1 }
 0x158   :  { %v2829_v55 = vadd.f32 %v1937_v54, %v1851_v27  ;;  %v1939_v56 = vpop.f32.mrb[2].mxu0  ;;  %v2294_v27 = vunpack.c.h.bf16 %v2286_v14  ;;  %v2301_v54 = vunpack.c.l.bf16 %v2290_v41 }
 0x159   :  { %v2830_v57 = vadd.f32 %v1939_v56, %v1853_v29  ;;  %v1941_v58 = vpop.f32.mrb[3].mxu0  ;;  %v2273_v15 = vadd.f32 %v2828_v53, %v2246_v5  ;;  %v2262_v39 = vrot.slane %v2241_v11, %v4277_v26 }
 0x15a   :  { %v2831_v59 = vadd.f32 %v1941_v58, %v1855_v31  ;;  %v2274_v17 = vadd.f32 %v2829_v55, %v2250_v8 }
 0x15b   :  { %v2279_v6 = vadd.f32 %v2830_v57, %v2246_v5  ;;  %v2303_v23 = vadd.f32 %v2291_v16, %v2273_v15 }
 0x15c   :  { %v2280_v7 = vadd.f32 %v2831_v59, %v2250_v8  ;;  %v2304_v24 = vadd.f32 %v2292_v18, %v2274_v17 }
 0x15d   :  { %v2309_v29 = vadd.f32 %v2297_v20, %v2279_v6 }
 0x15e   :  { %v2310_v30 = vadd.f32 %v2298_v21, %v2280_v7  ;;  %v2315_v36 = vadd.f32 %v2304_v24, %v2303_v23 }
 0x160   :  { %v2322_v44 = vadd.f32 %v2310_v30, %v2309_v29 }
 0x1d5   :  { %v2064_v60 = vpop.f32.mrb[4].mxu1 }
 0x1d6   :  { %v2066_v61 = vpop.f32.mrb[5].mxu1  ;;  %v2275_v34 = vadd.f32 %v2254_v13, %v2064_v60  ;;  %v2302_v60 = vunpack.c.h.bf16 %v2290_v41 }
 0x1d7   :  { %v2068_v62 = vpop.f32.mrb[6].mxu1  ;;  %v2276_v32 = vadd.f32 %v2258_v22, %v2066_v61 }
 0x1d8   :  { %v2070_v63 = vpop.f32.mrb[7].mxu1  ;;  %v2281_v25 = vadd.f32 %v2254_v13, %v2068_v62  ;;  %v2305_v31 = vadd.f32 %v2293_v48, %v2275_v34 }
 0x1d9   :  { %v2282_v38 = vadd.f32 %v2258_v22, %v2070_v63  ;;  %v2306_v43 = vadd.f32 %v2294_v27, %v2276_v32 }
 0x1da   :  { %v2311_v37 = vadd.f32 %v2299_v49, %v2281_v25  ;;  %v2316_v42 = vadd.f32 %v2315_v36, %v2305_v31 }
 0x1db   :  { %v2312_v51 = vadd.f32 %v2300_v33, %v2282_v38 }
 0x1dc   :  { %v2323_v50 = vadd.f32 %v2322_v44, %v2311_v37  ;;  %v2317_v61 = vadd.f32 %v2316_v42, %v2306_v43 }
 0x1de   :  { %v2324_v0 = vadd.f32 %v2323_v50, %v2312_v51 }
 0x216   :  { %v2193_v46 = vpop.f32.mrb[4].mxu0 }
 0x217   :  { %v2277_v52 = vadd.f32 %v2262_v39, %v2193_v46  ;;  %v2195_v53 = vpop.f32.mrb[5].mxu0 }
 0x218   :  { %v2278_v55 = vadd.f32 %v2266_v40, %v2195_v53  ;;  %v2197_v56 = vpop.f32.mrb[6].mxu0 }
 0x219   :  { %v2307_v57 = vadd.f32 %v2295_v45, %v2277_v52  ;;  %v2283_v58 = vadd.f32 %v2262_v39, %v2197_v56  ;;  %v2199_v59 = vpop.f32.mrb[7].mxu0 }
 0x21a   :  { %v2284_v62 = vadd.f32 %v2266_v40, %v2199_v59  ;;  %v2308_v63 = vadd.f32 %v2296_v47, %v2278_v55 }
 0x21b   :  { %v2313_v1 = vadd.f32 %v2301_v54, %v2283_v58  ;;  %v2318_v11 = vadd.f32 %v2317_v61, %v2307_v57  ;;  %v2432_v58 = vld [vmem:[%s4360_s5] sm:$0x3f] }
 0x21c   :  { %v2314_v5 = vadd.f32 %v2302_v60, %v2284_v62  ;;  %v2437_v60 = vrot.slane %v2432_v58, %v4250_v2  ;;  %v2441_v62 = vrot.slane %v2432_v58, %v4252_v3 }
 0x21d   :  { %v2319_v8 = vadd.f32 %v2318_v11, %v2308_v63  ;;  %v2325_v9 = vadd.f32 %v2324_v0, %v2313_v1  ;;  %v2445_v11 = vrot.slane %v2432_v58, %v4257_v4 }
 0x21f   :  { %2320 = vadd.xlane.f32.xlu0 %v2319_v8  ;;  %v2326_v12 = vadd.f32 %v2325_v9, %v2314_v5 }
 0x223   :  { %2327 = vadd.xlane.f32.xlu0 %v2326_v12 }
 0x2ac   :  { %v2321_v13 = vpop.xlane.xlu0 %2320 }
 0x2ad   :  { %v2330_v14 = vmul.f32 0.0013020834, %v2321_v13 }
 0x2af   :  { %v2332_v15 = vsub.f32 %v2303_v23, %v2330_v14  ;;  %v2333_v16 = vsub.f32 %v2304_v24, %v2330_v14  ;;  %v2334_v17 = vsub.f32 %v2305_v31, %v2330_v14  ;;  %v2335_v19 = vsub.f32 %v2306_v43, %v2330_v14 }
 0x2b0   :  { %v2328_v18 = vpop.xlane.xlu0 %2327  ;;  %v2336_v6 = vsub.f32 %v2307_v57, %v2330_v14  ;;  %v2337_v27 = vsub.f32 %v2308_v63, %v2330_v14  ;;  %v2388_v57 = vld [vmem:[%s4359_s4] sm:$0x3f] }
 0x2b1   :  { %v2331_v20 = vmul.f32 0.0013020834, %v2328_v18  ;;  %v2344_v21 = vmul.f32 %v2332_v15, %v2332_v15  ;;  %v2345_v22 = vmul.f32 %v2333_v16, %v2333_v16  ;;  %v2346_v7 = vmul.f32 %v2334_v17, %v2334_v17 }
 0x2b2   :  { %v2347_v32 = vmul.f32 %v2335_v19, %v2335_v19  ;;  %v2348_v35 = vmul.f32 %v2336_v6, %v2336_v6  ;;  %v2393_v59 = vrot.slane %v2388_v57, %v4250_v2  ;;  %v2397_v61 = vrot.slane %v2388_v57, %v4252_v3 }
 0x2b3   :  { %v2356_v34 = vadd.f32 %v2345_v22, %v2344_v21  ;;  %v4289_v48 = vsub.f32 %v2309_v29, %v2331_v20  ;;  %v4291_v49 = vsub.f32 %v2310_v30, %v2331_v20  ;;  %v4293_v25 = vsub.f32 %v2311_v37, %v2331_v20 }
 0x2b4   :  { %v4295_v23 = vsub.f32 %v2312_v51, %v2331_v20  ;;  %v4301_v38 = vsub.f32 %v2313_v1, %v2331_v20  ;;  %v2349_v37 = vmul.f32 %v2337_v27, %v2337_v27  ;;  %v4305_v40 = vsub.f32 %v2314_v5, %v2331_v20 }
 0x2b5   :  { %v2357_v33 = vadd.f32 %v2356_v34, %v2346_v7  ;;  %v2350_v24 = vmul.f32 %v4289_v48, %v4289_v48  ;;  %v2351_v31 = vmul.f32 %v4291_v49, %v4291_v49  ;;  %v2352_v29 = vmul.f32 %v4293_v25, %v4293_v25 }
 0x2b6   :  { %v2353_v41 = vmul.f32 %v4295_v23, %v4295_v23  ;;  %v2354_v44 = vmul.f32 %v4301_v38, %v4301_v38  ;;  %v2355_v46 = vmul.f32 %v4305_v40, %v4305_v40  ;;  %v2401_v63 = vrot.slane %v2388_v57, %v4257_v4 }
 0x2b7   :  { %v2358_v36 = vadd.f32 %v2357_v33, %v2347_v32  ;;  %v2363_v30 = vadd.f32 %v2351_v31, %v2350_v24  ;;  %v2405_v0 = vrot.slane %v2388_v57, %v4264_v10  ;;  %v2449_v5 = vrot.slane %v2432_v58, %v4264_v10 }
 0x2b8   :  { %v2409_v8 = vrot.slane %v2388_v57, %v4277_v26  ;;  %v2413_v9 = vrot.slane %v2388_v57, %v4279_v28  ;;  %v2453_v18 = vrot.slane %v2432_v58, %v4277_v26  ;;  %v2457_v3 = vrot.slane %v2432_v58, %v4279_v28 }
 0x2b9   :  { %v2359_v39 = vadd.f32 %v2358_v36, %v2348_v35  ;;  %v2364_v42 = vadd.f32 %v2363_v30, %v2352_v29 }
 0x2bb   :  { %v2360_v43 = vadd.f32 %v2359_v39, %v2349_v37  ;;  %v2365_v45 = vadd.f32 %v2364_v42, %v2353_v41 }
 0x2bd   :  { %2361 = vadd.xlane.f32.xlu1 %v2360_v43  ;;  %v2366_v47 = vadd.f32 %v2365_v45, %v2354_v44 }
 0x2bf   :  { %v2367_v50 = vadd.f32 %v2366_v47, %v2355_v46 }
 0x2c1   :  { %2368 = vadd.xlane.f32.xlu1 %v2367_v50 }
 0x34a   :  { %v2362_v51 = vpop.xlane.xlu1 %2361 }
 0x34b   :  { %v2370_v52 = vmul.f32 0.0013020834, %v2362_v51 }
 0x34d   :  { %v2372_v53 = vadd.f32 1e-05, %v2370_v52 }
 0x34e   :  { %v2369_v54 = vpop.xlane.xlu1 %2368 }
 0x34f   :  { %3293 = vrsqrt.f32 %v2372_v53  ;;  %v2371_v55 = vmul.f32 0.0013020834, %v2369_v54 }
 0x351   :  { %v2373_v56 = vadd.f32 1e-05, %v2371_v55 }
 0x353   :  { %3295 = vrsqrt.f32 %v2373_v56 }
 0x359   :  { %v3294_v1 = vpop.eup %3293 }
 0x35a   :  { %v2376_v12 = vmul.f32 %v3294_v1, %v2332_v15  ;;  %v2377_v13 = vmul.f32 %v3294_v1, %v2333_v16  ;;  %v2378_v2 = vmul.f32 %v3294_v1, %v2334_v17  ;;  %v2379_v14 = vmul.f32 %v3294_v1, %v2335_v19 }
 0x35b   :  { %v2380_v20 = vmul.f32 %v3294_v1, %v2336_v6  ;;  %v2381_v21 = vmul.f32 %v3294_v1, %v2337_v27 }
 0x35c   :  { %v2420_v22 = vmul.f32 %v2393_v59, %v2376_v12  ;;  %v2421_v7 = vmul.f32 %v2397_v61, %v2377_v13  ;;  %v2422_v34 = vmul.f32 %v2401_v63, %v2378_v2  ;;  %v2423_v4 = vmul.f32 %v2405_v0, %v2379_v14 }
 0x35d   :  { %v3296_v32 = vpop.eup %3295  ;;  %v2424_v10 = vmul.f32 %v2409_v8, %v2380_v20  ;;  %v2425_v33 = vmul.f32 %v2413_v9, %v2381_v21 }
 0x35e   :  { %v2464_v24 = vadd.f32 %v2437_v60, %v2420_v22  ;;  %v2465_v31 = vadd.f32 %v2441_v62, %v2421_v7  ;;  %v2466_v35 = vadd.f32 %v2445_v11, %v2422_v34  ;;  %v2467_v15 = vadd.f32 %v2449_v5, %v2423_v4 }
 0x35f   :  { %v2468_v16 = vadd.f32 %v2453_v18, %v2424_v10  ;;  %v2469_v17 = vadd.f32 %v2457_v3, %v2425_v33  ;;  %v2382_v19 = vmul.f32 %v3296_v32, %v4289_v48  ;;  %v2383_v26 = vmul.f32 %v3296_v32, %v4291_v49 }
 0x360   :  { %v2822_v28 = vpack.c.bf16 %v2465_v31, %v2464_v24  ;;  %v2823_v6 = vpack.c.bf16 %v2467_v15, %v2466_v35  ;;  %v2384_v27 = vmul.f32 %v3296_v32, %v4293_v25  ;;  %v2385_v36 = vmul.f32 %v3296_v32, %v4295_v23 }
 0x361   :  { %v2824_v29 = vpack.c.bf16 %v2469_v17, %v2468_v16  ;;  %v2386_v30 = vmul.f32 %v3296_v32, %v4301_v38  ;;  %v2387_v37 = vmul.f32 %v3296_v32, %v4305_v40  ;;  %v2426_v39 = vmul.f32 %v2393_v59, %v2382_v19 }
 0x362   :  { %2512 = vst [vmem:[%s4361_s6] sm:$0xff] %v2822_v28  ;;  %2513 = vst [vmem:[%s4361_s6 + $0x8] sm:$0xff] %v2823_v6  ;;  %v2427_v48 = vmul.f32 %v2397_v61, %v2383_v26  ;;  %v2428_v49 = vmul.f32 %v2401_v63, %v2384_v27  ;;  %v2429_v41 = vmul.f32 %v2405_v0, %v2385_v36 }
 0x363   :  { %2514 = vst [vmem:[%s4361_s6 + $0x10] sm:$0xff] %v2824_v29  ;;  %v2430_v25 = vmul.f32 %v2409_v8, %v2386_v30  ;;  %v2431_v23 = vmul.f32 %v2413_v9, %v2387_v37  ;;  %v2470_v38 = vadd.f32 %v2437_v60, %v2426_v39 }
 0x364   :  { %v2471_v40 = vadd.f32 %v2441_v62, %v2427_v48  ;;  %v2472_v42 = vadd.f32 %v2445_v11, %v2428_v49  ;;  %v2473_v43 = vadd.f32 %v2449_v5, %v2429_v41 }
 0x365   :  { %v2474_v44 = vadd.f32 %v2453_v18, %v2430_v25  ;;  %v2475_v45 = vadd.f32 %v2457_v3, %v2431_v23 }
 0x366   :  { %v2825_v46 = vpack.c.bf16 %v2471_v40, %v2470_v38  ;;  %v2826_v47 = vpack.c.bf16 %v2473_v43, %v2472_v42 }
 0x367   :  { %v2827_v50 = vpack.c.bf16 %v2475_v45, %v2474_v44 }
 0x368   :  { %2515 = vst [vmem:[%s4361_s6 + $0x18] sm:$0xff] %v2825_v46  ;;  %2516 = vst [vmem:[%s4361_s6 + $0x20] sm:$0xff] %v2826_v47 }
 0x369   :  { %2517 = vst [vmem:[%s4361_s6 + $0x28] sm:$0xff] %v2827_v50 }

// kernel: bert_classifier_forward.16
= control target key start
LH: loop header
LB: loop body
LE: loop exit
PB: predicated region body
PF: predicated region fallthrough
CT: control target
= control target key end

     0   :  { %s4827_s21 = smov 0   ;;  %s4829_s22 = smov 0   ;;  %s5446_s0 = inlined_call_operand.vmem [shape: bf16[16,3072], index: 0, kind: input, shape index: {}]   ;;  %s5447_s1 = inlined_call_operand.vmem [shape: bf16[3072,768], index: 1, kind: input, shape index: {}]   ;;  %s5448_s2 = inlined_call_operand.vmem [shape: f32[1,768], index: 2, kind: input, shape index: {}]   ;;  %s5449_s3 = inlined_call_operand.vmem [shape: bf16[16,768], index: 3, kind: input, shape index: {}]   ;;  %s5450_s4 = inlined_call_operand.vmem [shape: f32[1,768], index: 4, kind: input, shape index: {}]   ;;  %s5451_s5 = inlined_call_operand.vmem [shape: f32[1,768], index: 5, kind: input, shape index: {}]   ;;  %s5452_s6 = inlined_call_operand.vmem [shape: bf16[16,768], index: 6, kind: output, shape index: {}]  }
   0x1   :  { %s4831_s23 = smov 0   ;;  %s4833_s24 = smov 0  }
   0x2   :  { %s4835_s25 = smov 0  }
   0x3 LB: > { %s25_s26 = sadd.s32 1, %s4785_s24  ;;  %p44_p1 = scmp.ne.s32.totalorder %s4777_s22, %s4773_s21  ;;  %s4789_s25 = sphi %s4835_s25, %s16_s25   ;;  %s4785_s24 = sphi %s4833_s24, %s5456_s24   ;;  %s4781_s23 = sphi %s4831_s23, %s5455_s23   ;;  %s4777_s22 = sphi %s4829_s22, %s5454_s22   ;;  %s4773_s21 = sphi %s4827_s21, %s5453_s21  }
   0x4   : > { %p26_p0 = scmp.ge.s32.totalorder %s25_s26, 3  ;;  %p45_p2 = scmp.eq.s32.totalorder %s4789_s25, 0 }
   0x5   : > { %s37_s28 = sadd.s32 1, %s4777_s22  ;;  %p3674_p5 = scmp.ge.s32.totalorder %s4789_s25, 3 }
   0x6   : > { %s5458_s26 = smov (%p26_p0, %s25_s26), 0  ;;  %p46_p3 = por %p45_p2, %p44_p1 }
   0x7   : > { %s33_s27 = ssub.s32 %s4785_s24, %s5458_s26  ;;  %230 = sbr.rel (%p3674_p5) target bundleno = 22 (0x16), region = 32 }
   0x8   : > { %p35_p4 = scmp.eq.s32.totalorder %s33_s27, 0 }
   0xa   : > { %s4862_s29 = scalar_select %p35_p4, %s4777_s22, %s37_s28  }
   0xe   : > { %233 = sbr.rel (!%p46_p3) target bundleno = 22 (0x16), region = 36  ;;  %s235_s30 = sand.u32 (%p46_p3), 1, %s4777_s22  }
   0xf   : > { %s4086_s7 = sshll.u32 (%p46_p3), %s4785_s24, 5  ;;  %s3675_s8 = sshll.u32 (%p46_p3), %s235_s30, 6 }
  0x10   : > { %s243_s11 = scalar_lea.vmem (%p46_p3), %s5446_s0, %s4086_s7  ;;  %s237_s12 = scalar_lea.vmem (%p46_p3), [#allocation3], %s3675_s8 }
  0x11   : > { %v256_v0 = vld [vmem:[%s243_s11] sm:$0xff] (%p46_p3)  ;;  %v258_v1 = vld [vmem:[%s243_s11 + $0x8] sm:$0xff] (%p46_p3)  ;;  %v260_v2 = vld [vmem:[%s243_s11 + $0x10] sm:$0xff] (%p46_p3) }
  0x12   : > { %257 = vst [vmem:[%s237_s12] sm:$0xff] (%p46_p3), %v256_v0  ;;  %259 = vst [vmem:[%s237_s12 + $0x8] sm:$0xff] (%p46_p3), %v258_v1  ;;  %v262_v3 = vld [vmem:[%s243_s11 + $0x18] sm:$0xff] (%p46_p3)  ;;  %v264_v4 = vld [vmem:[%s243_s11 + $0x60] sm:$0xff] (%p46_p3) }
  0x13   : > { %261 = vst [vmem:[%s237_s12 + $0x10] sm:$0xff] (%p46_p3), %v260_v2  ;;  %v266_v5 = vld [vmem:[%s243_s11 + $0x68] sm:$0xff] (%p46_p3)  ;;  %263 = vst [vmem:[%s237_s12 + $0x18] sm:$0xff] (%p46_p3), %v262_v3  ;;  %v268_v6 = vld [vmem:[%s243_s11 + $0x70] sm:$0xff] (%p46_p3) }
  0x14   : > { %265 = vst [vmem:[%s237_s12 + $0x20] sm:$0xff] (%p46_p3), %v264_v4  ;;  %267 = vst [vmem:[%s237_s12 + $0x28] sm:$0xff] (%p46_p3), %v266_v5  ;;  %v270_v7 = vld [vmem:[%s243_s11 + $0x78] sm:$0xff] (%p46_p3) }
  0x15   : > { %269 = vst [vmem:[%s237_s12 + $0x30] sm:$0xff] %v268_v6  ;;  %271 = vst [vmem:[%s237_s12 + $0x38] sm:$0xff] %v270_v7 }
  0x16 PF: > { %p3678_p6 = scmp.ge.s32.totalorder %s4789_s25, 1  ;;  %p286_p7 = scmp.lt.s32.totalorder %s4789_s25, 4 }
  0x18   : > { %p287_p8 = pnand %p3678_p6, %p286_p7 }
  0x19   : > { %s293_s13 = sand.u32 (!%p287_p8), 1, %s4773_s21   ;;  %s3680_s14 = sshll.u32 (!%p287_p8), %s4781_s23, 7 }
  0x1a   : > { %290 = sbr.rel (%p287_p8) target bundleno = 991 (0x3df), region = 63  ;;  %s3679_s15 = sshll.u32 (!%p287_p8), %s293_s13, 6 }
  0x1b   : > { %p338_p9 = scmp.lt.s32.totalorder (!%p287_p8), %s3680_s14, 383  ;;  %s4879_s20 = scalar_lea.vmem (!%p287_p8), [#allocation3], %s3679_s15 }
  0x1c   : > { %p3682_p10 = scmp.ne.s32.totalorder (!%p287_p8), %s4781_s23, 0 }
  0x21   : > { %s5460_s14 = smov (!%p338_p9, %s3680_s14), 383  ;;  %361 = sbr.rel (%p3682_p10) target bundleno = 41 (0x29), region = 71 }
  0x22   : > { %s4129_s16 = smul.u32 24, %s5460_s14  ;;  %v4791_v8 = vmov (!%p3682_p10), 0.0  }
  0x23   : > { %362 = vst [vmem:[#allocation2] sm:$0xff] (!%p3682_p10), %v4791_v8  ;;  %363 = vst [vmem:[#allocation2 + $0x8] sm:$0xff] (!%p3682_p10), %v4791_v8 }
  0x24   : > { %s4877_s19 = scalar_lea.vmem %s5447_s1, %s4129_s16  ;;  %364 = vst [vmem:[#allocation2 + $0x10] sm:$0xff] (!%p3682_p10), %v4791_v8  ;;  %365 = vst [vmem:[#allocation2 + $0x18] sm:$0xff] (!%p3682_p10), %v4791_v8 }
  0x25   : > { %366 = vst [vmem:[#allocation2 + $0x20] sm:$0xff] (!%p3682_p10), %v4791_v8  ;;  %367 = vst [vmem:[#allocation2 + $0x28] sm:$0xff] (!%p3682_p10), %v4791_v8 }
  0x26   : > { %368 = vst [vmem:[#allocation2 + $0x30] sm:$0xff] (!%p3682_p10), %v4791_v8  ;;  %369 = vst [vmem:[#allocation2 + $0x38] sm:$0xff] (!%p3682_p10), %v4791_v8 }
  0x27   : > { %370 = vst [vmem:[#allocation2 + $0x40] sm:$0xff] (!%p3682_p10), %v4791_v8  ;;  %371 = vst [vmem:[#allocation2 + $0x48] sm:$0xff] (!%p3682_p10), %v4791_v8 }
  0x28   : > { %372 = vst [vmem:[#allocation2 + $0x50] sm:$0xff] %v4791_v8  ;;  %373 = vst [vmem:[#allocation2 + $0x58] sm:$0xff] %v4791_v8 }
  0x29 PF: > { %v4171_v9 = vld [vmem:[%s4877_s19 + $0x4] ss:$24 sps:$4 sm:$0xff]   ;;  %v4175_v11 = vld [vmem:[%s4877_s19] ss:$24 sps:$4 sm:$0xff]   ;;  %v4177_v13 = vld [vmem:[%s4877_s19 + $0x34] ss:$24 sps:$4 sm:$0xff]  }
  0x2a   : > { %v4173_v10 = vld [vmem:[%s4877_s19 + $0x604] ss:$24 sps:$4 sm:$0xff]   ;;  %2738 = vmatprep.subr.bf16.mxu1 %v4171_v9  ;;  %v4176_v12 = vld [vmem:[%s4877_s19 + $0x600] ss:$24 sps:$4 sm:$0xff]   ;;  %v4179_v14 = vld [vmem:[%s4877_s19 + $0x634] ss:$24 sps:$4 sm:$0xff]  }
  0x2b   : > { %2824 = vmatprep.subr.bf16.mxu0 %v4173_v10  ;;  %2739 = vmatpush1.bf16.msra.mxu1 %v4175_v11  ;;  %v4181_v15 = vld [vmem:[%s4877_s19 + $0x30] ss:$24 sps:$4 sm:$0xff]   ;;  %v4183_v17 = vld [vmem:[%s4877_s19 + $0x64] ss:$24 sps:$4 sm:$0xff]   ;;  %v4187_v19 = vld [vmem:[%s4877_s19 + $0x60] ss:$24 sps:$4 sm:$0xff]  }
  0x2c   : > { %2825 = vmatpush1.bf16.msra.mxu0 %v4176_v12  ;;  %2740 = vmatprep.subr.bf16.mxu1 %v4177_v13  ;;  %v4182_v16 = vld [vmem:[%s4877_s19 + $0x630] ss:$24 sps:$4 sm:$0xff]   ;;  %v4185_v18 = vld [vmem:[%s4877_s19 + $0x664] ss:$24 sps:$4 sm:$0xff]   ;;  %v4188_v20 = vld [vmem:[%s4877_s19 + $0x660] ss:$24 sps:$4 sm:$0xff]  }
  0x2d   : > { %2826 = vmatprep.subr.bf16.mxu0 %v4179_v14  ;;  %v4189_v21 = vld [vmem:[%s4877_s19 + $0x94] ss:$24 sps:$4 sm:$0xff]   ;;  %v4193_v23 = vld [vmem:[%s4877_s19 + $0x90] ss:$24 sps:$4 sm:$0xff]   ;;  %v4195_v25 = vld [vmem:[%s4877_s19 + $0xc4] ss:$24 sps:$4 sm:$0xff]  }
  0x2e   : > { %v4191_v22 = vld [vmem:[%s4877_s19 + $0x694] ss:$24 sps:$4 sm:$0xff]   ;;  %v4194_v24 = vld [vmem:[%s4877_s19 + $0x690] ss:$24 sps:$4 sm:$0xff]   ;;  %v4197_v26 = vld [vmem:[%s4877_s19 + $0x6c4] ss:$24 sps:$4 sm:$0xff]  }
  0x2f   : > { %2741 = vmatpush1.bf16.msra.mxu1 %v4181_v15  ;;  %v4199_v27 = vld [vmem:[%s4877_s19 + $0xc0] ss:$24 sps:$4 sm:$0xff]   ;;  %v4201_v29 = vld [vmem:[%s4877_s19 + $0xf4] ss:$24 sps:$4 sm:$0xff]   ;;  %v4205_v31 = vld [vmem:[%s4877_s19 + $0xf0] ss:$24 sps:$4 sm:$0xff]  }
  0x30   : > { %2827 = vmatpush1.bf16.msra.mxu0 %v4182_v16  ;;  %2742 = vmatprep.subr.bf16.mxu1 %v4183_v17  ;;  %v4200_v28 = vld [vmem:[%s4877_s19 + $0x6c0] ss:$24 sps:$4 sm:$0xff]   ;;  %v4203_v30 = vld [vmem:[%s4877_s19 + $0x6f4] ss:$24 sps:$4 sm:$0xff]   ;;  %v4206_v32 = vld [vmem:[%s4877_s19 + $0x6f0] ss:$24 sps:$4 sm:$0xff]  }
  0x31   : > { %2828 = vmatprep.subr.bf16.mxu0 %v4185_v18  ;;  %v4207_v33 = vld [vmem:[%s4877_s19 + $0x124] ss:$24 sps:$4 sm:$0xff]   ;;  %v4211_v35 = vld [vmem:[%s4877_s19 + $0x120] ss:$24 sps:$4 sm:$0xff]   ;;  %v4213_v37 = vld [vmem:[%s4877_s19 + $0x154] ss:$24 sps:$4 sm:$0xff]  }
  0x32   : > { %v4209_v34 = vld [vmem:[%s4877_s19 + $0x724] ss:$24 sps:$4 sm:$0xff]   ;;  %v4212_v36 = vld [vmem:[%s4877_s19 + $0x720] ss:$24 sps:$4 sm:$0xff]   ;;  %v4215_v38 = vld [vmem:[%s4877_s19 + $0x754] ss:$24 sps:$4 sm:$0xff]  }
  0x33   : > { %2743 = vmatpush1.bf16.msra.mxu1 %v4187_v19  ;;  %v4217_v39 = vld [vmem:[%s4877_s19 + $0x150] ss:$24 sps:$4 sm:$0xff]   ;;  %v4219_v41 = vld [vmem:[%s4877_s19 + $0x184] ss:$24 sps:$4 sm:$0xff]   ;;  %v4223_v43 = vld [vmem:[%s4877_s19 + $0x180] ss:$24 sps:$4 sm:$0xff]  }
  0x34   : > { %2829 = vmatpush1.bf16.msra.mxu0 %v4188_v20  ;;  %2744 = vmatprep.subr.bf16.mxu1 %v4189_v21  ;;  %v4218_v40 = vld [vmem:[%s4877_s19 + $0x750] ss:$24 sps:$4 sm:$0xff]   ;;  %v4221_v42 = vld [vmem:[%s4877_s19 + $0x784] ss:$24 sps:$4 sm:$0xff]   ;;  %v4224_v44 = vld [vmem:[%s4877_s19 + $0x780] ss:$24 sps:$4 sm:$0xff]  }
  0x35   : > { %2830 = vmatprep.subr.bf16.mxu0 %v4191_v22  ;;  %v4225_v45 = vld [vmem:[%s4877_s19 + $0x1b4] ss:$24 sps:$4 sm:$0xff]   ;;  %v4229_v47 = vld [vmem:[%s4877_s19 + $0x1b0] ss:$24 sps:$4 sm:$0xff]   ;;  %v4231_v49 = vld [vmem:[%s4877_s19 + $0x1e4] ss:$24 sps:$4 sm:$0xff]  }
  0x36   : > { %v4227_v46 = vld [vmem:[%s4877_s19 + $0x7b4] ss:$24 sps:$4 sm:$0xff]   ;;  %v4230_v48 = vld [vmem:[%s4877_s19 + $0x7b0] ss:$24 sps:$4 sm:$0xff]   ;;  %v4233_v50 = vld [vmem:[%s4877_s19 + $0x7e4] ss:$24 sps:$4 sm:$0xff]  }
  0x37   : > { %2745 = vmatpush1.bf16.msra.mxu1 %v4193_v23  ;;  %v4235_v51 = vld [vmem:[%s4877_s19 + $0x1e0] ss:$24 sps:$4 sm:$0xff]   ;;  %v4237_v53 = vld [vmem:[%s4877_s19 + $0x214] ss:$24 sps:$4 sm:$0xff]   ;;  %v4241_v55 = vld [vmem:[%s4877_s19 + $0x210] ss:$24 sps:$4 sm:$0xff]  }
  0x38   : > { %2831 = vmatpush1.bf16.msra.mxu0 %v4194_v24  ;;  %2746 = vmatprep.subr.bf16.mxu1 %v4195_v25  ;;  %v4236_v52 = vld [vmem:[%s4877_s19 + $0x7e0] ss:$24 sps:$4 sm:$0xff]   ;;  %v4239_v54 = vld [vmem:[%s4877_s19 + $0x814] ss:$24 sps:$4 sm:$0xff]   ;;  %v4242_v56 = vld [vmem:[%s4877_s19 + $0x810] ss:$24 sps:$4 sm:$0xff]  }
  0x39   : > { %2832 = vmatprep.subr.bf16.mxu0 %v4197_v26  ;;  %v386_v57 = vld [vmem:[%s4879_s20] sm:$0xff]  ;;  %v388_v62 = vld [vmem:[%s4879_s20 + $0x10] sm:$0xff]  ;;  %p4075_p11 = scmp.ne.s32.totalorder %s4781_s23, 2 }
  0x3a   : > { %v390_v58 = vld [vmem:[%s4879_s20 + $0x20] sm:$0xff]  ;;  %v392_v63 = vld [vmem:[%s4879_s20 + $0x30] sm:$0xff] }
  0x3b   : > { %2747 = vmatpush1.bf16.msra.mxu1 %v4199_v27  ;;  %v4243_v59 = vld [vmem:[%s4877_s19 + $0x244] ss:$24 sps:$4 sm:$0xff]   ;;  %v4934_v61 = vcombine.high %v386_v57, %v390_v58  ;;  %v4939_v0 = vcombine.high %v388_v62, %v392_v63  ;;  %v4247_v1 = vld [vmem:[%s4877_s19 + $0x240] ss:$24 sps:$4 sm:$0xff]   ;;  %v4249_v3 = vld [vmem:[%s4877_s19 + $0x274] ss:$24 sps:$4 sm:$0xff]   ;;  %v4960_v19 = vcombine.low %v386_v57, %v390_v58  ;;  %v4962_v20 = vcombine.low %v388_v62, %v392_v63 }
  0x3c   : > { %2833 = vmatpush1.bf16.msra.mxu0 %v4200_v28  ;;  %2748 = vmatprep.subr.bf16.mxu1 %v4201_v29  ;;  %v4245_v60 = vld [vmem:[%s4877_s19 + $0x844] ss:$24 sps:$4 sm:$0xff]   ;;  %v4248_v2 = vld [vmem:[%s4877_s19 + $0x840] ss:$24 sps:$4 sm:$0xff]   ;;  %v4251_v4 = vld [vmem:[%s4877_s19 + $0x874] ss:$24 sps:$4 sm:$0xff]  }
  0x3d   : > { %2834 = vmatprep.subr.bf16.mxu0 %v4203_v30  ;;  %2770 = vmatprep.mubr.bf16.mxu1 %v4934_v61  ;;  %v4253_v5 = vld [vmem:[%s4877_s19 + $0x270] ss:$24 sps:$4 sm:$0xff]   ;;  %v4255_v7 = vld [vmem:[%s4877_s19 + $0x2a4] ss:$24 sps:$4 sm:$0xff]   ;;  %v4259_v9 = vld [vmem:[%s4877_s19 + $0x2a0] ss:$24 sps:$4 sm:$0xff]  }
  0x3e   : > { %2856 = vmatprep.mubr.bf16.mxu0 %v4939_v0  ;;  %v4254_v6 = vld [vmem:[%s4877_s19 + $0x870] ss:$24 sps:$4 sm:$0xff]   ;;  %v4257_v8 = vld [vmem:[%s4877_s19 + $0x8a4] ss:$24 sps:$4 sm:$0xff]   ;;  %v4260_v10 = vld [vmem:[%s4877_s19 + $0x8a0] ss:$24 sps:$4 sm:$0xff]  }
  0x3f   : > { %2749 = vmatpush1.bf16.msra.mxu1 %v4205_v31  ;;  %v4261_v11 = vld [vmem:[%s4877_s19 + $0x2d4] ss:$24 sps:$4 sm:$0xff]   ;;  %v4265_v13 = vld [vmem:[%s4877_s19 + $0x2d0] ss:$24 sps:$4 sm:$0xff]   ;;  %v4269_v15 = vld [vmem:[%s4877_s19 + $0x304] ss:$24 sps:$4 sm:$0xff]  }
  0x40   : > { %2835 = vmatpush1.bf16.msra.mxu0 %v4206_v32  ;;  %2750 = vmatprep.subr.bf16.mxu1 %v4207_v33  ;;  %v4263_v12 = vld [vmem:[%s4877_s19 + $0x8d4] ss:$24 sps:$4 sm:$0xff]   ;;  %v4266_v14 = vld [vmem:[%s4877_s19 + $0x8d0] ss:$24 sps:$4 sm:$0xff]   ;;  %v4272_v16 = vld [vmem:[%s4877_s19 + $0x904] ss:$24 sps:$4 sm:$0xff]  }
  0x41   : > { %2836 = vmatprep.subr.bf16.mxu0 %v4209_v34  ;;  %v4267_v17 = vld [vmem:[%s4877_s19 + $0x300] ss:$24 sps:$4 sm:$0xff]   ;;  %v4275_v21 = vld [vmem:[%s4877_s19 + $0x334] ss:$24 sps:$4 sm:$0xff]   ;;  %v4273_v23 = vld [vmem:[%s4877_s19 + $0x330] ss:$24 sps:$4 sm:$0xff]  }
  0x42   : > { %v4270_v18 = vld [vmem:[%s4877_s19 + $0x900] ss:$24 sps:$4 sm:$0xff]   ;;  %v4278_v22 = vld [vmem:[%s4877_s19 + $0x934] ss:$24 sps:$4 sm:$0xff]   ;;  %v4276_v24 = vld [vmem:[%s4877_s19 + $0x930] ss:$24 sps:$4 sm:$0xff]  }
  0x43   : > { %2751 = vmatpush1.bf16.msra.mxu1 %v4211_v35  ;;  %v4281_v25 = vld [vmem:[%s4877_s19 + $0x364] ss:$24 sps:$4 sm:$0xff]   ;;  %v4279_v27 = vld [vmem:[%s4877_s19 + $0x360] ss:$24 sps:$4 sm:$0xff]   ;;  %v4287_v29 = vld [vmem:[%s4877_s19 + $0x394] ss:$24 sps:$4 sm:$0xff]  }
  0x44   : > { %2837 = vmatpush1.bf16.msra.mxu0 %v4212_v36  ;;  %2752 = vmatprep.subr.bf16.mxu1 %v4213_v37  ;;  %v4284_v26 = vld [vmem:[%s4877_s19 + $0x964] ss:$24 sps:$4 sm:$0xff]   ;;  %v4282_v28 = vld [vmem:[%s4877_s19 + $0x960] ss:$24 sps:$4 sm:$0xff]   ;;  %v4290_v30 = vld [vmem:[%s4877_s19 + $0x994] ss:$24 sps:$4 sm:$0xff]  }
  0x45   : > { %2838 = vmatprep.subr.bf16.mxu0 %v4215_v38  ;;  %v4285_v31 = vld [vmem:[%s4877_s19 + $0x390] ss:$24 sps:$4 sm:$0xff]   ;;  %v4293_v33 = vld [vmem:[%s4877_s19 + $0x3c4] ss:$24 sps:$4 sm:$0xff]   ;;  %v4291_v35 = vld [vmem:[%s4877_s19 + $0x3c0] ss:$24 sps:$4 sm:$0xff]  }
  0x46   : > { %v4288_v32 = vld [vmem:[%s4877_s19 + $0x990] ss:$24 sps:$4 sm:$0xff]   ;;  %v4296_v34 = vld [vmem:[%s4877_s19 + $0x9c4] ss:$24 sps:$4 sm:$0xff]   ;;  %v4294_v36 = vld [vmem:[%s4877_s19 + $0x9c0] ss:$24 sps:$4 sm:$0xff]  }
  0x47   : > { %2753 = vmatpush1.bf16.msra.mxu1 %v4217_v39  ;;  %v4299_v37 = vld [vmem:[%s4877_s19 + $0x3f4] ss:$24 sps:$4 sm:$0xff]   ;;  %v4297_v39 = vld [vmem:[%s4877_s19 + $0x3f0] ss:$24 sps:$4 sm:$0xff]   ;;  %v4315_v57 = vld [vmem:[%s4877_s19 + $0x480] ss:$24 sps:$4 sm:$0xff]  }
  0x48   : > { %2839 = vmatpush1.bf16.msra.mxu0 %v4218_v40  ;;  %2754 = vmatprep.subr.bf16.mxu1 %v4219_v41  ;;  %v4302_v38 = vld [vmem:[%s4877_s19 + $0x9f4] ss:$24 sps:$4 sm:$0xff]   ;;  %v4300_v40 = vld [vmem:[%s4877_s19 + $0x9f0] ss:$24 sps:$4 sm:$0xff]   ;;  %v4305_v41 = vld [vmem:[%s4877_s19 + $0x424] ss:$24 sps:$4 sm:$0xff]  }
  0x49   : > { %2840 = vmatprep.subr.bf16.mxu0 %v4221_v42  ;;  %v4308_v42 = vld [vmem:[%s4877_s19 + $0xa24] ss:$24 sps:$4 sm:$0xff]   ;;  %v4318_v58 = vld [vmem:[%s4877_s19 + $0xa80] ss:$24 sps:$4 sm:$0xff]   ;;  %v4321_v62 = vld [vmem:[%s4877_s19 + $0x4b0] ss:$24 sps:$4 sm:$0xff]  }
  0x4a   : > { %v4324_v63 = vld [vmem:[%s4877_s19 + $0xab0] ss:$24 sps:$4 sm:$0xff]  }
  0x4b   : > { %2755 = vmatpush1.bf16.msra.mxu1 %v4223_v43  ;;  %v4303_v43 = vld [vmem:[%s4877_s19 + $0x420] ss:$24 sps:$4 sm:$0xff]  }
  0x4c   : > { %2841 = vmatpush1.bf16.msra.mxu0 %v4224_v44  ;;  %2756 = vmatprep.subr.bf16.mxu1 %v4225_v45  ;;  %v4306_v44 = vld [vmem:[%s4877_s19 + $0xa20] ss:$24 sps:$4 sm:$0xff]   ;;  %v4991_v45 = vld [vmem:[%s4879_s20 + $0x8] sm:$0xff] }
  0x4d   : > { %2842 = vmatprep.subr.bf16.mxu0 %v4227_v46  ;;  %v4994_v46 = vld [vmem:[%s4879_s20 + $0x28] sm:$0xff] }
  0x4f   : > { %2757 = vmatpush1.bf16.msra.mxu1 %v4229_v47  ;;  %v4997_v47 = vld [vmem:[%s4879_s20 + $0x18] sm:$0xff] }
  0x50   : > { %2843 = vmatpush1.bf16.msra.mxu0 %v4230_v48  ;;  %2758 = vmatprep.subr.bf16.mxu1 %v4231_v49  ;;  %v5000_v48 = vld [vmem:[%s4879_s20 + $0x38] sm:$0xff]  ;;  %v4311_v49 = vld [vmem:[%s4877_s19 + $0x454] ss:$24 sps:$4 sm:$0xff]  }
  0x51   : > { %2844 = vmatprep.subr.bf16.mxu0 %v4233_v50  ;;  %v5005_v50 = vcombine.high %v4991_v45, %v4994_v46 }
  0x53   : > { %2759 = vmatpush1.bf16.msra.mxu1 %v4235_v51  ;;  %v4314_v51 = vld [vmem:[%s4877_s19 + $0xa54] ss:$24 sps:$4 sm:$0xff]  }
  0x54   : > { %2845 = vmatpush1.bf16.msra.mxu0 %v4236_v52  ;;  %2760 = vmatprep.subr.bf16.mxu1 %v4237_v53  ;;  %v5010_v52 = vcombine.high %v4997_v47, %v5000_v48  ;;  %v4309_v53 = vld [vmem:[%s4877_s19 + $0x450] ss:$24 sps:$4 sm:$0xff]  }
  0x55   : > { %2846 = vmatprep.subr.bf16.mxu0 %v4239_v54  ;;  %v4312_v54 = vld [vmem:[%s4877_s19 + $0xa50] ss:$24 sps:$4 sm:$0xff]  }
  0x57   : > { %2761 = vmatpush1.bf16.msra.mxu1 %v4241_v55  ;;  %v4317_v55 = vld [vmem:[%s4877_s19 + $0x484] ss:$24 sps:$4 sm:$0xff]  }
  0x58   : > { %2847 = vmatpush1.bf16.msra.mxu0 %v4242_v56  ;;  %2762 = vmatprep.subr.bf16.mxu1 %v4243_v59  ;;  %v4320_v56 = vld [vmem:[%s4877_s19 + $0xa84] ss:$24 sps:$4 sm:$0xff]   ;;  %v4323_v59 = vld [vmem:[%s4877_s19 + $0x4b4] ss:$24 sps:$4 sm:$0xff]  }
  0x59   : > { %2848 = vmatprep.subr.bf16.mxu0 %v4245_v60  ;;  %v4326_v60 = vld [vmem:[%s4877_s19 + $0xab4] ss:$24 sps:$4 sm:$0xff]  }
  0x5b   : > { %2763 = vmatpush1.bf16.msra.mxu1 %v4247_v1  ;;  %v4329_v1 = vld [vmem:[%s4877_s19 + $0x4e4] ss:$24 sps:$4 sm:$0xff]  }
  0x5c   : > { %2849 = vmatpush1.bf16.msra.mxu0 %v4248_v2  ;;  %2764 = vmatprep.subr.bf16.mxu1 %v4249_v3  ;;  %v4332_v2 = vld [vmem:[%s4877_s19 + $0xae4] ss:$24 sps:$4 sm:$0xff]   ;;  %v4327_v3 = vld [vmem:[%s4877_s19 + $0x4e0] ss:$24 sps:$4 sm:$0xff]  }
  0x5d   : > { %2850 = vmatprep.subr.bf16.mxu0 %v4251_v4  ;;  %v4330_v4 = vld [vmem:[%s4877_s19 + $0xae0] ss:$24 sps:$4 sm:$0xff]  }
  0x5f   : > { %2765 = vmatpush1.bf16.msra.mxu1 %v4253_v5  ;;  %v4335_v5 = vld [vmem:[%s4877_s19 + $0x514] ss:$24 sps:$4 sm:$0xff]  }
  0x60   : > { %2851 = vmatpush1.bf16.msra.mxu0 %v4254_v6  ;;  %2766 = vmatprep.subr.bf16.mxu1 %v4255_v7  ;;  %v4338_v6 = vld [vmem:[%s4877_s19 + $0xb14] ss:$24 sps:$4 sm:$0xff]   ;;  %v4333_v7 = vld [vmem:[%s4877_s19 + $0x510] ss:$24 sps:$4 sm:$0xff]  }
  0x61   : > { %2852 = vmatprep.subr.bf16.mxu0 %v4257_v8  ;;  %v4336_v8 = vld [vmem:[%s4877_s19 + $0xb10] ss:$24 sps:$4 sm:$0xff]  }
  0x63   : > { %2767 = vmatpush1.bf16.msra.mxu1 %v4259_v9  ;;  %v4341_v9 = vld [vmem:[%s4877_s19 + $0x544] ss:$24 sps:$4 sm:$0xff]  }
  0x64   : > { %2853 = vmatpush1.bf16.msra.mxu0 %v4260_v10  ;;  %2768 = vmatprep.subr.bf16.mxu1 %v4261_v11  ;;  %v4344_v10 = vld [vmem:[%s4877_s19 + $0xb44] ss:$24 sps:$4 sm:$0xff]   ;;  %v4339_v11 = vld [vmem:[%s4877_s19 + $0x540] ss:$24 sps:$4 sm:$0xff]  }
  0x65   : > { %2854 = vmatprep.subr.bf16.mxu0 %v4263_v12  ;;  %v4342_v12 = vld [vmem:[%s4877_s19 + $0xb40] ss:$24 sps:$4 sm:$0xff]  }
  0x67   : > { %2769 = vmatpush1.bf16.msra.mxu1 %v4265_v13  ;;  %v4347_v13 = vld [vmem:[%s4877_s19 + $0x574] ss:$24 sps:$4 sm:$0xff]  }
  0x68   : > { %2855 = vmatpush1.bf16.msra.mxu0 %v4266_v14  ;;  %2781 = vmatprep.subr.bf16.mxu1 %v4269_v15  ;;  %v4350_v14 = vld [vmem:[%s4877_s19 + $0xb74] ss:$24 sps:$4 sm:$0xff]   ;;  %v4345_v15 = vld [vmem:[%s4877_s19 + $0x570] ss:$24 sps:$4 sm:$0xff]  }
  0x69   : > { %2867 = vmatprep.subr.bf16.mxu0 %v4272_v16  ;;  %v4348_v16 = vld [vmem:[%s4877_s19 + $0xb70] ss:$24 sps:$4 sm:$0xff]  }
  0x6a   : > { %2771 = vmatmul.mubr.bf16.vlgmr.msra.gmra.mrb[0].mxu1 %v4960_v19 }
  0x6b   : > { %2857 = vmatmul.mubr.bf16.vlgmr.msra.gmra.mrb[0].mxu0 %v4962_v20  ;;  %2782 = vmatpush1.bf16.msra.mxu1 %v4267_v17  ;;  %v4353_v17 = vld [vmem:[%s4877_s19 + $0x5a4] ss:$24 sps:$4 sm:$0xff]  }
  0x6c   : > { %2868 = vmatpush1.bf16.msra.mxu0 %v4270_v18  ;;  %2783 = vmatprep.subr.bf16.mxu1 %v4275_v21  ;;  %v4356_v18 = vld [vmem:[%s4877_s19 + $0xba4] ss:$24 sps:$4 sm:$0xff]   ;;  %v4351_v21 = vld [vmem:[%s4877_s19 + $0x5a0] ss:$24 sps:$4 sm:$0xff]  }
  0x6d   : > { %2869 = vmatprep.subr.bf16.mxu0 %v4278_v22  ;;  %2813 = vmatprep.mubr.bf16.mxu1 %v5005_v50  ;;  %v4354_v22 = vld [vmem:[%s4877_s19 + $0xba0] ss:$24 sps:$4 sm:$0xff]  }
  0x6e   : > { %2899 = vmatprep.mubr.bf16.mxu0 %v5010_v52 }
  0x6f   : > { %2784 = vmatpush1.bf16.msra.mxu1 %v4273_v23  ;;  %v4359_v23 = vld [vmem:[%s4877_s19 + $0x5d4] ss:$24 sps:$4 sm:$0xff]  }
  0x70   : > { %2870 = vmatpush1.bf16.msra.mxu0 %v4276_v24  ;;  %2785 = vmatprep.subr.bf16.mxu1 %v4281_v25  ;;  %v4362_v24 = vld [vmem:[%s4877_s19 + $0xbd4] ss:$24 sps:$4 sm:$0xff]   ;;  %v4357_v25 = vld [vmem:[%s4877_s19 + $0x5d0] ss:$24 sps:$4 sm:$0xff]  }
  0x71   : > { %2871 = vmatprep.subr.bf16.mxu0 %v4284_v26  ;;  %v4360_v26 = vld [vmem:[%s4877_s19 + $0xbd0] ss:$24 sps:$4 sm:$0xff]  }
  0x73   : > { %2786 = vmatpush1.bf16.msra.mxu1 %v4279_v27  ;;  %v4365_v27 = vld [vmem:[%s4877_s19 + $0xc] ss:$24 sps:$4 sm:$0xff]  }
  0x74   : > { %2872 = vmatpush1.bf16.msra.mxu0 %v4282_v28  ;;  %2787 = vmatprep.subr.bf16.mxu1 %v4287_v29  ;;  %v4368_v28 = vld [vmem:[%s4877_s19 + $0x14] ss:$24 sps:$4 sm:$0xff]   ;;  %v5052_v29 = vcombine.low %v4991_v45, %v4994_v46  ;;  %v4387_v46 = vld [vmem:[%s4877_s19 + $0xc8] ss:$24 sps:$4 sm:$0xff]  }
  0x75   : > { %2873 = vmatprep.subr.bf16.mxu0 %v4290_v30  ;;  %v5056_v30 = vcombine.low %v4997_v47, %v5000_v48  ;;  %v4392_v45 = vld [vmem:[%s4877_s19 + $0xd4] ss:$24 sps:$4 sm:$0xff]   ;;  %v4390_v47 = vld [vmem:[%s4877_s19 + $0xd0] ss:$24 sps:$4 sm:$0xff]  }
  0x76   : > { %v4395_v48 = vld [vmem:[%s4877_s19 + $0xfc] ss:$24 sps:$4 sm:$0xff]  }
  0x77   : > { %2788 = vmatpush1.bf16.msra.mxu1 %v4285_v31  ;;  %v4363_v31 = vld [vmem:[%s4877_s19 + $0x8] ss:$24 sps:$4 sm:$0xff]  }
  0x78   : > { %2874 = vmatpush1.bf16.msra.mxu0 %v4288_v32  ;;  %2789 = vmatprep.subr.bf16.mxu1 %v4293_v33  ;;  %v4366_v32 = vld [vmem:[%s4877_s19 + $0x10] ss:$24 sps:$4 sm:$0xff]   ;;  %v4371_v33 = vld [vmem:[%s4877_s19 + $0x3c] ss:$24 sps:$4 sm:$0xff]  }
  0x79   : > { %2875 = vmatprep.subr.bf16.mxu0 %v4296_v34  ;;  %v4374_v34 = vld [vmem:[%s4877_s19 + $0x44] ss:$24 sps:$4 sm:$0xff]  }
  0x7b   : > { %2790 = vmatpush1.bf16.msra.mxu1 %v4291_v35  ;;  %v4369_v35 = vld [vmem:[%s4877_s19 + $0x38] ss:$24 sps:$4 sm:$0xff]  }
  0x7c   : > { %2876 = vmatpush1.bf16.msra.mxu0 %v4294_v36  ;;  %2791 = vmatprep.subr.bf16.mxu1 %v4299_v37  ;;  %v4372_v36 = vld [vmem:[%s4877_s19 + $0x40] ss:$24 sps:$4 sm:$0xff]   ;;  %v4377_v37 = vld [vmem:[%s4877_s19 + $0x6c] ss:$24 sps:$4 sm:$0xff]  }
  0x7d   : > { %2877 = vmatprep.subr.bf16.mxu0 %v4302_v38  ;;  %v4380_v38 = vld [vmem:[%s4877_s19 + $0x74] ss:$24 sps:$4 sm:$0xff]  }
  0x7f   : > { %2792 = vmatpush1.bf16.msra.mxu1 %v4297_v39  ;;  %v4375_v39 = vld [vmem:[%s4877_s19 + $0x68] ss:$24 sps:$4 sm:$0xff]  }
  0x80   : > { %2878 = vmatpush1.bf16.msra.mxu0 %v4300_v40  ;;  %2793 = vmatprep.subr.bf16.mxu1 %v4305_v41  ;;  %v4378_v40 = vld [vmem:[%s4877_s19 + $0x70] ss:$24 sps:$4 sm:$0xff]   ;;  %v4383_v41 = vld [vmem:[%s4877_s19 + $0x9c] ss:$24 sps:$4 sm:$0xff]  }
  0x81   : > { %2879 = vmatprep.subr.bf16.mxu0 %v4308_v42  ;;  %v4386_v42 = vld [vmem:[%s4877_s19 + $0xa4] ss:$24 sps:$4 sm:$0xff]  }
  0x83   : > { %2794 = vmatpush1.bf16.msra.mxu1 %v4303_v43  ;;  %v4381_v43 = vld [vmem:[%s4877_s19 + $0x98] ss:$24 sps:$4 sm:$0xff]  }
  0x84   : > { %2880 = vmatpush1.bf16.msra.mxu0 %v4306_v44  ;;  %2795 = vmatprep.subr.bf16.mxu1 %v4311_v49  ;;  %v4384_v44 = vld [vmem:[%s4877_s19 + $0xa0] ss:$24 sps:$4 sm:$0xff]   ;;  %v4398_v49 = vld [vmem:[%s4877_s19 + $0x104] ss:$24 sps:$4 sm:$0xff]  }
  0x85   : > { %2881 = vmatprep.subr.bf16.mxu0 %v4314_v51  ;;  %v4393_v51 = vld [vmem:[%s4877_s19 + $0xf8] ss:$24 sps:$4 sm:$0xff]  }
  0x87   : > { %2796 = vmatpush1.bf16.msra.mxu1 %v4309_v53  ;;  %v4396_v53 = vld [vmem:[%s4877_s19 + $0x100] ss:$24 sps:$4 sm:$0xff]  }
  0x88   : > { %2882 = vmatpush1.bf16.msra.mxu0 %v4312_v54  ;;  %2797 = vmatprep.subr.bf16.mxu1 %v4317_v55  ;;  %v4401_v54 = vld [vmem:[%s4877_s19 + $0x12c] ss:$24 sps:$4 sm:$0xff]  }
  0x89   : > { %2883 = vmatprep.subr.bf16.mxu0 %v4320_v56  ;;  %v4404_v55 = vld [vmem:[%s4877_s19 + $0x134] ss:$24 sps:$4 sm:$0xff]   ;;  %v4399_v56 = vld [vmem:[%s4877_s19 + $0x128] ss:$24 sps:$4 sm:$0xff]  }
  0x8b   : > { %2798 = vmatpush1.bf16.msra.mxu1 %v4315_v57  ;;  %v4402_v57 = vld [vmem:[%s4877_s19 + $0x130] ss:$24 sps:$4 sm:$0xff]  }
  0x8c   : > { %2884 = vmatpush1.bf16.msra.mxu0 %v4318_v58  ;;  %2799 = vmatprep.subr.bf16.mxu1 %v4323_v59  ;;  %v4407_v58 = vld [vmem:[%s4877_s19 + $0x15c] ss:$24 sps:$4 sm:$0xff]  }
  0x8d   : > { %2885 = vmatprep.subr.bf16.mxu0 %v4326_v60  ;;  %v4410_v59 = vld [vmem:[%s4877_s19 + $0x164] ss:$24 sps:$4 sm:$0xff]   ;;  %v4405_v60 = vld [vmem:[%s4877_s19 + $0x158] ss:$24 sps:$4 sm:$0xff]  }
  0x8f   : > { %2800 = vmatpush1.bf16.msra.mxu1 %v4321_v62  ;;  %v4408_v62 = vld [vmem:[%s4877_s19 + $0x160] ss:$24 sps:$4 sm:$0xff]  }
  0x90   : > { %2886 = vmatpush1.bf16.msra.mxu0 %v4324_v63  ;;  %2801 = vmatprep.subr.bf16.mxu1 %v4329_v1  ;;  %v4413_v63 = vld [vmem:[%s4877_s19 + $0x18c] ss:$24 sps:$4 sm:$0xff]  }
  0x91   : > { %2887 = vmatprep.subr.bf16.mxu0 %v4332_v2  ;;  %v4416_v1 = vld [vmem:[%s4877_s19 + $0x194] ss:$24 sps:$4 sm:$0xff]   ;;  %v4411_v2 = vld [vmem:[%s4877_s19 + $0x188] ss:$24 sps:$4 sm:$0xff]  }
  0x93   : > { %2802 = vmatpush1.bf16.msra.mxu1 %v4327_v3  ;;  %v4414_v3 = vld [vmem:[%s4877_s19 + $0x190] ss:$24 sps:$4 sm:$0xff]  }
  0x94   : > { %2888 = vmatpush1.bf16.msra.mxu0 %v4330_v4  ;;  %2803 = vmatprep.subr.bf16.mxu1 %v4335_v5  ;;  %v4419_v4 = vld [vmem:[%s4877_s19 + $0x1bc] ss:$24 sps:$4 sm:$0xff]  }
  0x95   : > { %2889 = vmatprep.subr.bf16.mxu0 %v4338_v6  ;;  %v4422_v5 = vld [vmem:[%s4877_s19 + $0x1c4] ss:$24 sps:$4 sm:$0xff]   ;;  %v4417_v6 = vld [vmem:[%s4877_s19 + $0x1b8] ss:$24 sps:$4 sm:$0xff]  }
  0x97   : > { %2804 = vmatpush1.bf16.msra.mxu1 %v4333_v7  ;;  %v4420_v7 = vld [vmem:[%s4877_s19 + $0x1c0] ss:$24 sps:$4 sm:$0xff]  }
  0x98   : > { %2890 = vmatpush1.bf16.msra.mxu0 %v4336_v8  ;;  %2805 = vmatprep.subr.bf16.mxu1 %v4341_v9  ;;  %v4425_v8 = vld [vmem:[%s4877_s19 + $0x1ec] ss:$24 sps:$4 sm:$0xff]  }
  0x99   : > { %2891 = vmatprep.subr.bf16.mxu0 %v4344_v10  ;;  %v4428_v9 = vld [vmem:[%s4877_s19 + $0x1f4] ss:$24 sps:$4 sm:$0xff]   ;;  %v4423_v10 = vld [vmem:[%s4877_s19 + $0x1e8] ss:$24 sps:$4 sm:$0xff]  }
  0x9b   : > { %2806 = vmatpush1.bf16.msra.mxu1 %v4339_v11  ;;  %v4426_v11 = vld [vmem:[%s4877_s19 + $0x1f0] ss:$24 sps:$4 sm:$0xff]  }
  0x9c   : > { %2892 = vmatpush1.bf16.msra.mxu0 %v4342_v12  ;;  %2807 = vmatprep.subr.bf16.mxu1 %v4347_v13  ;;  %v4431_v12 = vld [vmem:[%s4877_s19 + $0x21c] ss:$24 sps:$4 sm:$0xff]  }
  0x9d   : > { %2893 = vmatprep.subr.bf16.mxu0 %v4350_v14  ;;  %v4434_v13 = vld [vmem:[%s4877_s19 + $0x224] ss:$24 sps:$4 sm:$0xff]   ;;  %v4429_v14 = vld [vmem:[%s4877_s19 + $0x218] ss:$24 sps:$4 sm:$0xff]  }
  0x9f   : > { %2808 = vmatpush1.bf16.msra.mxu1 %v4345_v15  ;;  %v4432_v15 = vld [vmem:[%s4877_s19 + $0x220] ss:$24 sps:$4 sm:$0xff]  }
  0xa0   : > { %2894 = vmatpush1.bf16.msra.mxu0 %v4348_v16  ;;  %2809 = vmatprep.subr.bf16.mxu1 %v4353_v17  ;;  %v4437_v16 = vld [vmem:[%s4877_s19 + $0x24c] ss:$24 sps:$4 sm:$0xff]  }
  0xa1   : > { %2895 = vmatprep.subr.bf16.mxu0 %v4356_v18  ;;  %v4440_v17 = vld [vmem:[%s4877_s19 + $0x254] ss:$24 sps:$4 sm:$0xff]   ;;  %v4435_v18 = vld [vmem:[%s4877_s19 + $0x248] ss:$24 sps:$4 sm:$0xff]  }
  0xa3   : > { %2810 = vmatpush1.bf16.msra.mxu1 %v4351_v21  ;;  %v4438_v21 = vld [vmem:[%s4877_s19 + $0x250] ss:$24 sps:$4 sm:$0xff]  }
  0xa4   : > { %2896 = vmatpush1.bf16.msra.mxu0 %v4354_v22  ;;  %2811 = vmatprep.subr.bf16.mxu1 %v4359_v23  ;;  %v4443_v22 = vld [vmem:[%s4877_s19 + $0x27c] ss:$24 sps:$4 sm:$0xff]  }
  0xa5   : > { %2897 = vmatprep.subr.bf16.mxu0 %v4362_v24  ;;  %v4446_v23 = vld [vmem:[%s4877_s19 + $0x284] ss:$24 sps:$4 sm:$0xff]   ;;  %v4441_v24 = vld [vmem:[%s4877_s19 + $0x278] ss:$24 sps:$4 sm:$0xff]  }
  0xa7   : > { %2812 = vmatpush1.bf16.msra.mxu1 %v4357_v25  ;;  %v4444_v25 = vld [vmem:[%s4877_s19 + $0x280] ss:$24 sps:$4 sm:$0xff]  }
  0xa8   : > { %2898 = vmatpush1.bf16.msra.mxu0 %v4360_v26  ;;  %2910 = vmatprep.subr.bf16.mxu1 %v4365_v27  ;;  %v4449_v26 = vld [vmem:[%s4877_s19 + $0x2ac] ss:$24 sps:$4 sm:$0xff]  }
  0xa9   : > { %3082 = vmatprep.subr.bf16.mxu0 %v4368_v28  ;;  %v4452_v27 = vld [vmem:[%s4877_s19 + $0x2b4] ss:$24 sps:$4 sm:$0xff]   ;;  %v4447_v28 = vld [vmem:[%s4877_s19 + $0x2a8] ss:$24 sps:$4 sm:$0xff]  }
  0xaa   : > { %2814 = vmatmul.mubr.bf16.vlgmr.msra.gmra.mrb[0].mxu1 %v5052_v29 }
  0xab   : > { %2900 = vmatmul.mubr.bf16.vlgmr.msra.gmra.mrb[0].mxu0 %v5056_v30  ;;  %2911 = vmatpush1.bf16.msra.mxu1 %v4363_v31  ;;  %v4450_v31 = vld [vmem:[%s4877_s19 + $0x2b0] ss:$24 sps:$4 sm:$0xff]  }
  0xac   : > { %3083 = vmatpush1.bf16.msra.mxu0 %v4366_v32  ;;  %2912 = vmatprep.subr.bf16.mxu1 %v4371_v33  ;;  %v4455_v32 = vld [vmem:[%s4877_s19 + $0x2dc] ss:$24 sps:$4 sm:$0xff]  }
  0xad   : > { %3084 = vmatprep.subr.bf16.mxu0 %v4374_v34  ;;  %2942 = vmatprep.mubr.bf16.mxu1 %v4934_v61  ;;  %v4458_v33 = vld [vmem:[%s4877_s19 + $0x2e4] ss:$24 sps:$4 sm:$0xff]   ;;  %v4453_v34 = vld [vmem:[%s4877_s19 + $0x2d8] ss:$24 sps:$4 sm:$0xff]  }
  0xae   : > { %3114 = vmatprep.mubr.bf16.mxu0 %v4934_v61  ;;  %v4389_v61 = vld [vmem:[%s4877_s19 + $0xcc] ss:$24 sps:$4 sm:$0xff]  }
  0xaf   : > { %2913 = vmatpush1.bf16.msra.mxu1 %v4369_v35  ;;  %v4456_v35 = vld [vmem:[%s4877_s19 + $0x2e0] ss:$24 sps:$4 sm:$0xff]  }
  0xb0   : > { %3085 = vmatpush1.bf16.msra.mxu0 %v4372_v36  ;;  %2914 = vmatprep.subr.bf16.mxu1 %v4377_v37  ;;  %v4461_v36 = vld [vmem:[%s4877_s19 + $0x30c] ss:$24 sps:$4 sm:$0xff]  }
  0xb1   : > { %3086 = vmatprep.subr.bf16.mxu0 %v4380_v38  ;;  %v4464_v37 = vld [vmem:[%s4877_s19 + $0x314] ss:$24 sps:$4 sm:$0xff]   ;;  %v4459_v38 = vld [vmem:[%s4877_s19 + $0x308] ss:$24 sps:$4 sm:$0xff]  }
  0xb3   : > { %2915 = vmatpush1.bf16.msra.mxu1 %v4375_v39  ;;  %v4462_v39 = vld [vmem:[%s4877_s19 + $0x310] ss:$24 sps:$4 sm:$0xff]  }
  0xb4   : > { %3087 = vmatpush1.bf16.msra.mxu0 %v4378_v40  ;;  %2916 = vmatprep.subr.bf16.mxu1 %v4383_v41  ;;  %v4467_v40 = vld [vmem:[%s4877_s19 + $0x33c] ss:$24 sps:$4 sm:$0xff]  }
  0xb5   : > { %3088 = vmatprep.subr.bf16.mxu0 %v4386_v42  ;;  %v4470_v41 = vld [vmem:[%s4877_s19 + $0x344] ss:$24 sps:$4 sm:$0xff]   ;;  %v4465_v42 = vld [vmem:[%s4877_s19 + $0x338] ss:$24 sps:$4 sm:$0xff]  }
  0xb7   : > { %2917 = vmatpush1.bf16.msra.mxu1 %v4381_v43  ;;  %v4468_v43 = vld [vmem:[%s4877_s19 + $0x340] ss:$24 sps:$4 sm:$0xff]  }
  0xb8   : > { %3089 = vmatpush1.bf16.msra.mxu0 %v4384_v44  ;;  %2918 = vmatprep.subr.bf16.mxu1 %v4389_v61  ;;  %v4473_v44 = vld [vmem:[%s4877_s19 + $0x36c] ss:$24 sps:$4 sm:$0xff]  }
  0xb9   : > { %3090 = vmatprep.subr.bf16.mxu0 %v4392_v45  ;;  %v4476_v61 = vld [vmem:[%s4877_s19 + $0x374] ss:$24 sps:$4 sm:$0xff]   ;;  %v4471_v45 = vld [vmem:[%s4877_s19 + $0x368] ss:$24 sps:$4 sm:$0xff]  }
  0xbb   : > { %2919 = vmatpush1.bf16.msra.mxu1 %v4387_v46  ;;  %v4479_v46 = vld [vmem:[%s4877_s19 + $0x39c] ss:$24 sps:$4 sm:$0xff]  }
  0xbc   : > { %3091 = vmatpush1.bf16.msra.mxu0 %v4390_v47  ;;  %2920 = vmatprep.subr.bf16.mxu1 %v4395_v48  ;;  %v4482_v47 = vld [vmem:[%s4877_s19 + $0x3a4] ss:$24 sps:$4 sm:$0xff]   ;;  %v4477_v48 = vld [vmem:[%s4877_s19 + $0x398] ss:$24 sps:$4 sm:$0xff]  }
  0xbd   : > { %3092 = vmatprep.subr.bf16.mxu0 %v4398_v49  ;;  %v4480_v49 = vld [vmem:[%s4877_s19 + $0x3a0] ss:$24 sps:$4 sm:$0xff]  }
  0xbf   : > { %2921 = vmatpush1.bf16.msra.mxu1 %v4393_v51  ;;  %v4488_v51 = vld [vmem:[%s4877_s19 + $0x3d4] ss:$24 sps:$4 sm:$0xff]  }
  0xc0   : > { %3093 = vmatpush1.bf16.msra.mxu0 %v4396_v53  ;;  %2922 = vmatprep.subr.bf16.mxu1 %v4401_v54  ;;  %v4483_v53 = vld [vmem:[%s4877_s19 + $0x3c8] ss:$24 sps:$4 sm:$0xff]  }
  0xc1   : > { %3094 = vmatprep.subr.bf16.mxu0 %v4404_v55  ;;  %v4486_v54 = vld [vmem:[%s4877_s19 + $0x3d0] ss:$24 sps:$4 sm:$0xff]   ;;  %v4491_v55 = vld [vmem:[%s4877_s19 + $0x3fc] ss:$24 sps:$4 sm:$0xff]  }
  0xc3   : > { %2923 = vmatpush1.bf16.msra.mxu1 %v4399_v56  ;;  %v4494_v56 = vld [vmem:[%s4877_s19 + $0x404] ss:$24 sps:$4 sm:$0xff]  }
  0xc4   : > { %3095 = vmatpush1.bf16.msra.mxu0 %v4402_v57  ;;  %2924 = vmatprep.subr.bf16.mxu1 %v4407_v58  ;;  %v4489_v57 = vld [vmem:[%s4877_s19 + $0x3f8] ss:$24 sps:$4 sm:$0xff]  }
  0xc5   : > { %3096 = vmatprep.subr.bf16.mxu0 %v4410_v59  ;;  %v4492_v58 = vld [vmem:[%s4877_s19 + $0x400] ss:$24 sps:$4 sm:$0xff]   ;;  %v4497_v59 = vld [vmem:[%s4877_s19 + $0x42c] ss:$24 sps:$4 sm:$0xff]  }
  0xc7   : > { %2925 = vmatpush1.bf16.msra.mxu1 %v4405_v60  ;;  %v4500_v60 = vld [vmem:[%s4877_s19 + $0x434] ss:$24 sps:$4 sm:$0xff]  }
  0xc8   : > { %3097 = vmatpush1.bf16.msra.mxu0 %v4408_v62  ;;  %2926 = vmatprep.subr.bf16.mxu1 %v4413_v63  ;;  %v4495_v62 = vld [vmem:[%s4877_s19 + $0x428] ss:$24 sps:$4 sm:$0xff]  }
  0xc9   : > { %3098 = vmatprep.subr.bf16.mxu0 %v4416_v1  ;;  %v4498_v63 = vld [vmem:[%s4877_s19 + $0x430] ss:$24 sps:$4 sm:$0xff]   ;;  %v4503_v1 = vld [vmem:[%s4877_s19 + $0x45c] ss:$24 sps:$4 sm:$0xff]  }
  0xcb   : > { %2927 = vmatpush1.bf16.msra.mxu1 %v4411_v2  ;;  %v4506_v2 = vld [vmem:[%s4877_s19 + $0x464] ss:$24 sps:$4 sm:$0xff]  }
  0xcc   : > { %3099 = vmatpush1.bf16.msra.mxu0 %v4414_v3  ;;  %2928 = vmatprep.subr.bf16.mxu1 %v4419_v4  ;;  %v4501_v3 = vld [vmem:[%s4877_s19 + $0x458] ss:$24 sps:$4 sm:$0xff]  }
  0xcd   : > { %3100 = vmatprep.subr.bf16.mxu0 %v4422_v5  ;;  %v4504_v4 = vld [vmem:[%s4877_s19 + $0x460] ss:$24 sps:$4 sm:$0xff]   ;;  %v4509_v5 = vld [vmem:[%s4877_s19 + $0x48c] ss:$24 sps:$4 sm:$0xff]  }
  0xcf   : > { %2929 = vmatpush1.bf16.msra.mxu1 %v4417_v6  ;;  %v4512_v6 = vld [vmem:[%s4877_s19 + $0x494] ss:$24 sps:$4 sm:$0xff]  }
  0xd0   : > { %3101 = vmatpush1.bf16.msra.mxu0 %v4420_v7  ;;  %2930 = vmatprep.subr.bf16.mxu1 %v4425_v8  ;;  %v4507_v7 = vld [vmem:[%s4877_s19 + $0x488] ss:$24 sps:$4 sm:$0xff]  }
  0xd1   : > { %3102 = vmatprep.subr.bf16.mxu0 %v4428_v9  ;;  %v4510_v8 = vld [vmem:[%s4877_s19 + $0x490] ss:$24 sps:$4 sm:$0xff]   ;;  %v4515_v9 = vld [vmem:[%s4877_s19 + $0x4bc] ss:$24 sps:$4 sm:$0xff]  }
  0xd3   : > { %2931 = vmatpush1.bf16.msra.mxu1 %v4423_v10  ;;  %v4518_v10 = vld [vmem:[%s4877_s19 + $0x4c4] ss:$24 sps:$4 sm:$0xff]  }
  0xd4   : > { %3103 = vmatpush1.bf16.msra.mxu0 %v4426_v11  ;;  %2932 = vmatprep.subr.bf16.mxu1 %v4431_v12  ;;  %v4513_v11 = vld [vmem:[%s4877_s19 + $0x4b8] ss:$24 sps:$4 sm:$0xff]  }
  0xd5   : > { %3104 = vmatprep.subr.bf16.mxu0 %v4434_v13  ;;  %v4516_v12 = vld [vmem:[%s4877_s19 + $0x4c0] ss:$24 sps:$4 sm:$0xff]   ;;  %v4521_v13 = vld [vmem:[%s4877_s19 + $0x4ec] ss:$24 sps:$4 sm:$0xff]  }
  0xd7   : > { %2933 = vmatpush1.bf16.msra.mxu1 %v4429_v14  ;;  %v4524_v14 = vld [vmem:[%s4877_s19 + $0x4f4] ss:$24 sps:$4 sm:$0xff]  }
  0xd8   : > { %3105 = vmatpush1.bf16.msra.mxu0 %v4432_v15  ;;  %2934 = vmatprep.subr.bf16.mxu1 %v4437_v16  ;;  %v4519_v15 = vld [vmem:[%s4877_s19 + $0x4e8] ss:$24 sps:$4 sm:$0xff]  }
  0xd9   : > { %3106 = vmatprep.subr.bf16.mxu0 %v4440_v17  ;;  %v4522_v16 = vld [vmem:[%s4877_s19 + $0x4f0] ss:$24 sps:$4 sm:$0xff]   ;;  %v4527_v17 = vld [vmem:[%s4877_s19 + $0x51c] ss:$24 sps:$4 sm:$0xff]  }
  0xdb   : > { %2935 = vmatpush1.bf16.msra.mxu1 %v4435_v18  ;;  %v4530_v18 = vld [vmem:[%s4877_s19 + $0x524] ss:$24 sps:$4 sm:$0xff]  }
  0xdc   : > { %3107 = vmatpush1.bf16.msra.mxu0 %v4438_v21  ;;  %2936 = vmatprep.subr.bf16.mxu1 %v4443_v22  ;;  %v4525_v21 = vld [vmem:[%s4877_s19 + $0x518] ss:$24 sps:$4 sm:$0xff]  }
  0xdd   : > { %3108 = vmatprep.subr.bf16.mxu0 %v4446_v23  ;;  %v4528_v22 = vld [vmem:[%s4877_s19 + $0x520] ss:$24 sps:$4 sm:$0xff]   ;;  %v4533_v23 = vld [vmem:[%s4877_s19 + $0x54c] ss:$24 sps:$4 sm:$0xff]  }
  0xdf   : > { %2937 = vmatpush1.bf16.msra.mxu1 %v4441_v24  ;;  %v4536_v24 = vld [vmem:[%s4877_s19 + $0x554] ss:$24 sps:$4 sm:$0xff]  }
  0xe0   : > { %3109 = vmatpush1.bf16.msra.mxu0 %v4444_v25  ;;  %2938 = vmatprep.subr.bf16.mxu1 %v4449_v26  ;;  %v4531_v25 = vld [vmem:[%s4877_s19 + $0x548] ss:$24 sps:$4 sm:$0xff]  }
  0xe1   : > { %3110 = vmatprep.subr.bf16.mxu0 %v4452_v27  ;;  %v4534_v26 = vld [vmem:[%s4877_s19 + $0x550] ss:$24 sps:$4 sm:$0xff]   ;;  %v4539_v27 = vld [vmem:[%s4877_s19 + $0x57c] ss:$24 sps:$4 sm:$0xff]  }
  0xe3   : > { %2939 = vmatpush1.bf16.msra.mxu1 %v4447_v28  ;;  %v4542_v28 = vld [vmem:[%s4877_s19 + $0x584] ss:$24 sps:$4 sm:$0xff]  }
  0xe4   : > { %3111 = vmatpush1.bf16.msra.mxu0 %v4450_v31  ;;  %2940 = vmatprep.subr.bf16.mxu1 %v4455_v32  ;;  %v4537_v31 = vld [vmem:[%s4877_s19 + $0x578] ss:$24 sps:$4 sm:$0xff]  }
  0xe5   : > { %3112 = vmatprep.subr.bf16.mxu0 %v4458_v33  ;;  %v4540_v32 = vld [vmem:[%s4877_s19 + $0x580] ss:$24 sps:$4 sm:$0xff]   ;;  %v4545_v33 = vld [vmem:[%s4877_s19 + $0x5ac] ss:$24 sps:$4 sm:$0xff]  }
  0xe7   : > { %2941 = vmatpush1.bf16.msra.mxu1 %v4453_v34  ;;  %v4548_v34 = vld [vmem:[%s4877_s19 + $0x5b4] ss:$24 sps:$4 sm:$0xff]  }
  0xe8   : > { %3113 = vmatpush1.bf16.msra.mxu0 %v4456_v35  ;;  %2953 = vmatprep.subr.bf16.mxu1 %v4461_v36  ;;  %v4543_v35 = vld [vmem:[%s4877_s19 + $0x5a8] ss:$24 sps:$4 sm:$0xff]  }
  0xe9   : > { %3125 = vmatprep.subr.bf16.mxu0 %v4464_v37  ;;  %v4546_v36 = vld [vmem:[%s4877_s19 + $0x5b0] ss:$24 sps:$4 sm:$0xff]   ;;  %v4551_v37 = vld [vmem:[%s4877_s19 + $0x5dc] ss:$24 sps:$4 sm:$0xff]  }
  0xea   : > { %2943 = vmatmul.mubr.bf16.vlgmr.msra.gmra.mrb[4].mxu1 %v4960_v19 }
  0xeb   : > { %3115 = vmatmul.mubr.bf16.vlgmr.msra.gmra.mrb[4].mxu0 %v4960_v19  ;;  %2954 = vmatpush1.bf16.msra.mxu1 %v4459_v38  ;;  %v4474_v19 = vld [vmem:[%s4877_s19 + $0x370] ss:$24 sps:$4 sm:$0xff]   ;;  %v4554_v38 = vld [vmem:[%s4877_s19 + $0x5e4] ss:$24 sps:$4 sm:$0xff]  }
  0xec   : > { %3126 = vmatpush1.bf16.msra.mxu0 %v4462_v39  ;;  %2955 = vmatprep.subr.bf16.mxu1 %v4467_v40  ;;  %v4549_v39 = vld [vmem:[%s4877_s19 + $0x5d8] ss:$24 sps:$4 sm:$0xff]  }
  0xed   : > { %3127 = vmatprep.subr.bf16.mxu0 %v4470_v41  ;;  %2985 = vmatprep.mubr.bf16.mxu1 %v5005_v50  ;;  %v4552_v40 = vld [vmem:[%s4877_s19 + $0x5e0] ss:$24 sps:$4 sm:$0xff]   ;;  %v4557_v41 = vld [vmem:[%s4877_s19 + $0x60c] ss:$24 sps:$4 sm:$0xff]  }
  0xee   : > { %3157 = vmatprep.mubr.bf16.mxu0 %v5005_v50  ;;  %v4485_v50 = vld [vmem:[%s4877_s19 + $0x3cc] ss:$24 sps:$4 sm:$0xff]  }
  0xef   : > { %2956 = vmatpush1.bf16.msra.mxu1 %v4465_v42  ;;  %v4560_v42 = vld [vmem:[%s4877_s19 + $0x614] ss:$24 sps:$4 sm:$0xff]  }
  0xf0   : > { %3128 = vmatpush1.bf16.msra.mxu0 %v4468_v43  ;;  %2957 = vmatprep.subr.bf16.mxu1 %v4473_v44  ;;  %v4555_v43 = vld [vmem:[%s4877_s19 + $0x608] ss:$24 sps:$4 sm:$0xff]  }
  0xf1   : > { %3129 = vmatprep.subr.bf16.mxu0 %v4476_v61  ;;  %v4558_v44 = vld [vmem:[%s4877_s19 + $0x610] ss:$24 sps:$4 sm:$0xff]   ;;  %v4563_v61 = vld [vmem:[%s4877_s19 + $0x63c] ss:$24 sps:$4 sm:$0xff]  }
  0xf3   : > { %2958 = vmatpush1.bf16.msra.mxu1 %v4471_v45  ;;  %v4566_v45 = vld [vmem:[%s4877_s19 + $0x644] ss:$24 sps:$4 sm:$0xff]  }
  0xf4   : > { %3130 = vmatpush1.bf16.msra.mxu0 %v4474_v19  ;;  %2959 = vmatprep.subr.bf16.mxu1 %v4479_v46  ;;  %v4561_v19 = vld [vmem:[%s4877_s19 + $0x638] ss:$24 sps:$4 sm:$0xff]  }
  0xf5   : > { %3131 = vmatprep.subr.bf16.mxu0 %v4482_v47  ;;  %v4564_v46 = vld [vmem:[%s4877_s19 + $0x640] ss:$24 sps:$4 sm:$0xff]   ;;  %v4569_v47 = vld [vmem:[%s4877_s19 + $0x66c] ss:$24 sps:$4 sm:$0xff]  }
  0xf7   : > { %2960 = vmatpush1.bf16.msra.mxu1 %v4477_v48  ;;  %v4572_v48 = vld [vmem:[%s4877_s19 + $0x674] ss:$24 sps:$4 sm:$0xff]  }
  0xf8   : > { %3132 = vmatpush1.bf16.msra.mxu0 %v4480_v49  ;;  %2961 = vmatprep.subr.bf16.mxu1 %v4485_v50  ;;  %v4570_v49 = vld [vmem:[%s4877_s19 + $0x670] ss:$24 sps:$4 sm:$0xff]   ;;  %v4575_v50 = vld [vmem:[%s4877_s19 + $0x69c] ss:$24 sps:$4 sm:$0xff]  }
  0xf9   : > { %3133 = vmatprep.subr.bf16.mxu0 %v4488_v51  ;;  %v4578_v51 = vld [vmem:[%s4877_s19 + $0x6a4] ss:$24 sps:$4 sm:$0xff]  }
  0xfb   : > { %2962 = vmatpush1.bf16.msra.mxu1 %v4483_v53  ;;  %v4573_v53 = vld [vmem:[%s4877_s19 + $0x698] ss:$24 sps:$4 sm:$0xff]  }
  0xfc   : > { %3134 = vmatpush1.bf16.msra.mxu0 %v4486_v54  ;;  %2963 = vmatprep.subr.bf16.mxu1 %v4491_v55  ;;  %v4576_v54 = vld [vmem:[%s4877_s19 + $0x6a0] ss:$24 sps:$4 sm:$0xff]   ;;  %v4584_v55 = vld [vmem:[%s4877_s19 + $0x6d4] ss:$24 sps:$4 sm:$0xff]  }
  0xfd   : > { %3135 = vmatprep.subr.bf16.mxu0 %v4494_v56  ;;  %v4579_v56 = vld [vmem:[%s4877_s19 + $0x6c8] ss:$24 sps:$4 sm:$0xff]  }
  0xff   : > { %2964 = vmatpush1.bf16.msra.mxu1 %v4489_v57  ;;  %v4582_v57 = vld [vmem:[%s4877_s19 + $0x6d0] ss:$24 sps:$4 sm:$0xff]  }
 0x100   : > { %3136 = vmatpush1.bf16.msra.mxu0 %v4492_v58  ;;  %2965 = vmatprep.subr.bf16.mxu1 %v4497_v59  ;;  %v4587_v58 = vld [vmem:[%s4877_s19 + $0x6fc] ss:$24 sps:$4 sm:$0xff]  }
 0x101   : > { %3137 = vmatprep.subr.bf16.mxu0 %v4500_v60  ;;  %v4590_v59 = vld [vmem:[%s4877_s19 + $0x704] ss:$24 sps:$4 sm:$0xff]   ;;  %v4585_v60 = vld [vmem:[%s4877_s19 + $0x6f8] ss:$24 sps:$4 sm:$0xff]  }
 0x103   : > { %2966 = vmatpush1.bf16.msra.mxu1 %v4495_v62  ;;  %v4588_v62 = vld [vmem:[%s4877_s19 + $0x700] ss:$24 sps:$4 sm:$0xff]  }
 0x104   : > { %3138 = vmatpush1.bf16.msra.mxu0 %v4498_v63  ;;  %2967 = vmatprep.subr.bf16.mxu1 %v4503_v1  ;;  %v4593_v63 = vld [vmem:[%s4877_s19 + $0x72c] ss:$24 sps:$4 sm:$0xff]  }
 0x105   : > { %3139 = vmatprep.subr.bf16.mxu0 %v4506_v2  ;;  %v4596_v1 = vld [vmem:[%s4877_s19 + $0x734] ss:$24 sps:$4 sm:$0xff]   ;;  %v4591_v2 = vld [vmem:[%s4877_s19 + $0x728] ss:$24 sps:$4 sm:$0xff]  }
 0x107   : > { %2968 = vmatpush1.bf16.msra.mxu1 %v4501_v3  ;;  %v4594_v3 = vld [vmem:[%s4877_s19 + $0x730] ss:$24 sps:$4 sm:$0xff]  }
 0x108   : > { %3140 = vmatpush1.bf16.msra.mxu0 %v4504_v4  ;;  %2969 = vmatprep.subr.bf16.mxu1 %v4509_v5  ;;  %v4599_v4 = vld [vmem:[%s4877_s19 + $0x75c] ss:$24 sps:$4 sm:$0xff]  }
 0x109   : > { %3141 = vmatprep.subr.bf16.mxu0 %v4512_v6  ;;  %v4602_v5 = vld [vmem:[%s4877_s19 + $0x764] ss:$24 sps:$4 sm:$0xff]   ;;  %v4597_v6 = vld [vmem:[%s4877_s19 + $0x758] ss:$24 sps:$4 sm:$0xff]  }
 0x10b   : > { %2970 = vmatpush1.bf16.msra.mxu1 %v4507_v7  ;;  %v4600_v7 = vld [vmem:[%s4877_s19 + $0x760] ss:$24 sps:$4 sm:$0xff]  }
 0x10c   : > { %3142 = vmatpush1.bf16.msra.mxu0 %v4510_v8  ;;  %2971 = vmatprep.subr.bf16.mxu1 %v4515_v9  ;;  %v4605_v8 = vld [vmem:[%s4877_s19 + $0x78c] ss:$24 sps:$4 sm:$0xff]  }
 0x10d   : > { %3143 = vmatprep.subr.bf16.mxu0 %v4518_v10  ;;  %v4608_v9 = vld [vmem:[%s4877_s19 + $0x794] ss:$24 sps:$4 sm:$0xff]   ;;  %v4603_v10 = vld [vmem:[%s4877_s19 + $0x788] ss:$24 sps:$4 sm:$0xff]  }
 0x10f   : > { %2972 = vmatpush1.bf16.msra.mxu1 %v4513_v11  ;;  %v4606_v11 = vld [vmem:[%s4877_s19 + $0x790] ss:$24 sps:$4 sm:$0xff]  }
 0x110   : > { %3144 = vmatpush1.bf16.msra.mxu0 %v4516_v12  ;;  %2973 = vmatprep.subr.bf16.mxu1 %v4521_v13  ;;  %v4611_v12 = vld [vmem:[%s4877_s19 + $0x7bc] ss:$24 sps:$4 sm:$0xff]  }
 0x111   : > { %3145 = vmatprep.subr.bf16.mxu0 %v4524_v14  ;;  %v4614_v13 = vld [vmem:[%s4877_s19 + $0x7c4] ss:$24 sps:$4 sm:$0xff]   ;;  %v4609_v14 = vld [vmem:[%s4877_s19 + $0x7b8] ss:$24 sps:$4 sm:$0xff]  }
 0x113   : > { %2974 = vmatpush1.bf16.msra.mxu1 %v4519_v15  ;;  %v4612_v15 = vld [vmem:[%s4877_s19 + $0x7c0] ss:$24 sps:$4 sm:$0xff]  }
 0x114   : > { %3146 = vmatpush1.bf16.msra.mxu0 %v4522_v16  ;;  %2975 = vmatprep.subr.bf16.mxu1 %v4527_v17  ;;  %v4617_v16 = vld [vmem:[%s4877_s19 + $0x7ec] ss:$24 sps:$4 sm:$0xff]  }
 0x115   : > { %3147 = vmatprep.subr.bf16.mxu0 %v4530_v18  ;;  %v4620_v17 = vld [vmem:[%s4877_s19 + $0x7f4] ss:$24 sps:$4 sm:$0xff]   ;;  %v4615_v18 = vld [vmem:[%s4877_s19 + $0x7e8] ss:$24 sps:$4 sm:$0xff]  }
 0x117   : > { %2976 = vmatpush1.bf16.msra.mxu1 %v4525_v21  ;;  %v4618_v21 = vld [vmem:[%s4877_s19 + $0x7f0] ss:$24 sps:$4 sm:$0xff]  }
 0x118   : > { %3148 = vmatpush1.bf16.msra.mxu0 %v4528_v22  ;;  %2977 = vmatprep.subr.bf16.mxu1 %v4533_v23  ;;  %v4623_v22 = vld [vmem:[%s4877_s19 + $0x81c] ss:$24 sps:$4 sm:$0xff]  }
 0x119   : > { %3149 = vmatprep.subr.bf16.mxu0 %v4536_v24  ;;  %v4626_v23 = vld [vmem:[%s4877_s19 + $0x824] ss:$24 sps:$4 sm:$0xff]   ;;  %v4621_v24 = vld [vmem:[%s4877_s19 + $0x818] ss:$24 sps:$4 sm:$0xff]  }
 0x11b   : > { %2978 = vmatpush1.bf16.msra.mxu1 %v4531_v25  ;;  %v4624_v25 = vld [vmem:[%s4877_s19 + $0x820] ss:$24 sps:$4 sm:$0xff]  }
 0x11c   : > { %3150 = vmatpush1.bf16.msra.mxu0 %v4534_v26  ;;  %2979 = vmatprep.subr.bf16.mxu1 %v4539_v27  ;;  %v4629_v26 = vld [vmem:[%s4877_s19 + $0x84c] ss:$24 sps:$4 sm:$0xff]  }
 0x11d   : > { %3151 = vmatprep.subr.bf16.mxu0 %v4542_v28  ;;  %v4632_v27 = vld [vmem:[%s4877_s19 + $0x854] ss:$24 sps:$4 sm:$0xff]   ;;  %v4627_v28 = vld [vmem:[%s4877_s19 + $0x848] ss:$24 sps:$4 sm:$0xff]  }
 0x11f   : > { %2980 = vmatpush1.bf16.msra.mxu1 %v4537_v31  ;;  %v4630_v31 = vld [vmem:[%s4877_s19 + $0x850] ss:$24 sps:$4 sm:$0xff]  }
 0x120   : > { %3152 = vmatpush1.bf16.msra.mxu0 %v4540_v32  ;;  %2981 = vmatprep.subr.bf16.mxu1 %v4545_v33  ;;  %v4635_v32 = vld [vmem:[%s4877_s19 + $0x87c] ss:$24 sps:$4 sm:$0xff]  }
 0x121   : > { %3153 = vmatprep.subr.bf16.mxu0 %v4548_v34  ;;  %v4638_v33 = vld [vmem:[%s4877_s19 + $0x884] ss:$24 sps:$4 sm:$0xff]   ;;  %v4633_v34 = vld [vmem:[%s4877_s19 + $0x878] ss:$24 sps:$4 sm:$0xff]  }
 0x123   : > { %2982 = vmatpush1.bf16.msra.mxu1 %v4543_v35  ;;  %v4636_v35 = vld [vmem:[%s4877_s19 + $0x880] ss:$24 sps:$4 sm:$0xff]  }
 0x124   : > { %3154 = vmatpush1.bf16.msra.mxu0 %v4546_v36  ;;  %2983 = vmatprep.subr.bf16.mxu1 %v4551_v37  ;;  %v4641_v36 = vld [vmem:[%s4877_s19 + $0x8ac] ss:$24 sps:$4 sm:$0xff]  }
 0x125   : > { %3155 = vmatprep.subr.bf16.mxu0 %v4554_v38  ;;  %v4644_v37 = vld [vmem:[%s4877_s19 + $0x8b4] ss:$24 sps:$4 sm:$0xff]   ;;  %v4639_v38 = vld [vmem:[%s4877_s19 + $0x8a8] ss:$24 sps:$4 sm:$0xff]  }
 0x127   : > { %2984 = vmatpush1.bf16.msra.mxu1 %v4549_v39  ;;  %v4642_v39 = vld [vmem:[%s4877_s19 + $0x8b0] ss:$24 sps:$4 sm:$0xff]  }
 0x128   : > { %3156 = vmatpush1.bf16.msra.mxu0 %v4552_v40  ;;  %2996 = vmatprep.subr.bf16.mxu1 %v4557_v41  ;;  %v4647_v40 = vld [vmem:[%s4877_s19 + $0x8dc] ss:$24 sps:$4 sm:$0xff]  }
 0x129   : > { %3168 = vmatprep.subr.bf16.mxu0 %v4560_v42  ;;  %v4650_v41 = vld [vmem:[%s4877_s19 + $0x8e4] ss:$24 sps:$4 sm:$0xff]   ;;  %v4645_v42 = vld [vmem:[%s4877_s19 + $0x8d8] ss:$24 sps:$4 sm:$0xff]  }
 0x12a   : > { %2986 = vmatmul.mubr.bf16.vlgmr.msra.gmra.mrb[4].mxu1 %v5052_v29 }
 0x12b   : > { %3158 = vmatmul.mubr.bf16.vlgmr.msra.gmra.mrb[4].mxu0 %v5052_v29  ;;  %2997 = vmatpush1.bf16.msra.mxu1 %v4555_v43  ;;  %v4567_v29 = vld [vmem:[%s4877_s19 + $0x668] ss:$24 sps:$4 sm:$0xff]  }
 0x12c   : > { %3169 = vmatpush1.bf16.msra.mxu0 %v4558_v44  ;;  %2998 = vmatprep.subr.bf16.mxu1 %v4563_v61  ;;  %v4648_v43 = vld [vmem:[%s4877_s19 + $0x8e0] ss:$24 sps:$4 sm:$0xff]   ;;  %v4653_v44 = vld [vmem:[%s4877_s19 + $0x90c] ss:$24 sps:$4 sm:$0xff]  }
 0x12d   : > { %3170 = vmatprep.subr.bf16.mxu0 %v4566_v45  ;;  %3028 = vmatprep.mubr.bf16.mxu1 %v4939_v0  ;;  %v4656_v61 = vld [vmem:[%s4877_s19 + $0x914] ss:$24 sps:$4 sm:$0xff]   ;;  %v4651_v45 = vld [vmem:[%s4877_s19 + $0x908] ss:$24 sps:$4 sm:$0xff]  }
 0x12e   : > { %3200 = vmatprep.mubr.bf16.mxu0 %v4939_v0  ;;  %v4581_v0 = vld [vmem:[%s4877_s19 + $0x6cc] ss:$24 sps:$4 sm:$0xff]  }
 0x12f   : > { %2999 = vmatpush1.bf16.msra.mxu1 %v4561_v19  ;;  %v4654_v19 = vld [vmem:[%s4877_s19 + $0x910] ss:$24 sps:$4 sm:$0xff]  }
 0x130   : > { %3171 = vmatpush1.bf16.msra.mxu0 %v4564_v46  ;;  %3000 = vmatprep.subr.bf16.mxu1 %v4569_v47  ;;  %v4659_v46 = vld [vmem:[%s4877_s19 + $0x93c] ss:$24 sps:$4 sm:$0xff]  }
 0x131   : > { %3172 = vmatprep.subr.bf16.mxu0 %v4572_v48  ;;  %v4662_v47 = vld [vmem:[%s4877_s19 + $0x944] ss:$24 sps:$4 sm:$0xff]   ;;  %v4657_v48 = vld [vmem:[%s4877_s19 + $0x938] ss:$24 sps:$4 sm:$0xff]  }
 0x133   : > { %3001 = vmatpush1.bf16.msra.mxu1 %v4567_v29  ;;  %v4660_v29 = vld [vmem:[%s4877_s19 + $0x940] ss:$24 sps:$4 sm:$0xff]  }
 0x134   : > { %3173 = vmatpush1.bf16.msra.mxu0 %v4570_v49  ;;  %3002 = vmatprep.subr.bf16.mxu1 %v4575_v50  ;;  %v4665_v49 = vld [vmem:[%s4877_s19 + $0x96c] ss:$24 sps:$4 sm:$0xff]  }
 0x135   : > { %3174 = vmatprep.subr.bf16.mxu0 %v4578_v51  ;;  %v4668_v50 = vld [vmem:[%s4877_s19 + $0x974] ss:$24 sps:$4 sm:$0xff]   ;;  %v4666_v51 = vld [vmem:[%s4877_s19 + $0x970] ss:$24 sps:$4 sm:$0xff]  }
 0x137   : > { %3003 = vmatpush1.bf16.msra.mxu1 %v4573_v53  ;;  %v4671_v53 = vld [vmem:[%s4877_s19 + $0x99c] ss:$24 sps:$4 sm:$0xff]  }
 0x138   : > { %3175 = vmatpush1.bf16.msra.mxu0 %v4576_v54  ;;  %3004 = vmatprep.subr.bf16.mxu1 %v4581_v0  ;;  %v4674_v54 = vld [vmem:[%s4877_s19 + $0x9a4] ss:$24 sps:$4 sm:$0xff]   ;;  %v4669_v0 = vld [vmem:[%s4877_s19 + $0x998] ss:$24 sps:$4 sm:$0xff]  }
 0x139   : > { %3176 = vmatprep.subr.bf16.mxu0 %v4584_v55  ;;  %v4672_v55 = vld [vmem:[%s4877_s19 + $0x9a0] ss:$24 sps:$4 sm:$0xff]  }
 0x13b   : > { %3005 = vmatpush1.bf16.msra.mxu1 %v4579_v56  ;;  %v4680_v56 = vld [vmem:[%s4877_s19 + $0x9d4] ss:$24 sps:$4 sm:$0xff]  }
 0x13c   : > { %3177 = vmatpush1.bf16.msra.mxu0 %v4582_v57  ;;  %3006 = vmatprep.subr.bf16.mxu1 %v4587_v58  ;;  %v4675_v57 = vld [vmem:[%s4877_s19 + $0x9c8] ss:$24 sps:$4 sm:$0xff]  }
 0x13d   : > { %3178 = vmatprep.subr.bf16.mxu0 %v4590_v59  ;;  %v4678_v58 = vld [vmem:[%s4877_s19 + $0x9d0] ss:$24 sps:$4 sm:$0xff]   ;;  %v4683_v59 = vld [vmem:[%s4877_s19 + $0x9fc] ss:$24 sps:$4 sm:$0xff]  }
 0x13f   : > { %3007 = vmatpush1.bf16.msra.mxu1 %v4585_v60  ;;  %v4686_v60 = vld [vmem:[%s4877_s19 + $0xa04] ss:$24 sps:$4 sm:$0xff]  }
 0x140   : > { %3179 = vmatpush1.bf16.msra.mxu0 %v4588_v62  ;;  %3008 = vmatprep.subr.bf16.mxu1 %v4593_v63  ;;  %v4681_v62 = vld [vmem:[%s4877_s19 + $0x9f8] ss:$24 sps:$4 sm:$0xff]  }
 0x141   : > { %3180 = vmatprep.subr.bf16.mxu0 %v4596_v1  ;;  %v4684_v63 = vld [vmem:[%s4877_s19 + $0xa00] ss:$24 sps:$4 sm:$0xff]   ;;  %v4689_v1 = vld [vmem:[%s4877_s19 + $0xa2c] ss:$24 sps:$4 sm:$0xff]  }
 0x143   : > { %3009 = vmatpush1.bf16.msra.mxu1 %v4591_v2  ;;  %v4692_v2 = vld [vmem:[%s4877_s19 + $0xa34] ss:$24 sps:$4 sm:$0xff]  }
 0x144   : > { %3181 = vmatpush1.bf16.msra.mxu0 %v4594_v3  ;;  %3010 = vmatprep.subr.bf16.mxu1 %v4599_v4  ;;  %v374_v4 = vld [vmem:[#allocation2] sm:$0xff] }
 0x145   : > { %3182 = vmatprep.subr.bf16.mxu0 %v4602_v5 }
 0x147   : > { %3011 = vmatpush1.bf16.msra.mxu1 %v4597_v6 }
 0x148   : > { %3183 = vmatpush1.bf16.msra.mxu0 %v4600_v7  ;;  %3012 = vmatprep.subr.bf16.mxu1 %v4605_v8  ;;  %v375_v8 = vld [vmem:[#allocation2 + $0x8] sm:$0xff] }
 0x149   : > { %3184 = vmatprep.subr.bf16.mxu0 %v4608_v9 }
 0x14b   : > { %3013 = vmatpush1.bf16.msra.mxu1 %v4603_v10  ;;  %v380_v10 = vld [vmem:[#allocation2 + $0x30] sm:$0xff] }
 0x14c   : > { %3185 = vmatpush1.bf16.msra.mxu0 %v4606_v11  ;;  %3014 = vmatprep.subr.bf16.mxu1 %v4611_v12  ;;  %v381_v11 = vld [vmem:[#allocation2 + $0x38] sm:$0xff] }
 0x14d   : > { %3186 = vmatprep.subr.bf16.mxu0 %v4614_v13 }
 0x14f   : > { %3015 = vmatpush1.bf16.msra.mxu1 %v4609_v14 }
 0x150   : > { %3187 = vmatpush1.bf16.msra.mxu0 %v4612_v15  ;;  %3016 = vmatprep.subr.bf16.mxu1 %v4617_v16  ;;  %v4687_v15 = vld [vmem:[%s4877_s19 + $0xa28] ss:$24 sps:$4 sm:$0xff]  }
 0x151   : > { %3188 = vmatprep.subr.bf16.mxu0 %v4620_v17  ;;  %v4690_v16 = vld [vmem:[%s4877_s19 + $0xa30] ss:$24 sps:$4 sm:$0xff]  }
 0x153   : > { %3017 = vmatpush1.bf16.msra.mxu1 %v4615_v18 }
 0x154   : > { %3189 = vmatpush1.bf16.msra.mxu0 %v4618_v21  ;;  %3018 = vmatprep.subr.bf16.mxu1 %v4623_v22 }
 0x155   : > { %3190 = vmatprep.subr.bf16.mxu0 %v4626_v23  ;;  %v4695_v23 = vld [vmem:[%s4877_s19 + $0xa5c] ss:$24 sps:$4 sm:$0xff]  }
 0x157   : > { %3019 = vmatpush1.bf16.msra.mxu1 %v4621_v24  ;;  %v4698_v24 = vld [vmem:[%s4877_s19 + $0xa64] ss:$24 sps:$4 sm:$0xff]  }
 0x158   : > { %3191 = vmatpush1.bf16.msra.mxu0 %v4624_v25  ;;  %3020 = vmatprep.subr.bf16.mxu1 %v4629_v26 }
 0x159   : > { %3192 = vmatprep.subr.bf16.mxu0 %v4632_v27 }
 0x15b   : > { %3021 = vmatpush1.bf16.msra.mxu1 %v4627_v28 }
 0x15c   : > { %3193 = vmatpush1.bf16.msra.mxu0 %v4630_v31  ;;  %3022 = vmatprep.subr.bf16.mxu1 %v4635_v32  ;;  %v4693_v31 = vld [vmem:[%s4877_s19 + $0xa58] ss:$24 sps:$4 sm:$0xff]  }
 0x15d   : > { %3194 = vmatprep.subr.bf16.mxu0 %v4638_v33  ;;  %v4696_v32 = vld [vmem:[%s4877_s19 + $0xa60] ss:$24 sps:$4 sm:$0xff]   ;;  %v4701_v33 = vld [vmem:[%s4877_s19 + $0xa8c] ss:$24 sps:$4 sm:$0xff]  }
 0x15f   : > { %3023 = vmatpush1.bf16.msra.mxu1 %v4633_v34  ;;  %v4704_v34 = vld [vmem:[%s4877_s19 + $0xa94] ss:$24 sps:$4 sm:$0xff]  }
 0x160   : > { %3195 = vmatpush1.bf16.msra.mxu0 %v4636_v35  ;;  %3024 = vmatprep.subr.bf16.mxu1 %v4641_v36  ;;  %v4699_v35 = vld [vmem:[%s4877_s19 + $0xa88] ss:$24 sps:$4 sm:$0xff]  }
 0x161   : > { %3196 = vmatprep.subr.bf16.mxu0 %v4644_v37  ;;  %v4702_v36 = vld [vmem:[%s4877_s19 + $0xa90] ss:$24 sps:$4 sm:$0xff]   ;;  %v4707_v37 = vld [vmem:[%s4877_s19 + $0xabc] ss:$24 sps:$4 sm:$0xff]  }
 0x163   : > { %3025 = vmatpush1.bf16.msra.mxu1 %v4639_v38  ;;  %v4710_v38 = vld [vmem:[%s4877_s19 + $0xac4] ss:$24 sps:$4 sm:$0xff]  }
 0x164   : > { %3197 = vmatpush1.bf16.msra.mxu0 %v4642_v39  ;;  %3026 = vmatprep.subr.bf16.mxu1 %v4647_v40  ;;  %v4705_v39 = vld [vmem:[%s4877_s19 + $0xab8] ss:$24 sps:$4 sm:$0xff]  }
 0x165   : > { %3198 = vmatprep.subr.bf16.mxu0 %v4650_v41  ;;  %v4708_v40 = vld [vmem:[%s4877_s19 + $0xac0] ss:$24 sps:$4 sm:$0xff]   ;;  %v4713_v41 = vld [vmem:[%s4877_s19 + $0xaec] ss:$24 sps:$4 sm:$0xff]  }
 0x167   : > { %3027 = vmatpush1.bf16.msra.mxu1 %v4645_v42  ;;  %v4716_v42 = vld [vmem:[%s4877_s19 + $0xaf4] ss:$24 sps:$4 sm:$0xff]  }
 0x168   : > { %3199 = vmatpush1.bf16.msra.mxu0 %v4648_v43  ;;  %3039 = vmatprep.subr.bf16.mxu1 %v4653_v44  ;;  %v4711_v43 = vld [vmem:[%s4877_s19 + $0xae8] ss:$24 sps:$4 sm:$0xff]  }
 0x169   : > { %3211 = vmatprep.subr.bf16.mxu0 %v4656_v61  ;;  %v4714_v44 = vld [vmem:[%s4877_s19 + $0xaf0] ss:$24 sps:$4 sm:$0xff]   ;;  %v4719_v61 = vld [vmem:[%s4877_s19 + $0xb1c] ss:$24 sps:$4 sm:$0xff]  }
 0x16a   : > { %3029 = vmatmul.mubr.bf16.vlgmr.msra.gmra.mrb[4].mxu1 %v4962_v20 }
 0x16b   : > { %3201 = vmatmul.mubr.bf16.vlgmr.msra.gmra.mrb[4].mxu0 %v4962_v20  ;;  %3040 = vmatpush1.bf16.msra.mxu1 %v4651_v45  ;;  %v4663_v20 = vld [vmem:[%s4877_s19 + $0x968] ss:$24 sps:$4 sm:$0xff]   ;;  %v4722_v45 = vld [vmem:[%s4877_s19 + $0xb24] ss:$24 sps:$4 sm:$0xff]  }
 0x16c   : > { %3212 = vmatpush1.bf16.msra.mxu0 %v4654_v19  ;;  %3041 = vmatprep.subr.bf16.mxu1 %v4659_v46  ;;  %v4717_v19 = vld [vmem:[%s4877_s19 + $0xb18] ss:$24 sps:$4 sm:$0xff]  }
 0x16d   : > { %3213 = vmatprep.subr.bf16.mxu0 %v4662_v47  ;;  %3071 = vmatprep.mubr.bf16.mxu1 %v5010_v52  ;;  %v4720_v46 = vld [vmem:[%s4877_s19 + $0xb20] ss:$24 sps:$4 sm:$0xff]   ;;  %v4725_v47 = vld [vmem:[%s4877_s19 + $0xb4c] ss:$24 sps:$4 sm:$0xff]  }
 0x16e   : > { %3243 = vmatprep.mubr.bf16.mxu0 %v5010_v52  ;;  %v4677_v52 = vld [vmem:[%s4877_s19 + $0x9cc] ss:$24 sps:$4 sm:$0xff]  }
 0x16f   : > { %3042 = vmatpush1.bf16.msra.mxu1 %v4657_v48  ;;  %v4728_v48 = vld [vmem:[%s4877_s19 + $0xb54] ss:$24 sps:$4 sm:$0xff]  }
 0x170   : > { %3214 = vmatpush1.bf16.msra.mxu0 %v4660_v29  ;;  %3043 = vmatprep.subr.bf16.mxu1 %v4665_v49  ;;  %v4723_v29 = vld [vmem:[%s4877_s19 + $0xb48] ss:$24 sps:$4 sm:$0xff]  }
 0x171   : > { %3215 = vmatprep.subr.bf16.mxu0 %v4668_v50  ;;  %v4726_v49 = vld [vmem:[%s4877_s19 + $0xb50] ss:$24 sps:$4 sm:$0xff]   ;;  %v4731_v50 = vld [vmem:[%s4877_s19 + $0xb7c] ss:$24 sps:$4 sm:$0xff]  }
 0x173   : > { %3044 = vmatpush1.bf16.msra.mxu1 %v4663_v20  ;;  %v4734_v20 = vld [vmem:[%s4877_s19 + $0xb84] ss:$24 sps:$4 sm:$0xff]  }
 0x174   : > { %3216 = vmatpush1.bf16.msra.mxu0 %v4666_v51  ;;  %3045 = vmatprep.subr.bf16.mxu1 %v4671_v53  ;;  %v4729_v51 = vld [vmem:[%s4877_s19 + $0xb78] ss:$24 sps:$4 sm:$0xff]  }
 0x175   : > { %3217 = vmatprep.subr.bf16.mxu0 %v4674_v54  ;;  %v4732_v53 = vld [vmem:[%s4877_s19 + $0xb80] ss:$24 sps:$4 sm:$0xff]   ;;  %v4737_v54 = vld [vmem:[%s4877_s19 + $0xbac] ss:$24 sps:$4 sm:$0xff]  }
 0x177   : > { %3046 = vmatpush1.bf16.msra.mxu1 %v4669_v0  ;;  %v4740_v0 = vld [vmem:[%s4877_s19 + $0xbb4] ss:$24 sps:$4 sm:$0xff]  }
 0x178   : > { %3218 = vmatpush1.bf16.msra.mxu0 %v4672_v55  ;;  %3047 = vmatprep.subr.bf16.mxu1 %v4677_v52  ;;  %v4735_v55 = vld [vmem:[%s4877_s19 + $0xba8] ss:$24 sps:$4 sm:$0xff]  }
 0x179   : > { %3219 = vmatprep.subr.bf16.mxu0 %v4680_v56  ;;  %v4738_v52 = vld [vmem:[%s4877_s19 + $0xbb0] ss:$24 sps:$4 sm:$0xff]   ;;  %v4743_v56 = vld [vmem:[%s4877_s19 + $0xbdc] ss:$24 sps:$4 sm:$0xff]  }
 0x17b   : > { %3048 = vmatpush1.bf16.msra.mxu1 %v4675_v57  ;;  %v4746_v57 = vld [vmem:[%s4877_s19 + $0xbe4] ss:$24 sps:$4 sm:$0xff]  }
 0x17c   : > { %3220 = vmatpush1.bf16.msra.mxu0 %v4678_v58  ;;  %3049 = vmatprep.subr.bf16.mxu1 %v4683_v59  ;;  %v4741_v58 = vld [vmem:[%s4877_s19 + $0xbd8] ss:$24 sps:$4 sm:$0xff]  }
 0x17d   : > { %3221 = vmatprep.subr.bf16.mxu0 %v4686_v60  ;;  %v2815_v3 = vpop.f32.mrb[0].mxu1  ;;  %v4744_v59 = vld [vmem:[%s4877_s19 + $0xbe0] ss:$24 sps:$4 sm:$0xff]   ;;  %v376_v60 = vld [vmem:[#allocation2 + $0x10] sm:$0xff] }
 0x17e   : > { %v2901_v5 = vpop.f32.mrb[0].mxu0  ;;  %v2817_v7 = vpop.f32.mrb[1].mxu1 }
 0x17f   : > { %v4093_v6 = vadd.f32 %v2901_v5, %v2815_v3  ;;  %v2903_v9 = vpop.f32.mrb[1].mxu0  ;;  %v2819_v13 = vpop.f32.mrb[2].mxu1  ;;  %3050 = vmatpush1.bf16.msra.mxu1 %v4681_v62  ;;  %v378_v62 = vld [vmem:[#allocation2 + $0x20] sm:$0xff]  ;;  %v384_v5 = vld [vmem:[#allocation2 + $0x50] sm:$0xff] }
 0x180   : > { %v4094_v12 = vadd.f32 %v2903_v9, %v2817_v7  ;;  %v2905_v14 = vpop.f32.mrb[2].mxu0  ;;  %3222 = vmatpush1.bf16.msra.mxu0 %v4684_v63  ;;  %v2821_v21 = vpop.f32.mrb[3].mxu1  ;;  %3051 = vmatprep.subr.bf16.mxu1 %v4689_v1  ;;  %v377_v63 = vld [vmem:[#allocation2 + $0x18] sm:$0xff]  ;;  %v379_v1 = vld [vmem:[#allocation2 + $0x28] sm:$0xff] }
 0x181   : > { %v3254_v17 = vadd.f32 %v4093_v6, %v374_v4  ;;  %v4095_v18 = vadd.f32 %v2905_v14, %v2819_v13  ;;  %v2907_v22 = vpop.f32.mrb[3].mxu0  ;;  %3223 = vmatprep.subr.bf16.mxu0 %v4692_v2  ;;  %v382_v4 = vld [vmem:[#allocation2 + $0x40] sm:$0xff] }
 0x182   : > { %v3255_v25 = vadd.f32 %v4094_v12, %v375_v8  ;;  %v4096_v26 = vadd.f32 %v2907_v22, %v2821_v21 }
 0x183   : > { %3266 = vst [vmem:[#allocation2] sm:$0xff] %v3254_v17  ;;  %v3260_v27 = vadd.f32 %v4095_v18, %v380_v10  ;;  %3052 = vmatpush1.bf16.msra.mxu1 %v4687_v15  ;;  %v383_v10 = vld [vmem:[#allocation2 + $0x48] sm:$0xff] }
 0x184   : > { %3267 = vst [vmem:[#allocation2 + $0x8] sm:$0xff] %v3255_v25  ;;  %v3261_v28 = vadd.f32 %v4096_v26, %v381_v11  ;;  %3224 = vmatpush1.bf16.msra.mxu0 %v4690_v16  ;;  %3053 = vmatprep.subr.bf16.mxu1 %v4695_v23  ;;  %v385_v11 = vld [vmem:[#allocation2 + $0x58] sm:$0xff]  ;;  %v3296_v23 = vlaneseq (!%p4075_p11)  ;;  %v3338_v25 = vld [vmem:[%s5449_s3] sm:$0xff] (!%p4075_p11)  ;;  %v3339_v26 = vld [vmem:[%s5449_s3 + $0x8] sm:$0xff] (!%p4075_p11) }
 0x185   : > { %3272 = vst [vmem:[#allocation2 + $0x30] sm:$0xff] %v3260_v27  ;;  %3225 = vmatprep.subr.bf16.mxu0 %v4698_v24  ;;  %v3294_v27 = vld [vmem:[%s5448_s2] sm:$0x3f] (!%p4075_p11) }
 0x186   : > { %3273 = vst [vmem:[#allocation2 + $0x38] sm:$0xff] %v3261_v28  ;;  %v3297_v24 = vshrl.u32 (!%p4075_p11), %v3296_v23, 7  ;;  %v3344_v28 = vunpack.c.l.bf16 (!%p4075_p11), %v3338_v25 }
 0x187   : > { %3054 = vmatpush1.bf16.msra.mxu1 %v4693_v31 }
 0x188   : > { %3226 = vmatpush1.bf16.msra.mxu0 %v4696_v32  ;;  %3055 = vmatprep.subr.bf16.mxu1 %v4701_v33  ;;  %v5340_v32 = vsub.s32 (!%p4075_p11), 0, %v3297_v24  ;;  %v5342_v33 = vsub.s32 (!%p4075_p11), 1, %v3297_v24 }
 0x189   : > { %3227 = vmatprep.subr.bf16.mxu0 %v4704_v34  ;;  %v5344_v34 = vsub.s32 (!%p4075_p11), 2, %v3297_v24 }
 0x18a   : > { %v3282_v31 = vld [vmem:[#allocation2] sm:$0xff] (!%p4075_p11) }
 0x18b   : > { %3056 = vmatpush1.bf16.msra.mxu1 %v4699_v35  ;;  %v5346_v35 = vsub.s32 (!%p4075_p11), 3, %v3297_v24 }
 0x18c   : > { %3228 = vmatpush1.bf16.msra.mxu0 %v4702_v36  ;;  %3057 = vmatprep.subr.bf16.mxu1 %v4707_v37  ;;  %v3283_v36 = vld [vmem:[#allocation2 + $0x8] sm:$0xff] (!%p4075_p11) }
 0x18d   : > { %3229 = vmatprep.subr.bf16.mxu0 %v4710_v38 }
 0x18f   : > { %3058 = vmatpush1.bf16.msra.mxu1 %v4705_v39  ;;  %v5348_v39 = vsub.s32 (!%p4075_p11), 4, %v3297_v24 }
 0x190   : > { %3230 = vmatpush1.bf16.msra.mxu0 %v4708_v40  ;;  %3059 = vmatprep.subr.bf16.mxu1 %v4713_v41  ;;  %v5350_v40 = vsub.s32 (!%p4075_p11), 5, %v3297_v24  ;;  %v3345_v41 = vunpack.c.h.bf16 (!%p4075_p11), %v3338_v25 }
 0x191   : > { %3231 = vmatprep.subr.bf16.mxu0 %v4716_v42  ;;  %v3346_v42 = vunpack.c.l.bf16 (!%p4075_p11), %v3339_v26 }
 0x193   : > { %3060 = vmatpush1.bf16.msra.mxu1 %v4711_v43  ;;  %v3299_v43 = vrot.slane (!%p4075_p11), %v3294_v27, %v5340_v32 }
 0x194   : > { %3232 = vmatpush1.bf16.msra.mxu0 %v4714_v44  ;;  %3061 = vmatprep.subr.bf16.mxu1 %v4719_v61  ;;  %v3303_v44 = vrot.slane (!%p4075_p11), %v3294_v27, %v5342_v33  ;;  %v3307_v61 = vrot.slane (!%p4075_p11), %v3294_v27, %v5344_v34 }
 0x195   : > { %3233 = vmatprep.subr.bf16.mxu0 %v4722_v45  ;;  %v3311_v45 = vrot.slane (!%p4075_p11), %v3294_v27, %v5346_v35 }
 0x197   : > { %3062 = vmatpush1.bf16.msra.mxu1 %v4717_v19  ;;  %v3340_v19 = vld [vmem:[%s5449_s3 + $0x10] sm:$0xff] (!%p4075_p11) }
 0x198   : > { %3234 = vmatpush1.bf16.msra.mxu0 %v4720_v46  ;;  %3063 = vmatprep.subr.bf16.mxu1 %v4725_v47  ;;  %v3315_v47 = vrot.slane (!%p4075_p11), %v3294_v27, %v5348_v39 }
 0x199   : > { %3235 = vmatprep.subr.bf16.mxu0 %v4728_v48  ;;  %v3319_v48 = vrot.slane (!%p4075_p11), %v3294_v27, %v5350_v40 }
 0x19b   : > { %3064 = vmatpush1.bf16.msra.mxu1 %v4723_v29  ;;  %v3347_v29 = vunpack.c.h.bf16 (!%p4075_p11), %v3339_v26 }
 0x19c   : > { %3236 = vmatpush1.bf16.msra.mxu0 %v4726_v49  ;;  %3065 = vmatprep.subr.bf16.mxu1 %v4731_v50  ;;  %v3326_v49 = vadd.f32 (!%p4075_p11), %v3299_v43, %v3282_v31  ;;  %v3327_v50 = vadd.f32 (!%p4075_p11), %v3303_v44, %v3283_v36 }
 0x19d   : > { %3237 = vmatprep.subr.bf16.mxu0 %v4734_v20 }
 0x19f   : > { %3066 = vmatpush1.bf16.msra.mxu1 %v4729_v51 }
 0x1a0   : > { %3238 = vmatpush1.bf16.msra.mxu0 %v4732_v53  ;;  %3067 = vmatprep.subr.bf16.mxu1 %v4737_v54  ;;  %v3348_v54 = vunpack.c.l.bf16 (!%p4075_p11), %v3340_v19 }
 0x1a1   : > { %3239 = vmatprep.subr.bf16.mxu0 %v4740_v0 }
 0x1a3   : > { %3068 = vmatpush1.bf16.msra.mxu1 %v4735_v55  ;;  %v3356_v55 = vadd.f32 (!%p4075_p11), %v3344_v28, %v3326_v49 }
 0x1a4   : > { %3240 = vmatpush1.bf16.msra.mxu0 %v4738_v52  ;;  %3069 = vmatprep.subr.bf16.mxu1 %v4743_v56  ;;  %v3357_v52 = vadd.f32 (!%p4075_p11), %v3345_v41, %v3327_v50 }
 0x1a5   : > { %3241 = vmatprep.subr.bf16.mxu0 %v4746_v57  ;;  %v3288_v57 = vld [vmem:[#allocation2 + $0x30] sm:$0xff] (!%p4075_p11) }
 0x1a7   : > { %3070 = vmatpush1.bf16.msra.mxu1 %v4741_v58  ;;  %v3289_v58 = vld [vmem:[#allocation2 + $0x38] sm:$0xff] (!%p4075_p11) }
 0x1a8   : > { %3242 = vmatpush1.bf16.msra.mxu0 %v4744_v59 }
 0x1aa   : > { %3072 = vmatmul.mubr.bf16.vlgmr.msra.gmra.mrb[4].mxu1 %v5056_v30 }
 0x1ab   : > { %3244 = vmatmul.mubr.bf16.vlgmr.msra.gmra.mrb[4].mxu0 %v5056_v30 }
 0x27d   : > { %v3073_v2 = vpop.f32.mrb[4].mxu1 }
 0x27e   : > { %v3245_v3 = vpop.f32.mrb[4].mxu0  ;;  %v3256_v6 = vadd.f32 %v3073_v2, %v376_v60  ;;  %v3075_v8 = vpop.f32.mrb[5].mxu1  ;;  %3281 = sbr.rel (%p4075_p11) target bundleno = 991 (0x3df), region = 75 }
 0x27f   : > { %v3258_v7 = vadd.f32 %v3245_v3, %v378_v62  ;;  %v3247_v9 = vpop.f32.mrb[5].mxu0  ;;  %v3257_v12 = vadd.f32 %v3075_v8, %v377_v63  ;;  %v3077_v14 = vpop.f32.mrb[6].mxu1  ;;  %v3349_v62 = vunpack.c.h.bf16 (!%p4075_p11), %v3340_v19  ;;  %v3341_v3 = vld [vmem:[%s5449_s3 + $0x18] sm:$0xff] (!%p4075_p11) }
 0x280   : > { %v3259_v13 = vadd.f32 %v3247_v9, %v379_v1  ;;  %v3249_v15 = vpop.f32.mrb[6].mxu0  ;;  %3268 = vst [vmem:[#allocation2 + $0x10] sm:$0xff] %v3256_v6  ;;  %v3262_v30 = vadd.f32 %v3077_v14, %v382_v4  ;;  %v3079_v17 = vpop.f32.mrb[7].mxu1  ;;  %v3368_v1 = vadd.f32 (!%p4075_p11), %v3357_v52, %v3356_v55  ;;  %v3332_v4 = vadd.f32 (!%p4075_p11), %v3299_v43, %v3288_v57 }
 0x281   : > { %3270 = vst [vmem:[#allocation2 + $0x20] sm:$0xff] %v3258_v7  ;;  %v3264_v16 = vadd.f32 %v3249_v15, %v384_v5  ;;  %v3251_v18 = vpop.f32.mrb[7].mxu0  ;;  %3269 = vst [vmem:[#allocation2 + $0x18] sm:$0xff] %v3257_v12  ;;  %v3263_v21 = vadd.f32 %v3079_v17, %v383_v10  ;;  %v3342_v5 = vld [vmem:[%s5449_s3 + $0x20] sm:$0xff] (!%p4075_p11)  ;;  %v3333_v9 = vadd.f32 (!%p4075_p11), %v3303_v44, %v3289_v58  ;;  %v3351_v14 = vunpack.c.h.bf16 (!%p4075_p11), %v3341_v3 }
 0x282   : > { %3271 = vst [vmem:[#allocation2 + $0x28] sm:$0xff] %v3259_v13  ;;  %v3265_v22 = vadd.f32 %v3251_v18, %v385_v11  ;;  %3274 = vst [vmem:[#allocation2 + $0x40] sm:$0xff] %v3262_v30  ;;  %v3343_v11 = vld [vmem:[%s5449_s3 + $0x28] sm:$0xff] (!%p4075_p11)  ;;  %v3350_v13 = vunpack.c.l.bf16 (!%p4075_p11), %v3341_v3  ;;  %v3352_v17 = vunpack.c.l.bf16 (!%p4075_p11), %v3342_v5  ;;  %v3353_v18 = vunpack.c.h.bf16 (!%p4075_p11), %v3342_v5 }
 0x283   : > { %3276 = vst [vmem:[#allocation2 + $0x50] sm:$0xff] %v3264_v16  ;;  %3275 = vst [vmem:[#allocation2 + $0x48] sm:$0xff] %v3263_v21  ;;  %v3363_v24 = vadd.f32 (!%p4075_p11), %v3351_v14, %v3333_v9  ;;  %v3355_v28 = vunpack.c.h.bf16 (!%p4075_p11), %v3343_v11 }
 0x284   : > { %3277 = vst [vmem:[#allocation2 + $0x58] sm:$0xff] %v3265_v22  ;;  %v3354_v22 = vunpack.c.l.bf16 (!%p4075_p11), %v3343_v11  ;;  %v3362_v23 = vadd.f32 (!%p4075_p11), %v3350_v13, %v3332_v4 }
 0x286   : > { %v3375_v36 = vadd.f32 %v3363_v24, %v3362_v23 }
 0x287   : > { %v3284_v37 = vld [vmem:[#allocation2 + $0x10] sm:$0xff] }
 0x288   : > { %v3285_v38 = vld [vmem:[#allocation2 + $0x18] sm:$0xff]  ;;  %v3286_v46 = vld [vmem:[#allocation2 + $0x20] sm:$0xff]  ;;  %v3328_v20 = vadd.f32 %v3307_v61, %v3284_v37 }
 0x289   : > { %v3329_v51 = vadd.f32 %v3311_v45, %v3285_v38  ;;  %v3287_v53 = vld [vmem:[#allocation2 + $0x28] sm:$0xff]  ;;  %v3330_v0 = vadd.f32 %v3315_v47, %v3286_v46  ;;  %v3290_v59 = vld [vmem:[#allocation2 + $0x40] sm:$0xff] }
 0x28a   : > { %v3358_v56 = vadd.f32 %v3346_v42, %v3328_v20  ;;  %v3331_v60 = vadd.f32 %v3319_v48, %v3287_v53  ;;  %v3291_v2 = vld [vmem:[#allocation2 + $0x48] sm:$0xff]  ;;  %v3292_v8 = vld [vmem:[#allocation2 + $0x50] sm:$0xff]  ;;  %v3334_v10 = vadd.f32 %v3307_v61, %v3290_v59 }
 0x28b   : > { %v3359_v63 = vadd.f32 %v3347_v29, %v3329_v51  ;;  %v3360_v6 = vadd.f32 %v3348_v54, %v3330_v0  ;;  %v3335_v12 = vadd.f32 %v3311_v45, %v3291_v2  ;;  %v3293_v16 = vld [vmem:[#allocation2 + $0x58] sm:$0xff]  ;;  %v3336_v21 = vadd.f32 %v3315_v47, %v3292_v8 }
 0x28c   : > { %v3369_v7 = vadd.f32 %v3368_v1, %v3358_v56  ;;  %v3361_v15 = vadd.f32 %v3349_v62, %v3331_v60  ;;  %v3364_v26 = vadd.f32 %v3352_v17, %v3334_v10  ;;  %v3337_v27 = vadd.f32 %v3319_v48, %v3293_v16 }
 0x28d   : > { %v3365_v31 = vadd.f32 %v3353_v18, %v3335_v12  ;;  %v3366_v38 = vadd.f32 %v3354_v22, %v3336_v21 }
 0x28e   : > { %v3370_v30 = vadd.f32 %v3369_v7, %v3359_v63  ;;  %v3376_v41 = vadd.f32 %v3375_v36, %v3364_v26  ;;  %v3367_v42 = vadd.f32 %v3355_v28, %v3337_v27 }
 0x290   : > { %v3371_v25 = vadd.f32 %v3370_v30, %v3360_v6  ;;  %v3377_v43 = vadd.f32 %v3376_v41, %v3365_v31 }
 0x292   : > { %v3372_v37 = vadd.f32 %v3371_v25, %v3361_v15  ;;  %v3378_v44 = vadd.f32 %v3377_v43, %v3366_v38  ;;  %v3485_v25 = vld [vmem:[%s5451_s5] sm:$0x3f] }
 0x293   : > { %v3490_v41 = vrot.slane %v3485_v25, %v5340_v32  ;;  %v3498_v43 = vrot.slane %v3485_v25, %v5344_v34 }
 0x294   : > { %3373 = vadd.xlane.f32.xlu0 %v3372_v37  ;;  %v3379_v61 = vadd.f32 %v3378_v44, %v3367_v42  ;;  %v3502_v44 = vrot.slane %v3485_v25, %v5346_v35 }
 0x298   : > { %3380 = vadd.xlane.f32.xlu0 %v3379_v61 }
 0x321   : > { %v3374_v45 = vpop.xlane.xlu0 %3373 }
 0x322   : > { %v3383_v19 = vmul.f32 0.0013020834, %v3374_v45 }
 0x324   : > { %v3385_v46 = vsub.f32 %v3356_v55, %v3383_v19  ;;  %v3386_v47 = vsub.f32 %v3357_v52, %v3383_v19  ;;  %v3387_v29 = vsub.f32 %v3358_v56, %v3383_v19  ;;  %v3388_v49 = vsub.f32 %v3359_v63, %v3383_v19 }
 0x325   : > { %v3381_v20 = vpop.xlane.xlu0 %3380  ;;  %v3389_v51 = vsub.f32 %v3360_v6, %v3383_v19  ;;  %v3390_v57 = vsub.f32 %v3361_v15, %v3383_v19 }
 0x326   : > { %v3397_v50 = vmul.f32 %v3385_v46, %v3385_v46  ;;  %v3398_v48 = vmul.f32 %v3386_v47, %v3386_v47  ;;  %v3399_v53 = vmul.f32 %v3387_v29, %v3387_v29  ;;  %v3384_v0 = vmul.f32 0.0013020834, %v3381_v20 }
 0x327   : > { %v3400_v58 = vmul.f32 %v3388_v49, %v3388_v49  ;;  %v3401_v55 = vmul.f32 %v3389_v51, %v3389_v51  ;;  %v3402_v3 = vmul.f32 %v3390_v57, %v3390_v57  ;;  %v3510_v20 = vrot.slane %v3485_v25, %v5350_v40 }
 0x328   : > { %v3409_v54 = vadd.f32 %v3398_v48, %v3397_v50  ;;  %v5370_v60 = vsub.f32 %v3362_v23, %v3384_v0  ;;  %v5372_v62 = vsub.f32 %v3363_v24, %v3384_v0  ;;  %v5374_v1 = vsub.f32 %v3364_v26, %v3384_v0  ;;  %v3441_v23 = vld [vmem:[%s5450_s4] sm:$0x3f] }
 0x329   : > { %v5376_v56 = vsub.f32 %v3365_v31, %v3384_v0  ;;  %v5382_v5 = vsub.f32 %v3366_v38, %v3384_v0  ;;  %v3396_v9 = vsub.f32 %v3367_v42, %v3384_v0  ;;  %v3446_v26 = vrot.slane %v3441_v23, %v5340_v32 }
 0x32a   : > { %v3410_v59 = vadd.f32 %v3409_v54, %v3399_v53  ;;  %v3403_v63 = vmul.f32 %v5370_v60, %v5370_v60  ;;  %v3404_v2 = vmul.f32 %v5372_v62, %v5372_v62  ;;  %v3405_v6 = vmul.f32 %v5374_v1, %v5374_v1 }
 0x32b   : > { %v3406_v10 = vmul.f32 %v5376_v56, %v5376_v56  ;;  %v3407_v12 = vmul.f32 %v5382_v5, %v5382_v5  ;;  %v3408_v14 = vmul.f32 %v3396_v9, %v3396_v9  ;;  %v3450_v27 = vrot.slane %v3441_v23, %v5342_v33 }
 0x32c   : > { %v3411_v52 = vadd.f32 %v3410_v59, %v3400_v58  ;;  %v3416_v7 = vadd.f32 %v3404_v2, %v3403_v63  ;;  %v3454_v28 = vrot.slane %v3441_v23, %v5344_v34  ;;  %v3458_v31 = vrot.slane %v3441_v23, %v5346_v35 }
 0x32d   : > { %v3462_v36 = vrot.slane %v3441_v23, %v5348_v39  ;;  %v3466_v37 = vrot.slane %v3441_v23, %v5350_v40  ;;  %v3494_v42 = vrot.slane %v3485_v25, %v5342_v33  ;;  %v3506_v48 = vrot.slane %v3485_v25, %v5348_v39 }
 0x32e   : > { %v3412_v4 = vadd.f32 %v3411_v52, %v3401_v55  ;;  %v3417_v11 = vadd.f32 %v3416_v7, %v3405_v6 }
 0x330   : > { %v3413_v8 = vadd.f32 %v3412_v4, %v3402_v3  ;;  %v3418_v13 = vadd.f32 %v3417_v11, %v3406_v10 }
 0x332   : > { %3414 = vadd.xlane.f32.xlu1 %v3413_v8  ;;  %v3419_v15 = vadd.f32 %v3418_v13, %v3407_v12 }
 0x334   : > { %v3420_v30 = vadd.f32 %v3419_v15, %v3408_v14 }
 0x336   : > { %3421 = vadd.xlane.f32.xlu1 %v3420_v30 }
 0x3bf   : > { %v3415_v16 = vpop.xlane.xlu1 %3414 }
 0x3c0   : > { %v3423_v17 = vmul.f32 0.0013020834, %v3415_v16 }
 0x3c2   : > { %v3425_v18 = vadd.f32 1e-05, %v3423_v17 }
 0x3c3   : > { %v3422_v21 = vpop.xlane.xlu1 %3421 }
 0x3c4   : > { %4747 = vrsqrt.f32 %v3425_v18  ;;  %v3424_v22 = vmul.f32 0.0013020834, %v3422_v21 }
 0x3c6   : > { %v3426_v24 = vadd.f32 1e-05, %v3424_v22 }
 0x3c8   : > { %4749 = vrsqrt.f32 %v3426_v24 }
 0x3ce   : > { %v4748_v38 = vpop.eup %4747 }
 0x3cf   : > { %v3429_v61 = vmul.f32 %v4748_v38, %v3385_v46  ;;  %v3430_v45 = vmul.f32 %v4748_v38, %v3386_v47  ;;  %v3431_v19 = vmul.f32 %v4748_v38, %v3387_v29  ;;  %v3432_v50 = vmul.f32 %v4748_v38, %v3388_v49 }
 0x3d0   : > { %v3433_v53 = vmul.f32 %v4748_v38, %v3389_v51  ;;  %v3434_v54 = vmul.f32 %v4748_v38, %v3390_v57 }
 0x3d1   : > { %v3473_v0 = vmul.f32 %v3446_v26, %v3429_v61  ;;  %v3474_v58 = vmul.f32 %v3450_v27, %v3430_v45  ;;  %v3475_v59 = vmul.f32 %v3454_v28, %v3431_v19  ;;  %v3476_v32 = vmul.f32 %v3458_v31, %v3432_v50 }
 0x3d2   : > { %v3477_v55 = vmul.f32 %v3462_v36, %v3433_v53  ;;  %v3478_v33 = vmul.f32 %v3466_v37, %v3434_v54  ;;  %v4750_v29 = vpop.eup %4749 }
 0x3d3   : > { %v3517_v52 = vadd.f32 %v3490_v41, %v3473_v0  ;;  %v3518_v34 = vadd.f32 %v3494_v42, %v3474_v58  ;;  %v3519_v63 = vadd.f32 %v3498_v43, %v3475_v59  ;;  %v3520_v35 = vadd.f32 %v3502_v44, %v3476_v32 }
 0x3d4   : > { %v3521_v46 = vadd.f32 %v3506_v48, %v3477_v55  ;;  %v3522_v47 = vadd.f32 %v3510_v20, %v3478_v33  ;;  %v3435_v40 = vmul.f32 %v4750_v29, %v5370_v60  ;;  %v3436_v51 = vmul.f32 %v4750_v29, %v5372_v62 }
 0x3d5   : > { %v4087_v49 = vpack.c.bf16 %v3518_v34, %v3517_v52  ;;  %v4088_v2 = vpack.c.bf16 %v3520_v35, %v3519_v63  ;;  %v3437_v57 = vmul.f32 %v4750_v29, %v5374_v1  ;;  %v3438_v3 = vmul.f32 %v4750_v29, %v5376_v56 }
 0x3d6   : > { %v4089_v39 = vpack.c.bf16 %v3522_v47, %v3521_v46  ;;  %v3439_v4 = vmul.f32 %v4750_v29, %v5382_v5  ;;  %v3440_v6 = vmul.f32 %v4750_v29, %v3396_v9  ;;  %v3479_v60 = vmul.f32 %v3446_v26, %v3435_v40 }
 0x3d7   : > { %3565 = vst [vmem:[%s5452_s6] sm:$0xff] %v4087_v49  ;;  %3566 = vst [vmem:[%s5452_s6 + $0x8] sm:$0xff] %v4088_v2  ;;  %v3480_v62 = vmul.f32 %v3450_v27, %v3436_v51  ;;  %v3481_v1 = vmul.f32 %v3454_v28, %v3437_v57  ;;  %v3482_v7 = vmul.f32 %v3458_v31, %v3438_v3 }
 0x3d8   : > { %3567 = vst [vmem:[%s5452_s6 + $0x10] sm:$0xff] %v4089_v39  ;;  %v3483_v8 = vmul.f32 %v3462_v36, %v3439_v4  ;;  %v3484_v10 = vmul.f32 %v3466_v37, %v3440_v6  ;;  %v3523_v11 = vadd.f32 %v3490_v41, %v3479_v60 }
 0x3d9   : > { %v3524_v12 = vadd.f32 %v3494_v42, %v3480_v62  ;;  %v3525_v13 = vadd.f32 %v3498_v43, %v3481_v1  ;;  %v3526_v14 = vadd.f32 %v3502_v44, %v3482_v7 }
 0x3da   : > { %v3527_v15 = vadd.f32 %v3506_v48, %v3483_v8  ;;  %v3528_v30 = vadd.f32 %v3510_v20, %v3484_v10 }
 0x3db   : > { %v4090_v56 = vpack.c.bf16 %v3524_v12, %v3523_v11  ;;  %v4091_v16 = vpack.c.bf16 %v3526_v14, %v3525_v13 }
 0x3dc   : > { %v4092_v5 = vpack.c.bf16 %v3528_v30, %v3527_v15 }
 0x3dd   : > { %3568 = vst [vmem:[%s5452_s6 + $0x18] sm:$0xff] %v4090_v56  ;;  %3569 = vst [vmem:[%s5452_s6 + $0x20] sm:$0xff] %v4091_v16 }
 0x3de   : > { %3570 = vst [vmem:[%s5452_s6 + $0x28] sm:$0xff] %v4092_v5 }
 0x3df PF: > { %s16_s25 = sadd.s32 1, %s4789_s25   ;;  %s5453_s21 = smov %s4777_s22 }
 0x3e0   : > { %p13_p12 = scmp.ge.s32.totalorder %s16_s25, 5   ;;  %s5454_s22 = smov %s4862_s29 }
 0x3e1   : > { %s5455_s23 = smov %s4785_s24  ;;  %s5456_s24 = smov %s5458_s26 }
 0x3e2   :  { %15 = sbr.rel (!%p13_p12) target bundleno = 3 (0x3), region = 116 }

// kernel: bert_classifier_forward.15
= control target key start
LH: loop header
LB: loop body
LE: loop exit
PB: predicated region body
PF: predicated region fallthrough
CT: control target
= control target key end

     0   :  { %s4994_s12 = smov 0   ;;  %s4996_s13 = smov 0   ;;  %s6418_s0 = inlined_call_operand.vmem [shape: bf16[16,768], index: 0, kind: input, shape index: {}]   ;;  %s6419_s1 = inlined_call_operand.vmem [shape: bf16[768,3072], index: 1, kind: input, shape index: {}]   ;;  %s6420_s2 = inlined_call_operand.vmem [shape: f32[1,3072], index: 2, kind: input, shape index: {}]   ;;  %s6421_s3 = inlined_call_operand.vmem [shape: bf16[16,3072], index: 3, kind: output, shape index: {}]  }
   0x1   :  { %s4998_s14 = smov 0   ;;  %s5000_s15 = smov 0  }
   0x2   :  { %s5002_s16 = smov 0  }
   0x3 LB: > { %s28_s17 = sadd.s32 1, %s4968_s15  ;;  %s4390_s18 = sadd.s32 4294967295, %s4972_s16   ;;  %s4972_s16 = sphi %s5002_s16, %s13_s16   ;;  %s4968_s15 = sphi %s5000_s15, %s6426_s15   ;;  %s4964_s14 = sphi %s4998_s14, %s6425_s14   ;;  %s4960_s13 = sphi %s4996_s13, %s6424_s13   ;;  %s4956_s12 = sphi %s4994_s12, %s6423_s12  }
   0x4   : > { %p30_p0 = scmp.ge.s32.totalorder %s28_s17, 3  ;;  %p76_p1 = scmp.ne.s32.totalorder %s4960_s13, %s4956_s12 }
   0x5   : > { %p77_p2 = scmp.eq.s32.totalorder %s4972_s16, 0  ;;  %p134_p4 = scmp.eq.s32.totalorder %s4390_s18, 2 }
   0x6   : > { %s6428_s17 = smov (%p30_p0, %s28_s17), 0  ;;  %s69_s20 = sadd.s32 1, %s4960_s13 }
   0x7   : > { %p78_p3 = por %p77_p2, %p76_p1  ;;  %s65_s19 = ssub.s32 %s4968_s15, %s6428_s17 }
   0x8   : > { %p67_p5 = scmp.eq.s32.totalorder %s65_s19, 0  ;;  %p5029_p6 = por %p134_p4, %p76_p1 }
   0x9   : > { %p4394_p7 = scmp.ge.s32.totalorder %s4972_s16, 3 }
   0xa   : > { %s5034_s22 = scalar_select %p67_p5, %s4960_s13, %s69_s20  }
   0xb   : > { %171 = sbr.rel (%p4394_p7) target bundleno = 215 (0xd7), region = 20 }
  0x12   : > { %174 = sbr.rel (!%p78_p3) target bundleno = 215 (0xd7), region = 24  ;;  %s176_s23 = sand.u32 (%p78_p3), 1, %s4960_s13  }
  0x13   : > { %s4803_s24 = sshll.u32 (%p78_p3), %s4968_s15, 5  ;;  %s4845_s25 = smul.u32 (%p78_p3), 3072, %s176_s23 }
  0x14   : > { %s5042_s28 = scalar_lea.vmem (%p78_p3), %s6419_s1, %s4803_s24 }
  0x15   : > { %v197_v0 = vld [vmem:[%s5042_s28] sm:$0xff] (%p78_p3)  ;;  %v199_v1 = vld [vmem:[%s5042_s28 + $0x8] sm:$0xff] (%p78_p3)  ;;  %v201_v2 = vld [vmem:[%s5042_s28 + $0x10] sm:$0xff] (%p78_p3)  ;;  %s5050_s29 = scalar_lea.vmem (%p78_p3), [#allocation3], %s4845_s25 }
  0x16   : > { %v203_v3 = vld [vmem:[%s5042_s28 + $0x18] sm:$0xff] (%p78_p3)  ;;  %v205_v4 = vld [vmem:[%s5042_s28 + $0x60] sm:$0xff] (%p78_p3)  ;;  %v207_v5 = vld [vmem:[%s5042_s28 + $0x68] sm:$0xff] (%p78_p3)  ;;  %198 = vst [vmem:[%s5050_s29] sm:$0xff] (%p78_p3), %v197_v0 }
  0x17   : > { %200 = vst [vmem:[%s5050_s29 + $0x8] sm:$0xff] (%p78_p3), %v199_v1  ;;  %202 = vst [vmem:[%s5050_s29 + $0x10] sm:$0xff] (%p78_p3), %v201_v2  ;;  %v209_v6 = vld [vmem:[%s5042_s28 + $0x70] sm:$0xff] (%p78_p3)  ;;  %v211_v7 = vld [vmem:[%s5042_s28 + $0x78] sm:$0xff] (%p78_p3) }
  0x18   : > { %204 = vst [vmem:[%s5050_s29 + $0x18] sm:$0xff] (%p78_p3), %v203_v3  ;;  %206 = vst [vmem:[%s5050_s29 + $0x20] sm:$0xff] (%p78_p3), %v205_v4  ;;  %v213_v8 = vld [vmem:[%s5042_s28 + $0xc0] sm:$0xff] (%p78_p3)  ;;  %v215_v9 = vld [vmem:[%s5042_s28 + $0xc8] sm:$0xff] (%p78_p3) }
  0x19   : > { %208 = vst [vmem:[%s5050_s29 + $0x28] sm:$0xff] %v207_v5  ;;  %210 = vst [vmem:[%s5050_s29 + $0x30] sm:$0xff] %v209_v6  ;;  %v217_v10 = vld [vmem:[%s5042_s28 + $0xd0] sm:$0xff]  ;;  %v219_v11 = vld [vmem:[%s5042_s28 + $0xd8] sm:$0xff] }
  0x1a   : > { %212 = vst [vmem:[%s5050_s29 + $0x38] sm:$0xff] %v211_v7  ;;  %214 = vst [vmem:[%s5050_s29 + $0x40] sm:$0xff] %v213_v8  ;;  %v221_v12 = vld [vmem:[%s5042_s28 + $0x120] sm:$0xff]  ;;  %v223_v13 = vld [vmem:[%s5042_s28 + $0x128] sm:$0xff] }
  0x1b   : > { %216 = vst [vmem:[%s5050_s29 + $0x48] sm:$0xff] %v215_v9  ;;  %218 = vst [vmem:[%s5050_s29 + $0x50] sm:$0xff] %v217_v10  ;;  %v225_v14 = vld [vmem:[%s5042_s28 + $0x130] sm:$0xff]  ;;  %v227_v15 = vld [vmem:[%s5042_s28 + $0x138] sm:$0xff] }
  0x1c   : > { %220 = vst [vmem:[%s5050_s29 + $0x58] sm:$0xff] %v219_v11  ;;  %222 = vst [vmem:[%s5050_s29 + $0x60] sm:$0xff] %v221_v12  ;;  %v229_v16 = vld [vmem:[%s5042_s28 + $0x180] sm:$0xff]  ;;  %v231_v17 = vld [vmem:[%s5042_s28 + $0x188] sm:$0xff] }
  0x1d   : > { %224 = vst [vmem:[%s5050_s29 + $0x68] sm:$0xff] %v223_v13  ;;  %226 = vst [vmem:[%s5050_s29 + $0x70] sm:$0xff] %v225_v14  ;;  %v233_v18 = vld [vmem:[%s5042_s28 + $0x190] sm:$0xff]  ;;  %v235_v19 = vld [vmem:[%s5042_s28 + $0x198] sm:$0xff] }
  0x1e   : > { %228 = vst [vmem:[%s5050_s29 + $0x78] sm:$0xff] %v227_v15  ;;  %230 = vst [vmem:[%s5050_s29 + $0x80] sm:$0xff] %v229_v16  ;;  %v237_v20 = vld [vmem:[%s5042_s28 + $0x1e0] sm:$0xff]  ;;  %v239_v21 = vld [vmem:[%s5042_s28 + $0x1e8] sm:$0xff] }
  0x1f   : > { %232 = vst [vmem:[%s5050_s29 + $0x88] sm:$0xff] %v231_v17  ;;  %234 = vst [vmem:[%s5050_s29 + $0x90] sm:$0xff] %v233_v18  ;;  %v241_v22 = vld [vmem:[%s5042_s28 + $0x1f0] sm:$0xff]  ;;  %v243_v23 = vld [vmem:[%s5042_s28 + $0x1f8] sm:$0xff] }
  0x20   : > { %236 = vst [vmem:[%s5050_s29 + $0x98] sm:$0xff] %v235_v19  ;;  %238 = vst [vmem:[%s5050_s29 + $0xa0] sm:$0xff] %v237_v20  ;;  %v245_v24 = vld [vmem:[%s5042_s28 + $0x240] sm:$0xff]  ;;  %v247_v25 = vld [vmem:[%s5042_s28 + $0x248] sm:$0xff] }
  0x21   : > { %240 = vst [vmem:[%s5050_s29 + $0xa8] sm:$0xff] %v239_v21  ;;  %242 = vst [vmem:[%s5050_s29 + $0xb0] sm:$0xff] %v241_v22  ;;  %v249_v26 = vld [vmem:[%s5042_s28 + $0x250] sm:$0xff]  ;;  %v251_v27 = vld [vmem:[%s5042_s28 + $0x258] sm:$0xff] }
  0x22   : > { %244 = vst [vmem:[%s5050_s29 + $0xb8] sm:$0xff] %v243_v23  ;;  %246 = vst [vmem:[%s5050_s29 + $0xc0] sm:$0xff] %v245_v24  ;;  %v253_v28 = vld [vmem:[%s5042_s28 + $0x2a0] sm:$0xff]  ;;  %v255_v29 = vld [vmem:[%s5042_s28 + $0x2a8] sm:$0xff] }
  0x23   : > { %248 = vst [vmem:[%s5050_s29 + $0xc8] sm:$0xff] %v247_v25  ;;  %250 = vst [vmem:[%s5050_s29 + $0xd0] sm:$0xff] %v249_v26  ;;  %v257_v30 = vld [vmem:[%s5042_s28 + $0x2b0] sm:$0xff]  ;;  %v259_v31 = vld [vmem:[%s5042_s28 + $0x2b8] sm:$0xff] }
  0x24   : > { %252 = vst [vmem:[%s5050_s29 + $0xd8] sm:$0xff] %v251_v27  ;;  %254 = vst [vmem:[%s5050_s29 + $0xe0] sm:$0xff] %v253_v28  ;;  %v261_v32 = vld [vmem:[%s5042_s28 + $0x300] sm:$0xff]  ;;  %v263_v33 = vld [vmem:[%s5042_s28 + $0x308] sm:$0xff] }
  0x25   : > { %256 = vst [vmem:[%s5050_s29 + $0xe8] sm:$0xff] %v255_v29  ;;  %258 = vst [vmem:[%s5050_s29 + $0xf0] sm:$0xff] %v257_v30  ;;  %v265_v34 = vld [vmem:[%s5042_s28 + $0x310] sm:$0xff]  ;;  %v267_v35 = vld [vmem:[%s5042_s28 + $0x318] sm:$0xff] }
  0x26   : > { %260 = vst [vmem:[%s5050_s29 + $0xf8] sm:$0xff] %v259_v31  ;;  %262 = vst [vmem:[%s5050_s29 + $0x100] sm:$0xff] %v261_v32  ;;  %v269_v36 = vld [vmem:[%s5042_s28 + $0x360] sm:$0xff]  ;;  %v271_v37 = vld [vmem:[%s5042_s28 + $0x368] sm:$0xff] }
  0x27   : > { %264 = vst [vmem:[%s5050_s29 + $0x108] sm:$0xff] %v263_v33  ;;  %266 = vst [vmem:[%s5050_s29 + $0x110] sm:$0xff] %v265_v34  ;;  %v273_v38 = vld [vmem:[%s5042_s28 + $0x370] sm:$0xff]  ;;  %v275_v39 = vld [vmem:[%s5042_s28 + $0x378] sm:$0xff] }
  0x28   : > { %268 = vst [vmem:[%s5050_s29 + $0x118] sm:$0xff] %v267_v35  ;;  %270 = vst [vmem:[%s5050_s29 + $0x120] sm:$0xff] %v269_v36  ;;  %v277_v40 = vld [vmem:[%s5042_s28 + $0x3c0] sm:$0xff]  ;;  %v279_v41 = vld [vmem:[%s5042_s28 + $0x3c8] sm:$0xff] }
  0x29   : > { %272 = vst [vmem:[%s5050_s29 + $0x128] sm:$0xff] %v271_v37  ;;  %274 = vst [vmem:[%s5050_s29 + $0x130] sm:$0xff] %v273_v38  ;;  %v281_v42 = vld [vmem:[%s5042_s28 + $0x3d0] sm:$0xff]  ;;  %v283_v43 = vld [vmem:[%s5042_s28 + $0x3d8] sm:$0xff] }
  0x2a   : > { %276 = vst [vmem:[%s5050_s29 + $0x138] sm:$0xff] %v275_v39  ;;  %278 = vst [vmem:[%s5050_s29 + $0x140] sm:$0xff] %v277_v40  ;;  %v285_v44 = vld [vmem:[%s5042_s28 + $0x420] sm:$0xff]  ;;  %v287_v45 = vld [vmem:[%s5042_s28 + $0x428] sm:$0xff] }
  0x2b   : > { %280 = vst [vmem:[%s5050_s29 + $0x148] sm:$0xff] %v279_v41  ;;  %282 = vst [vmem:[%s5050_s29 + $0x150] sm:$0xff] %v281_v42  ;;  %v289_v46 = vld [vmem:[%s5042_s28 + $0x430] sm:$0xff]  ;;  %v291_v47 = vld [vmem:[%s5042_s28 + $0x438] sm:$0xff] }
  0x2c   : > { %284 = vst [vmem:[%s5050_s29 + $0x158] sm:$0xff] %v283_v43  ;;  %286 = vst [vmem:[%s5050_s29 + $0x160] sm:$0xff] %v285_v44  ;;  %v293_v48 = vld [vmem:[%s5042_s28 + $0x480] sm:$0xff]  ;;  %v295_v49 = vld [vmem:[%s5042_s28 + $0x488] sm:$0xff] }
  0x2d   : > { %288 = vst [vmem:[%s5050_s29 + $0x168] sm:$0xff] %v287_v45  ;;  %290 = vst [vmem:[%s5050_s29 + $0x170] sm:$0xff] %v289_v46  ;;  %v297_v50 = vld [vmem:[%s5042_s28 + $0x490] sm:$0xff]  ;;  %v299_v51 = vld [vmem:[%s5042_s28 + $0x498] sm:$0xff] }
  0x2e   : > { %292 = vst [vmem:[%s5050_s29 + $0x178] sm:$0xff] %v291_v47  ;;  %294 = vst [vmem:[%s5050_s29 + $0x180] sm:$0xff] %v293_v48  ;;  %v301_v52 = vld [vmem:[%s5042_s28 + $0x4e0] sm:$0xff]  ;;  %v303_v53 = vld [vmem:[%s5042_s28 + $0x4e8] sm:$0xff] }
  0x2f   : > { %296 = vst [vmem:[%s5050_s29 + $0x188] sm:$0xff] %v295_v49  ;;  %298 = vst [vmem:[%s5050_s29 + $0x190] sm:$0xff] %v297_v50  ;;  %v305_v54 = vld [vmem:[%s5042_s28 + $0x4f0] sm:$0xff]  ;;  %v307_v55 = vld [vmem:[%s5042_s28 + $0x4f8] sm:$0xff] }
  0x30   : > { %300 = vst [vmem:[%s5050_s29 + $0x198] sm:$0xff] %v299_v51  ;;  %302 = vst [vmem:[%s5050_s29 + $0x1a0] sm:$0xff] %v301_v52  ;;  %v309_v56 = vld [vmem:[%s5042_s28 + $0x540] sm:$0xff]  ;;  %v311_v57 = vld [vmem:[%s5042_s28 + $0x548] sm:$0xff] }
  0x31   : > { %304 = vst [vmem:[%s5050_s29 + $0x1a8] sm:$0xff] %v303_v53  ;;  %306 = vst [vmem:[%s5050_s29 + $0x1b0] sm:$0xff] %v305_v54  ;;  %v313_v58 = vld [vmem:[%s5042_s28 + $0x550] sm:$0xff]  ;;  %v315_v59 = vld [vmem:[%s5042_s28 + $0x558] sm:$0xff] }
  0x32   : > { %308 = vst [vmem:[%s5050_s29 + $0x1b8] sm:$0xff] %v307_v55  ;;  %310 = vst [vmem:[%s5050_s29 + $0x1c0] sm:$0xff] %v309_v56  ;;  %v317_v60 = vld [vmem:[%s5042_s28 + $0x5a0] sm:$0xff]  ;;  %v319_v61 = vld [vmem:[%s5042_s28 + $0x5a8] sm:$0xff] }
  0x33   : > { %312 = vst [vmem:[%s5050_s29 + $0x1c8] sm:$0xff] %v311_v57  ;;  %314 = vst [vmem:[%s5050_s29 + $0x1d0] sm:$0xff] %v313_v58  ;;  %v321_v62 = vld [vmem:[%s5042_s28 + $0x5b0] sm:$0xff]  ;;  %v323_v63 = vld [vmem:[%s5042_s28 + $0x5b8] sm:$0xff] }
  0x34   : > { %316 = vst [vmem:[%s5050_s29 + $0x1d8] sm:$0xff] %v315_v59  ;;  %318 = vst [vmem:[%s5050_s29 + $0x1e0] sm:$0xff] %v317_v60  ;;  %v325_v0 = vld [vmem:[%s5042_s28 + $0x600] sm:$0xff]  ;;  %v327_v1 = vld [vmem:[%s5042_s28 + $0x608] sm:$0xff] }
  0x35   : > { %320 = vst [vmem:[%s5050_s29 + $0x1e8] sm:$0xff] %v319_v61  ;;  %322 = vst [vmem:[%s5050_s29 + $0x1f0] sm:$0xff] %v321_v62  ;;  %v329_v2 = vld [vmem:[%s5042_s28 + $0x610] sm:$0xff]  ;;  %v331_v3 = vld [vmem:[%s5042_s28 + $0x618] sm:$0xff] }
  0x36   : > { %324 = vst [vmem:[%s5050_s29 + $0x1f8] sm:$0xff] %v323_v63  ;;  %326 = vst [vmem:[%s5050_s29 + $0x200] sm:$0xff] %v325_v0  ;;  %v333_v4 = vld [vmem:[%s5042_s28 + $0x660] sm:$0xff]  ;;  %v335_v5 = vld [vmem:[%s5042_s28 + $0x668] sm:$0xff] }
  0x37   : > { %328 = vst [vmem:[%s5050_s29 + $0x208] sm:$0xff] %v327_v1  ;;  %330 = vst [vmem:[%s5050_s29 + $0x210] sm:$0xff] %v329_v2  ;;  %v337_v6 = vld [vmem:[%s5042_s28 + $0x670] sm:$0xff]  ;;  %v339_v7 = vld [vmem:[%s5042_s28 + $0x678] sm:$0xff] }
  0x38   : > { %332 = vst [vmem:[%s5050_s29 + $0x218] sm:$0xff] %v331_v3  ;;  %334 = vst [vmem:[%s5050_s29 + $0x220] sm:$0xff] %v333_v4  ;;  %v341_v8 = vld [vmem:[%s5042_s28 + $0x6c0] sm:$0xff]  ;;  %v343_v9 = vld [vmem:[%s5042_s28 + $0x6c8] sm:$0xff] }
  0x39   : > { %336 = vst [vmem:[%s5050_s29 + $0x228] sm:$0xff] %v335_v5  ;;  %338 = vst [vmem:[%s5050_s29 + $0x230] sm:$0xff] %v337_v6  ;;  %v345_v10 = vld [vmem:[%s5042_s28 + $0x6d0] sm:$0xff]  ;;  %v347_v11 = vld [vmem:[%s5042_s28 + $0x6d8] sm:$0xff] }
  0x3a   : > { %340 = vst [vmem:[%s5050_s29 + $0x238] sm:$0xff] %v339_v7  ;;  %342 = vst [vmem:[%s5050_s29 + $0x240] sm:$0xff] %v341_v8  ;;  %v349_v12 = vld [vmem:[%s5042_s28 + $0x720] sm:$0xff]  ;;  %v351_v13 = vld [vmem:[%s5042_s28 + $0x728] sm:$0xff] }
  0x3b   : > { %344 = vst [vmem:[%s5050_s29 + $0x248] sm:$0xff] %v343_v9  ;;  %346 = vst [vmem:[%s5050_s29 + $0x250] sm:$0xff] %v345_v10  ;;  %v353_v14 = vld [vmem:[%s5042_s28 + $0x730] sm:$0xff]  ;;  %v355_v15 = vld [vmem:[%s5042_s28 + $0x738] sm:$0xff] }
  0x3c   : > { %348 = vst [vmem:[%s5050_s29 + $0x258] sm:$0xff] %v347_v11  ;;  %350 = vst [vmem:[%s5050_s29 + $0x260] sm:$0xff] %v349_v12  ;;  %v357_v16 = vld [vmem:[%s5042_s28 + $0x780] sm:$0xff]  ;;  %v359_v17 = vld [vmem:[%s5042_s28 + $0x788] sm:$0xff] }
  0x3d   : > { %352 = vst [vmem:[%s5050_s29 + $0x268] sm:$0xff] %v351_v13  ;;  %354 = vst [vmem:[%s5050_s29 + $0x270] sm:$0xff] %v353_v14  ;;  %v361_v18 = vld [vmem:[%s5042_s28 + $0x790] sm:$0xff]  ;;  %v363_v19 = vld [vmem:[%s5042_s28 + $0x798] sm:$0xff] }
  0x3e   : > { %356 = vst [vmem:[%s5050_s29 + $0x278] sm:$0xff] %v355_v15  ;;  %358 = vst [vmem:[%s5050_s29 + $0x280] sm:$0xff] %v357_v16  ;;  %v365_v20 = vld [vmem:[%s5042_s28 + $0x7e0] sm:$0xff]  ;;  %v367_v21 = vld [vmem:[%s5042_s28 + $0x7e8] sm:$0xff] }
  0x3f   : > { %360 = vst [vmem:[%s5050_s29 + $0x288] sm:$0xff] %v359_v17  ;;  %362 = vst [vmem:[%s5050_s29 + $0x290] sm:$0xff] %v361_v18  ;;  %v369_v22 = vld [vmem:[%s5042_s28 + $0x7f0] sm:$0xff]  ;;  %v371_v23 = vld [vmem:[%s5042_s28 + $0x7f8] sm:$0xff] }
  0x40   : > { %364 = vst [vmem:[%s5050_s29 + $0x298] sm:$0xff] %v363_v19  ;;  %366 = vst [vmem:[%s5050_s29 + $0x2a0] sm:$0xff] %v365_v20  ;;  %v373_v24 = vld [vmem:[%s5042_s28 + $0x840] sm:$0xff]  ;;  %v375_v25 = vld [vmem:[%s5042_s28 + $0x848] sm:$0xff] }
  0x41   : > { %368 = vst [vmem:[%s5050_s29 + $0x2a8] sm:$0xff] %v367_v21  ;;  %370 = vst [vmem:[%s5050_s29 + $0x2b0] sm:$0xff] %v369_v22  ;;  %v377_v26 = vld [vmem:[%s5042_s28 + $0x850] sm:$0xff]  ;;  %v379_v27 = vld [vmem:[%s5042_s28 + $0x858] sm:$0xff] }
  0x42   : > { %372 = vst [vmem:[%s5050_s29 + $0x2b8] sm:$0xff] %v371_v23  ;;  %374 = vst [vmem:[%s5050_s29 + $0x2c0] sm:$0xff] %v373_v24  ;;  %v381_v28 = vld [vmem:[%s5042_s28 + $0x8a0] sm:$0xff]  ;;  %v383_v29 = vld [vmem:[%s5042_s28 + $0x8a8] sm:$0xff] }
  0x43   : > { %376 = vst [vmem:[%s5050_s29 + $0x2c8] sm:$0xff] %v375_v25  ;;  %378 = vst [vmem:[%s5050_s29 + $0x2d0] sm:$0xff] %v377_v26  ;;  %v385_v30 = vld [vmem:[%s5042_s28 + $0x8b0] sm:$0xff]  ;;  %v387_v31 = vld [vmem:[%s5042_s28 + $0x8b8] sm:$0xff] }
  0x44   : > { %380 = vst [vmem:[%s5050_s29 + $0x2d8] sm:$0xff] %v379_v27  ;;  %382 = vst [vmem:[%s5050_s29 + $0x2e0] sm:$0xff] %v381_v28  ;;  %v389_v32 = vld [vmem:[%s5042_s28 + $0x900] sm:$0xff]  ;;  %v391_v33 = vld [vmem:[%s5042_s28 + $0x908] sm:$0xff] }
  0x45   : > { %384 = vst [vmem:[%s5050_s29 + $0x2e8] sm:$0xff] %v383_v29  ;;  %386 = vst [vmem:[%s5050_s29 + $0x2f0] sm:$0xff] %v385_v30  ;;  %v393_v34 = vld [vmem:[%s5042_s28 + $0x910] sm:$0xff]  ;;  %v395_v35 = vld [vmem:[%s5042_s28 + $0x918] sm:$0xff] }
  0x46   : > { %388 = vst [vmem:[%s5050_s29 + $0x2f8] sm:$0xff] %v387_v31  ;;  %390 = vst [vmem:[%s5050_s29 + $0x300] sm:$0xff] %v389_v32  ;;  %v397_v36 = vld [vmem:[%s5042_s28 + $0x960] sm:$0xff]  ;;  %v399_v37 = vld [vmem:[%s5042_s28 + $0x968] sm:$0xff] }
  0x47   : > { %392 = vst [vmem:[%s5050_s29 + $0x308] sm:$0xff] %v391_v33  ;;  %394 = vst [vmem:[%s5050_s29 + $0x310] sm:$0xff] %v393_v34  ;;  %v401_v38 = vld [vmem:[%s5042_s28 + $0x970] sm:$0xff]  ;;  %v403_v39 = vld [vmem:[%s5042_s28 + $0x978] sm:$0xff] }
  0x48   : > { %396 = vst [vmem:[%s5050_s29 + $0x318] sm:$0xff] %v395_v35  ;;  %398 = vst [vmem:[%s5050_s29 + $0x320] sm:$0xff] %v397_v36  ;;  %v405_v40 = vld [vmem:[%s5042_s28 + $0x9c0] sm:$0xff]  ;;  %v407_v41 = vld [vmem:[%s5042_s28 + $0x9c8] sm:$0xff] }
  0x49   : > { %400 = vst [vmem:[%s5050_s29 + $0x328] sm:$0xff] %v399_v37  ;;  %402 = vst [vmem:[%s5050_s29 + $0x330] sm:$0xff] %v401_v38  ;;  %v409_v42 = vld [vmem:[%s5042_s28 + $0x9d0] sm:$0xff]  ;;  %v411_v43 = vld [vmem:[%s5042_s28 + $0x9d8] sm:$0xff] }
  0x4a   : > { %404 = vst [vmem:[%s5050_s29 + $0x338] sm:$0xff] %v403_v39  ;;  %406 = vst [vmem:[%s5050_s29 + $0x340] sm:$0xff] %v405_v40  ;;  %v413_v44 = vld [vmem:[%s5042_s28 + $0xa20] sm:$0xff]  ;;  %v415_v45 = vld [vmem:[%s5042_s28 + $0xa28] sm:$0xff] }
  0x4b   : > { %408 = vst [vmem:[%s5050_s29 + $0x348] sm:$0xff] %v407_v41  ;;  %410 = vst [vmem:[%s5050_s29 + $0x350] sm:$0xff] %v409_v42  ;;  %v417_v46 = vld [vmem:[%s5042_s28 + $0xa30] sm:$0xff]  ;;  %v419_v47 = vld [vmem:[%s5042_s28 + $0xa38] sm:$0xff] }
  0x4c   : > { %412 = vst [vmem:[%s5050_s29 + $0x358] sm:$0xff] %v411_v43  ;;  %414 = vst [vmem:[%s5050_s29 + $0x360] sm:$0xff] %v413_v44  ;;  %v421_v48 = vld [vmem:[%s5042_s28 + $0xa80] sm:$0xff]  ;;  %v423_v49 = vld [vmem:[%s5042_s28 + $0xa88] sm:$0xff] }
  0x4d   : > { %416 = vst [vmem:[%s5050_s29 + $0x368] sm:$0xff] %v415_v45  ;;  %418 = vst [vmem:[%s5050_s29 + $0x370] sm:$0xff] %v417_v46  ;;  %v425_v50 = vld [vmem:[%s5042_s28 + $0xa90] sm:$0xff]  ;;  %v427_v51 = vld [vmem:[%s5042_s28 + $0xa98] sm:$0xff] }
  0x4e   : > { %420 = vst [vmem:[%s5050_s29 + $0x378] sm:$0xff] %v419_v47  ;;  %422 = vst [vmem:[%s5050_s29 + $0x380] sm:$0xff] %v421_v48  ;;  %v429_v52 = vld [vmem:[%s5042_s28 + $0xae0] sm:$0xff]  ;;  %v431_v53 = vld [vmem:[%s5042_s28 + $0xae8] sm:$0xff] }
  0x4f   : > { %424 = vst [vmem:[%s5050_s29 + $0x388] sm:$0xff] %v423_v49  ;;  %426 = vst [vmem:[%s5050_s29 + $0x390] sm:$0xff] %v425_v50  ;;  %v433_v54 = vld [vmem:[%s5042_s28 + $0xaf0] sm:$0xff]  ;;  %v435_v55 = vld [vmem:[%s5042_s28 + $0xaf8] sm:$0xff] }
  0x50   : > { %428 = vst [vmem:[%s5050_s29 + $0x398] sm:$0xff] %v427_v51  ;;  %430 = vst [vmem:[%s5050_s29 + $0x3a0] sm:$0xff] %v429_v52  ;;  %v437_v56 = vld [vmem:[%s5042_s28 + $0xb40] sm:$0xff]  ;;  %v439_v57 = vld [vmem:[%s5042_s28 + $0xb48] sm:$0xff] }
  0x51   : > { %432 = vst [vmem:[%s5050_s29 + $0x3a8] sm:$0xff] %v431_v53  ;;  %434 = vst [vmem:[%s5050_s29 + $0x3b0] sm:$0xff] %v433_v54  ;;  %v441_v58 = vld [vmem:[%s5042_s28 + $0xb50] sm:$0xff]  ;;  %v443_v59 = vld [vmem:[%s5042_s28 + $0xb58] sm:$0xff] }
  0x52   : > { %436 = vst [vmem:[%s5050_s29 + $0x3b8] sm:$0xff] %v435_v55  ;;  %438 = vst [vmem:[%s5050_s29 + $0x3c0] sm:$0xff] %v437_v56  ;;  %v445_v60 = vld [vmem:[%s5042_s28 + $0xba0] sm:$0xff]  ;;  %v447_v61 = vld [vmem:[%s5042_s28 + $0xba8] sm:$0xff] }
  0x53   : > { %440 = vst [vmem:[%s5050_s29 + $0x3c8] sm:$0xff] %v439_v57  ;;  %442 = vst [vmem:[%s5050_s29 + $0x3d0] sm:$0xff] %v441_v58  ;;  %v449_v62 = vld [vmem:[%s5042_s28 + $0xbb0] sm:$0xff]  ;;  %v451_v63 = vld [vmem:[%s5042_s28 + $0xbb8] sm:$0xff] }
  0x54   : > { %444 = vst [vmem:[%s5050_s29 + $0x3d8] sm:$0xff] %v443_v59  ;;  %446 = vst [vmem:[%s5050_s29 + $0x3e0] sm:$0xff] %v445_v60  ;;  %v453_v0 = vld [vmem:[%s5042_s28 + $0xc00] sm:$0xff]  ;;  %v455_v1 = vld [vmem:[%s5042_s28 + $0xc08] sm:$0xff] }
  0x55   : > { %448 = vst [vmem:[%s5050_s29 + $0x3e8] sm:$0xff] %v447_v61  ;;  %450 = vst [vmem:[%s5050_s29 + $0x3f0] sm:$0xff] %v449_v62  ;;  %v457_v2 = vld [vmem:[%s5042_s28 + $0xc10] sm:$0xff]  ;;  %v459_v3 = vld [vmem:[%s5042_s28 + $0xc18] sm:$0xff] }
  0x56   : > { %452 = vst [vmem:[%s5050_s29 + $0x3f8] sm:$0xff] %v451_v63  ;;  %454 = vst [vmem:[%s5050_s29 + $0x400] sm:$0xff] %v453_v0  ;;  %v461_v4 = vld [vmem:[%s5042_s28 + $0xc60] sm:$0xff]  ;;  %v463_v5 = vld [vmem:[%s5042_s28 + $0xc68] sm:$0xff] }
  0x57   : > { %456 = vst [vmem:[%s5050_s29 + $0x408] sm:$0xff] %v455_v1  ;;  %458 = vst [vmem:[%s5050_s29 + $0x410] sm:$0xff] %v457_v2  ;;  %v465_v6 = vld [vmem:[%s5042_s28 + $0xc70] sm:$0xff]  ;;  %v467_v7 = vld [vmem:[%s5042_s28 + $0xc78] sm:$0xff] }
  0x58   : > { %460 = vst [vmem:[%s5050_s29 + $0x418] sm:$0xff] %v459_v3  ;;  %462 = vst [vmem:[%s5050_s29 + $0x420] sm:$0xff] %v461_v4  ;;  %v469_v8 = vld [vmem:[%s5042_s28 + $0xcc0] sm:$0xff]  ;;  %v471_v9 = vld [vmem:[%s5042_s28 + $0xcc8] sm:$0xff] }
  0x59   : > { %464 = vst [vmem:[%s5050_s29 + $0x428] sm:$0xff] %v463_v5  ;;  %466 = vst [vmem:[%s5050_s29 + $0x430] sm:$0xff] %v465_v6  ;;  %v473_v10 = vld [vmem:[%s5042_s28 + $0xcd0] sm:$0xff]  ;;  %v475_v11 = vld [vmem:[%s5042_s28 + $0xcd8] sm:$0xff] }
  0x5a   : > { %468 = vst [vmem:[%s5050_s29 + $0x438] sm:$0xff] %v467_v7  ;;  %470 = vst [vmem:[%s5050_s29 + $0x440] sm:$0xff] %v469_v8  ;;  %v477_v12 = vld [vmem:[%s5042_s28 + $0xd20] sm:$0xff]  ;;  %v479_v13 = vld [vmem:[%s5042_s28 + $0xd28] sm:$0xff] }
  0x5b   : > { %472 = vst [vmem:[%s5050_s29 + $0x448] sm:$0xff] %v471_v9  ;;  %474 = vst [vmem:[%s5050_s29 + $0x450] sm:$0xff] %v473_v10  ;;  %v481_v14 = vld [vmem:[%s5042_s28 + $0xd30] sm:$0xff]  ;;  %v483_v15 = vld [vmem:[%s5042_s28 + $0xd38] sm:$0xff] }
  0x5c   : > { %476 = vst [vmem:[%s5050_s29 + $0x458] sm:$0xff] %v475_v11  ;;  %478 = vst [vmem:[%s5050_s29 + $0x460] sm:$0xff] %v477_v12  ;;  %v485_v16 = vld [vmem:[%s5042_s28 + $0xd80] sm:$0xff]  ;;  %v487_v17 = vld [vmem:[%s5042_s28 + $0xd88] sm:$0xff] }
  0x5d   : > { %480 = vst [vmem:[%s5050_s29 + $0x468] sm:$0xff] %v479_v13  ;;  %482 = vst [vmem:[%s5050_s29 + $0x470] sm:$0xff] %v481_v14  ;;  %v489_v18 = vld [vmem:[%s5042_s28 + $0xd90] sm:$0xff]  ;;  %v491_v19 = vld [vmem:[%s5042_s28 + $0xd98] sm:$0xff] }
  0x5e   : > { %484 = vst [vmem:[%s5050_s29 + $0x478] sm:$0xff] %v483_v15  ;;  %486 = vst [vmem:[%s5050_s29 + $0x480] sm:$0xff] %v485_v16  ;;  %v493_v20 = vld [vmem:[%s5042_s28 + $0xde0] sm:$0xff]  ;;  %v495_v21 = vld [vmem:[%s5042_s28 + $0xde8] sm:$0xff] }
  0x5f   : > { %488 = vst [vmem:[%s5050_s29 + $0x488] sm:$0xff] %v487_v17  ;;  %490 = vst [vmem:[%s5050_s29 + $0x490] sm:$0xff] %v489_v18  ;;  %v497_v22 = vld [vmem:[%s5042_s28 + $0xdf0] sm:$0xff]  ;;  %v499_v23 = vld [vmem:[%s5042_s28 + $0xdf8] sm:$0xff] }
  0x60   : > { %492 = vst [vmem:[%s5050_s29 + $0x498] sm:$0xff] %v491_v19  ;;  %494 = vst [vmem:[%s5050_s29 + $0x4a0] sm:$0xff] %v493_v20  ;;  %v501_v24 = vld [vmem:[%s5042_s28 + $0xe40] sm:$0xff]  ;;  %v503_v25 = vld [vmem:[%s5042_s28 + $0xe48] sm:$0xff] }
  0x61   : > { %496 = vst [vmem:[%s5050_s29 + $0x4a8] sm:$0xff] %v495_v21  ;;  %498 = vst [vmem:[%s5050_s29 + $0x4b0] sm:$0xff] %v497_v22  ;;  %v505_v26 = vld [vmem:[%s5042_s28 + $0xe50] sm:$0xff]  ;;  %v507_v27 = vld [vmem:[%s5042_s28 + $0xe58] sm:$0xff] }
  0x62   : > { %500 = vst [vmem:[%s5050_s29 + $0x4b8] sm:$0xff] %v499_v23  ;;  %502 = vst [vmem:[%s5050_s29 + $0x4c0] sm:$0xff] %v501_v24  ;;  %v509_v28 = vld [vmem:[%s5042_s28 + $0xea0] sm:$0xff]  ;;  %v511_v29 = vld [vmem:[%s5042_s28 + $0xea8] sm:$0xff] }
  0x63   : > { %504 = vst [vmem:[%s5050_s29 + $0x4c8] sm:$0xff] %v503_v25  ;;  %506 = vst [vmem:[%s5050_s29 + $0x4d0] sm:$0xff] %v505_v26  ;;  %v513_v30 = vld [vmem:[%s5042_s28 + $0xeb0] sm:$0xff]  ;;  %v515_v31 = vld [vmem:[%s5042_s28 + $0xeb8] sm:$0xff] }
  0x64   : > { %508 = vst [vmem:[%s5050_s29 + $0x4d8] sm:$0xff] %v507_v27  ;;  %510 = vst [vmem:[%s5050_s29 + $0x4e0] sm:$0xff] %v509_v28  ;;  %v517_v32 = vld [vmem:[%s5042_s28 + $0xf00] sm:$0xff]  ;;  %v519_v33 = vld [vmem:[%s5042_s28 + $0xf08] sm:$0xff] }
  0x65   : > { %512 = vst [vmem:[%s5050_s29 + $0x4e8] sm:$0xff] %v511_v29  ;;  %514 = vst [vmem:[%s5050_s29 + $0x4f0] sm:$0xff] %v513_v30  ;;  %v521_v34 = vld [vmem:[%s5042_s28 + $0xf10] sm:$0xff]  ;;  %v523_v35 = vld [vmem:[%s5042_s28 + $0xf18] sm:$0xff] }
  0x66   : > { %516 = vst [vmem:[%s5050_s29 + $0x4f8] sm:$0xff] %v515_v31  ;;  %518 = vst [vmem:[%s5050_s29 + $0x500] sm:$0xff] %v517_v32  ;;  %v525_v36 = vld [vmem:[%s5042_s28 + $0xf60] sm:$0xff]  ;;  %v527_v37 = vld [vmem:[%s5042_s28 + $0xf68] sm:$0xff] }
  0x67   : > { %520 = vst [vmem:[%s5050_s29 + $0x508] sm:$0xff] %v519_v33  ;;  %522 = vst [vmem:[%s5050_s29 + $0x510] sm:$0xff] %v521_v34  ;;  %v529_v38 = vld [vmem:[%s5042_s28 + $0xf70] sm:$0xff]  ;;  %v531_v39 = vld [vmem:[%s5042_s28 + $0xf78] sm:$0xff] }
  0x68   : > { %524 = vst [vmem:[%s5050_s29 + $0x518] sm:$0xff] %v523_v35  ;;  %526 = vst [vmem:[%s5050_s29 + $0x520] sm:$0xff] %v525_v36  ;;  %v533_v40 = vld [vmem:[%s5042_s28 + $0xfc0] sm:$0xff]  ;;  %v535_v41 = vld [vmem:[%s5042_s28 + $0xfc8] sm:$0xff] }
  0x69   : > { %528 = vst [vmem:[%s5050_s29 + $0x528] sm:$0xff] %v527_v37  ;;  %530 = vst [vmem:[%s5050_s29 + $0x530] sm:$0xff] %v529_v38  ;;  %v537_v42 = vld [vmem:[%s5042_s28 + $0xfd0] sm:$0xff]  ;;  %v539_v43 = vld [vmem:[%s5042_s28 + $0xfd8] sm:$0xff] }
  0x6a   : > { %532 = vst [vmem:[%s5050_s29 + $0x538] sm:$0xff] %v531_v39  ;;  %534 = vst [vmem:[%s5050_s29 + $0x540] sm:$0xff] %v533_v40  ;;  %v541_v44 = vld [vmem:[%s5042_s28 + $0x1020] sm:$0xff]  ;;  %v543_v45 = vld [vmem:[%s5042_s28 + $0x1028] sm:$0xff] }
  0x6b   : > { %536 = vst [vmem:[%s5050_s29 + $0x548] sm:$0xff] %v535_v41  ;;  %538 = vst [vmem:[%s5050_s29 + $0x550] sm:$0xff] %v537_v42  ;;  %v545_v46 = vld [vmem:[%s5042_s28 + $0x1030] sm:$0xff]  ;;  %v547_v47 = vld [vmem:[%s5042_s28 + $0x1038] sm:$0xff] }
  0x6c   : > { %540 = vst [vmem:[%s5050_s29 + $0x558] sm:$0xff] %v539_v43  ;;  %542 = vst [vmem:[%s5050_s29 + $0x560] sm:$0xff] %v541_v44  ;;  %v549_v48 = vld [vmem:[%s5042_s28 + $0x1080] sm:$0xff]  ;;  %v551_v49 = vld [vmem:[%s5042_s28 + $0x1088] sm:$0xff] }
  0x6d   : > { %544 = vst [vmem:[%s5050_s29 + $0x568] sm:$0xff] %v543_v45  ;;  %546 = vst [vmem:[%s5050_s29 + $0x570] sm:$0xff] %v545_v46  ;;  %v553_v50 = vld [vmem:[%s5042_s28 + $0x1090] sm:$0xff]  ;;  %v555_v51 = vld [vmem:[%s5042_s28 + $0x1098] sm:$0xff] }
  0x6e   : > { %548 = vst [vmem:[%s5050_s29 + $0x578] sm:$0xff] %v547_v47  ;;  %550 = vst [vmem:[%s5050_s29 + $0x580] sm:$0xff] %v549_v48  ;;  %v557_v52 = vld [vmem:[%s5042_s28 + $0x10e0] sm:$0xff]  ;;  %v559_v53 = vld [vmem:[%s5042_s28 + $0x10e8] sm:$0xff] }
  0x6f   : > { %552 = vst [vmem:[%s5050_s29 + $0x588] sm:$0xff] %v551_v49  ;;  %554 = vst [vmem:[%s5050_s29 + $0x590] sm:$0xff] %v553_v50  ;;  %v561_v54 = vld [vmem:[%s5042_s28 + $0x10f0] sm:$0xff]  ;;  %v563_v55 = vld [vmem:[%s5042_s28 + $0x10f8] sm:$0xff] }
  0x70   : > { %556 = vst [vmem:[%s5050_s29 + $0x598] sm:$0xff] %v555_v51  ;;  %558 = vst [vmem:[%s5050_s29 + $0x5a0] sm:$0xff] %v557_v52  ;;  %v565_v56 = vld [vmem:[%s5042_s28 + $0x1140] sm:$0xff]  ;;  %v567_v57 = vld [vmem:[%s5042_s28 + $0x1148] sm:$0xff] }
  0x71   : > { %560 = vst [vmem:[%s5050_s29 + $0x5a8] sm:$0xff] %v559_v53  ;;  %562 = vst [vmem:[%s5050_s29 + $0x5b0] sm:$0xff] %v561_v54  ;;  %v569_v58 = vld [vmem:[%s5042_s28 + $0x1150] sm:$0xff]  ;;  %v571_v59 = vld [vmem:[%s5042_s28 + $0x1158] sm:$0xff] }
  0x72   : > { %564 = vst [vmem:[%s5050_s29 + $0x5b8] sm:$0xff] %v563_v55  ;;  %566 = vst [vmem:[%s5050_s29 + $0x5c0] sm:$0xff] %v565_v56  ;;  %v573_v60 = vld [vmem:[%s5042_s28 + $0x11a0] sm:$0xff]  ;;  %v575_v61 = vld [vmem:[%s5042_s28 + $0x11a8] sm:$0xff] }
  0x73   : > { %568 = vst [vmem:[%s5050_s29 + $0x5c8] sm:$0xff] %v567_v57  ;;  %570 = vst [vmem:[%s5050_s29 + $0x5d0] sm:$0xff] %v569_v58  ;;  %v577_v62 = vld [vmem:[%s5042_s28 + $0x11b0] sm:$0xff]  ;;  %v579_v63 = vld [vmem:[%s5042_s28 + $0x11b8] sm:$0xff] }
  0x74   : > { %572 = vst [vmem:[%s5050_s29 + $0x5d8] sm:$0xff] %v571_v59  ;;  %574 = vst [vmem:[%s5050_s29 + $0x5e0] sm:$0xff] %v573_v60  ;;  %v581_v0 = vld [vmem:[%s5042_s28 + $0x1200] sm:$0xff]  ;;  %v583_v1 = vld [vmem:[%s5042_s28 + $0x1208] sm:$0xff] }
  0x75   : > { %576 = vst [vmem:[%s5050_s29 + $0x5e8] sm:$0xff] %v575_v61  ;;  %578 = vst [vmem:[%s5050_s29 + $0x5f0] sm:$0xff] %v577_v62  ;;  %v585_v2 = vld [vmem:[%s5042_s28 + $0x1210] sm:$0xff]  ;;  %v587_v3 = vld [vmem:[%s5042_s28 + $0x1218] sm:$0xff] }
  0x76   : > { %580 = vst [vmem:[%s5050_s29 + $0x5f8] sm:$0xff] %v579_v63  ;;  %582 = vst [vmem:[%s5050_s29 + $0x600] sm:$0xff] %v581_v0  ;;  %v589_v4 = vld [vmem:[%s5042_s28 + $0x1260] sm:$0xff]  ;;  %v591_v5 = vld [vmem:[%s5042_s28 + $0x1268] sm:$0xff] }
  0x77   : > { %584 = vst [vmem:[%s5050_s29 + $0x608] sm:$0xff] %v583_v1  ;;  %586 = vst [vmem:[%s5050_s29 + $0x610] sm:$0xff] %v585_v2  ;;  %v593_v6 = vld [vmem:[%s5042_s28 + $0x1270] sm:$0xff]  ;;  %v595_v7 = vld [vmem:[%s5042_s28 + $0x1278] sm:$0xff] }
  0x78   : > { %588 = vst [vmem:[%s5050_s29 + $0x618] sm:$0xff] %v587_v3  ;;  %590 = vst [vmem:[%s5050_s29 + $0x620] sm:$0xff] %v589_v4  ;;  %v597_v8 = vld [vmem:[%s5042_s28 + $0x12c0] sm:$0xff]  ;;  %v599_v9 = vld [vmem:[%s5042_s28 + $0x12c8] sm:$0xff] }
  0x79   : > { %592 = vst [vmem:[%s5050_s29 + $0x628] sm:$0xff] %v591_v5  ;;  %594 = vst [vmem:[%s5050_s29 + $0x630] sm:$0xff] %v593_v6  ;;  %v601_v10 = vld [vmem:[%s5042_s28 + $0x12d0] sm:$0xff]  ;;  %v603_v11 = vld [vmem:[%s5042_s28 + $0x12d8] sm:$0xff] }
  0x7a   : > { %596 = vst [vmem:[%s5050_s29 + $0x638] sm:$0xff] %v595_v7  ;;  %598 = vst [vmem:[%s5050_s29 + $0x640] sm:$0xff] %v597_v8  ;;  %v605_v12 = vld [vmem:[%s5042_s28 + $0x1320] sm:$0xff]  ;;  %v607_v13 = vld [vmem:[%s5042_s28 + $0x1328] sm:$0xff] }
  0x7b   : > { %600 = vst [vmem:[%s5050_s29 + $0x648] sm:$0xff] %v599_v9  ;;  %602 = vst [vmem:[%s5050_s29 + $0x650] sm:$0xff] %v601_v10  ;;  %v609_v14 = vld [vmem:[%s5042_s28 + $0x1330] sm:$0xff]  ;;  %v611_v15 = vld [vmem:[%s5042_s28 + $0x1338] sm:$0xff] }
  0x7c   : > { %604 = vst [vmem:[%s5050_s29 + $0x658] sm:$0xff] %v603_v11  ;;  %606 = vst [vmem:[%s5050_s29 + $0x660] sm:$0xff] %v605_v12  ;;  %v613_v16 = vld [vmem:[%s5042_s28 + $0x1380] sm:$0xff]  ;;  %v615_v17 = vld [vmem:[%s5042_s28 + $0x1388] sm:$0xff] }
  0x7d   : > { %608 = vst [vmem:[%s5050_s29 + $0x668] sm:$0xff] %v607_v13  ;;  %610 = vst [vmem:[%s5050_s29 + $0x670] sm:$0xff] %v609_v14  ;;  %v617_v18 = vld [vmem:[%s5042_s28 + $0x1390] sm:$0xff]  ;;  %v619_v19 = vld [vmem:[%s5042_s28 + $0x1398] sm:$0xff] }
  0x7e   : > { %612 = vst [vmem:[%s5050_s29 + $0x678] sm:$0xff] %v611_v15  ;;  %614 = vst [vmem:[%s5050_s29 + $0x680] sm:$0xff] %v613_v16  ;;  %v621_v20 = vld [vmem:[%s5042_s28 + $0x13e0] sm:$0xff]  ;;  %v623_v21 = vld [vmem:[%s5042_s28 + $0x13e8] sm:$0xff] }
  0x7f   : > { %616 = vst [vmem:[%s5050_s29 + $0x688] sm:$0xff] %v615_v17  ;;  %618 = vst [vmem:[%s5050_s29 + $0x690] sm:$0xff] %v617_v18  ;;  %v625_v22 = vld [vmem:[%s5042_s28 + $0x13f0] sm:$0xff]  ;;  %v627_v23 = vld [vmem:[%s5042_s28 + $0x13f8] sm:$0xff] }
  0x80   : > { %620 = vst [vmem:[%s5050_s29 + $0x698] sm:$0xff] %v619_v19  ;;  %622 = vst [vmem:[%s5050_s29 + $0x6a0] sm:$0xff] %v621_v20  ;;  %v629_v24 = vld [vmem:[%s5042_s28 + $0x1440] sm:$0xff]  ;;  %v631_v25 = vld [vmem:[%s5042_s28 + $0x1448] sm:$0xff] }
  0x81   : > { %624 = vst [vmem:[%s5050_s29 + $0x6a8] sm:$0xff] %v623_v21  ;;  %626 = vst [vmem:[%s5050_s29 + $0x6b0] sm:$0xff] %v625_v22  ;;  %v633_v26 = vld [vmem:[%s5042_s28 + $0x1450] sm:$0xff]  ;;  %v635_v27 = vld [vmem:[%s5042_s28 + $0x1458] sm:$0xff] }
  0x82   : > { %628 = vst [vmem:[%s5050_s29 + $0x6b8] sm:$0xff] %v627_v23  ;;  %630 = vst [vmem:[%s5050_s29 + $0x6c0] sm:$0xff] %v629_v24  ;;  %v637_v28 = vld [vmem:[%s5042_s28 + $0x14a0] sm:$0xff]  ;;  %v639_v29 = vld [vmem:[%s5042_s28 + $0x14a8] sm:$0xff] }
  0x83   : > { %632 = vst [vmem:[%s5050_s29 + $0x6c8] sm:$0xff] %v631_v25  ;;  %634 = vst [vmem:[%s5050_s29 + $0x6d0] sm:$0xff] %v633_v26  ;;  %v641_v30 = vld [vmem:[%s5042_s28 + $0x14b0] sm:$0xff]  ;;  %v643_v31 = vld [vmem:[%s5042_s28 + $0x14b8] sm:$0xff] }
  0x84   : > { %636 = vst [vmem:[%s5050_s29 + $0x6d8] sm:$0xff] %v635_v27  ;;  %638 = vst [vmem:[%s5050_s29 + $0x6e0] sm:$0xff] %v637_v28  ;;  %v645_v32 = vld [vmem:[%s5042_s28 + $0x1500] sm:$0xff]  ;;  %v647_v33 = vld [vmem:[%s5042_s28 + $0x1508] sm:$0xff] }
  0x85   : > { %640 = vst [vmem:[%s5050_s29 + $0x6e8] sm:$0xff] %v639_v29  ;;  %642 = vst [vmem:[%s5050_s29 + $0x6f0] sm:$0xff] %v641_v30  ;;  %v649_v34 = vld [vmem:[%s5042_s28 + $0x1510] sm:$0xff]  ;;  %v651_v35 = vld [vmem:[%s5042_s28 + $0x1518] sm:$0xff] }
  0x86   : > { %644 = vst [vmem:[%s5050_s29 + $0x6f8] sm:$0xff] %v643_v31  ;;  %646 = vst [vmem:[%s5050_s29 + $0x700] sm:$0xff] %v645_v32  ;;  %v653_v36 = vld [vmem:[%s5042_s28 + $0x1560] sm:$0xff]  ;;  %v655_v37 = vld [vmem:[%s5042_s28 + $0x1568] sm:$0xff] }
  0x87   : > { %648 = vst [vmem:[%s5050_s29 + $0x708] sm:$0xff] %v647_v33  ;;  %650 = vst [vmem:[%s5050_s29 + $0x710] sm:$0xff] %v649_v34  ;;  %v657_v38 = vld [vmem:[%s5042_s28 + $0x1570] sm:$0xff]  ;;  %v659_v39 = vld [vmem:[%s5042_s28 + $0x1578] sm:$0xff] }
  0x88   : > { %652 = vst [vmem:[%s5050_s29 + $0x718] sm:$0xff] %v651_v35  ;;  %654 = vst [vmem:[%s5050_s29 + $0x720] sm:$0xff] %v653_v36  ;;  %v661_v40 = vld [vmem:[%s5042_s28 + $0x15c0] sm:$0xff]  ;;  %v663_v41 = vld [vmem:[%s5042_s28 + $0x15c8] sm:$0xff] }
  0x89   : > { %656 = vst [vmem:[%s5050_s29 + $0x728] sm:$0xff] %v655_v37  ;;  %658 = vst [vmem:[%s5050_s29 + $0x730] sm:$0xff] %v657_v38  ;;  %v665_v42 = vld [vmem:[%s5042_s28 + $0x15d0] sm:$0xff]  ;;  %v667_v43 = vld [vmem:[%s5042_s28 + $0x15d8] sm:$0xff] }
  0x8a   : > { %660 = vst [vmem:[%s5050_s29 + $0x738] sm:$0xff] %v659_v39  ;;  %662 = vst [vmem:[%s5050_s29 + $0x740] sm:$0xff] %v661_v40  ;;  %v669_v44 = vld [vmem:[%s5042_s28 + $0x1620] sm:$0xff]  ;;  %v671_v45 = vld [vmem:[%s5042_s28 + $0x1628] sm:$0xff] }
  0x8b   : > { %664 = vst [vmem:[%s5050_s29 + $0x748] sm:$0xff] %v663_v41  ;;  %666 = vst [vmem:[%s5050_s29 + $0x750] sm:$0xff] %v665_v42  ;;  %v673_v46 = vld [vmem:[%s5042_s28 + $0x1630] sm:$0xff]  ;;  %v675_v47 = vld [vmem:[%s5042_s28 + $0x1638] sm:$0xff] }
  0x8c   : > { %668 = vst [vmem:[%s5050_s29 + $0x758] sm:$0xff] %v667_v43  ;;  %670 = vst [vmem:[%s5050_s29 + $0x760] sm:$0xff] %v669_v44  ;;  %v677_v48 = vld [vmem:[%s5042_s28 + $0x1680] sm:$0xff]  ;;  %v679_v49 = vld [vmem:[%s5042_s28 + $0x1688] sm:$0xff] }
  0x8d   : > { %672 = vst [vmem:[%s5050_s29 + $0x768] sm:$0xff] %v671_v45  ;;  %674 = vst [vmem:[%s5050_s29 + $0x770] sm:$0xff] %v673_v46  ;;  %v681_v50 = vld [vmem:[%s5042_s28 + $0x1690] sm:$0xff]  ;;  %v683_v51 = vld [vmem:[%s5042_s28 + $0x1698] sm:$0xff] }
  0x8e   : > { %676 = vst [vmem:[%s5050_s29 + $0x778] sm:$0xff] %v675_v47  ;;  %678 = vst [vmem:[%s5050_s29 + $0x780] sm:$0xff] %v677_v48  ;;  %v685_v52 = vld [vmem:[%s5042_s28 + $0x16e0] sm:$0xff]  ;;  %v687_v53 = vld [vmem:[%s5042_s28 + $0x16e8] sm:$0xff] }
  0x8f   : > { %680 = vst [vmem:[%s5050_s29 + $0x788] sm:$0xff] %v679_v49  ;;  %682 = vst [vmem:[%s5050_s29 + $0x790] sm:$0xff] %v681_v50  ;;  %v689_v54 = vld [vmem:[%s5042_s28 + $0x16f0] sm:$0xff]  ;;  %v691_v55 = vld [vmem:[%s5042_s28 + $0x16f8] sm:$0xff] }
  0x90   : > { %684 = vst [vmem:[%s5050_s29 + $0x798] sm:$0xff] %v683_v51  ;;  %686 = vst [vmem:[%s5050_s29 + $0x7a0] sm:$0xff] %v685_v52  ;;  %v693_v56 = vld [vmem:[%s5042_s28 + $0x1740] sm:$0xff]  ;;  %v695_v57 = vld [vmem:[%s5042_s28 + $0x1748] sm:$0xff] }
  0x91   : > { %688 = vst [vmem:[%s5050_s29 + $0x7a8] sm:$0xff] %v687_v53  ;;  %690 = vst [vmem:[%s5050_s29 + $0x7b0] sm:$0xff] %v689_v54  ;;  %v697_v58 = vld [vmem:[%s5042_s28 + $0x1750] sm:$0xff]  ;;  %v699_v59 = vld [vmem:[%s5042_s28 + $0x1758] sm:$0xff] }
  0x92   : > { %692 = vst [vmem:[%s5050_s29 + $0x7b8] sm:$0xff] %v691_v55  ;;  %694 = vst [vmem:[%s5050_s29 + $0x7c0] sm:$0xff] %v693_v56  ;;  %v701_v60 = vld [vmem:[%s5042_s28 + $0x17a0] sm:$0xff]  ;;  %v703_v61 = vld [vmem:[%s5042_s28 + $0x17a8] sm:$0xff] }
  0x93   : > { %696 = vst [vmem:[%s5050_s29 + $0x7c8] sm:$0xff] %v695_v57  ;;  %698 = vst [vmem:[%s5050_s29 + $0x7d0] sm:$0xff] %v697_v58  ;;  %v705_v62 = vld [vmem:[%s5042_s28 + $0x17b0] sm:$0xff]  ;;  %v707_v63 = vld [vmem:[%s5042_s28 + $0x17b8] sm:$0xff] }
  0x94   : > { %700 = vst [vmem:[%s5050_s29 + $0x7d8] sm:$0xff] %v699_v59  ;;  %702 = vst [vmem:[%s5050_s29 + $0x7e0] sm:$0xff] %v701_v60  ;;  %v709_v0 = vld [vmem:[%s5042_s28 + $0x1800] sm:$0xff]  ;;  %v711_v1 = vld [vmem:[%s5042_s28 + $0x1808] sm:$0xff] }
  0x95   : > { %704 = vst [vmem:[%s5050_s29 + $0x7e8] sm:$0xff] %v703_v61  ;;  %706 = vst [vmem:[%s5050_s29 + $0x7f0] sm:$0xff] %v705_v62  ;;  %v713_v2 = vld [vmem:[%s5042_s28 + $0x1810] sm:$0xff]  ;;  %v715_v3 = vld [vmem:[%s5042_s28 + $0x1818] sm:$0xff] }
  0x96   : > { %708 = vst [vmem:[%s5050_s29 + $0x7f8] sm:$0xff] %v707_v63  ;;  %710 = vst [vmem:[%s5050_s29 + $0x800] sm:$0xff] %v709_v0  ;;  %v717_v4 = vld [vmem:[%s5042_s28 + $0x1860] sm:$0xff]  ;;  %v719_v5 = vld [vmem:[%s5042_s28 + $0x1868] sm:$0xff] }
  0x97   : > { %712 = vst [vmem:[%s5050_s29 + $0x808] sm:$0xff] %v711_v1  ;;  %714 = vst [vmem:[%s5050_s29 + $0x810] sm:$0xff] %v713_v2  ;;  %v721_v6 = vld [vmem:[%s5042_s28 + $0x1870] sm:$0xff]  ;;  %v723_v7 = vld [vmem:[%s5042_s28 + $0x1878] sm:$0xff] }
  0x98   : > { %716 = vst [vmem:[%s5050_s29 + $0x818] sm:$0xff] %v715_v3  ;;  %718 = vst [vmem:[%s5050_s29 + $0x820] sm:$0xff] %v717_v4  ;;  %v725_v8 = vld [vmem:[%s5042_s28 + $0x18c0] sm:$0xff]  ;;  %v727_v9 = vld [vmem:[%s5042_s28 + $0x18c8] sm:$0xff] }
  0x99   : > { %720 = vst [vmem:[%s5050_s29 + $0x828] sm:$0xff] %v719_v5  ;;  %722 = vst [vmem:[%s5050_s29 + $0x830] sm:$0xff] %v721_v6  ;;  %v729_v10 = vld [vmem:[%s5042_s28 + $0x18d0] sm:$0xff]  ;;  %v731_v11 = vld [vmem:[%s5042_s28 + $0x18d8] sm:$0xff] }
  0x9a   : > { %724 = vst [vmem:[%s5050_s29 + $0x838] sm:$0xff] %v723_v7  ;;  %726 = vst [vmem:[%s5050_s29 + $0x840] sm:$0xff] %v725_v8  ;;  %v733_v12 = vld [vmem:[%s5042_s28 + $0x1920] sm:$0xff]  ;;  %v735_v13 = vld [vmem:[%s5042_s28 + $0x1928] sm:$0xff] }
  0x9b   : > { %728 = vst [vmem:[%s5050_s29 + $0x848] sm:$0xff] %v727_v9  ;;  %730 = vst [vmem:[%s5050_s29 + $0x850] sm:$0xff] %v729_v10  ;;  %v737_v14 = vld [vmem:[%s5042_s28 + $0x1930] sm:$0xff]  ;;  %v739_v15 = vld [vmem:[%s5042_s28 + $0x1938] sm:$0xff] }
  0x9c   : > { %732 = vst [vmem:[%s5050_s29 + $0x858] sm:$0xff] %v731_v11  ;;  %734 = vst [vmem:[%s5050_s29 + $0x860] sm:$0xff] %v733_v12  ;;  %v741_v16 = vld [vmem:[%s5042_s28 + $0x1980] sm:$0xff]  ;;  %v743_v17 = vld [vmem:[%s5042_s28 + $0x1988] sm:$0xff] }
  0x9d   : > { %736 = vst [vmem:[%s5050_s29 + $0x868] sm:$0xff] %v735_v13  ;;  %738 = vst [vmem:[%s5050_s29 + $0x870] sm:$0xff] %v737_v14  ;;  %v745_v18 = vld [vmem:[%s5042_s28 + $0x1990] sm:$0xff]  ;;  %v747_v19 = vld [vmem:[%s5042_s28 + $0x1998] sm:$0xff] }
  0x9e   : > { %740 = vst [vmem:[%s5050_s29 + $0x878] sm:$0xff] %v739_v15  ;;  %742 = vst [vmem:[%s5050_s29 + $0x880] sm:$0xff] %v741_v16  ;;  %v749_v20 = vld [vmem:[%s5042_s28 + $0x19e0] sm:$0xff]  ;;  %v751_v21 = vld [vmem:[%s5042_s28 + $0x19e8] sm:$0xff] }
  0x9f   : > { %744 = vst [vmem:[%s5050_s29 + $0x888] sm:$0xff] %v743_v17  ;;  %746 = vst [vmem:[%s5050_s29 + $0x890] sm:$0xff] %v745_v18  ;;  %v753_v22 = vld [vmem:[%s5042_s28 + $0x19f0] sm:$0xff]  ;;  %v755_v23 = vld [vmem:[%s5042_s28 + $0x19f8] sm:$0xff] }
  0xa0   : > { %748 = vst [vmem:[%s5050_s29 + $0x898] sm:$0xff] %v747_v19  ;;  %750 = vst [vmem:[%s5050_s29 + $0x8a0] sm:$0xff] %v749_v20  ;;  %v757_v24 = vld [vmem:[%s5042_s28 + $0x1a40] sm:$0xff]  ;;  %v759_v25 = vld [vmem:[%s5042_s28 + $0x1a48] sm:$0xff] }
  0xa1   : > { %752 = vst [vmem:[%s5050_s29 + $0x8a8] sm:$0xff] %v751_v21  ;;  %754 = vst [vmem:[%s5050_s29 + $0x8b0] sm:$0xff] %v753_v22  ;;  %v761_v26 = vld [vmem:[%s5042_s28 + $0x1a50] sm:$0xff]  ;;  %v763_v27 = vld [vmem:[%s5042_s28 + $0x1a58] sm:$0xff] }
  0xa2   : > { %756 = vst [vmem:[%s5050_s29 + $0x8b8] sm:$0xff] %v755_v23  ;;  %758 = vst [vmem:[%s5050_s29 + $0x8c0] sm:$0xff] %v757_v24  ;;  %v765_v28 = vld [vmem:[%s5042_s28 + $0x1aa0] sm:$0xff]  ;;  %v767_v29 = vld [vmem:[%s5042_s28 + $0x1aa8] sm:$0xff] }
  0xa3   : > { %760 = vst [vmem:[%s5050_s29 + $0x8c8] sm:$0xff] %v759_v25  ;;  %762 = vst [vmem:[%s5050_s29 + $0x8d0] sm:$0xff] %v761_v26  ;;  %v769_v30 = vld [vmem:[%s5042_s28 + $0x1ab0] sm:$0xff]  ;;  %v771_v31 = vld [vmem:[%s5042_s28 + $0x1ab8] sm:$0xff] }
  0xa4   : > { %764 = vst [vmem:[%s5050_s29 + $0x8d8] sm:$0xff] %v763_v27  ;;  %766 = vst [vmem:[%s5050_s29 + $0x8e0] sm:$0xff] %v765_v28  ;;  %v773_v32 = vld [vmem:[%s5042_s28 + $0x1b00] sm:$0xff]  ;;  %v775_v33 = vld [vmem:[%s5042_s28 + $0x1b08] sm:$0xff] }
  0xa5   : > { %768 = vst [vmem:[%s5050_s29 + $0x8e8] sm:$0xff] %v767_v29  ;;  %770 = vst [vmem:[%s5050_s29 + $0x8f0] sm:$0xff] %v769_v30  ;;  %v777_v34 = vld [vmem:[%s5042_s28 + $0x1b10] sm:$0xff]  ;;  %v779_v35 = vld [vmem:[%s5042_s28 + $0x1b18] sm:$0xff] }
  0xa6   : > { %772 = vst [vmem:[%s5050_s29 + $0x8f8] sm:$0xff] %v771_v31  ;;  %774 = vst [vmem:[%s5050_s29 + $0x900] sm:$0xff] %v773_v32  ;;  %v781_v36 = vld [vmem:[%s5042_s28 + $0x1b60] sm:$0xff]  ;;  %v783_v37 = vld [vmem:[%s5042_s28 + $0x1b68] sm:$0xff] }
  0xa7   : > { %776 = vst [vmem:[%s5050_s29 + $0x908] sm:$0xff] %v775_v33  ;;  %778 = vst [vmem:[%s5050_s29 + $0x910] sm:$0xff] %v777_v34  ;;  %v785_v38 = vld [vmem:[%s5042_s28 + $0x1b70] sm:$0xff]  ;;  %v787_v39 = vld [vmem:[%s5042_s28 + $0x1b78] sm:$0xff] }
  0xa8   : > { %780 = vst [vmem:[%s5050_s29 + $0x918] sm:$0xff] %v779_v35  ;;  %782 = vst [vmem:[%s5050_s29 + $0x920] sm:$0xff] %v781_v36  ;;  %v789_v40 = vld [vmem:[%s5042_s28 + $0x1bc0] sm:$0xff]  ;;  %v791_v41 = vld [vmem:[%s5042_s28 + $0x1bc8] sm:$0xff] }
  0xa9   : > { %784 = vst [vmem:[%s5050_s29 + $0x928] sm:$0xff] %v783_v37  ;;  %786 = vst [vmem:[%s5050_s29 + $0x930] sm:$0xff] %v785_v38  ;;  %v793_v42 = vld [vmem:[%s5042_s28 + $0x1bd0] sm:$0xff]  ;;  %v795_v43 = vld [vmem:[%s5042_s28 + $0x1bd8] sm:$0xff] }
  0xaa   : > { %788 = vst [vmem:[%s5050_s29 + $0x938] sm:$0xff] %v787_v39  ;;  %790 = vst [vmem:[%s5050_s29 + $0x940] sm:$0xff] %v789_v40  ;;  %v797_v44 = vld [vmem:[%s5042_s28 + $0x1c20] sm:$0xff]  ;;  %v799_v45 = vld [vmem:[%s5042_s28 + $0x1c28] sm:$0xff] }
  0xab   : > { %792 = vst [vmem:[%s5050_s29 + $0x948] sm:$0xff] %v791_v41  ;;  %794 = vst [vmem:[%s5050_s29 + $0x950] sm:$0xff] %v793_v42  ;;  %v801_v46 = vld [vmem:[%s5042_s28 + $0x1c30] sm:$0xff]  ;;  %v803_v47 = vld [vmem:[%s5042_s28 + $0x1c38] sm:$0xff] }
  0xac   : > { %796 = vst [vmem:[%s5050_s29 + $0x958] sm:$0xff] %v795_v43  ;;  %798 = vst [vmem:[%s5050_s29 + $0x960] sm:$0xff] %v797_v44  ;;  %v805_v48 = vld [vmem:[%s5042_s28 + $0x1c80] sm:$0xff]  ;;  %v807_v49 = vld [vmem:[%s5042_s28 + $0x1c88] sm:$0xff] }
  0xad   : > { %800 = vst [vmem:[%s5050_s29 + $0x968] sm:$0xff] %v799_v45  ;;  %802 = vst [vmem:[%s5050_s29 + $0x970] sm:$0xff] %v801_v46  ;;  %v809_v50 = vld [vmem:[%s5042_s28 + $0x1c90] sm:$0xff]  ;;  %v811_v51 = vld [vmem:[%s5042_s28 + $0x1c98] sm:$0xff] }
  0xae   : > { %804 = vst [vmem:[%s5050_s29 + $0x978] sm:$0xff] %v803_v47  ;;  %806 = vst [vmem:[%s5050_s29 + $0x980] sm:$0xff] %v805_v48  ;;  %v813_v52 = vld [vmem:[%s5042_s28 + $0x1ce0] sm:$0xff]  ;;  %v815_v53 = vld [vmem:[%s5042_s28 + $0x1ce8] sm:$0xff] }
  0xaf   : > { %808 = vst [vmem:[%s5050_s29 + $0x988] sm:$0xff] %v807_v49  ;;  %810 = vst [vmem:[%s5050_s29 + $0x990] sm:$0xff] %v809_v50  ;;  %v817_v54 = vld [vmem:[%s5042_s28 + $0x1cf0] sm:$0xff]  ;;  %v819_v55 = vld [vmem:[%s5042_s28 + $0x1cf8] sm:$0xff] }
  0xb0   : > { %812 = vst [vmem:[%s5050_s29 + $0x998] sm:$0xff] %v811_v51  ;;  %814 = vst [vmem:[%s5050_s29 + $0x9a0] sm:$0xff] %v813_v52  ;;  %v821_v56 = vld [vmem:[%s5042_s28 + $0x1d40] sm:$0xff]  ;;  %v823_v57 = vld [vmem:[%s5042_s28 + $0x1d48] sm:$0xff] }
  0xb1   : > { %816 = vst [vmem:[%s5050_s29 + $0x9a8] sm:$0xff] %v815_v53  ;;  %818 = vst [vmem:[%s5050_s29 + $0x9b0] sm:$0xff] %v817_v54  ;;  %v825_v58 = vld [vmem:[%s5042_s28 + $0x1d50] sm:$0xff]  ;;  %v827_v59 = vld [vmem:[%s5042_s28 + $0x1d58] sm:$0xff] }
  0xb2   : > { %820 = vst [vmem:[%s5050_s29 + $0x9b8] sm:$0xff] %v819_v55  ;;  %822 = vst [vmem:[%s5050_s29 + $0x9c0] sm:$0xff] %v821_v56  ;;  %v829_v60 = vld [vmem:[%s5042_s28 + $0x1da0] sm:$0xff]  ;;  %v831_v61 = vld [vmem:[%s5042_s28 + $0x1da8] sm:$0xff] }
  0xb3   : > { %824 = vst [vmem:[%s5050_s29 + $0x9c8] sm:$0xff] %v823_v57  ;;  %826 = vst [vmem:[%s5050_s29 + $0x9d0] sm:$0xff] %v825_v58  ;;  %v833_v62 = vld [vmem:[%s5042_s28 + $0x1db0] sm:$0xff]  ;;  %v835_v63 = vld [vmem:[%s5042_s28 + $0x1db8] sm:$0xff] }
  0xb4   : > { %828 = vst [vmem:[%s5050_s29 + $0x9d8] sm:$0xff] %v827_v59  ;;  %830 = vst [vmem:[%s5050_s29 + $0x9e0] sm:$0xff] %v829_v60  ;;  %v837_v0 = vld [vmem:[%s5042_s28 + $0x1e00] sm:$0xff]  ;;  %v839_v1 = vld [vmem:[%s5042_s28 + $0x1e08] sm:$0xff] }
  0xb5   : > { %832 = vst [vmem:[%s5050_s29 + $0x9e8] sm:$0xff] %v831_v61  ;;  %834 = vst [vmem:[%s5050_s29 + $0x9f0] sm:$0xff] %v833_v62  ;;  %v841_v2 = vld [vmem:[%s5042_s28 + $0x1e10] sm:$0xff]  ;;  %v843_v3 = vld [vmem:[%s5042_s28 + $0x1e18] sm:$0xff] }
  0xb6   : > { %836 = vst [vmem:[%s5050_s29 + $0x9f8] sm:$0xff] %v835_v63  ;;  %838 = vst [vmem:[%s5050_s29 + $0xa00] sm:$0xff] %v837_v0  ;;  %v845_v4 = vld [vmem:[%s5042_s28 + $0x1e60] sm:$0xff]  ;;  %v847_v5 = vld [vmem:[%s5042_s28 + $0x1e68] sm:$0xff] }
  0xb7   : > { %840 = vst [vmem:[%s5050_s29 + $0xa08] sm:$0xff] %v839_v1  ;;  %842 = vst [vmem:[%s5050_s29 + $0xa10] sm:$0xff] %v841_v2  ;;  %v849_v6 = vld [vmem:[%s5042_s28 + $0x1e70] sm:$0xff]  ;;  %v851_v7 = vld [vmem:[%s5042_s28 + $0x1e78] sm:$0xff] }
  0xb8   : > { %844 = vst [vmem:[%s5050_s29 + $0xa18] sm:$0xff] %v843_v3  ;;  %846 = vst [vmem:[%s5050_s29 + $0xa20] sm:$0xff] %v845_v4  ;;  %v853_v8 = vld [vmem:[%s5042_s28 + $0x1ec0] sm:$0xff]  ;;  %v855_v9 = vld [vmem:[%s5042_s28 + $0x1ec8] sm:$0xff] }
  0xb9   : > { %848 = vst [vmem:[%s5050_s29 + $0xa28] sm:$0xff] %v847_v5  ;;  %850 = vst [vmem:[%s5050_s29 + $0xa30] sm:$0xff] %v849_v6  ;;  %v857_v10 = vld [vmem:[%s5042_s28 + $0x1ed0] sm:$0xff]  ;;  %v859_v11 = vld [vmem:[%s5042_s28 + $0x1ed8] sm:$0xff] }
  0xba   : > { %852 = vst [vmem:[%s5050_s29 + $0xa38] sm:$0xff] %v851_v7  ;;  %854 = vst [vmem:[%s5050_s29 + $0xa40] sm:$0xff] %v853_v8  ;;  %v861_v12 = vld [vmem:[%s5042_s28 + $0x1f20] sm:$0xff]  ;;  %v863_v13 = vld [vmem:[%s5042_s28 + $0x1f28] sm:$0xff] }
  0xbb   : > { %856 = vst [vmem:[%s5050_s29 + $0xa48] sm:$0xff] %v855_v9  ;;  %858 = vst [vmem:[%s5050_s29 + $0xa50] sm:$0xff] %v857_v10  ;;  %v865_v14 = vld [vmem:[%s5042_s28 + $0x1f30] sm:$0xff]  ;;  %v867_v15 = vld [vmem:[%s5042_s28 + $0x1f38] sm:$0xff] }
  0xbc   : > { %860 = vst [vmem:[%s5050_s29 + $0xa58] sm:$0xff] %v859_v11  ;;  %862 = vst [vmem:[%s5050_s29 + $0xa60] sm:$0xff] %v861_v12  ;;  %v869_v16 = vld [vmem:[%s5042_s28 + $0x1f80] sm:$0xff]  ;;  %v871_v17 = vld [vmem:[%s5042_s28 + $0x1f88] sm:$0xff] }
  0xbd   : > { %864 = vst [vmem:[%s5050_s29 + $0xa68] sm:$0xff] %v863_v13  ;;  %866 = vst [vmem:[%s5050_s29 + $0xa70] sm:$0xff] %v865_v14  ;;  %v873_v18 = vld [vmem:[%s5042_s28 + $0x1f90] sm:$0xff]  ;;  %v875_v19 = vld [vmem:[%s5042_s28 + $0x1f98] sm:$0xff] }
  0xbe   : > { %868 = vst [vmem:[%s5050_s29 + $0xa78] sm:$0xff] %v867_v15  ;;  %870 = vst [vmem:[%s5050_s29 + $0xa80] sm:$0xff] %v869_v16  ;;  %v877_v20 = vld [vmem:[%s5042_s28 + $0x1fe0] sm:$0xff]  ;;  %v879_v21 = vld [vmem:[%s5042_s28 + $0x1fe8] sm:$0xff] }
  0xbf   : > { %872 = vst [vmem:[%s5050_s29 + $0xa88] sm:$0xff] %v871_v17  ;;  %874 = vst [vmem:[%s5050_s29 + $0xa90] sm:$0xff] %v873_v18  ;;  %v881_v22 = vld [vmem:[%s5042_s28 + $0x1ff0] sm:$0xff]  ;;  %v883_v23 = vld [vmem:[%s5042_s28 + $0x1ff8] sm:$0xff] }
  0xc0   : > { %876 = vst [vmem:[%s5050_s29 + $0xa98] sm:$0xff] %v875_v19  ;;  %878 = vst [vmem:[%s5050_s29 + $0xaa0] sm:$0xff] %v877_v20  ;;  %v885_v24 = vld [vmem:[%s5042_s28 + $0x2040] sm:$0xff]  ;;  %v887_v25 = vld [vmem:[%s5042_s28 + $0x2048] sm:$0xff] }
  0xc1   : > { %880 = vst [vmem:[%s5050_s29 + $0xaa8] sm:$0xff] %v879_v21  ;;  %882 = vst [vmem:[%s5050_s29 + $0xab0] sm:$0xff] %v881_v22  ;;  %v889_v26 = vld [vmem:[%s5042_s28 + $0x2050] sm:$0xff]  ;;  %v891_v27 = vld [vmem:[%s5042_s28 + $0x2058] sm:$0xff] }
  0xc2   : > { %884 = vst [vmem:[%s5050_s29 + $0xab8] sm:$0xff] %v883_v23  ;;  %886 = vst [vmem:[%s5050_s29 + $0xac0] sm:$0xff] %v885_v24  ;;  %v893_v28 = vld [vmem:[%s5042_s28 + $0x20a0] sm:$0xff]  ;;  %v895_v29 = vld [vmem:[%s5042_s28 + $0x20a8] sm:$0xff] }
  0xc3   : > { %888 = vst [vmem:[%s5050_s29 + $0xac8] sm:$0xff] %v887_v25  ;;  %890 = vst [vmem:[%s5050_s29 + $0xad0] sm:$0xff] %v889_v26  ;;  %v897_v30 = vld [vmem:[%s5042_s28 + $0x20b0] sm:$0xff]  ;;  %v899_v31 = vld [vmem:[%s5042_s28 + $0x20b8] sm:$0xff] }
  0xc4   : > { %892 = vst [vmem:[%s5050_s29 + $0xad8] sm:$0xff] %v891_v27  ;;  %894 = vst [vmem:[%s5050_s29 + $0xae0] sm:$0xff] %v893_v28  ;;  %v901_v32 = vld [vmem:[%s5042_s28 + $0x2100] sm:$0xff]  ;;  %v903_v33 = vld [vmem:[%s5042_s28 + $0x2108] sm:$0xff] }
  0xc5   : > { %896 = vst [vmem:[%s5050_s29 + $0xae8] sm:$0xff] %v895_v29  ;;  %898 = vst [vmem:[%s5050_s29 + $0xaf0] sm:$0xff] %v897_v30  ;;  %v905_v34 = vld [vmem:[%s5042_s28 + $0x2110] sm:$0xff]  ;;  %v907_v35 = vld [vmem:[%s5042_s28 + $0x2118] sm:$0xff] }
  0xc6   : > { %900 = vst [vmem:[%s5050_s29 + $0xaf8] sm:$0xff] %v899_v31  ;;  %902 = vst [vmem:[%s5050_s29 + $0xb00] sm:$0xff] %v901_v32  ;;  %v909_v36 = vld [vmem:[%s5042_s28 + $0x2160] sm:$0xff]  ;;  %v911_v37 = vld [vmem:[%s5042_s28 + $0x2168] sm:$0xff] }
  0xc7   : > { %904 = vst [vmem:[%s5050_s29 + $0xb08] sm:$0xff] %v903_v33  ;;  %906 = vst [vmem:[%s5050_s29 + $0xb10] sm:$0xff] %v905_v34  ;;  %v913_v38 = vld [vmem:[%s5042_s28 + $0x2170] sm:$0xff]  ;;  %v915_v39 = vld [vmem:[%s5042_s28 + $0x2178] sm:$0xff] }
  0xc8   : > { %908 = vst [vmem:[%s5050_s29 + $0xb18] sm:$0xff] %v907_v35  ;;  %910 = vst [vmem:[%s5050_s29 + $0xb20] sm:$0xff] %v909_v36  ;;  %v917_v40 = vld [vmem:[%s5042_s28 + $0x21c0] sm:$0xff]  ;;  %v919_v41 = vld [vmem:[%s5042_s28 + $0x21c8] sm:$0xff] }
  0xc9   : > { %912 = vst [vmem:[%s5050_s29 + $0xb28] sm:$0xff] %v911_v37  ;;  %914 = vst [vmem:[%s5050_s29 + $0xb30] sm:$0xff] %v913_v38  ;;  %v921_v42 = vld [vmem:[%s5042_s28 + $0x21d0] sm:$0xff]  ;;  %v923_v43 = vld [vmem:[%s5042_s28 + $0x21d8] sm:$0xff] }
  0xca   : > { %916 = vst [vmem:[%s5050_s29 + $0xb38] sm:$0xff] %v915_v39  ;;  %918 = vst [vmem:[%s5050_s29 + $0xb40] sm:$0xff] %v917_v40  ;;  %v925_v44 = vld [vmem:[%s5042_s28 + $0x2220] sm:$0xff]  ;;  %v927_v45 = vld [vmem:[%s5042_s28 + $0x2228] sm:$0xff] }
  0xcb   : > { %920 = vst [vmem:[%s5050_s29 + $0xb48] sm:$0xff] %v919_v41  ;;  %922 = vst [vmem:[%s5050_s29 + $0xb50] sm:$0xff] %v921_v42  ;;  %v929_v46 = vld [vmem:[%s5042_s28 + $0x2230] sm:$0xff]  ;;  %v931_v47 = vld [vmem:[%s5042_s28 + $0x2238] sm:$0xff] }
  0xcc   : > { %924 = vst [vmem:[%s5050_s29 + $0xb58] sm:$0xff] %v923_v43  ;;  %926 = vst [vmem:[%s5050_s29 + $0xb60] sm:$0xff] %v925_v44  ;;  %v933_v48 = vld [vmem:[%s5042_s28 + $0x2280] sm:$0xff]  ;;  %v935_v49 = vld [vmem:[%s5042_s28 + $0x2288] sm:$0xff] }
  0xcd   : > { %928 = vst [vmem:[%s5050_s29 + $0xb68] sm:$0xff] %v927_v45  ;;  %930 = vst [vmem:[%s5050_s29 + $0xb70] sm:$0xff] %v929_v46  ;;  %v937_v50 = vld [vmem:[%s5042_s28 + $0x2290] sm:$0xff]  ;;  %v939_v51 = vld [vmem:[%s5042_s28 + $0x2298] sm:$0xff] }
  0xce   : > { %932 = vst [vmem:[%s5050_s29 + $0xb78] sm:$0xff] %v931_v47  ;;  %934 = vst [vmem:[%s5050_s29 + $0xb80] sm:$0xff] %v933_v48  ;;  %v941_v52 = vld [vmem:[%s5042_s28 + $0x22e0] sm:$0xff]  ;;  %v943_v53 = vld [vmem:[%s5042_s28 + $0x22e8] sm:$0xff] }
  0xcf   : > { %936 = vst [vmem:[%s5050_s29 + $0xb88] sm:$0xff] %v935_v49  ;;  %938 = vst [vmem:[%s5050_s29 + $0xb90] sm:$0xff] %v937_v50  ;;  %v945_v54 = vld [vmem:[%s5042_s28 + $0x22f0] sm:$0xff]  ;;  %v947_v55 = vld [vmem:[%s5042_s28 + $0x22f8] sm:$0xff] }
  0xd0   : > { %940 = vst [vmem:[%s5050_s29 + $0xb98] sm:$0xff] %v939_v51  ;;  %942 = vst [vmem:[%s5050_s29 + $0xba0] sm:$0xff] %v941_v52  ;;  %v949_v56 = vld [vmem:[%s5042_s28 + $0x2340] sm:$0xff]  ;;  %v951_v57 = vld [vmem:[%s5042_s28 + $0x2348] sm:$0xff] }
  0xd1   : > { %944 = vst [vmem:[%s5050_s29 + $0xba8] sm:$0xff] %v943_v53  ;;  %946 = vst [vmem:[%s5050_s29 + $0xbb0] sm:$0xff] %v945_v54  ;;  %v953_v58 = vld [vmem:[%s5042_s28 + $0x2350] sm:$0xff]  ;;  %v955_v59 = vld [vmem:[%s5042_s28 + $0x2358] sm:$0xff] }
  0xd2   : > { %948 = vst [vmem:[%s5050_s29 + $0xbb8] sm:$0xff] %v947_v55  ;;  %950 = vst [vmem:[%s5050_s29 + $0xbc0] sm:$0xff] %v949_v56  ;;  %v957_v60 = vld [vmem:[%s5042_s28 + $0x23a0] sm:$0xff]  ;;  %v959_v61 = vld [vmem:[%s5042_s28 + $0x23a8] sm:$0xff] }
  0xd3   : > { %952 = vst [vmem:[%s5050_s29 + $0xbc8] sm:$0xff] %v951_v57  ;;  %954 = vst [vmem:[%s5050_s29 + $0xbd0] sm:$0xff] %v953_v58  ;;  %v961_v62 = vld [vmem:[%s5042_s28 + $0x23b0] sm:$0xff]  ;;  %v963_v63 = vld [vmem:[%s5042_s28 + $0x23b8] sm:$0xff] }
  0xd4   : > { %956 = vst [vmem:[%s5050_s29 + $0xbd8] sm:$0xff] %v955_v59  ;;  %958 = vst [vmem:[%s5050_s29 + $0xbe0] sm:$0xff] %v957_v60 }
  0xd5   : > { %960 = vst [vmem:[%s5050_s29 + $0xbe8] sm:$0xff] %v959_v61  ;;  %962 = vst [vmem:[%s5050_s29 + $0xbf0] sm:$0xff] %v961_v62 }
  0xd6   : > { %964 = vst [vmem:[%s5050_s29 + $0xbf8] sm:$0xff] %v963_v63 }
  0xd7 PF: > { %p4397_p8 = scmp.ge.s32.totalorder %s4972_s16, 1  ;;  %p977_p9 = scmp.lt.s32.totalorder %s4972_s16, 4 }
  0xd9   : > { %p978_p10 = pnand %p4397_p8, %p977_p9 }
  0xda   : > { %s984_s30 = sand.u32 (!%p978_p10), 1, %s4956_s12   ;;  %v4887_v0 = vld [vmem:[%s6418_s0 + $0x4] ss:$24 sps:$4 sm:$0xff] (!%p978_p10)   ;;  %s4399_s11 = sshll.u32 (!%p978_p10), %s4964_s14, 3 }
  0xdb   : > { %981 = sbr.rel (%p978_p10) target bundleno = 870 (0x366), region = 51  ;;  %3449 = vmatprep.mubr.bf16.mxu0 (!%p978_p10), %v4887_v0  ;;  %3578 = vmatprep.mubr.bf16.mxu1 (!%p978_p10), %v4887_v0  ;;  %p1035_p11 = scmp.lt.s32.totalorder (!%p978_p10), %s4399_s11, 23 }
  0xdc   : > { %s4846_s6 = smul.u32 (!%p978_p10), 3072, %s984_s30  ;;  %s4398_s24 = sshll.u32 (!%p978_p10), %s984_s30, 6 }
  0xdd   : > { %s6313_s12 = scalar_lea.vmem (!%p978_p10), [#allocation4], %s4398_s24 }
  0xde   : > { %s5822_s7 = scalar_lea.vmem (!%p978_p10), [#allocation3], %s4846_s6 }
  0xdf   : > { %v1083_v1 = vld [vmem:[%s5822_s7] sm:$0xff] (!%p978_p10)  ;;  %v1084_v3 = vld [vmem:[%s5822_s7 + $0x8] sm:$0xff] (!%p978_p10) }
  0xe0   : > { %v1087_v2 = vld [vmem:[%s5822_s7 + $0x20] sm:$0xff] (!%p978_p10)  ;;  %v1088_v5 = vld [vmem:[%s5822_s7 + $0x28] sm:$0xff] (!%p978_p10) }
  0xe1   : > { %v4407_v4 = vcombine.high (!%p978_p10), %v1083_v1, %v1087_v2  ;;  %v4406_v6 = vcombine.low (!%p978_p10), %v1083_v1, %v1087_v2  ;;  %v1091_v7 = vld [vmem:[%s5822_s7 + $0x40] sm:$0xff] (!%p978_p10)  ;;  %v4409_v9 = vcombine.high (!%p978_p10), %v1084_v3, %v1088_v5  ;;  %v4408_v10 = vcombine.low (!%p978_p10), %v1084_v3, %v1088_v5  ;;  %v1092_v12 = vld [vmem:[%s5822_s7 + $0x48] sm:$0xff] (!%p978_p10) }
  0xe2   : > { %v1095_v8 = vld [vmem:[%s5822_s7 + $0x60] sm:$0xff]  ;;  %v1096_v13 = vld [vmem:[%s5822_s7 + $0x68] sm:$0xff]  ;;  %s6430_s11 = smov (!%p1035_p11, %s4399_s11), 23  ;;  %s4812_s30 = sshll.u32 (%p5029_p6), %s4964_s14, 5 }
  0xe3   : > { %v4415_v11 = vcombine.high %v1091_v7, %v1095_v8  ;;  %v1099_v14 = vld [vmem:[%s5822_s7 + $0x80] sm:$0xff]  ;;  %3417 = vmatprep.subr.bf16.mxu0 %v4407_v4  ;;  %v4417_v15 = vcombine.high %v1092_v12, %v1096_v13  ;;  %v1100_v17 = vld [vmem:[%s5822_s7 + $0x88] sm:$0xff]  ;;  %3546 = vmatprep.subr.bf16.mxu1 %v4409_v9  ;;  %v4414_v19 = vcombine.low %v1091_v7, %v1095_v8  ;;  %s1037_s23 = scalar_lea.vmem %s6420_s2, %s6430_s11  ;;  %s4254_s27 = scalar_lea.vmem (%p5029_p6), %s6421_s3, %s4812_s30 }
  0xe4   : > { %v1103_v16 = vld [vmem:[%s5822_s7 + $0xa0] sm:$0xff]  ;;  %v1104_v18 = vld [vmem:[%s5822_s7 + $0xa8] sm:$0xff]  ;;  %3418 = vmatpush1.bf16.msra.mxu0 %v4406_v6  ;;  %3547 = vmatpush1.bf16.msra.mxu1 %v4408_v10  ;;  %v4416_v20 = vcombine.low %v1092_v12, %v1096_v13 }
  0xe5   : > { %3419 = vmatprep.subr.bf16.mxu0 %v4415_v11  ;;  %v4423_v21 = vcombine.high %v1099_v14, %v1103_v16  ;;  %3548 = vmatprep.subr.bf16.mxu1 %v4417_v15  ;;  %v4425_v22 = vcombine.high %v1100_v17, %v1104_v18  ;;  %v1107_v23 = vld [vmem:[%s5822_s7 + $0xc0] sm:$0xff]  ;;  %v1108_v25 = vld [vmem:[%s5822_s7 + $0xc8] sm:$0xff]  ;;  %v4422_v27 = vcombine.low %v1099_v14, %v1103_v16 }
  0xe6   : > { %v1111_v24 = vld [vmem:[%s5822_s7 + $0xe0] sm:$0xff]  ;;  %v1112_v26 = vld [vmem:[%s5822_s7 + $0xe8] sm:$0xff]  ;;  %v4424_v28 = vcombine.low %v1100_v17, %v1104_v18 }
  0xe7   : > { %v4431_v29 = vcombine.high %v1107_v23, %v1111_v24  ;;  %v4433_v30 = vcombine.high %v1108_v25, %v1112_v26  ;;  %v1115_v31 = vld [vmem:[%s5822_s7 + $0x100] sm:$0xff]  ;;  %v1116_v33 = vld [vmem:[%s5822_s7 + $0x108] sm:$0xff]  ;;  %v4430_v35 = vcombine.low %v1107_v23, %v1111_v24  ;;  %v4432_v36 = vcombine.low %v1108_v25, %v1112_v26 }
  0xe8   : > { %3420 = vmatpush1.bf16.msra.mxu0 %v4414_v19  ;;  %3549 = vmatpush1.bf16.msra.mxu1 %v4416_v20  ;;  %v1119_v32 = vld [vmem:[%s5822_s7 + $0x120] sm:$0xff]  ;;  %v1120_v34 = vld [vmem:[%s5822_s7 + $0x128] sm:$0xff] }
  0xe9   : > { %3421 = vmatprep.subr.bf16.mxu0 %v4423_v21  ;;  %3550 = vmatprep.subr.bf16.mxu1 %v4425_v22  ;;  %v4439_v37 = vcombine.high %v1115_v31, %v1119_v32  ;;  %v4441_v38 = vcombine.high %v1116_v33, %v1120_v34  ;;  %v1123_v39 = vld [vmem:[%s5822_s7 + $0x140] sm:$0xff]  ;;  %v1124_v41 = vld [vmem:[%s5822_s7 + $0x148] sm:$0xff]  ;;  %v4438_v43 = vcombine.low %v1115_v31, %v1119_v32 }
  0xea   : > { %v1127_v40 = vld [vmem:[%s5822_s7 + $0x160] sm:$0xff]  ;;  %v1128_v42 = vld [vmem:[%s5822_s7 + $0x168] sm:$0xff]  ;;  %v4440_v44 = vcombine.low %v1116_v33, %v1120_v34 }
  0xeb   : > { %v4447_v45 = vcombine.high %v1123_v39, %v1127_v40  ;;  %v4449_v46 = vcombine.high %v1124_v41, %v1128_v42  ;;  %v1131_v47 = vld [vmem:[%s5822_s7 + $0x180] sm:$0xff]  ;;  %v1132_v49 = vld [vmem:[%s5822_s7 + $0x188] sm:$0xff]  ;;  %v4446_v51 = vcombine.low %v1123_v39, %v1127_v40  ;;  %v4448_v52 = vcombine.low %v1124_v41, %v1128_v42 }
  0xec   : > { %3422 = vmatpush1.bf16.msra.mxu0 %v4422_v27  ;;  %3551 = vmatpush1.bf16.msra.mxu1 %v4424_v28  ;;  %v1135_v48 = vld [vmem:[%s5822_s7 + $0x1a0] sm:$0xff]  ;;  %v1136_v50 = vld [vmem:[%s5822_s7 + $0x1a8] sm:$0xff] }
  0xed   : > { %3423 = vmatprep.subr.bf16.mxu0 %v4431_v29  ;;  %3552 = vmatprep.subr.bf16.mxu1 %v4433_v30  ;;  %v4455_v53 = vcombine.high %v1131_v47, %v1135_v48  ;;  %v4457_v54 = vcombine.high %v1132_v49, %v1136_v50  ;;  %v1139_v55 = vld [vmem:[%s5822_s7 + $0x1c0] sm:$0xff]  ;;  %v1140_v57 = vld [vmem:[%s5822_s7 + $0x1c8] sm:$0xff]  ;;  %v4454_v59 = vcombine.low %v1131_v47, %v1135_v48 }
  0xee   : > { %v1143_v56 = vld [vmem:[%s5822_s7 + $0x1e0] sm:$0xff]  ;;  %v1144_v58 = vld [vmem:[%s5822_s7 + $0x1e8] sm:$0xff]  ;;  %v4456_v60 = vcombine.low %v1132_v49, %v1136_v50 }
  0xef   : > { %v4463_v61 = vcombine.high %v1139_v55, %v1143_v56  ;;  %v4465_v62 = vcombine.high %v1140_v57, %v1144_v58  ;;  %v1147_v63 = vld [vmem:[%s5822_s7 + $0x200] sm:$0xff]  ;;  %v1148_v1 = vld [vmem:[%s5822_s7 + $0x208] sm:$0xff]  ;;  %v4462_v3 = vcombine.low %v1139_v55, %v1143_v56  ;;  %v4464_v4 = vcombine.low %v1140_v57, %v1144_v58 }
  0xf0   : > { %3424 = vmatpush1.bf16.msra.mxu0 %v4430_v35  ;;  %3553 = vmatpush1.bf16.msra.mxu1 %v4432_v36  ;;  %v1151_v0 = vld [vmem:[%s5822_s7 + $0x220] sm:$0xff]  ;;  %v1152_v2 = vld [vmem:[%s5822_s7 + $0x228] sm:$0xff] }
  0xf1   : > { %3425 = vmatprep.subr.bf16.mxu0 %v4439_v37  ;;  %3554 = vmatprep.subr.bf16.mxu1 %v4441_v38  ;;  %v4471_v5 = vcombine.high %v1147_v63, %v1151_v0  ;;  %v4473_v6 = vcombine.high %v1148_v1, %v1152_v2  ;;  %v1155_v7 = vld [vmem:[%s5822_s7 + $0x240] sm:$0xff]  ;;  %v1156_v9 = vld [vmem:[%s5822_s7 + $0x248] sm:$0xff]  ;;  %v4470_v11 = vcombine.low %v1147_v63, %v1151_v0 }
  0xf2   : > { %v1159_v8 = vld [vmem:[%s5822_s7 + $0x260] sm:$0xff]  ;;  %v1160_v10 = vld [vmem:[%s5822_s7 + $0x268] sm:$0xff]  ;;  %v4472_v12 = vcombine.low %v1148_v1, %v1152_v2 }
  0xf3   : > { %v4479_v13 = vcombine.high %v1155_v7, %v1159_v8  ;;  %v4481_v14 = vcombine.high %v1156_v9, %v1160_v10  ;;  %v1163_v15 = vld [vmem:[%s5822_s7 + $0x280] sm:$0xff]  ;;  %v1164_v17 = vld [vmem:[%s5822_s7 + $0x288] sm:$0xff]  ;;  %v4478_v19 = vcombine.low %v1155_v7, %v1159_v8  ;;  %v4480_v20 = vcombine.low %v1156_v9, %v1160_v10 }
  0xf4   : > { %3426 = vmatpush1.bf16.msra.mxu0 %v4438_v43  ;;  %3555 = vmatpush1.bf16.msra.mxu1 %v4440_v44  ;;  %v1167_v16 = vld [vmem:[%s5822_s7 + $0x2a0] sm:$0xff]  ;;  %v1168_v18 = vld [vmem:[%s5822_s7 + $0x2a8] sm:$0xff] }
  0xf5   : > { %3427 = vmatprep.subr.bf16.mxu0 %v4447_v45  ;;  %3556 = vmatprep.subr.bf16.mxu1 %v4449_v46  ;;  %v4487_v21 = vcombine.high %v1163_v15, %v1167_v16  ;;  %v4489_v22 = vcombine.high %v1164_v17, %v1168_v18  ;;  %v1171_v23 = vld [vmem:[%s5822_s7 + $0x2c0] sm:$0xff]  ;;  %v1172_v25 = vld [vmem:[%s5822_s7 + $0x2c8] sm:$0xff]  ;;  %v4486_v27 = vcombine.low %v1163_v15, %v1167_v16 }
  0xf6   : > { %v1175_v24 = vld [vmem:[%s5822_s7 + $0x2e0] sm:$0xff]  ;;  %v1176_v26 = vld [vmem:[%s5822_s7 + $0x2e8] sm:$0xff]  ;;  %v4488_v28 = vcombine.low %v1164_v17, %v1168_v18 }
  0xf7   : > { %v4495_v29 = vcombine.high %v1171_v23, %v1175_v24  ;;  %v4497_v30 = vcombine.high %v1172_v25, %v1176_v26  ;;  %v1179_v31 = vld [vmem:[%s5822_s7 + $0x300] sm:$0xff]  ;;  %v1180_v33 = vld [vmem:[%s5822_s7 + $0x308] sm:$0xff]  ;;  %v4494_v35 = vcombine.low %v1171_v23, %v1175_v24  ;;  %v4496_v36 = vcombine.low %v1172_v25, %v1176_v26 }
  0xf8   : > { %3428 = vmatpush1.bf16.msra.mxu0 %v4446_v51  ;;  %3557 = vmatpush1.bf16.msra.mxu1 %v4448_v52  ;;  %v1183_v32 = vld [vmem:[%s5822_s7 + $0x320] sm:$0xff]  ;;  %v1184_v34 = vld [vmem:[%s5822_s7 + $0x328] sm:$0xff] }
  0xf9   : > { %3429 = vmatprep.subr.bf16.mxu0 %v4455_v53  ;;  %3558 = vmatprep.subr.bf16.mxu1 %v4457_v54  ;;  %v4503_v37 = vcombine.high %v1179_v31, %v1183_v32  ;;  %v4505_v38 = vcombine.high %v1180_v33, %v1184_v34  ;;  %v1187_v39 = vld [vmem:[%s5822_s7 + $0x340] sm:$0xff]  ;;  %v1188_v41 = vld [vmem:[%s5822_s7 + $0x348] sm:$0xff]  ;;  %v4502_v43 = vcombine.low %v1179_v31, %v1183_v32 }
  0xfa   : > { %v1191_v40 = vld [vmem:[%s5822_s7 + $0x360] sm:$0xff]  ;;  %v1192_v42 = vld [vmem:[%s5822_s7 + $0x368] sm:$0xff]  ;;  %v4504_v44 = vcombine.low %v1180_v33, %v1184_v34 }
  0xfb   : > { %v4511_v45 = vcombine.high %v1187_v39, %v1191_v40  ;;  %v4513_v46 = vcombine.high %v1188_v41, %v1192_v42  ;;  %v1195_v47 = vld [vmem:[%s5822_s7 + $0x380] sm:$0xff]  ;;  %v1196_v49 = vld [vmem:[%s5822_s7 + $0x388] sm:$0xff]  ;;  %v4510_v51 = vcombine.low %v1187_v39, %v1191_v40  ;;  %v4512_v52 = vcombine.low %v1188_v41, %v1192_v42 }
  0xfc   : > { %3430 = vmatpush1.bf16.msra.mxu0 %v4454_v59  ;;  %3559 = vmatpush1.bf16.msra.mxu1 %v4456_v60  ;;  %v1199_v48 = vld [vmem:[%s5822_s7 + $0x3a0] sm:$0xff]  ;;  %v1200_v50 = vld [vmem:[%s5822_s7 + $0x3a8] sm:$0xff] }
  0xfd   : > { %3431 = vmatprep.subr.bf16.mxu0 %v4463_v61  ;;  %3560 = vmatprep.subr.bf16.mxu1 %v4465_v62  ;;  %v4519_v53 = vcombine.high %v1195_v47, %v1199_v48  ;;  %v4521_v54 = vcombine.high %v1196_v49, %v1200_v50  ;;  %v1203_v55 = vld [vmem:[%s5822_s7 + $0x3c0] sm:$0xff]  ;;  %v1204_v57 = vld [vmem:[%s5822_s7 + $0x3c8] sm:$0xff]  ;;  %v4518_v59 = vcombine.low %v1195_v47, %v1199_v48 }
  0xfe   : > { %v1207_v56 = vld [vmem:[%s5822_s7 + $0x3e0] sm:$0xff]  ;;  %v1208_v58 = vld [vmem:[%s5822_s7 + $0x3e8] sm:$0xff]  ;;  %v4520_v60 = vcombine.low %v1196_v49, %v1200_v50 }
  0xff   : > { %v4527_v61 = vcombine.high %v1203_v55, %v1207_v56  ;;  %v4529_v62 = vcombine.high %v1204_v57, %v1208_v58  ;;  %v1211_v63 = vld [vmem:[%s5822_s7 + $0x400] sm:$0xff]  ;;  %v1212_v1 = vld [vmem:[%s5822_s7 + $0x408] sm:$0xff] }
 0x100   : > { %3432 = vmatpush1.bf16.msra.mxu0 %v4462_v3  ;;  %3561 = vmatpush1.bf16.msra.mxu1 %v4464_v4  ;;  %v1215_v0 = vld [vmem:[%s5822_s7 + $0x420] sm:$0xff]  ;;  %v1216_v2 = vld [vmem:[%s5822_s7 + $0x428] sm:$0xff]  ;;  %v4526_v3 = vcombine.low %v1203_v55, %v1207_v56  ;;  %v4528_v4 = vcombine.low %v1204_v57, %v1208_v58 }
 0x101   : > { %3433 = vmatprep.subr.bf16.mxu0 %v4471_v5  ;;  %3562 = vmatprep.subr.bf16.mxu1 %v4473_v6  ;;  %v4535_v5 = vcombine.high %v1211_v63, %v1215_v0  ;;  %v4537_v6 = vcombine.high %v1212_v1, %v1216_v2  ;;  %v1219_v7 = vld [vmem:[%s5822_s7 + $0x440] sm:$0xff]  ;;  %v1220_v10 = vld [vmem:[%s5822_s7 + $0x448] sm:$0xff] }
 0x102   : > { %v1223_v8 = vld [vmem:[%s5822_s7 + $0x460] sm:$0xff] }
 0x103   : > { %v4889_v9 = vld [vmem:[%s6418_s0] ss:$24 sps:$4 sm:$0xff]   ;;  %v4890_v18 = vld [vmem:[%s6418_s0 + $0xc] ss:$24 sps:$4 sm:$0xff]  }
 0x104   : > { %3434 = vmatpush1.bf16.msra.mxu0 %v4470_v11  ;;  %3563 = vmatpush1.bf16.msra.mxu1 %v4472_v12  ;;  %v1224_v11 = vld [vmem:[%s5822_s7 + $0x468] sm:$0xff]  ;;  %v4534_v12 = vcombine.low %v1211_v63, %v1215_v0  ;;  %v1227_v16 = vld [vmem:[%s5822_s7 + $0x480] sm:$0xff] }
 0x105   : > { %3435 = vmatprep.subr.bf16.mxu0 %v4479_v13  ;;  %3564 = vmatprep.subr.bf16.mxu1 %v4481_v14  ;;  %v4536_v13 = vcombine.low %v1212_v1, %v1216_v2  ;;  %v4543_v14 = vcombine.high %v1219_v7, %v1223_v8  ;;  %v4545_v15 = vcombine.high %v1220_v10, %v1224_v11  ;;  %v1231_v17 = vld [vmem:[%s5822_s7 + $0x4a0] sm:$0xff] }
 0x106   : > { %v4551_v23 = vcombine.high %v1227_v16, %v1231_v17  ;;  %v1235_v25 = vld [vmem:[%s5822_s7 + $0x4c0] sm:$0xff] }
 0x107   : > { %v1239_v26 = vld [vmem:[%s5822_s7 + $0x4e0] sm:$0xff] }
 0x108   : > { %3436 = vmatpush1.bf16.msra.mxu0 %v4478_v19  ;;  %3565 = vmatpush1.bf16.msra.mxu1 %v4480_v20  ;;  %v1228_v19 = vld [vmem:[%s5822_s7 + $0x488] sm:$0xff]  ;;  %v4559_v31 = vcombine.high %v1235_v25, %v1239_v26  ;;  %v1243_v33 = vld [vmem:[%s5822_s7 + $0x500] sm:$0xff] }
 0x109   : > { %3437 = vmatprep.subr.bf16.mxu0 %v4487_v21  ;;  %3566 = vmatprep.subr.bf16.mxu1 %v4489_v22  ;;  %v1232_v20 = vld [vmem:[%s5822_s7 + $0x4a8] sm:$0xff]  ;;  %v4542_v21 = vcombine.low %v1219_v7, %v1223_v8  ;;  %v4544_v22 = vcombine.low %v1220_v10, %v1224_v11  ;;  %v1247_v34 = vld [vmem:[%s5822_s7 + $0x520] sm:$0xff] }
 0x10a   : > { %v4553_v24 = vcombine.high %v1228_v19, %v1232_v20  ;;  %v4567_v39 = vcombine.high %v1243_v33, %v1247_v34  ;;  %v1251_v41 = vld [vmem:[%s5822_s7 + $0x540] sm:$0xff]  ;;  %v1284_v11 = vld [vmem:[%s5822_s7 + $0x648] sm:$0xff] }
 0x10b   : > { %v1255_v42 = vld [vmem:[%s5822_s7 + $0x560] sm:$0xff] }
 0x10c   : > { %3438 = vmatpush1.bf16.msra.mxu0 %v4486_v27  ;;  %3567 = vmatpush1.bf16.msra.mxu1 %v4488_v28  ;;  %v1236_v27 = vld [vmem:[%s5822_s7 + $0x4c8] sm:$0xff]  ;;  %v4575_v47 = vcombine.high %v1251_v41, %v1255_v42  ;;  %v1259_v49 = vld [vmem:[%s5822_s7 + $0x580] sm:$0xff] }
 0x10d   : > { %3439 = vmatprep.subr.bf16.mxu0 %v4495_v29  ;;  %3568 = vmatprep.subr.bf16.mxu1 %v4497_v30  ;;  %v1240_v28 = vld [vmem:[%s5822_s7 + $0x4e8] sm:$0xff]  ;;  %v4550_v29 = vcombine.low %v1227_v16, %v1231_v17  ;;  %v4552_v30 = vcombine.low %v1228_v19, %v1232_v20  ;;  %v1263_v50 = vld [vmem:[%s5822_s7 + $0x5a0] sm:$0xff] }
 0x10e   : > { %v4561_v32 = vcombine.high %v1236_v27, %v1240_v28  ;;  %v4583_v55 = vcombine.high %v1259_v49, %v1263_v50  ;;  %v1267_v57 = vld [vmem:[%s5822_s7 + $0x5c0] sm:$0xff]  ;;  %v1292_v19 = vld [vmem:[%s5822_s7 + $0x688] sm:$0xff] }
 0x10f   : > { %v1271_v58 = vld [vmem:[%s5822_s7 + $0x5e0] sm:$0xff]  ;;  %v1296_v20 = vld [vmem:[%s5822_s7 + $0x6a8] sm:$0xff] }
 0x110   : > { %3440 = vmatpush1.bf16.msra.mxu0 %v4494_v35  ;;  %3569 = vmatpush1.bf16.msra.mxu1 %v4496_v36  ;;  %v1244_v35 = vld [vmem:[%s5822_s7 + $0x508] sm:$0xff]  ;;  %v4591_v63 = vcombine.high %v1267_v57, %v1271_v58  ;;  %v1275_v1 = vld [vmem:[%s5822_s7 + $0x600] sm:$0xff] }
 0x111   : > { %3441 = vmatprep.subr.bf16.mxu0 %v4503_v37  ;;  %3570 = vmatprep.subr.bf16.mxu1 %v4505_v38  ;;  %v1248_v36 = vld [vmem:[%s5822_s7 + $0x528] sm:$0xff]  ;;  %v4558_v37 = vcombine.low %v1235_v25, %v1239_v26  ;;  %v4560_v38 = vcombine.low %v1236_v27, %v1240_v28  ;;  %v1279_v2 = vld [vmem:[%s5822_s7 + $0x620] sm:$0xff] }
 0x112   : > { %v4569_v40 = vcombine.high %v1244_v35, %v1248_v36  ;;  %v4599_v7 = vcombine.high %v1275_v1, %v1279_v2  ;;  %v1287_v10 = vld [vmem:[%s5822_s7 + $0x660] sm:$0xff]  ;;  %v1300_v27 = vld [vmem:[%s5822_s7 + $0x6c8] sm:$0xff] }
 0x113   : > { %v1291_v17 = vld [vmem:[%s5822_s7 + $0x680] sm:$0xff]  ;;  %v1304_v28 = vld [vmem:[%s5822_s7 + $0x6e8] sm:$0xff] }
 0x114   : > { %3442 = vmatpush1.bf16.msra.mxu0 %v4502_v43  ;;  %3571 = vmatpush1.bf16.msra.mxu1 %v4504_v44  ;;  %v1252_v43 = vld [vmem:[%s5822_s7 + $0x548] sm:$0xff]  ;;  %v1299_v25 = vld [vmem:[%s5822_s7 + $0x6c0] sm:$0xff] }
 0x115   : > { %3443 = vmatprep.subr.bf16.mxu0 %v4511_v45  ;;  %3572 = vmatprep.subr.bf16.mxu1 %v4513_v46  ;;  %v1256_v44 = vld [vmem:[%s5822_s7 + $0x568] sm:$0xff]  ;;  %v4566_v45 = vcombine.low %v1243_v33, %v1247_v34  ;;  %v4568_v46 = vcombine.low %v1244_v35, %v1248_v36  ;;  %v1303_v26 = vld [vmem:[%s5822_s7 + $0x6e0] sm:$0xff] }
 0x116   : > { %v4577_v48 = vcombine.high %v1252_v43, %v1256_v44  ;;  %v1307_v33 = vld [vmem:[%s5822_s7 + $0x700] sm:$0xff]  ;;  %v1308_v35 = vld [vmem:[%s5822_s7 + $0x708] sm:$0xff] }
 0x117   : > { %v1311_v34 = vld [vmem:[%s5822_s7 + $0x720] sm:$0xff]  ;;  %v1312_v36 = vld [vmem:[%s5822_s7 + $0x728] sm:$0xff] }
 0x118   : > { %3444 = vmatpush1.bf16.msra.mxu0 %v4510_v51  ;;  %3573 = vmatpush1.bf16.msra.mxu1 %v4512_v52  ;;  %v1260_v51 = vld [vmem:[%s5822_s7 + $0x588] sm:$0xff] }
 0x119   : > { %3445 = vmatprep.subr.bf16.mxu0 %v4519_v53  ;;  %3574 = vmatprep.subr.bf16.mxu1 %v4521_v54  ;;  %v1264_v52 = vld [vmem:[%s5822_s7 + $0x5a8] sm:$0xff]  ;;  %v4574_v53 = vcombine.low %v1251_v41, %v1255_v42  ;;  %v4576_v54 = vcombine.low %v1252_v43, %v1256_v44  ;;  %v1315_v41 = vld [vmem:[%s5822_s7 + $0x740] sm:$0xff] }
 0x11a   : > { %v4585_v56 = vcombine.high %v1260_v51, %v1264_v52  ;;  %v1319_v42 = vld [vmem:[%s5822_s7 + $0x760] sm:$0xff]  ;;  %v1316_v43 = vld [vmem:[%s5822_s7 + $0x748] sm:$0xff] }
 0x11b   : > { %v1320_v44 = vld [vmem:[%s5822_s7 + $0x768] sm:$0xff] }
 0x11c   : > { %3446 = vmatpush1.bf16.msra.mxu0 %v4518_v59  ;;  %3575 = vmatpush1.bf16.msra.mxu1 %v4520_v60  ;;  %v1268_v59 = vld [vmem:[%s5822_s7 + $0x5c8] sm:$0xff] }
 0x11d   : > { %3447 = vmatprep.subr.bf16.mxu0 %v4527_v61  ;;  %3576 = vmatprep.subr.bf16.mxu1 %v4529_v62  ;;  %v1272_v60 = vld [vmem:[%s5822_s7 + $0x5e8] sm:$0xff]  ;;  %v4582_v61 = vcombine.low %v1259_v49, %v1263_v50  ;;  %v4584_v62 = vcombine.low %v1260_v51, %v1264_v52  ;;  %v1323_v49 = vld [vmem:[%s5822_s7 + $0x780] sm:$0xff] }
 0x11e   : > { %v4593_v0 = vcombine.high %v1268_v59, %v1272_v60  ;;  %v1327_v50 = vld [vmem:[%s5822_s7 + $0x7a0] sm:$0xff]  ;;  %v1324_v51 = vld [vmem:[%s5822_s7 + $0x788] sm:$0xff] }
 0x11f   : > { %v1328_v52 = vld [vmem:[%s5822_s7 + $0x7a8] sm:$0xff] }
 0x120   : > { %3448 = vmatpush1.bf16.msra.mxu0 %v4526_v3  ;;  %3577 = vmatpush1.bf16.msra.mxu1 %v4528_v4  ;;  %v1276_v3 = vld [vmem:[%s5822_s7 + $0x608] sm:$0xff] }
 0x121   : > { %3460 = vmatprep.subr.bf16.mxu0 %v4535_v5  ;;  %3589 = vmatprep.subr.bf16.mxu1 %v4537_v6  ;;  %v1280_v4 = vld [vmem:[%s5822_s7 + $0x628] sm:$0xff]  ;;  %v4590_v5 = vcombine.low %v1267_v57, %v1271_v58  ;;  %v4592_v6 = vcombine.low %v1268_v59, %v1272_v60  ;;  %v1331_v57 = vld [vmem:[%s5822_s7 + $0x7c0] sm:$0xff] }
 0x122   : > { %v4601_v8 = vcombine.high %v1276_v3, %v1280_v4  ;;  %v1335_v58 = vld [vmem:[%s5822_s7 + $0x7e0] sm:$0xff]  ;;  %v1332_v59 = vld [vmem:[%s5822_s7 + $0x7c8] sm:$0xff] }
 0x123   : > { %3450 = vmatmul.mubr.bf16.vlgmr.msra.gmra.mrb[0].mxu0 %v4889_v9  ;;  %3579 = vmatmul.mubr.bf16.vlgmr.msra.gmra.mrb[0].mxu1 %v4889_v9  ;;  %v1283_v9 = vld [vmem:[%s5822_s7 + $0x640] sm:$0xff]  ;;  %v1336_v60 = vld [vmem:[%s5822_s7 + $0x7e8] sm:$0xff] }
 0x124   : > { %3461 = vmatpush1.bf16.msra.mxu0 %v4534_v12  ;;  %3590 = vmatpush1.bf16.msra.mxu1 %v4536_v13  ;;  %v1288_v12 = vld [vmem:[%s5822_s7 + $0x668] sm:$0xff]  ;;  %v4598_v13 = vcombine.low %v1275_v1, %v1279_v2  ;;  %v1339_v1 = vld [vmem:[%s5822_s7 + $0x800] sm:$0xff] }
 0x125   : > { %3462 = vmatprep.subr.bf16.mxu0 %v4543_v14  ;;  %3591 = vmatprep.subr.bf16.mxu1 %v4545_v15  ;;  %v4600_v14 = vcombine.low %v1276_v3, %v1280_v4  ;;  %v4607_v15 = vcombine.high %v1283_v9, %v1287_v10  ;;  %v4609_v16 = vcombine.high %v1284_v11, %v1288_v12  ;;  %v1343_v2 = vld [vmem:[%s5822_s7 + $0x820] sm:$0xff]  ;;  %v1340_v3 = vld [vmem:[%s5822_s7 + $0x808] sm:$0xff] }
 0x126   : > { %3492 = vmatprep.mubr.bf16.mxu0 %v4890_v18  ;;  %3621 = vmatprep.mubr.bf16.mxu1 %v4890_v18  ;;  %v1295_v18 = vld [vmem:[%s5822_s7 + $0x6a0] sm:$0xff]  ;;  %v1344_v4 = vld [vmem:[%s5822_s7 + $0x828] sm:$0xff] }
 0x128   : > { %3463 = vmatpush1.bf16.msra.mxu0 %v4542_v21  ;;  %3592 = vmatpush1.bf16.msra.mxu1 %v4544_v22  ;;  %v4606_v21 = vcombine.low %v1283_v9, %v1287_v10  ;;  %v4608_v22 = vcombine.low %v1284_v11, %v1288_v12  ;;  %v1347_v9 = vld [vmem:[%s5822_s7 + $0x840] sm:$0xff]  ;;  %v1348_v12 = vld [vmem:[%s5822_s7 + $0x848] sm:$0xff] }
 0x129   : > { %3464 = vmatprep.subr.bf16.mxu0 %v4551_v23  ;;  %3593 = vmatprep.subr.bf16.mxu1 %v4553_v24  ;;  %v4615_v23 = vcombine.high %v1291_v17, %v1295_v18  ;;  %v4617_v24 = vcombine.high %v1292_v19, %v1296_v20  ;;  %v1351_v10 = vld [vmem:[%s5822_s7 + $0x860] sm:$0xff] }
 0x12a   : > { %v4892_v11 = vld [vmem:[%s6418_s0 + $0x8] ss:$24 sps:$4 sm:$0xff]  }
 0x12c   : > { %3465 = vmatpush1.bf16.msra.mxu0 %v4550_v29  ;;  %3594 = vmatpush1.bf16.msra.mxu1 %v4552_v30  ;;  %v4614_v29 = vcombine.low %v1291_v17, %v1295_v18  ;;  %v4616_v30 = vcombine.low %v1292_v19, %v1296_v20  ;;  %v1355_v18 = vld [vmem:[%s5822_s7 + $0x880] sm:$0xff]  ;;  %v4893_v20 = vld [vmem:[%s6418_s0 + $0x14] ss:$24 sps:$4 sm:$0xff]  }
 0x12d   : > { %3466 = vmatprep.subr.bf16.mxu0 %v4559_v31  ;;  %3595 = vmatprep.subr.bf16.mxu1 %v4561_v32  ;;  %v4623_v31 = vcombine.high %v1299_v25, %v1303_v26  ;;  %v4625_v32 = vcombine.high %v1300_v27, %v1304_v28  ;;  %v1359_v19 = vld [vmem:[%s5822_s7 + $0x8a0] sm:$0xff] }
 0x130   : > { %3467 = vmatpush1.bf16.msra.mxu0 %v4558_v37  ;;  %3596 = vmatpush1.bf16.msra.mxu1 %v4560_v38  ;;  %v4622_v37 = vcombine.low %v1299_v25, %v1303_v26  ;;  %v4624_v38 = vcombine.low %v1300_v27, %v1304_v28  ;;  %v4679_v25 = vcombine.high %v1355_v18, %v1359_v19  ;;  %v1363_v27 = vld [vmem:[%s5822_s7 + $0x8c0] sm:$0xff] }
 0x131   : > { %3468 = vmatprep.subr.bf16.mxu0 %v4567_v39  ;;  %3597 = vmatprep.subr.bf16.mxu1 %v4569_v40  ;;  %v4631_v39 = vcombine.high %v1307_v33, %v1311_v34  ;;  %v4633_v40 = vcombine.high %v1308_v35, %v1312_v36  ;;  %v1367_v28 = vld [vmem:[%s5822_s7 + $0x8e0] sm:$0xff] }
 0x134   : > { %3469 = vmatpush1.bf16.msra.mxu0 %v4566_v45  ;;  %3598 = vmatpush1.bf16.msra.mxu1 %v4568_v46  ;;  %v4630_v45 = vcombine.low %v1307_v33, %v1311_v34  ;;  %v4632_v46 = vcombine.low %v1308_v35, %v1312_v36  ;;  %v4687_v33 = vcombine.high %v1363_v27, %v1367_v28  ;;  %v1371_v35 = vld [vmem:[%s5822_s7 + $0x900] sm:$0xff] }
 0x135   : > { %3470 = vmatprep.subr.bf16.mxu0 %v4575_v47  ;;  %3599 = vmatprep.subr.bf16.mxu1 %v4577_v48  ;;  %v4639_v47 = vcombine.high %v1315_v41, %v1319_v42  ;;  %v4641_v48 = vcombine.high %v1316_v43, %v1320_v44  ;;  %v1375_v36 = vld [vmem:[%s5822_s7 + $0x920] sm:$0xff] }
 0x138   : > { %3471 = vmatpush1.bf16.msra.mxu0 %v4574_v53  ;;  %3600 = vmatpush1.bf16.msra.mxu1 %v4576_v54  ;;  %v4638_v53 = vcombine.low %v1315_v41, %v1319_v42  ;;  %v4640_v54 = vcombine.low %v1316_v43, %v1320_v44  ;;  %v4695_v41 = vcombine.high %v1371_v35, %v1375_v36  ;;  %v1379_v43 = vld [vmem:[%s5822_s7 + $0x940] sm:$0xff] }
 0x139   : > { %3472 = vmatprep.subr.bf16.mxu0 %v4583_v55  ;;  %3601 = vmatprep.subr.bf16.mxu1 %v4585_v56  ;;  %v4647_v55 = vcombine.high %v1323_v49, %v1327_v50  ;;  %v4649_v56 = vcombine.high %v1324_v51, %v1328_v52  ;;  %v1383_v44 = vld [vmem:[%s5822_s7 + $0x960] sm:$0xff] }
 0x13c   : > { %3473 = vmatpush1.bf16.msra.mxu0 %v4582_v61  ;;  %3602 = vmatpush1.bf16.msra.mxu1 %v4584_v62  ;;  %v4646_v61 = vcombine.low %v1323_v49, %v1327_v50  ;;  %v4648_v62 = vcombine.low %v1324_v51, %v1328_v52  ;;  %v4703_v49 = vcombine.high %v1379_v43, %v1383_v44  ;;  %v1387_v51 = vld [vmem:[%s5822_s7 + $0x980] sm:$0xff] }
 0x13d   : > { %3474 = vmatprep.subr.bf16.mxu0 %v4591_v63  ;;  %3603 = vmatprep.subr.bf16.mxu1 %v4593_v0  ;;  %v4655_v63 = vcombine.high %v1331_v57, %v1335_v58  ;;  %v4657_v0 = vcombine.high %v1332_v59, %v1336_v60  ;;  %v1391_v52 = vld [vmem:[%s5822_s7 + $0x9a0] sm:$0xff] }
 0x140   : > { %3475 = vmatpush1.bf16.msra.mxu0 %v4590_v5  ;;  %3604 = vmatpush1.bf16.msra.mxu1 %v4592_v6  ;;  %v4654_v5 = vcombine.low %v1331_v57, %v1335_v58  ;;  %v4656_v6 = vcombine.low %v1332_v59, %v1336_v60  ;;  %v4711_v57 = vcombine.high %v1387_v51, %v1391_v52  ;;  %v1395_v59 = vld [vmem:[%s5822_s7 + $0x9c0] sm:$0xff] }
 0x141   : > { %3476 = vmatprep.subr.bf16.mxu0 %v4599_v7  ;;  %3605 = vmatprep.subr.bf16.mxu1 %v4601_v8  ;;  %v4663_v7 = vcombine.high %v1339_v1, %v1343_v2  ;;  %v4665_v8 = vcombine.high %v1340_v3, %v1344_v4  ;;  %v1399_v60 = vld [vmem:[%s5822_s7 + $0x9e0] sm:$0xff] }
 0x144   : > { %3477 = vmatpush1.bf16.msra.mxu0 %v4598_v13  ;;  %3606 = vmatpush1.bf16.msra.mxu1 %v4600_v14  ;;  %v1352_v13 = vld [vmem:[%s5822_s7 + $0x868] sm:$0xff]  ;;  %v4662_v14 = vcombine.low %v1339_v1, %v1343_v2  ;;  %v4719_v1 = vcombine.high %v1395_v59, %v1399_v60 }
 0x145   : > { %3478 = vmatprep.subr.bf16.mxu0 %v4607_v15  ;;  %3607 = vmatprep.subr.bf16.mxu1 %v4609_v16  ;;  %v4664_v15 = vcombine.low %v1340_v3, %v1344_v4  ;;  %v4671_v16 = vcombine.high %v1347_v9, %v1351_v10  ;;  %v4673_v17 = vcombine.high %v1348_v12, %v1352_v13  ;;  %v1403_v3 = vld [vmem:[%s5822_s7 + $0xa00] sm:$0xff] }
 0x146   : > { %v1407_v4 = vld [vmem:[%s5822_s7 + $0xa20] sm:$0xff] }
 0x148   : > { %3479 = vmatpush1.bf16.msra.mxu0 %v4606_v21  ;;  %3608 = vmatpush1.bf16.msra.mxu1 %v4608_v22  ;;  %v1356_v21 = vld [vmem:[%s5822_s7 + $0x888] sm:$0xff] }
 0x149   : > { %3480 = vmatprep.subr.bf16.mxu0 %v4615_v23  ;;  %3609 = vmatprep.subr.bf16.mxu1 %v4617_v24  ;;  %v1360_v22 = vld [vmem:[%s5822_s7 + $0x8a8] sm:$0xff]  ;;  %v4670_v23 = vcombine.low %v1347_v9, %v1351_v10  ;;  %v4672_v24 = vcombine.low %v1348_v12, %v1352_v13  ;;  %v4727_v9 = vcombine.high %v1403_v3, %v1407_v4  ;;  %v1415_v12 = vld [vmem:[%s5822_s7 + $0xa60] sm:$0xff] }
 0x14a   : > { %v4681_v26 = vcombine.high %v1356_v21, %v1360_v22  ;;  %v1412_v13 = vld [vmem:[%s5822_s7 + $0xa48] sm:$0xff] }
 0x14c   : > { %3481 = vmatpush1.bf16.msra.mxu0 %v4614_v29  ;;  %3610 = vmatpush1.bf16.msra.mxu1 %v4616_v30  ;;  %v1364_v29 = vld [vmem:[%s5822_s7 + $0x8c8] sm:$0xff] }
 0x14d   : > { %3482 = vmatprep.subr.bf16.mxu0 %v4623_v31  ;;  %3611 = vmatprep.subr.bf16.mxu1 %v4625_v32  ;;  %v1368_v30 = vld [vmem:[%s5822_s7 + $0x8e8] sm:$0xff]  ;;  %v4678_v31 = vcombine.low %v1355_v18, %v1359_v19  ;;  %v4680_v32 = vcombine.low %v1356_v21, %v1360_v22  ;;  %v1419_v19 = vld [vmem:[%s5822_s7 + $0xa80] sm:$0xff] }
 0x14e   : > { %v4689_v34 = vcombine.high %v1364_v29, %v1368_v30  ;;  %v1420_v21 = vld [vmem:[%s5822_s7 + $0xa88] sm:$0xff] }
 0x14f   : > { %v1424_v22 = vld [vmem:[%s5822_s7 + $0xaa8] sm:$0xff] }
 0x150   : > { %3483 = vmatpush1.bf16.msra.mxu0 %v4622_v37  ;;  %3612 = vmatpush1.bf16.msra.mxu1 %v4624_v38  ;;  %v1372_v37 = vld [vmem:[%s5822_s7 + $0x908] sm:$0xff] }
 0x151   : > { %3484 = vmatprep.subr.bf16.mxu0 %v4631_v39  ;;  %3613 = vmatprep.subr.bf16.mxu1 %v4633_v40  ;;  %v1376_v38 = vld [vmem:[%s5822_s7 + $0x928] sm:$0xff]  ;;  %v4686_v39 = vcombine.low %v1363_v27, %v1367_v28  ;;  %v4688_v40 = vcombine.low %v1364_v29, %v1368_v30  ;;  %v1427_v27 = vld [vmem:[%s5822_s7 + $0xac0] sm:$0xff] }
 0x152   : > { %v4697_v42 = vcombine.high %v1372_v37, %v1376_v38  ;;  %v1431_v28 = vld [vmem:[%s5822_s7 + $0xae0] sm:$0xff]  ;;  %v1428_v29 = vld [vmem:[%s5822_s7 + $0xac8] sm:$0xff] }
 0x153   : > { %v1432_v30 = vld [vmem:[%s5822_s7 + $0xae8] sm:$0xff] }
 0x154   : > { %3485 = vmatpush1.bf16.msra.mxu0 %v4630_v45  ;;  %3614 = vmatpush1.bf16.msra.mxu1 %v4632_v46  ;;  %v1380_v45 = vld [vmem:[%s5822_s7 + $0x948] sm:$0xff] }
 0x155   : > { %3486 = vmatprep.subr.bf16.mxu0 %v4639_v47  ;;  %3615 = vmatprep.subr.bf16.mxu1 %v4641_v48  ;;  %v1384_v46 = vld [vmem:[%s5822_s7 + $0x968] sm:$0xff]  ;;  %v4694_v47 = vcombine.low %v1371_v35, %v1375_v36  ;;  %v4696_v48 = vcombine.low %v1372_v37, %v1376_v38  ;;  %v1435_v35 = vld [vmem:[%s5822_s7 + $0xb00] sm:$0xff] }
 0x156   : > { %v4705_v50 = vcombine.high %v1380_v45, %v1384_v46  ;;  %v1439_v36 = vld [vmem:[%s5822_s7 + $0xb20] sm:$0xff]  ;;  %v1436_v37 = vld [vmem:[%s5822_s7 + $0xb08] sm:$0xff] }
 0x157   : > { %v1440_v38 = vld [vmem:[%s5822_s7 + $0xb28] sm:$0xff] }
 0x158   : > { %3487 = vmatpush1.bf16.msra.mxu0 %v4638_v53  ;;  %3616 = vmatpush1.bf16.msra.mxu1 %v4640_v54  ;;  %v1388_v53 = vld [vmem:[%s5822_s7 + $0x988] sm:$0xff] }
 0x159   : > { %3488 = vmatprep.subr.bf16.mxu0 %v4647_v55  ;;  %3617 = vmatprep.subr.bf16.mxu1 %v4649_v56  ;;  %v1392_v54 = vld [vmem:[%s5822_s7 + $0x9a8] sm:$0xff]  ;;  %v4702_v55 = vcombine.low %v1379_v43, %v1383_v44  ;;  %v4704_v56 = vcombine.low %v1380_v45, %v1384_v46  ;;  %v1443_v43 = vld [vmem:[%s5822_s7 + $0xb40] sm:$0xff] }
 0x15a   : > { %v4713_v58 = vcombine.high %v1388_v53, %v1392_v54  ;;  %v1447_v44 = vld [vmem:[%s5822_s7 + $0xb60] sm:$0xff]  ;;  %v1444_v45 = vld [vmem:[%s5822_s7 + $0xb48] sm:$0xff] }
 0x15b   : > { %v1448_v46 = vld [vmem:[%s5822_s7 + $0xb68] sm:$0xff] }
 0x15c   : > { %3489 = vmatpush1.bf16.msra.mxu0 %v4646_v61  ;;  %3618 = vmatpush1.bf16.msra.mxu1 %v4648_v62  ;;  %v1396_v61 = vld [vmem:[%s5822_s7 + $0x9c8] sm:$0xff] }
 0x15d   : > { %3490 = vmatprep.subr.bf16.mxu0 %v4655_v63  ;;  %3619 = vmatprep.subr.bf16.mxu1 %v4657_v0  ;;  %v1400_v62 = vld [vmem:[%s5822_s7 + $0x9e8] sm:$0xff]  ;;  %v4710_v63 = vcombine.low %v1387_v51, %v1391_v52  ;;  %v4712_v0 = vcombine.low %v1388_v53, %v1392_v54  ;;  %v1451_v51 = vld [vmem:[%s5822_s7 + $0xb80] sm:$0xff] }
 0x15e   : > { %v4721_v2 = vcombine.high %v1396_v61, %v1400_v62  ;;  %v1455_v52 = vld [vmem:[%s5822_s7 + $0xba0] sm:$0xff]  ;;  %v1452_v53 = vld [vmem:[%s5822_s7 + $0xb88] sm:$0xff] }
 0x15f   : > { %v1456_v54 = vld [vmem:[%s5822_s7 + $0xba8] sm:$0xff] }
 0x160   : > { %3491 = vmatpush1.bf16.msra.mxu0 %v4654_v5  ;;  %3620 = vmatpush1.bf16.msra.mxu1 %v4656_v6  ;;  %v1404_v5 = vld [vmem:[%s5822_s7 + $0xa08] sm:$0xff] }
 0x161   : > { %3503 = vmatprep.subr.bf16.mxu0 %v4663_v7  ;;  %3632 = vmatprep.subr.bf16.mxu1 %v4665_v8  ;;  %v1408_v6 = vld [vmem:[%s5822_s7 + $0xa28] sm:$0xff]  ;;  %v4718_v7 = vcombine.low %v1395_v59, %v1399_v60  ;;  %v4720_v8 = vcombine.low %v1396_v61, %v1400_v62  ;;  %v1459_v59 = vld [vmem:[%s5822_s7 + $0xbc0] sm:$0xff] }
 0x162   : > { %v4729_v10 = vcombine.high %v1404_v5, %v1408_v6  ;;  %v1463_v60 = vld [vmem:[%s5822_s7 + $0xbe0] sm:$0xff]  ;;  %v1460_v61 = vld [vmem:[%s5822_s7 + $0xbc8] sm:$0xff] }
 0x163   : > { %3493 = vmatmul.mubr.bf16.vlgmr.msra.gmra.mrb[0].mxu0 %v4892_v11  ;;  %3622 = vmatmul.mubr.bf16.vlgmr.msra.gmra.mrb[0].mxu1 %v4892_v11  ;;  %v1411_v11 = vld [vmem:[%s5822_s7 + $0xa40] sm:$0xff]  ;;  %v1464_v62 = vld [vmem:[%s5822_s7 + $0xbe8] sm:$0xff] }
 0x164   : > { %3504 = vmatpush1.bf16.msra.mxu0 %v4662_v14  ;;  %3633 = vmatpush1.bf16.msra.mxu1 %v4664_v15  ;;  %v1416_v14 = vld [vmem:[%s5822_s7 + $0xa68] sm:$0xff]  ;;  %v4726_v15 = vcombine.low %v1403_v3, %v1407_v4  ;;  %v1085_v3 = vld [vmem:[%s5822_s7 + $0x10] sm:$0xff] }
 0x165   : > { %3505 = vmatprep.subr.bf16.mxu0 %v4671_v16  ;;  %3634 = vmatprep.subr.bf16.mxu1 %v4673_v17  ;;  %v4728_v16 = vcombine.low %v1404_v5, %v1408_v6  ;;  %v4735_v17 = vcombine.high %v1411_v11, %v1415_v12  ;;  %v4737_v18 = vcombine.high %v1412_v13, %v1416_v14  ;;  %v1089_v4 = vld [vmem:[%s5822_s7 + $0x30] sm:$0xff]  ;;  %v1086_v5 = vld [vmem:[%s5822_s7 + $0x18] sm:$0xff] }
 0x166   : > { %3535 = vmatprep.mubr.bf16.mxu0 %v4893_v20  ;;  %3664 = vmatprep.mubr.bf16.mxu1 %v4893_v20  ;;  %v1423_v20 = vld [vmem:[%s5822_s7 + $0xaa0] sm:$0xff]  ;;  %v1090_v6 = vld [vmem:[%s5822_s7 + $0x38] sm:$0xff] }
 0x168   : > { %3506 = vmatpush1.bf16.msra.mxu0 %v4670_v23  ;;  %3635 = vmatpush1.bf16.msra.mxu1 %v4672_v24  ;;  %v4734_v23 = vcombine.low %v1411_v11, %v1415_v12  ;;  %v4736_v24 = vcombine.low %v1412_v13, %v1416_v14  ;;  %v1093_v11 = vld [vmem:[%s5822_s7 + $0x50] sm:$0xff]  ;;  %v1094_v14 = vld [vmem:[%s5822_s7 + $0x58] sm:$0xff] }
 0x169   : > { %3507 = vmatprep.subr.bf16.mxu0 %v4679_v25  ;;  %3636 = vmatprep.subr.bf16.mxu1 %v4681_v26  ;;  %v4743_v25 = vcombine.high %v1419_v19, %v1423_v20  ;;  %v4745_v26 = vcombine.high %v1420_v21, %v1424_v22  ;;  %v1097_v12 = vld [vmem:[%s5822_s7 + $0x70] sm:$0xff] }
 0x16a   : > { %v4895_v13 = vld [vmem:[%s6418_s0 + $0x10] ss:$24 sps:$4 sm:$0xff]  }
 0x16c   : > { %3508 = vmatpush1.bf16.msra.mxu0 %v4678_v31  ;;  %3637 = vmatpush1.bf16.msra.mxu1 %v4680_v32  ;;  %v4742_v31 = vcombine.low %v1419_v19, %v1423_v20  ;;  %v4744_v32 = vcombine.low %v1420_v21, %v1424_v22  ;;  %v1101_v20 = vld [vmem:[%s5822_s7 + $0x90] sm:$0xff]  ;;  %v1102_v22 = vld [vmem:[%s5822_s7 + $0x98] sm:$0xff] }
 0x16d   : > { %3509 = vmatprep.subr.bf16.mxu0 %v4687_v33  ;;  %3638 = vmatprep.subr.bf16.mxu1 %v4689_v34  ;;  %v4751_v33 = vcombine.high %v1427_v27, %v1431_v28  ;;  %v4753_v34 = vcombine.high %v1428_v29, %v1432_v30  ;;  %v1105_v21 = vld [vmem:[%s5822_s7 + $0xb0] sm:$0xff] }
 0x170   : > { %3510 = vmatpush1.bf16.msra.mxu0 %v4686_v39  ;;  %3639 = vmatpush1.bf16.msra.mxu1 %v4688_v40  ;;  %v4750_v39 = vcombine.low %v1427_v27, %v1431_v28  ;;  %v4752_v40 = vcombine.low %v1428_v29, %v1432_v30  ;;  %v1109_v28 = vld [vmem:[%s5822_s7 + $0xd0] sm:$0xff]  ;;  %v4928_v30 = vld [vmem:[%s6418_s0 + $0x4] ss:$24 sps:$4 sm:$0xff]  }
 0x171   : > { %3511 = vmatprep.subr.bf16.mxu0 %v4695_v41  ;;  %3640 = vmatprep.subr.bf16.mxu1 %v4697_v42  ;;  %v4759_v41 = vcombine.high %v1435_v35, %v1439_v36  ;;  %v4761_v42 = vcombine.high %v1436_v37, %v1440_v38  ;;  %v1113_v29 = vld [vmem:[%s5822_s7 + $0xf0] sm:$0xff] }
 0x174   : > { %3512 = vmatpush1.bf16.msra.mxu0 %v4694_v47  ;;  %3641 = vmatpush1.bf16.msra.mxu1 %v4696_v48  ;;  %v4758_v47 = vcombine.low %v1435_v35, %v1439_v36  ;;  %v4760_v48 = vcombine.low %v1436_v37, %v1440_v38  ;;  %v4435_v35 = vcombine.high %v1109_v28, %v1113_v29  ;;  %v1117_v37 = vld [vmem:[%s5822_s7 + $0x110] sm:$0xff] }
 0x175   : > { %3513 = vmatprep.subr.bf16.mxu0 %v4703_v49  ;;  %3642 = vmatprep.subr.bf16.mxu1 %v4705_v50  ;;  %v4767_v49 = vcombine.high %v1443_v43, %v1447_v44  ;;  %v4769_v50 = vcombine.high %v1444_v45, %v1448_v46  ;;  %v1121_v38 = vld [vmem:[%s5822_s7 + $0x130] sm:$0xff] }
 0x178   : > { %3514 = vmatpush1.bf16.msra.mxu0 %v4702_v55  ;;  %3643 = vmatpush1.bf16.msra.mxu1 %v4704_v56  ;;  %v4766_v55 = vcombine.low %v1443_v43, %v1447_v44  ;;  %v4768_v56 = vcombine.low %v1444_v45, %v1448_v46  ;;  %v4443_v43 = vcombine.high %v1117_v37, %v1121_v38  ;;  %v1125_v45 = vld [vmem:[%s5822_s7 + $0x150] sm:$0xff] }
 0x179   : > { %3515 = vmatprep.subr.bf16.mxu0 %v4711_v57  ;;  %3644 = vmatprep.subr.bf16.mxu1 %v4713_v58  ;;  %v4775_v57 = vcombine.high %v1451_v51, %v1455_v52  ;;  %v4777_v58 = vcombine.high %v1452_v53, %v1456_v54  ;;  %v1129_v46 = vld [vmem:[%s5822_s7 + $0x170] sm:$0xff] }
 0x17c   : > { %3516 = vmatpush1.bf16.msra.mxu0 %v4710_v63  ;;  %3645 = vmatpush1.bf16.msra.mxu1 %v4712_v0  ;;  %v4774_v63 = vcombine.low %v1451_v51, %v1455_v52  ;;  %v4776_v0 = vcombine.low %v1452_v53, %v1456_v54  ;;  %v4451_v51 = vcombine.high %v1125_v45, %v1129_v46  ;;  %v1133_v53 = vld [vmem:[%s5822_s7 + $0x190] sm:$0xff] }
 0x17d   : > { %3517 = vmatprep.subr.bf16.mxu0 %v4719_v1  ;;  %3646 = vmatprep.subr.bf16.mxu1 %v4721_v2  ;;  %v4783_v1 = vcombine.high %v1459_v59, %v1463_v60  ;;  %v4785_v2 = vcombine.high %v1460_v61, %v1464_v62  ;;  %v1137_v54 = vld [vmem:[%s5822_s7 + $0x1b0] sm:$0xff] }
 0x180   : > { %3518 = vmatpush1.bf16.msra.mxu0 %v4718_v7  ;;  %3647 = vmatpush1.bf16.msra.mxu1 %v4720_v8  ;;  %v4782_v7 = vcombine.low %v1459_v59, %v1463_v60  ;;  %v4784_v8 = vcombine.low %v1460_v61, %v1464_v62  ;;  %v4459_v59 = vcombine.high %v1133_v53, %v1137_v54  ;;  %v1141_v61 = vld [vmem:[%s5822_s7 + $0x1d0] sm:$0xff] }
 0x181   : > { %3519 = vmatprep.subr.bf16.mxu0 %v4727_v9  ;;  %3648 = vmatprep.subr.bf16.mxu1 %v4729_v10  ;;  %v4411_v9 = vcombine.high %v1085_v3, %v1089_v4  ;;  %v4413_v10 = vcombine.high %v1086_v5, %v1090_v6  ;;  %v1145_v62 = vld [vmem:[%s5822_s7 + $0x1f0] sm:$0xff] }
 0x184   : > { %3520 = vmatpush1.bf16.msra.mxu0 %v4726_v15  ;;  %3649 = vmatpush1.bf16.msra.mxu1 %v4728_v16  ;;  %v1098_v15 = vld [vmem:[%s5822_s7 + $0x78] sm:$0xff]  ;;  %v4410_v16 = vcombine.low %v1085_v3, %v1089_v4  ;;  %v4467_v3 = vcombine.high %v1141_v61, %v1145_v62 }
 0x185   : > { %3521 = vmatprep.subr.bf16.mxu0 %v4735_v17  ;;  %3650 = vmatprep.subr.bf16.mxu1 %v4737_v18  ;;  %v4412_v17 = vcombine.low %v1086_v5, %v1090_v6  ;;  %v4419_v18 = vcombine.high %v1093_v11, %v1097_v12  ;;  %v4421_v19 = vcombine.high %v1094_v14, %v1098_v15  ;;  %v1149_v5 = vld [vmem:[%s5822_s7 + $0x210] sm:$0xff] }
 0x186   : > { %v1153_v6 = vld [vmem:[%s5822_s7 + $0x230] sm:$0xff] }
 0x188   : > { %3522 = vmatpush1.bf16.msra.mxu0 %v4734_v23  ;;  %3651 = vmatpush1.bf16.msra.mxu1 %v4736_v24  ;;  %v1106_v23 = vld [vmem:[%s5822_s7 + $0xb8] sm:$0xff]  ;;  %v4418_v24 = vcombine.low %v1093_v11, %v1097_v12  ;;  %v4475_v11 = vcombine.high %v1149_v5, %v1153_v6 }
 0x189   : > { %3523 = vmatprep.subr.bf16.mxu0 %v4743_v25  ;;  %3652 = vmatprep.subr.bf16.mxu1 %v4745_v26  ;;  %v4420_v25 = vcombine.low %v1094_v14, %v1098_v15  ;;  %v4427_v26 = vcombine.high %v1101_v20, %v1105_v21  ;;  %v4429_v27 = vcombine.high %v1102_v22, %v1106_v23  ;;  %v1161_v14 = vld [vmem:[%s5822_s7 + $0x270] sm:$0xff]  ;;  %v1158_v15 = vld [vmem:[%s5822_s7 + $0x258] sm:$0xff] }
 0x18c   : > { %3524 = vmatpush1.bf16.msra.mxu0 %v4742_v31  ;;  %3653 = vmatpush1.bf16.msra.mxu1 %v4744_v32  ;;  %v1110_v31 = vld [vmem:[%s5822_s7 + $0xd8] sm:$0xff] }
 0x18d   : > { %3525 = vmatprep.subr.bf16.mxu0 %v4751_v33  ;;  %3654 = vmatprep.subr.bf16.mxu1 %v4753_v34  ;;  %v1114_v32 = vld [vmem:[%s5822_s7 + $0xf8] sm:$0xff]  ;;  %v4426_v33 = vcombine.low %v1101_v20, %v1105_v21  ;;  %v4428_v34 = vcombine.low %v1102_v22, %v1106_v23  ;;  %v1165_v21 = vld [vmem:[%s5822_s7 + $0x290] sm:$0xff] }
 0x18e   : > { %v4437_v36 = vcombine.high %v1110_v31, %v1114_v32  ;;  %v1169_v22 = vld [vmem:[%s5822_s7 + $0x2b0] sm:$0xff]  ;;  %v1166_v23 = vld [vmem:[%s5822_s7 + $0x298] sm:$0xff] }
 0x190   : > { %3526 = vmatpush1.bf16.msra.mxu0 %v4750_v39  ;;  %3655 = vmatpush1.bf16.msra.mxu1 %v4752_v40  ;;  %v1118_v39 = vld [vmem:[%s5822_s7 + $0x118] sm:$0xff] }
 0x191   : > { %3527 = vmatprep.subr.bf16.mxu0 %v4759_v41  ;;  %3656 = vmatprep.subr.bf16.mxu1 %v4761_v42  ;;  %v1122_v40 = vld [vmem:[%s5822_s7 + $0x138] sm:$0xff]  ;;  %v4434_v41 = vcombine.low %v1109_v28, %v1113_v29  ;;  %v4436_v42 = vcombine.low %v1110_v31, %v1114_v32  ;;  %v1173_v29 = vld [vmem:[%s5822_s7 + $0x2d0] sm:$0xff] }
 0x192   : > { %v4445_v44 = vcombine.high %v1118_v39, %v1122_v40  ;;  %v1174_v31 = vld [vmem:[%s5822_s7 + $0x2d8] sm:$0xff] }
 0x193   : > { %v1178_v32 = vld [vmem:[%s5822_s7 + $0x2f8] sm:$0xff] }
 0x194   : > { %3528 = vmatpush1.bf16.msra.mxu0 %v4758_v47  ;;  %3657 = vmatpush1.bf16.msra.mxu1 %v4760_v48  ;;  %v1126_v47 = vld [vmem:[%s5822_s7 + $0x158] sm:$0xff] }
 0x195   : > { %3529 = vmatprep.subr.bf16.mxu0 %v4767_v49  ;;  %3658 = vmatprep.subr.bf16.mxu1 %v4769_v50  ;;  %v1130_v48 = vld [vmem:[%s5822_s7 + $0x178] sm:$0xff]  ;;  %v4442_v49 = vcombine.low %v1117_v37, %v1121_v38  ;;  %v4444_v50 = vcombine.low %v1118_v39, %v1122_v40  ;;  %v1181_v37 = vld [vmem:[%s5822_s7 + $0x310] sm:$0xff] }
 0x196   : > { %v4453_v52 = vcombine.high %v1126_v47, %v1130_v48  ;;  %v1185_v38 = vld [vmem:[%s5822_s7 + $0x330] sm:$0xff]  ;;  %v1182_v39 = vld [vmem:[%s5822_s7 + $0x318] sm:$0xff] }
 0x197   : > { %v1186_v40 = vld [vmem:[%s5822_s7 + $0x338] sm:$0xff] }
 0x198   : > { %3530 = vmatpush1.bf16.msra.mxu0 %v4766_v55  ;;  %3659 = vmatpush1.bf16.msra.mxu1 %v4768_v56  ;;  %v1134_v55 = vld [vmem:[%s5822_s7 + $0x198] sm:$0xff] }
 0x199   : > { %3531 = vmatprep.subr.bf16.mxu0 %v4775_v57  ;;  %3660 = vmatprep.subr.bf16.mxu1 %v4777_v58  ;;  %v1138_v56 = vld [vmem:[%s5822_s7 + $0x1b8] sm:$0xff]  ;;  %v4450_v57 = vcombine.low %v1125_v45, %v1129_v46  ;;  %v4452_v58 = vcombine.low %v1126_v47, %v1130_v48  ;;  %v1189_v45 = vld [vmem:[%s5822_s7 + $0x350] sm:$0xff] }
 0x19a   : > { %v4461_v60 = vcombine.high %v1134_v55, %v1138_v56  ;;  %v1193_v46 = vld [vmem:[%s5822_s7 + $0x370] sm:$0xff]  ;;  %v1190_v47 = vld [vmem:[%s5822_s7 + $0x358] sm:$0xff] }
 0x19b   : > { %v1194_v48 = vld [vmem:[%s5822_s7 + $0x378] sm:$0xff] }
 0x19c   : > { %3532 = vmatpush1.bf16.msra.mxu0 %v4774_v63  ;;  %3661 = vmatpush1.bf16.msra.mxu1 %v4776_v0  ;;  %v1142_v63 = vld [vmem:[%s5822_s7 + $0x1d8] sm:$0xff] }
 0x19d   : > { %3533 = vmatprep.subr.bf16.mxu0 %v4783_v1  ;;  %3662 = vmatprep.subr.bf16.mxu1 %v4785_v2  ;;  %v1146_v0 = vld [vmem:[%s5822_s7 + $0x1f8] sm:$0xff]  ;;  %v4458_v1 = vcombine.low %v1133_v53, %v1137_v54  ;;  %v4460_v2 = vcombine.low %v1134_v55, %v1138_v56  ;;  %v1197_v53 = vld [vmem:[%s5822_s7 + $0x390] sm:$0xff] }
 0x19e   : > { %v4469_v4 = vcombine.high %v1142_v63, %v1146_v0  ;;  %v1201_v54 = vld [vmem:[%s5822_s7 + $0x3b0] sm:$0xff]  ;;  %v1198_v55 = vld [vmem:[%s5822_s7 + $0x398] sm:$0xff] }
 0x19f   : > { %v1202_v56 = vld [vmem:[%s5822_s7 + $0x3b8] sm:$0xff] }
 0x1a0   : > { %3534 = vmatpush1.bf16.msra.mxu0 %v4782_v7  ;;  %3663 = vmatpush1.bf16.msra.mxu1 %v4784_v8  ;;  %v1150_v7 = vld [vmem:[%s5822_s7 + $0x218] sm:$0xff] }
 0x1a1   : > { %3675 = vmatprep.subr.bf16.mxu0 %v4411_v9  ;;  %3804 = vmatprep.subr.bf16.mxu1 %v4413_v10  ;;  %v1154_v8 = vld [vmem:[%s5822_s7 + $0x238] sm:$0xff]  ;;  %v4466_v9 = vcombine.low %v1141_v61, %v1145_v62  ;;  %v4468_v10 = vcombine.low %v1142_v63, %v1146_v0  ;;  %v1205_v61 = vld [vmem:[%s5822_s7 + $0x3d0] sm:$0xff] }
 0x1a2   : > { %v4477_v12 = vcombine.high %v1150_v7, %v1154_v8  ;;  %v1209_v62 = vld [vmem:[%s5822_s7 + $0x3f0] sm:$0xff]  ;;  %v1206_v63 = vld [vmem:[%s5822_s7 + $0x3d8] sm:$0xff] }
 0x1a3   : > { %3536 = vmatmul.mubr.bf16.vlgmr.msra.gmra.mrb[0].mxu0 %v4895_v13  ;;  %3665 = vmatmul.mubr.bf16.vlgmr.msra.gmra.mrb[0].mxu1 %v4895_v13  ;;  %v1157_v13 = vld [vmem:[%s5822_s7 + $0x250] sm:$0xff]  ;;  %v1210_v0 = vld [vmem:[%s5822_s7 + $0x3f8] sm:$0xff] }
 0x1a4   : > { %3676 = vmatpush1.bf16.msra.mxu0 %v4410_v16  ;;  %3805 = vmatpush1.bf16.msra.mxu1 %v4412_v17  ;;  %v1162_v16 = vld [vmem:[%s5822_s7 + $0x278] sm:$0xff]  ;;  %v4474_v17 = vcombine.low %v1149_v5, %v1153_v6  ;;  %v1213_v5 = vld [vmem:[%s5822_s7 + $0x410] sm:$0xff] }
 0x1a5   : > { %3677 = vmatprep.subr.bf16.mxu0 %v4419_v18  ;;  %3806 = vmatprep.subr.bf16.mxu1 %v4421_v19  ;;  %v4476_v18 = vcombine.low %v1150_v7, %v1154_v8  ;;  %v4483_v19 = vcombine.high %v1157_v13, %v1161_v14  ;;  %v4485_v20 = vcombine.high %v1158_v15, %v1162_v16  ;;  %v1217_v6 = vld [vmem:[%s5822_s7 + $0x430] sm:$0xff]  ;;  %v1214_v7 = vld [vmem:[%s5822_s7 + $0x418] sm:$0xff] }
 0x1a6   : > { %3707 = vmatprep.mubr.bf16.mxu0 %v4928_v30  ;;  %3836 = vmatprep.mubr.bf16.mxu1 %v4928_v30  ;;  %v1177_v30 = vld [vmem:[%s5822_s7 + $0x2f0] sm:$0xff]  ;;  %v1218_v8 = vld [vmem:[%s5822_s7 + $0x438] sm:$0xff] }
 0x1a8   : > { %3678 = vmatpush1.bf16.msra.mxu0 %v4418_v24  ;;  %3807 = vmatpush1.bf16.msra.mxu1 %v4420_v25  ;;  %v1170_v24 = vld [vmem:[%s5822_s7 + $0x2b8] sm:$0xff]  ;;  %v4482_v25 = vcombine.low %v1157_v13, %v1161_v14  ;;  %v1221_v13 = vld [vmem:[%s5822_s7 + $0x450] sm:$0xff] }
 0x1a9   : > { %3679 = vmatprep.subr.bf16.mxu0 %v4427_v26  ;;  %3808 = vmatprep.subr.bf16.mxu1 %v4429_v27  ;;  %v4484_v26 = vcombine.low %v1158_v15, %v1162_v16  ;;  %v4491_v27 = vcombine.high %v1165_v21, %v1169_v22  ;;  %v4493_v28 = vcombine.high %v1166_v23, %v1170_v24  ;;  %v1225_v14 = vld [vmem:[%s5822_s7 + $0x470] sm:$0xff]  ;;  %v1222_v15 = vld [vmem:[%s5822_s7 + $0x458] sm:$0xff] }
 0x1aa   : > { %v1226_v16 = vld [vmem:[%s5822_s7 + $0x478] sm:$0xff] }
 0x1ac   : > { %3680 = vmatpush1.bf16.msra.mxu0 %v4426_v33  ;;  %3809 = vmatpush1.bf16.msra.mxu1 %v4428_v34  ;;  %v4490_v33 = vcombine.low %v1165_v21, %v1169_v22  ;;  %v4492_v34 = vcombine.low %v1166_v23, %v1170_v24  ;;  %v1229_v21 = vld [vmem:[%s5822_s7 + $0x490] sm:$0xff]  ;;  %v4929_v23 = vld [vmem:[%s6418_s0] ss:$24 sps:$4 sm:$0xff]  }
 0x1ad   : > { %3681 = vmatprep.subr.bf16.mxu0 %v4435_v35  ;;  %3810 = vmatprep.subr.bf16.mxu1 %v4437_v36  ;;  %v4499_v35 = vcombine.high %v1173_v29, %v1177_v30  ;;  %v4501_v36 = vcombine.high %v1174_v31, %v1178_v32  ;;  %v1233_v22 = vld [vmem:[%s5822_s7 + $0x4b0] sm:$0xff]  ;;  %v1230_v24 = vld [vmem:[%s5822_s7 + $0x498] sm:$0xff] }
 0x1b0   : > { %3682 = vmatpush1.bf16.msra.mxu0 %v4434_v41  ;;  %3811 = vmatpush1.bf16.msra.mxu1 %v4436_v42  ;;  %v4498_v41 = vcombine.low %v1173_v29, %v1177_v30  ;;  %v4500_v42 = vcombine.low %v1174_v31, %v1178_v32  ;;  %v1237_v30 = vld [vmem:[%s5822_s7 + $0x4d0] sm:$0xff]  ;;  %v4930_v32 = vld [vmem:[%s6418_s0 + $0xc] ss:$24 sps:$4 sm:$0xff]  }
 0x1b1   : > { %3683 = vmatprep.subr.bf16.mxu0 %v4443_v43  ;;  %3812 = vmatprep.subr.bf16.mxu1 %v4445_v44  ;;  %v4507_v43 = vcombine.high %v1181_v37, %v1185_v38  ;;  %v4509_v44 = vcombine.high %v1182_v39, %v1186_v40  ;;  %v1241_v31 = vld [vmem:[%s5822_s7 + $0x4f0] sm:$0xff] }
 0x1b4   : > { %3684 = vmatpush1.bf16.msra.mxu0 %v4442_v49  ;;  %3813 = vmatpush1.bf16.msra.mxu1 %v4444_v50  ;;  %v4506_v49 = vcombine.low %v1181_v37, %v1185_v38  ;;  %v4508_v50 = vcombine.low %v1182_v39, %v1186_v40  ;;  %v4563_v37 = vcombine.high %v1237_v30, %v1241_v31  ;;  %v1245_v39 = vld [vmem:[%s5822_s7 + $0x510] sm:$0xff] }
 0x1b5   : > { %3685 = vmatprep.subr.bf16.mxu0 %v4451_v51  ;;  %3814 = vmatprep.subr.bf16.mxu1 %v4453_v52  ;;  %v4515_v51 = vcombine.high %v1189_v45, %v1193_v46  ;;  %v4517_v52 = vcombine.high %v1190_v47, %v1194_v48  ;;  %v1249_v40 = vld [vmem:[%s5822_s7 + $0x530] sm:$0xff] }
 0x1b8   : > { %3686 = vmatpush1.bf16.msra.mxu0 %v4450_v57  ;;  %3815 = vmatpush1.bf16.msra.mxu1 %v4452_v58  ;;  %v4514_v57 = vcombine.low %v1189_v45, %v1193_v46  ;;  %v4516_v58 = vcombine.low %v1190_v47, %v1194_v48  ;;  %v4571_v45 = vcombine.high %v1245_v39, %v1249_v40  ;;  %v1253_v47 = vld [vmem:[%s5822_s7 + $0x550] sm:$0xff] }
 0x1b9   : > { %3687 = vmatprep.subr.bf16.mxu0 %v4459_v59  ;;  %3816 = vmatprep.subr.bf16.mxu1 %v4461_v60  ;;  %v4523_v59 = vcombine.high %v1197_v53, %v1201_v54  ;;  %v4525_v60 = vcombine.high %v1198_v55, %v1202_v56  ;;  %v1257_v48 = vld [vmem:[%s5822_s7 + $0x570] sm:$0xff] }
 0x1bc   : > { %3688 = vmatpush1.bf16.msra.mxu0 %v4458_v1  ;;  %3817 = vmatpush1.bf16.msra.mxu1 %v4460_v2  ;;  %v4522_v1 = vcombine.low %v1197_v53, %v1201_v54  ;;  %v4524_v2 = vcombine.low %v1198_v55, %v1202_v56  ;;  %v4579_v53 = vcombine.high %v1253_v47, %v1257_v48  ;;  %v1261_v55 = vld [vmem:[%s5822_s7 + $0x590] sm:$0xff] }
 0x1bd   : > { %3689 = vmatprep.subr.bf16.mxu0 %v4467_v3  ;;  %3818 = vmatprep.subr.bf16.mxu1 %v4469_v4  ;;  %v4531_v3 = vcombine.high %v1205_v61, %v1209_v62  ;;  %v4533_v4 = vcombine.high %v1206_v63, %v1210_v0  ;;  %v1265_v56 = vld [vmem:[%s5822_s7 + $0x5b0] sm:$0xff] }
 0x1c0   : > { %3690 = vmatpush1.bf16.msra.mxu0 %v4466_v9  ;;  %3819 = vmatpush1.bf16.msra.mxu1 %v4468_v10  ;;  %v4530_v9 = vcombine.low %v1205_v61, %v1209_v62  ;;  %v4532_v10 = vcombine.low %v1206_v63, %v1210_v0  ;;  %v4587_v61 = vcombine.high %v1261_v55, %v1265_v56  ;;  %v1269_v63 = vld [vmem:[%s5822_s7 + $0x5d0] sm:$0xff] }
 0x1c1   : > { %3691 = vmatprep.subr.bf16.mxu0 %v4475_v11  ;;  %3820 = vmatprep.subr.bf16.mxu1 %v4477_v12  ;;  %v4539_v11 = vcombine.high %v1213_v5, %v1217_v6  ;;  %v4541_v12 = vcombine.high %v1214_v7, %v1218_v8  ;;  %v1273_v0 = vld [vmem:[%s5822_s7 + $0x5f0] sm:$0xff] }
 0x1c4   : > { %3692 = vmatpush1.bf16.msra.mxu0 %v4474_v17  ;;  %3821 = vmatpush1.bf16.msra.mxu1 %v4476_v18  ;;  %v4538_v17 = vcombine.low %v1213_v5, %v1217_v6  ;;  %v4540_v18 = vcombine.low %v1214_v7, %v1218_v8  ;;  %v4595_v5 = vcombine.high %v1269_v63, %v1273_v0  ;;  %v1277_v7 = vld [vmem:[%s5822_s7 + $0x610] sm:$0xff] }
 0x1c5   : > { %3693 = vmatprep.subr.bf16.mxu0 %v4483_v19  ;;  %3822 = vmatprep.subr.bf16.mxu1 %v4485_v20  ;;  %v4547_v19 = vcombine.high %v1221_v13, %v1225_v14  ;;  %v4549_v20 = vcombine.high %v1222_v15, %v1226_v16  ;;  %v1281_v8 = vld [vmem:[%s5822_s7 + $0x630] sm:$0xff] }
 0x1c8   : > { %3694 = vmatpush1.bf16.msra.mxu0 %v4482_v25  ;;  %3823 = vmatpush1.bf16.msra.mxu1 %v4484_v26  ;;  %v1234_v25 = vld [vmem:[%s5822_s7 + $0x4b8] sm:$0xff]  ;;  %v4546_v26 = vcombine.low %v1221_v13, %v1225_v14  ;;  %v4603_v13 = vcombine.high %v1277_v7, %v1281_v8 }
 0x1c9   : > { %3695 = vmatprep.subr.bf16.mxu0 %v4491_v27  ;;  %3824 = vmatprep.subr.bf16.mxu1 %v4493_v28  ;;  %v4548_v27 = vcombine.low %v1222_v15, %v1226_v16  ;;  %v4555_v28 = vcombine.high %v1229_v21, %v1233_v22  ;;  %v4557_v29 = vcombine.high %v1230_v24, %v1234_v25  ;;  %v1285_v15 = vld [vmem:[%s5822_s7 + $0x650] sm:$0xff] }
 0x1ca   : > { %v1289_v16 = vld [vmem:[%s5822_s7 + $0x670] sm:$0xff] }
 0x1cc   : > { %3696 = vmatpush1.bf16.msra.mxu0 %v4490_v33  ;;  %3825 = vmatpush1.bf16.msra.mxu1 %v4492_v34  ;;  %v1238_v33 = vld [vmem:[%s5822_s7 + $0x4d8] sm:$0xff] }
 0x1cd   : > { %3697 = vmatprep.subr.bf16.mxu0 %v4499_v35  ;;  %3826 = vmatprep.subr.bf16.mxu1 %v4501_v36  ;;  %v1242_v34 = vld [vmem:[%s5822_s7 + $0x4f8] sm:$0xff]  ;;  %v4554_v35 = vcombine.low %v1229_v21, %v1233_v22  ;;  %v4556_v36 = vcombine.low %v1230_v24, %v1234_v25  ;;  %v4611_v21 = vcombine.high %v1285_v15, %v1289_v16  ;;  %v1297_v24 = vld [vmem:[%s5822_s7 + $0x6b0] sm:$0xff] }
 0x1ce   : > { %v4565_v38 = vcombine.high %v1238_v33, %v1242_v34  ;;  %v1294_v25 = vld [vmem:[%s5822_s7 + $0x698] sm:$0xff] }
 0x1d0   : > { %3698 = vmatpush1.bf16.msra.mxu0 %v4498_v41  ;;  %3827 = vmatpush1.bf16.msra.mxu1 %v4500_v42  ;;  %v1246_v41 = vld [vmem:[%s5822_s7 + $0x518] sm:$0xff] }
 0x1d1   : > { %3699 = vmatprep.subr.bf16.mxu0 %v4507_v43  ;;  %3828 = vmatprep.subr.bf16.mxu1 %v4509_v44  ;;  %v1250_v42 = vld [vmem:[%s5822_s7 + $0x538] sm:$0xff]  ;;  %v4562_v43 = vcombine.low %v1237_v30, %v1241_v31  ;;  %v4564_v44 = vcombine.low %v1238_v33, %v1242_v34  ;;  %v1301_v31 = vld [vmem:[%s5822_s7 + $0x6d0] sm:$0xff] }
 0x1d2   : > { %v4573_v46 = vcombine.high %v1246_v41, %v1250_v42  ;;  %v1302_v33 = vld [vmem:[%s5822_s7 + $0x6d8] sm:$0xff] }
 0x1d3   : > { %v1306_v34 = vld [vmem:[%s5822_s7 + $0x6f8] sm:$0xff] }
 0x1d4   : > { %3700 = vmatpush1.bf16.msra.mxu0 %v4506_v49  ;;  %3829 = vmatpush1.bf16.msra.mxu1 %v4508_v50  ;;  %v1254_v49 = vld [vmem:[%s5822_s7 + $0x558] sm:$0xff] }
 0x1d5   : > { %3701 = vmatprep.subr.bf16.mxu0 %v4515_v51  ;;  %3830 = vmatprep.subr.bf16.mxu1 %v4517_v52  ;;  %v1258_v50 = vld [vmem:[%s5822_s7 + $0x578] sm:$0xff]  ;;  %v4570_v51 = vcombine.low %v1245_v39, %v1249_v40  ;;  %v4572_v52 = vcombine.low %v1246_v41, %v1250_v42  ;;  %v1309_v39 = vld [vmem:[%s5822_s7 + $0x710] sm:$0xff] }
 0x1d6   : > { %v4581_v54 = vcombine.high %v1254_v49, %v1258_v50  ;;  %v1313_v40 = vld [vmem:[%s5822_s7 + $0x730] sm:$0xff]  ;;  %v1310_v41 = vld [vmem:[%s5822_s7 + $0x718] sm:$0xff] }
 0x1d7   : > { %v1314_v42 = vld [vmem:[%s5822_s7 + $0x738] sm:$0xff] }
 0x1d8   : > { %3702 = vmatpush1.bf16.msra.mxu0 %v4514_v57  ;;  %3831 = vmatpush1.bf16.msra.mxu1 %v4516_v58  ;;  %v1262_v57 = vld [vmem:[%s5822_s7 + $0x598] sm:$0xff] }
 0x1d9   : > { %3703 = vmatprep.subr.bf16.mxu0 %v4523_v59  ;;  %3832 = vmatprep.subr.bf16.mxu1 %v4525_v60  ;;  %v1266_v58 = vld [vmem:[%s5822_s7 + $0x5b8] sm:$0xff]  ;;  %v4578_v59 = vcombine.low %v1253_v47, %v1257_v48  ;;  %v4580_v60 = vcombine.low %v1254_v49, %v1258_v50  ;;  %v1317_v47 = vld [vmem:[%s5822_s7 + $0x750] sm:$0xff] }
 0x1da   : > { %v4589_v62 = vcombine.high %v1262_v57, %v1266_v58  ;;  %v1321_v48 = vld [vmem:[%s5822_s7 + $0x770] sm:$0xff]  ;;  %v1318_v49 = vld [vmem:[%s5822_s7 + $0x758] sm:$0xff] }
 0x1db   : > { %v1322_v50 = vld [vmem:[%s5822_s7 + $0x778] sm:$0xff] }
 0x1dc   : > { %3704 = vmatpush1.bf16.msra.mxu0 %v4522_v1  ;;  %3833 = vmatpush1.bf16.msra.mxu1 %v4524_v2  ;;  %v1270_v1 = vld [vmem:[%s5822_s7 + $0x5d8] sm:$0xff] }
 0x1dd   : > { %3705 = vmatprep.subr.bf16.mxu0 %v4531_v3  ;;  %3834 = vmatprep.subr.bf16.mxu1 %v4533_v4  ;;  %v1274_v2 = vld [vmem:[%s5822_s7 + $0x5f8] sm:$0xff]  ;;  %v4586_v3 = vcombine.low %v1261_v55, %v1265_v56  ;;  %v4588_v4 = vcombine.low %v1262_v57, %v1266_v58  ;;  %v1325_v55 = vld [vmem:[%s5822_s7 + $0x790] sm:$0xff] }
 0x1de   : > { %v4597_v6 = vcombine.high %v1270_v1, %v1274_v2  ;;  %v1329_v56 = vld [vmem:[%s5822_s7 + $0x7b0] sm:$0xff]  ;;  %v1326_v57 = vld [vmem:[%s5822_s7 + $0x798] sm:$0xff] }
 0x1df   : > { %v1330_v58 = vld [vmem:[%s5822_s7 + $0x7b8] sm:$0xff] }
 0x1e0   : > { %3706 = vmatpush1.bf16.msra.mxu0 %v4530_v9  ;;  %3835 = vmatpush1.bf16.msra.mxu1 %v4532_v10  ;;  %v1278_v9 = vld [vmem:[%s5822_s7 + $0x618] sm:$0xff] }
 0x1e1   : > { %3718 = vmatprep.subr.bf16.mxu0 %v4539_v11  ;;  %3847 = vmatprep.subr.bf16.mxu1 %v4541_v12  ;;  %v1282_v10 = vld [vmem:[%s5822_s7 + $0x638] sm:$0xff]  ;;  %v4594_v11 = vcombine.low %v1269_v63, %v1273_v0  ;;  %v4596_v12 = vcombine.low %v1270_v1, %v1274_v2  ;;  %v1333_v63 = vld [vmem:[%s5822_s7 + $0x7d0] sm:$0xff] }
 0x1e2   : > { %v4605_v14 = vcombine.high %v1278_v9, %v1282_v10  ;;  %v1337_v0 = vld [vmem:[%s5822_s7 + $0x7f0] sm:$0xff]  ;;  %v1334_v1 = vld [vmem:[%s5822_s7 + $0x7d8] sm:$0xff] }
 0x1e3   : > { %3708 = vmatmul.mubr.bf16.vlgmr.msra.gmra.mrb[4].mxu0 %v4929_v23  ;;  %3837 = vmatmul.mubr.bf16.vlgmr.msra.gmra.mrb[4].mxu1 %v4929_v23  ;;  %v1293_v23 = vld [vmem:[%s5822_s7 + $0x690] sm:$0xff]  ;;  %v1338_v2 = vld [vmem:[%s5822_s7 + $0x7f8] sm:$0xff] }
 0x1e4   : > { %3719 = vmatpush1.bf16.msra.mxu0 %v4538_v17  ;;  %3848 = vmatpush1.bf16.msra.mxu1 %v4540_v18  ;;  %v1286_v17 = vld [vmem:[%s5822_s7 + $0x658] sm:$0xff] }
 0x1e5   : > { %3720 = vmatprep.subr.bf16.mxu0 %v4547_v19  ;;  %3849 = vmatprep.subr.bf16.mxu1 %v4549_v20  ;;  %v1290_v18 = vld [vmem:[%s5822_s7 + $0x678] sm:$0xff]  ;;  %v4602_v19 = vcombine.low %v1277_v7, %v1281_v8  ;;  %v4604_v20 = vcombine.low %v1278_v9, %v1282_v10  ;;  %v1341_v7 = vld [vmem:[%s5822_s7 + $0x810] sm:$0xff] }
 0x1e6   : > { %3750 = vmatprep.mubr.bf16.mxu0 %v4930_v32  ;;  %3879 = vmatprep.mubr.bf16.mxu1 %v4930_v32  ;;  %v4613_v22 = vcombine.high %v1286_v17, %v1290_v18  ;;  %v1305_v32 = vld [vmem:[%s5822_s7 + $0x6f0] sm:$0xff]  ;;  %v1342_v9 = vld [vmem:[%s5822_s7 + $0x818] sm:$0xff] }
 0x1e7   : > { %v1345_v8 = vld [vmem:[%s5822_s7 + $0x830] sm:$0xff]  ;;  %v1346_v10 = vld [vmem:[%s5822_s7 + $0x838] sm:$0xff] }
 0x1e8   : > { %3721 = vmatpush1.bf16.msra.mxu0 %v4546_v26  ;;  %3850 = vmatpush1.bf16.msra.mxu1 %v4548_v27  ;;  %v1298_v26 = vld [vmem:[%s5822_s7 + $0x6b8] sm:$0xff]  ;;  %v4610_v27 = vcombine.low %v1285_v15, %v1289_v16  ;;  %v1349_v15 = vld [vmem:[%s5822_s7 + $0x850] sm:$0xff] }
 0x1e9   : > { %3722 = vmatprep.subr.bf16.mxu0 %v4555_v28  ;;  %3851 = vmatprep.subr.bf16.mxu1 %v4557_v29  ;;  %v4612_v28 = vcombine.low %v1286_v17, %v1290_v18  ;;  %v4619_v29 = vcombine.high %v1293_v23, %v1297_v24  ;;  %v4621_v30 = vcombine.high %v1294_v25, %v1298_v26  ;;  %v1353_v16 = vld [vmem:[%s5822_s7 + $0x870] sm:$0xff]  ;;  %v1350_v17 = vld [vmem:[%s5822_s7 + $0x858] sm:$0xff] }
 0x1ea   : > { %v1354_v18 = vld [vmem:[%s5822_s7 + $0x878] sm:$0xff] }
 0x1ec   : > { %3723 = vmatpush1.bf16.msra.mxu0 %v4554_v35  ;;  %3852 = vmatpush1.bf16.msra.mxu1 %v4556_v36  ;;  %v4618_v35 = vcombine.low %v1293_v23, %v1297_v24  ;;  %v4620_v36 = vcombine.low %v1294_v25, %v1298_v26  ;;  %v1357_v23 = vld [vmem:[%s5822_s7 + $0x890] sm:$0xff]  ;;  %v4931_v25 = vld [vmem:[%s6418_s0 + $0x8] ss:$24 sps:$4 sm:$0xff]   ;;  %v1358_v26 = vld [vmem:[%s5822_s7 + $0x898] sm:$0xff] }
 0x1ed   : > { %3724 = vmatprep.subr.bf16.mxu0 %v4563_v37  ;;  %3853 = vmatprep.subr.bf16.mxu1 %v4565_v38  ;;  %v4627_v37 = vcombine.high %v1301_v31, %v1305_v32  ;;  %v4629_v38 = vcombine.high %v1302_v33, %v1306_v34  ;;  %v1361_v24 = vld [vmem:[%s5822_s7 + $0x8b0] sm:$0xff] }
 0x1f0   : > { %3725 = vmatpush1.bf16.msra.mxu0 %v4562_v43  ;;  %3854 = vmatpush1.bf16.msra.mxu1 %v4564_v44  ;;  %v4626_v43 = vcombine.low %v1301_v31, %v1305_v32  ;;  %v4628_v44 = vcombine.low %v1302_v33, %v1306_v34  ;;  %v1365_v32 = vld [vmem:[%s5822_s7 + $0x8d0] sm:$0xff] }
 0x1f1   : > { %3726 = vmatprep.subr.bf16.mxu0 %v4571_v45  ;;  %3855 = vmatprep.subr.bf16.mxu1 %v4573_v46  ;;  %v4635_v45 = vcombine.high %v1309_v39, %v1313_v40  ;;  %v4637_v46 = vcombine.high %v1310_v41, %v1314_v42  ;;  %v1369_v33 = vld [vmem:[%s5822_s7 + $0x8f0] sm:$0xff] }
 0x1f2   : > { %v4932_v34 = vld [vmem:[%s6418_s0 + $0x14] ss:$24 sps:$4 sm:$0xff]  }
 0x1f4   : > { %3727 = vmatpush1.bf16.msra.mxu0 %v4570_v51  ;;  %3856 = vmatpush1.bf16.msra.mxu1 %v4572_v52  ;;  %v4634_v51 = vcombine.low %v1309_v39, %v1313_v40  ;;  %v4636_v52 = vcombine.low %v1310_v41, %v1314_v42  ;;  %v4691_v39 = vcombine.high %v1365_v32, %v1369_v33  ;;  %v1373_v41 = vld [vmem:[%s5822_s7 + $0x910] sm:$0xff] }
 0x1f5   : > { %3728 = vmatprep.subr.bf16.mxu0 %v4579_v53  ;;  %3857 = vmatprep.subr.bf16.mxu1 %v4581_v54  ;;  %v4643_v53 = vcombine.high %v1317_v47, %v1321_v48  ;;  %v4645_v54 = vcombine.high %v1318_v49, %v1322_v50  ;;  %v1377_v42 = vld [vmem:[%s5822_s7 + $0x930] sm:$0xff] }
 0x1f8   : > { %3729 = vmatpush1.bf16.msra.mxu0 %v4578_v59  ;;  %3858 = vmatpush1.bf16.msra.mxu1 %v4580_v60  ;;  %v4642_v59 = vcombine.low %v1317_v47, %v1321_v48  ;;  %v4644_v60 = vcombine.low %v1318_v49, %v1322_v50  ;;  %v4699_v47 = vcombine.high %v1373_v41, %v1377_v42  ;;  %v1381_v49 = vld [vmem:[%s5822_s7 + $0x950] sm:$0xff] }
 0x1f9   : > { %3730 = vmatprep.subr.bf16.mxu0 %v4587_v61  ;;  %3859 = vmatprep.subr.bf16.mxu1 %v4589_v62  ;;  %v4651_v61 = vcombine.high %v1325_v55, %v1329_v56  ;;  %v4653_v62 = vcombine.high %v1326_v57, %v1330_v58  ;;  %v1385_v50 = vld [vmem:[%s5822_s7 + $0x970] sm:$0xff] }
 0x1fc   : > { %3731 = vmatpush1.bf16.msra.mxu0 %v4586_v3  ;;  %3860 = vmatpush1.bf16.msra.mxu1 %v4588_v4  ;;  %v4650_v3 = vcombine.low %v1325_v55, %v1329_v56  ;;  %v4652_v4 = vcombine.low %v1326_v57, %v1330_v58  ;;  %v4707_v55 = vcombine.high %v1381_v49, %v1385_v50  ;;  %v1389_v57 = vld [vmem:[%s5822_s7 + $0x990] sm:$0xff] }
 0x1fd   : > { %3732 = vmatprep.subr.bf16.mxu0 %v4595_v5  ;;  %3861 = vmatprep.subr.bf16.mxu1 %v4597_v6  ;;  %v4659_v5 = vcombine.high %v1333_v63, %v1337_v0  ;;  %v4661_v6 = vcombine.high %v1334_v1, %v1338_v2  ;;  %v1393_v58 = vld [vmem:[%s5822_s7 + $0x9b0] sm:$0xff] }
 0x200   : > { %3733 = vmatpush1.bf16.msra.mxu0 %v4594_v11  ;;  %3862 = vmatpush1.bf16.msra.mxu1 %v4596_v12  ;;  %v4658_v11 = vcombine.low %v1333_v63, %v1337_v0  ;;  %v4660_v12 = vcombine.low %v1334_v1, %v1338_v2  ;;  %v4715_v63 = vcombine.high %v1389_v57, %v1393_v58  ;;  %v1397_v1 = vld [vmem:[%s5822_s7 + $0x9d0] sm:$0xff] }
 0x201   : > { %3734 = vmatprep.subr.bf16.mxu0 %v4603_v13  ;;  %3863 = vmatprep.subr.bf16.mxu1 %v4605_v14  ;;  %v4667_v13 = vcombine.high %v1341_v7, %v1345_v8  ;;  %v4669_v14 = vcombine.high %v1342_v9, %v1346_v10  ;;  %v1401_v2 = vld [vmem:[%s5822_s7 + $0x9f0] sm:$0xff] }
 0x204   : > { %3735 = vmatpush1.bf16.msra.mxu0 %v4602_v19  ;;  %3864 = vmatpush1.bf16.msra.mxu1 %v4604_v20  ;;  %v4666_v19 = vcombine.low %v1341_v7, %v1345_v8  ;;  %v4668_v20 = vcombine.low %v1342_v9, %v1346_v10  ;;  %v4723_v7 = vcombine.high %v1397_v1, %v1401_v2  ;;  %v1405_v9 = vld [vmem:[%s5822_s7 + $0xa10] sm:$0xff] }
 0x205   : > { %3736 = vmatprep.subr.bf16.mxu0 %v4611_v21  ;;  %3865 = vmatprep.subr.bf16.mxu1 %v4613_v22  ;;  %v4675_v21 = vcombine.high %v1349_v15, %v1353_v16  ;;  %v4677_v22 = vcombine.high %v1350_v17, %v1354_v18  ;;  %v1409_v10 = vld [vmem:[%s5822_s7 + $0xa30] sm:$0xff] }
 0x208   : > { %3737 = vmatpush1.bf16.msra.mxu0 %v4610_v27  ;;  %3866 = vmatpush1.bf16.msra.mxu1 %v4612_v28  ;;  %v1362_v27 = vld [vmem:[%s5822_s7 + $0x8b8] sm:$0xff]  ;;  %v4674_v28 = vcombine.low %v1349_v15, %v1353_v16  ;;  %v4731_v15 = vcombine.high %v1405_v9, %v1409_v10 }
 0x209   : > { %3738 = vmatprep.subr.bf16.mxu0 %v4619_v29  ;;  %3867 = vmatprep.subr.bf16.mxu1 %v4621_v30  ;;  %v4676_v29 = vcombine.low %v1350_v17, %v1354_v18  ;;  %v4683_v30 = vcombine.high %v1357_v23, %v1361_v24  ;;  %v4685_v31 = vcombine.high %v1358_v26, %v1362_v27  ;;  %v1413_v17 = vld [vmem:[%s5822_s7 + $0xa50] sm:$0xff] }
 0x20a   : > { %v1417_v18 = vld [vmem:[%s5822_s7 + $0xa70] sm:$0xff] }
 0x20c   : > { %3739 = vmatpush1.bf16.msra.mxu0 %v4618_v35  ;;  %3868 = vmatpush1.bf16.msra.mxu1 %v4620_v36  ;;  %v1366_v35 = vld [vmem:[%s5822_s7 + $0x8d8] sm:$0xff] }
 0x20d   : > { %3740 = vmatprep.subr.bf16.mxu0 %v4627_v37  ;;  %3869 = vmatprep.subr.bf16.mxu1 %v4629_v38  ;;  %v1370_v36 = vld [vmem:[%s5822_s7 + $0x8f8] sm:$0xff]  ;;  %v4682_v37 = vcombine.low %v1357_v23, %v1361_v24  ;;  %v4684_v38 = vcombine.low %v1358_v26, %v1362_v27  ;;  %v4739_v23 = vcombine.high %v1413_v17, %v1417_v18  ;;  %v1425_v26 = vld [vmem:[%s5822_s7 + $0xab0] sm:$0xff] }
 0x20e   : > { %v4693_v40 = vcombine.high %v1366_v35, %v1370_v36  ;;  %v1422_v27 = vld [vmem:[%s5822_s7 + $0xa98] sm:$0xff] }
 0x210   : > { %3741 = vmatpush1.bf16.msra.mxu0 %v4626_v43  ;;  %3870 = vmatpush1.bf16.msra.mxu1 %v4628_v44  ;;  %v1374_v43 = vld [vmem:[%s5822_s7 + $0x918] sm:$0xff] }
 0x211   : > { %3742 = vmatprep.subr.bf16.mxu0 %v4635_v45  ;;  %3871 = vmatprep.subr.bf16.mxu1 %v4637_v46  ;;  %v1378_v44 = vld [vmem:[%s5822_s7 + $0x938] sm:$0xff]  ;;  %v4690_v45 = vcombine.low %v1365_v32, %v1369_v33  ;;  %v4692_v46 = vcombine.low %v1366_v35, %v1370_v36  ;;  %v1429_v33 = vld [vmem:[%s5822_s7 + $0xad0] sm:$0xff] }
 0x212   : > { %v4701_v48 = vcombine.high %v1374_v43, %v1378_v44  ;;  %v1430_v35 = vld [vmem:[%s5822_s7 + $0xad8] sm:$0xff] }
 0x213   : > { %v1434_v36 = vld [vmem:[%s5822_s7 + $0xaf8] sm:$0xff] }
 0x214   : > { %3743 = vmatpush1.bf16.msra.mxu0 %v4634_v51  ;;  %3872 = vmatpush1.bf16.msra.mxu1 %v4636_v52  ;;  %v1382_v51 = vld [vmem:[%s5822_s7 + $0x958] sm:$0xff] }
 0x215   : > { %3744 = vmatprep.subr.bf16.mxu0 %v4643_v53  ;;  %3873 = vmatprep.subr.bf16.mxu1 %v4645_v54  ;;  %v1386_v52 = vld [vmem:[%s5822_s7 + $0x978] sm:$0xff]  ;;  %v4698_v53 = vcombine.low %v1373_v41, %v1377_v42  ;;  %v4700_v54 = vcombine.low %v1374_v43, %v1378_v44  ;;  %v1437_v41 = vld [vmem:[%s5822_s7 + $0xb10] sm:$0xff] }
 0x216   : > { %v4709_v56 = vcombine.high %v1382_v51, %v1386_v52  ;;  %v1441_v42 = vld [vmem:[%s5822_s7 + $0xb30] sm:$0xff]  ;;  %v1438_v43 = vld [vmem:[%s5822_s7 + $0xb18] sm:$0xff] }
 0x217   : > { %v1442_v44 = vld [vmem:[%s5822_s7 + $0xb38] sm:$0xff] }
 0x218   : > { %3745 = vmatpush1.bf16.msra.mxu0 %v4642_v59  ;;  %3874 = vmatpush1.bf16.msra.mxu1 %v4644_v60  ;;  %v1390_v59 = vld [vmem:[%s5822_s7 + $0x998] sm:$0xff] }
 0x219   : > { %3746 = vmatprep.subr.bf16.mxu0 %v4651_v61  ;;  %3875 = vmatprep.subr.bf16.mxu1 %v4653_v62  ;;  %v1394_v60 = vld [vmem:[%s5822_s7 + $0x9b8] sm:$0xff]  ;;  %v4706_v61 = vcombine.low %v1381_v49, %v1385_v50  ;;  %v4708_v62 = vcombine.low %v1382_v51, %v1386_v52  ;;  %v1445_v49 = vld [vmem:[%s5822_s7 + $0xb50] sm:$0xff] }
 0x21a   : > { %v4717_v0 = vcombine.high %v1390_v59, %v1394_v60  ;;  %v1449_v50 = vld [vmem:[%s5822_s7 + $0xb70] sm:$0xff]  ;;  %v1446_v51 = vld [vmem:[%s5822_s7 + $0xb58] sm:$0xff] }
 0x21b   : > { %v1450_v52 = vld [vmem:[%s5822_s7 + $0xb78] sm:$0xff] }
 0x21c   : > { %3747 = vmatpush1.bf16.msra.mxu0 %v4650_v3  ;;  %3876 = vmatpush1.bf16.msra.mxu1 %v4652_v4  ;;  %v1398_v3 = vld [vmem:[%s5822_s7 + $0x9d8] sm:$0xff] }
 0x21d   : > { %3748 = vmatprep.subr.bf16.mxu0 %v4659_v5  ;;  %3877 = vmatprep.subr.bf16.mxu1 %v4661_v6  ;;  %v1402_v4 = vld [vmem:[%s5822_s7 + $0x9f8] sm:$0xff]  ;;  %v4714_v5 = vcombine.low %v1389_v57, %v1393_v58  ;;  %v4716_v6 = vcombine.low %v1390_v59, %v1394_v60  ;;  %v1453_v57 = vld [vmem:[%s5822_s7 + $0xb90] sm:$0xff] }
 0x21e   : > { %v4725_v8 = vcombine.high %v1398_v3, %v1402_v4  ;;  %v1457_v58 = vld [vmem:[%s5822_s7 + $0xbb0] sm:$0xff]  ;;  %v1454_v59 = vld [vmem:[%s5822_s7 + $0xb98] sm:$0xff] }
 0x21f   : > { %v1458_v60 = vld [vmem:[%s5822_s7 + $0xbb8] sm:$0xff] }
 0x220   : > { %3749 = vmatpush1.bf16.msra.mxu0 %v4658_v11  ;;  %3878 = vmatpush1.bf16.msra.mxu1 %v4660_v12  ;;  %v1406_v11 = vld [vmem:[%s5822_s7 + $0xa18] sm:$0xff] }
 0x221   : > { %3761 = vmatprep.subr.bf16.mxu0 %v4667_v13  ;;  %3890 = vmatprep.subr.bf16.mxu1 %v4669_v14  ;;  %v1410_v12 = vld [vmem:[%s5822_s7 + $0xa38] sm:$0xff]  ;;  %v4722_v13 = vcombine.low %v1397_v1, %v1401_v2  ;;  %v4724_v14 = vcombine.low %v1398_v3, %v1402_v4  ;;  %v1461_v1 = vld [vmem:[%s5822_s7 + $0xbd0] sm:$0xff] }
 0x222   : > { %v4733_v16 = vcombine.high %v1406_v11, %v1410_v12  ;;  %v1465_v2 = vld [vmem:[%s5822_s7 + $0xbf0] sm:$0xff]  ;;  %v1462_v3 = vld [vmem:[%s5822_s7 + $0xbd8] sm:$0xff] }
 0x223   : > { %3751 = vmatmul.mubr.bf16.vlgmr.msra.gmra.mrb[4].mxu0 %v4931_v25  ;;  %3880 = vmatmul.mubr.bf16.vlgmr.msra.gmra.mrb[4].mxu1 %v4931_v25  ;;  %v1421_v25 = vld [vmem:[%s5822_s7 + $0xa90] sm:$0xff]  ;;  %v1466_v4 = vld [vmem:[%s5822_s7 + $0xbf8] sm:$0xff] }
 0x224   : > { %3762 = vmatpush1.bf16.msra.mxu0 %v4666_v19  ;;  %3891 = vmatpush1.bf16.msra.mxu1 %v4668_v20  ;;  %v1414_v19 = vld [vmem:[%s5822_s7 + $0xa58] sm:$0xff] }
 0x225   : > { %3763 = vmatprep.subr.bf16.mxu0 %v4675_v21  ;;  %3892 = vmatprep.subr.bf16.mxu1 %v4677_v22  ;;  %v1418_v20 = vld [vmem:[%s5822_s7 + $0xa78] sm:$0xff]  ;;  %v4730_v21 = vcombine.low %v1405_v9, %v1409_v10  ;;  %v4732_v22 = vcombine.low %v1406_v11, %v1410_v12  ;;  %v4786_v9 = vcombine.low %v1461_v1, %v1465_v2  ;;  %v4933_v11 = vld [vmem:[%s6418_s0 + $0x10] ss:$24 sps:$4 sm:$0xff]   ;;  %v3986_v12 = vlaneseq }
 0x226   : > { %3793 = vmatprep.mubr.bf16.mxu0 %v4932_v34  ;;  %3922 = vmatprep.mubr.bf16.mxu1 %v4932_v34  ;;  %v4741_v24 = vcombine.high %v1414_v19, %v1418_v20  ;;  %v1433_v34 = vld [vmem:[%s5822_s7 + $0xaf0] sm:$0xff]  ;;  %v4788_v10 = vcombine.low %v1462_v3, %v1466_v4 }
 0x228   : > { %3764 = vmatpush1.bf16.msra.mxu0 %v4674_v28  ;;  %3893 = vmatpush1.bf16.msra.mxu1 %v4676_v29  ;;  %v1426_v28 = vld [vmem:[%s5822_s7 + $0xab8] sm:$0xff]  ;;  %v4738_v29 = vcombine.low %v1413_v17, %v1417_v18 }
 0x229   : > { %3765 = vmatprep.subr.bf16.mxu0 %v4683_v30  ;;  %3894 = vmatprep.subr.bf16.mxu1 %v4685_v31  ;;  %v4740_v30 = vcombine.low %v1414_v19, %v1418_v20  ;;  %v4747_v31 = vcombine.high %v1421_v25, %v1425_v26  ;;  %v4749_v32 = vcombine.high %v1422_v27, %v1426_v28 }
 0x22c   : > { %3766 = vmatpush1.bf16.msra.mxu0 %v4682_v37  ;;  %3895 = vmatpush1.bf16.msra.mxu1 %v4684_v38  ;;  %v4746_v37 = vcombine.low %v1421_v25, %v1425_v26  ;;  %v4748_v38 = vcombine.low %v1422_v27, %v1426_v28 }
 0x22d   : > { %3767 = vmatprep.subr.bf16.mxu0 %v4691_v39  ;;  %3896 = vmatprep.subr.bf16.mxu1 %v4693_v40  ;;  %v4755_v39 = vcombine.high %v1429_v33, %v1433_v34  ;;  %v4757_v40 = vcombine.high %v1430_v35, %v1434_v36 }
 0x230   : > { %3768 = vmatpush1.bf16.msra.mxu0 %v4690_v45  ;;  %3897 = vmatpush1.bf16.msra.mxu1 %v4692_v46  ;;  %v4754_v45 = vcombine.low %v1429_v33, %v1433_v34  ;;  %v4756_v46 = vcombine.low %v1430_v35, %v1434_v36 }
 0x231   : > { %3769 = vmatprep.subr.bf16.mxu0 %v4699_v47  ;;  %3898 = vmatprep.subr.bf16.mxu1 %v4701_v48  ;;  %v4763_v47 = vcombine.high %v1437_v41, %v1441_v42  ;;  %v4765_v48 = vcombine.high %v1438_v43, %v1442_v44 }
 0x234   : > { %3770 = vmatpush1.bf16.msra.mxu0 %v4698_v53  ;;  %3899 = vmatpush1.bf16.msra.mxu1 %v4700_v54  ;;  %v4762_v53 = vcombine.low %v1437_v41, %v1441_v42  ;;  %v4764_v54 = vcombine.low %v1438_v43, %v1442_v44 }
 0x235   : > { %3771 = vmatprep.subr.bf16.mxu0 %v4707_v55  ;;  %3900 = vmatprep.subr.bf16.mxu1 %v4709_v56  ;;  %v4771_v55 = vcombine.high %v1445_v49, %v1449_v50  ;;  %v4773_v56 = vcombine.high %v1446_v51, %v1450_v52 }
 0x238   : > { %3772 = vmatpush1.bf16.msra.mxu0 %v4706_v61  ;;  %3901 = vmatpush1.bf16.msra.mxu1 %v4708_v62  ;;  %v4770_v61 = vcombine.low %v1445_v49, %v1449_v50  ;;  %v4772_v62 = vcombine.low %v1446_v51, %v1450_v52 }
 0x239   : > { %3773 = vmatprep.subr.bf16.mxu0 %v4715_v63  ;;  %3902 = vmatprep.subr.bf16.mxu1 %v4717_v0  ;;  %v4779_v63 = vcombine.high %v1453_v57, %v1457_v58  ;;  %v4781_v0 = vcombine.high %v1454_v59, %v1458_v60 }
 0x23c   : > { %3774 = vmatpush1.bf16.msra.mxu0 %v4714_v5  ;;  %3903 = vmatpush1.bf16.msra.mxu1 %v4716_v6  ;;  %v4778_v5 = vcombine.low %v1453_v57, %v1457_v58  ;;  %v4780_v6 = vcombine.low %v1454_v59, %v1458_v60 }
 0x23d   : > { %3775 = vmatprep.subr.bf16.mxu0 %v4723_v7  ;;  %3904 = vmatprep.subr.bf16.mxu1 %v4725_v8  ;;  %v4787_v7 = vcombine.high %v1461_v1, %v1465_v2  ;;  %v4789_v8 = vcombine.high %v1462_v3, %v1466_v4 }
 0x240   : > { %3776 = vmatpush1.bf16.msra.mxu0 %v4722_v13  ;;  %3905 = vmatpush1.bf16.msra.mxu1 %v4724_v14  ;;  %v6242_v13 = vshrl.u32 %v3986_v12, 7 }
 0x241   : > { %3777 = vmatprep.subr.bf16.mxu0 %v4731_v15  ;;  %3906 = vmatprep.subr.bf16.mxu1 %v4733_v16  ;;  %v6248_v15 = vld [vmem:[%s1037_s23] sm:$0xff] }
 0x242   : > { %v3988_v14 = vsub.s32 0, %v6242_v13  ;;  %v3996_v16 = vsub.s32 2, %v6242_v13  ;;  %v3992_v17 = vsub.s32 1, %v6242_v13  ;;  %v4000_v18 = vsub.s32 3, %v6242_v13 }
 0x244   : > { %3778 = vmatpush1.bf16.msra.mxu0 %v4730_v21  ;;  %3907 = vmatpush1.bf16.msra.mxu1 %v4732_v22  ;;  %v3989_v19 = vrot.slane %v6248_v15, %v3988_v14  ;;  %v3997_v20 = vrot.slane %v6248_v15, %v3996_v16  ;;  %v3993_v21 = vrot.slane %v6248_v15, %v3992_v17 }
 0x245   : > { %3779 = vmatprep.subr.bf16.mxu0 %v4739_v23  ;;  %3908 = vmatprep.subr.bf16.mxu1 %v4741_v24  ;;  %v4001_v22 = vrot.slane %v6248_v15, %v4000_v18 }
 0x248   : > { %3780 = vmatpush1.bf16.msra.mxu0 %v4738_v29  ;;  %3909 = vmatpush1.bf16.msra.mxu1 %v4740_v30 }
 0x249   : > { %3781 = vmatprep.subr.bf16.mxu0 %v4747_v31  ;;  %3910 = vmatprep.subr.bf16.mxu1 %v4749_v32 }
 0x24c   : > { %3782 = vmatpush1.bf16.msra.mxu0 %v4746_v37  ;;  %3911 = vmatpush1.bf16.msra.mxu1 %v4748_v38 }
 0x24d   : > { %3783 = vmatprep.subr.bf16.mxu0 %v4755_v39  ;;  %3912 = vmatprep.subr.bf16.mxu1 %v4757_v40 }
 0x250   : > { %3784 = vmatpush1.bf16.msra.mxu0 %v4754_v45  ;;  %3913 = vmatpush1.bf16.msra.mxu1 %v4756_v46 }
 0x251   : > { %3785 = vmatprep.subr.bf16.mxu0 %v4763_v47  ;;  %3914 = vmatprep.subr.bf16.mxu1 %v4765_v48 }
 0x254   : > { %3786 = vmatpush1.bf16.msra.mxu0 %v4762_v53  ;;  %3915 = vmatpush1.bf16.msra.mxu1 %v4764_v54 }
 0x255   : > { %3787 = vmatprep.subr.bf16.mxu0 %v4771_v55  ;;  %3916 = vmatprep.subr.bf16.mxu1 %v4773_v56 }
 0x258   : > { %3788 = vmatpush1.bf16.msra.mxu0 %v4770_v61  ;;  %3917 = vmatpush1.bf16.msra.mxu1 %v4772_v62 }
 0x259   : > { %3789 = vmatprep.subr.bf16.mxu0 %v4779_v63  ;;  %3918 = vmatprep.subr.bf16.mxu1 %v4781_v0 }
 0x25c   : > { %3790 = vmatpush1.bf16.msra.mxu0 %v4778_v5  ;;  %3919 = vmatpush1.bf16.msra.mxu1 %v4780_v6 }
 0x25d   : > { %3791 = vmatprep.subr.bf16.mxu0 %v4787_v7  ;;  %3920 = vmatprep.subr.bf16.mxu1 %v4789_v8 }
 0x260   : > { %3792 = vmatpush1.bf16.msra.mxu0 %v4786_v9  ;;  %3921 = vmatpush1.bf16.msra.mxu1 %v4788_v10 }
 0x263   : > { %3794 = vmatmul.mubr.bf16.vlgmr.msra.gmra.mrb[4].mxu0 %v4933_v11  ;;  %3923 = vmatmul.mubr.bf16.vlgmr.msra.gmra.mrb[4].mxu1 %v4933_v11 }
 0x276   : > { %v3537_v23 = vpop.f32.mrb[0].mxu0  ;;  %v3666_v25 = vpop.f32.mrb[0].mxu1 }
 0x277   : > { %v6257_v24 = vadd.f32 %v3989_v19, %v3537_v23  ;;  %v3539_v26 = vpop.f32.mrb[1].mxu0  ;;  %v6259_v27 = vadd.f32 %v3997_v20, %v3666_v25  ;;  %v3668_v29 = vpop.f32.mrb[1].mxu1 }
 0x278   : > { %v6261_v28 = vadd.f32 %v3993_v21, %v3539_v26  ;;  %v3541_v30 = vpop.f32.mrb[2].mxu0  ;;  %v6265_v32 = vadd.f32 %v4001_v22, %v3668_v29  ;;  %v3670_v34 = vpop.f32.mrb[2].mxu1 }
 0x279   : > { %v4042_v31 = vmul.f32 %v6257_v24, %v6257_v24  ;;  %v6267_v33 = vadd.f32 %v3989_v19, %v3541_v30  ;;  %v3543_v35 = vpop.f32.mrb[3].mxu0  ;;  %v4044_v36 = vmul.f32 %v6259_v27, %v6259_v27  ;;  %v6273_v38 = vadd.f32 %v3997_v20, %v3670_v34  ;;  %v3672_v40 = vpop.f32.mrb[3].mxu1 }
 0x27a   : > { %v4043_v37 = vmul.f32 %v6261_v28, %v6261_v28  ;;  %v6275_v39 = vadd.f32 %v3993_v21, %v3543_v35  ;;  %v4045_v42 = vmul.f32 %v6265_v32, %v6265_v32  ;;  %v6282_v44 = vadd.f32 %v4001_v22, %v3672_v40 }
 0x27b   : > { %v4058_v41 = vmul.f32 %v4042_v31, %v6257_v24  ;;  %v4050_v43 = vmul.f32 %v6267_v33, %v6267_v33  ;;  %v4060_v45 = vmul.f32 %v4044_v36, %v6259_v27  ;;  %v4052_v47 = vmul.f32 %v6273_v38, %v6273_v38 }
 0x27c   : > { %v4059_v46 = vmul.f32 %v4043_v37, %v6261_v28  ;;  %v4051_v48 = vmul.f32 %v6275_v39, %v6275_v39  ;;  %v4061_v50 = vmul.f32 %v4045_v42, %v6265_v32  ;;  %v4053_v52 = vmul.f32 %v6282_v44, %v6282_v44 }
 0x27d   : > { %v4074_v49 = vmul.f32 0.044715, %v4058_v41  ;;  %v4066_v51 = vmul.f32 %v4050_v43, %v6267_v33  ;;  %v4076_v53 = vmul.f32 0.044715, %v4060_v45  ;;  %v4068_v55 = vmul.f32 %v4052_v47, %v6273_v38 }
 0x27e   : > { %v4075_v54 = vmul.f32 0.044715, %v4059_v46  ;;  %v4067_v56 = vmul.f32 %v4051_v48, %v6275_v39  ;;  %v4077_v58 = vmul.f32 0.044715, %v4061_v50  ;;  %v4069_v60 = vmul.f32 %v4053_v52, %v6282_v44 }
 0x27f   : > { %v4090_v57 = vadd.f32 %v4074_v49, %v6257_v24  ;;  %v4082_v59 = vmul.f32 0.044715, %v4066_v51  ;;  %v4092_v61 = vadd.f32 %v4076_v53, %v6259_v27  ;;  %v4084_v63 = vmul.f32 0.044715, %v4068_v55 }
 0x280   : > { %v4091_v62 = vadd.f32 %v4075_v54, %v6261_v28  ;;  %v4083_v0 = vmul.f32 0.044715, %v4067_v56  ;;  %v4093_v2 = vadd.f32 %v4077_v58, %v6265_v32  ;;  %v4085_v4 = vmul.f32 0.044715, %v4069_v60 }
 0x281   : > { %v4106_v1 = vmul.f32 0.7978846, %v4090_v57  ;;  %v4098_v3 = vadd.f32 %v4082_v59, %v6267_v33  ;;  %v4108_v5 = vmul.f32 0.7978846, %v4092_v61  ;;  %v4100_v7 = vadd.f32 %v4084_v63, %v6273_v38 }
 0x282   : > { %v4107_v6 = vmul.f32 0.7978846, %v4091_v62  ;;  %v4099_v8 = vadd.f32 %v4083_v0, %v6275_v39  ;;  %v4109_v9 = vmul.f32 0.7978846, %v4093_v2  ;;  %v4101_v11 = vadd.f32 %v4085_v4, %v6282_v44 }
 0x283   : > { %4896 = vtanh.f32 %v4106_v1  ;;  %v4114_v10 = vmul.f32 0.7978846, %v4098_v3  ;;  %v4116_v12 = vmul.f32 0.7978846, %v4100_v7  ;;  %v4008_v57 = vsub.s32 5, %v6242_v13 }
 0x284   : > { %4898 = vtanh.f32 %v4108_v5  ;;  %v4115_v14 = vmul.f32 0.7978846, %v4099_v8  ;;  %v4117_v16 = vmul.f32 0.7978846, %v4101_v11  ;;  %v4016_v58 = vsub.s32 7, %v6242_v13 }
 0x285   : > { %4900 = vtanh.f32 %v4107_v6 }
 0x286   : > { %4902 = vtanh.f32 %v4109_v9 }
 0x287   : > { %4904 = vtanh.f32 %v4114_v10 }
 0x288   : > { %4906 = vtanh.f32 %v4116_v12 }
 0x289   : > { %4908 = vtanh.f32 %v4115_v14 }
 0x28a   : > { %4910 = vtanh.f32 %v4117_v16 }
 0x28d   : > { %v4897_v17 = vpop.eup %4896 }
 0x28e   : > { %v4899_v18 = vpop.eup %4898  ;;  %v4138_v19 = vadd.f32 1.0, %v4897_v17 }
 0x28f   : > { %v4901_v20 = vpop.eup %4900  ;;  %v4140_v21 = vadd.f32 1.0, %v4899_v18 }
 0x290   : > { %v4903_v22 = vpop.eup %4902  ;;  %v4154_v23 = vmul.f32 0.5, %v4138_v19  ;;  %v4139_v25 = vadd.f32 1.0, %v4901_v20 }
 0x291   : > { %v4905_v26 = vpop.eup %4904  ;;  %v4156_v29 = vmul.f32 0.5, %v4140_v21  ;;  %v4141_v30 = vadd.f32 1.0, %v4903_v22 }
 0x292   : > { %v4907_v31 = vpop.eup %4906  ;;  %v4170_v34 = vmul.f32 %v4154_v23, %v6257_v24  ;;  %v4155_v35 = vmul.f32 0.5, %v4139_v25  ;;  %v4146_v36 = vadd.f32 1.0, %v4905_v26 }
 0x293   : > { %v4909_v37 = vpop.eup %4908  ;;  %v4172_v40 = vmul.f32 %v4156_v29, %v6259_v27  ;;  %v4157_v41 = vmul.f32 0.5, %v4141_v30  ;;  %v4148_v42 = vadd.f32 1.0, %v4907_v31 }
 0x294   : > { %v4911_v43 = vpop.eup %4910  ;;  %v4171_v45 = vmul.f32 %v4155_v35, %v6261_v28  ;;  %v4162_v46 = vmul.f32 0.5, %v4146_v36  ;;  %v4147_v47 = vadd.f32 1.0, %v4909_v37 }
 0x295   : > { %v4173_v48 = vmul.f32 %v4157_v41, %v6265_v32  ;;  %v4164_v49 = vmul.f32 0.5, %v4148_v42  ;;  %v4149_v50 = vadd.f32 1.0, %v4911_v43 }
 0x296   : > { %v4804_v51 = vpack.c.bf16 %v4171_v45, %v4170_v34  ;;  %v4178_v24 = vmul.f32 %v4162_v46, %v6267_v33  ;;  %v4163_v52 = vmul.f32 0.5, %v4147_v47  ;;  %v4004_v33 = vsub.s32 4, %v6242_v13 }
 0x297   : > { %v4805_v53 = vpack.c.bf16 %v4173_v48, %v4172_v40  ;;  %v4180_v54 = vmul.f32 %v4164_v49, %v6273_v38  ;;  %v4165_v55 = vmul.f32 0.5, %v4149_v50  ;;  %v4012_v38 = vsub.s32 6, %v6242_v13 }
 0x298   : > { %4234 = vst [vmem:[%s6313_s12] sm:$0xff] %v4804_v51  ;;  %v4179_v27 = vmul.f32 %v4163_v52, %v6275_v39  ;;  %v4005_v59 = vrot.slane %v6248_v15, %v4004_v33  ;;  %v4009_v39 = vrot.slane %v6248_v15, %v4008_v57 }
 0x299   : > { %4235 = vst [vmem:[%s6313_s12 + $0x8] sm:$0xff] %v4805_v53  ;;  %v4181_v28 = vmul.f32 %v4165_v55, %v6282_v44  ;;  %v4013_v60 = vrot.slane %v6248_v15, %v4012_v38  ;;  %v4017_v44 = vrot.slane %v6248_v15, %v4016_v58 }
 0x29a   : > { %v4808_v32 = vpack.c.bf16 %v4179_v27, %v4178_v24 }
 0x29b   : > { %v4809_v56 = vpack.c.bf16 %v4181_v28, %v4180_v54 }
 0x29c   : > { %4238 = vst [vmem:[%s6313_s12 + $0x20] sm:$0xff] %v4808_v32 }
 0x29d   : > { %4239 = vst [vmem:[%s6313_s12 + $0x28] sm:$0xff] %v4809_v56 }
 0x336   : > { %v3795_v61 = vpop.f32.mrb[4].mxu0  ;;  %v3924_v63 = vpop.f32.mrb[4].mxu1 }
 0x337   : > { %v6329_v62 = vadd.f32 %v4005_v59, %v3795_v61  ;;  %v3797_v0 = vpop.f32.mrb[5].mxu0  ;;  %v6331_v1 = vadd.f32 %v4013_v60, %v3924_v63  ;;  %v3926_v3 = vpop.f32.mrb[5].mxu1 }
 0x338   : > { %v6333_v2 = vadd.f32 %v4009_v39, %v3797_v0  ;;  %v3799_v4 = vpop.f32.mrb[6].mxu0  ;;  %v6337_v5 = vadd.f32 %v4017_v44, %v3926_v3  ;;  %v3928_v7 = vpop.f32.mrb[6].mxu1 }
 0x339   : > { %v4046_v13 = vmul.f32 %v6329_v62, %v6329_v62  ;;  %v6339_v6 = vadd.f32 %v4005_v59, %v3799_v4  ;;  %v3801_v15 = vpop.f32.mrb[7].mxu0  ;;  %v4048_v8 = vmul.f32 %v6331_v1, %v6331_v1  ;;  %v6345_v10 = vadd.f32 %v4013_v60, %v3928_v7  ;;  %v3930_v12 = vpop.f32.mrb[7].mxu1 }
 0x33a   : > { %v4047_v9 = vmul.f32 %v6333_v2, %v6333_v2  ;;  %v6347_v11 = vadd.f32 %v4009_v39, %v3801_v15  ;;  %v4049_v16 = vmul.f32 %v6337_v5, %v6337_v5  ;;  %v6354_v18 = vadd.f32 %v4017_v44, %v3930_v12 }
 0x33b   : > { %v4062_v14 = vmul.f32 %v4046_v13, %v6329_v62  ;;  %v4054_v17 = vmul.f32 %v6339_v6, %v6339_v6  ;;  %v4064_v19 = vmul.f32 %v4048_v8, %v6331_v1  ;;  %v4056_v21 = vmul.f32 %v6345_v10, %v6345_v10 }
 0x33c   : > { %v4063_v20 = vmul.f32 %v4047_v9, %v6333_v2  ;;  %v4055_v22 = vmul.f32 %v6347_v11, %v6347_v11  ;;  %v4065_v25 = vmul.f32 %v4049_v16, %v6337_v5  ;;  %v4057_v29 = vmul.f32 %v6354_v18, %v6354_v18 }
 0x33d   : > { %v4078_v23 = vmul.f32 0.044715, %v4062_v14  ;;  %v4070_v26 = vmul.f32 %v4054_v17, %v6339_v6  ;;  %v4080_v30 = vmul.f32 0.044715, %v4064_v19  ;;  %v4072_v34 = vmul.f32 %v4056_v21, %v6345_v10 }
 0x33e   : > { %v4079_v31 = vmul.f32 0.044715, %v4063_v20  ;;  %v4071_v35 = vmul.f32 %v4055_v22, %v6347_v11  ;;  %v4081_v37 = vmul.f32 0.044715, %v4065_v25  ;;  %v4073_v41 = vmul.f32 %v4057_v29, %v6354_v18 }
 0x33f   : > { %v4094_v36 = vadd.f32 %v4078_v23, %v6329_v62  ;;  %v4086_v40 = vmul.f32 0.044715, %v4070_v26  ;;  %v4096_v42 = vadd.f32 %v4080_v30, %v6331_v1  ;;  %v4088_v45 = vmul.f32 0.044715, %v4072_v34 }
 0x340   : > { %v4095_v43 = vadd.f32 %v4079_v31, %v6333_v2  ;;  %v4087_v46 = vmul.f32 0.044715, %v4071_v35  ;;  %v4097_v48 = vadd.f32 %v4081_v37, %v6337_v5  ;;  %v4089_v50 = vmul.f32 0.044715, %v4073_v41  ;;  %v4277_v35 = vld [vmem:[%s6313_s12 + $0x28] sm:$0xff] (%p5029_p6) }
 0x341   : > { %v4110_v47 = vmul.f32 0.7978846, %v4094_v36  ;;  %v4102_v49 = vadd.f32 %v4086_v40, %v6339_v6  ;;  %v4112_v51 = vmul.f32 0.7978846, %v4096_v42  ;;  %v4104_v52 = vadd.f32 %v4088_v45, %v6345_v10  ;;  %4278 = vst [vmem:[%s4254_s27 + $0x68] sm:$0xff] (%p5029_p6), %v4277_v35 }
 0x342   : > { %v4111_v24 = vmul.f32 0.7978846, %v4095_v43  ;;  %v4103_v53 = vadd.f32 %v4087_v46, %v6347_v11  ;;  %v4113_v54 = vmul.f32 0.7978846, %v4097_v48  ;;  %v4105_v27 = vadd.f32 %v4089_v50, %v6354_v18 }
 0x343   : > { %4912 = vtanh.f32 %v4110_v47  ;;  %v4118_v55 = vmul.f32 0.7978846, %v4102_v49  ;;  %v4120_v28 = vmul.f32 0.7978846, %v4104_v52 }
 0x344   : > { %4914 = vtanh.f32 %v4112_v51  ;;  %v4119_v32 = vmul.f32 0.7978846, %v4103_v53  ;;  %v4121_v56 = vmul.f32 0.7978846, %v4105_v27 }
 0x345   : > { %4916 = vtanh.f32 %v4111_v24 }
 0x346   : > { %4918 = vtanh.f32 %v4113_v54 }
 0x347   : > { %4920 = vtanh.f32 %v4118_v55 }
 0x348   : > { %4922 = vtanh.f32 %v4120_v28 }
 0x349   : > { %4924 = vtanh.f32 %v4119_v32 }
 0x34a   : > { %4926 = vtanh.f32 %v4121_v56 }
 0x34d   : > { %v4913_v33 = vpop.eup %4912 }
 0x34e   : > { %v4915_v38 = vpop.eup %4914  ;;  %v4142_v57 = vadd.f32 1.0, %v4913_v33 }
 0x34f   : > { %v4917_v58 = vpop.eup %4916  ;;  %v4144_v59 = vadd.f32 1.0, %v4915_v38 }
 0x350   : > { %v4919_v60 = vpop.eup %4918  ;;  %v4158_v39 = vmul.f32 0.5, %v4142_v57  ;;  %v4143_v44 = vadd.f32 1.0, %v4917_v58 }
 0x351   : > { %v4921_v61 = vpop.eup %4920  ;;  %v4160_v63 = vmul.f32 0.5, %v4144_v59  ;;  %v4145_v0 = vadd.f32 1.0, %v4919_v60 }
 0x352   : > { %v4923_v3 = vpop.eup %4922  ;;  %v4174_v4 = vmul.f32 %v4158_v39, %v6329_v62  ;;  %v4159_v13 = vmul.f32 0.5, %v4143_v44  ;;  %v4150_v7 = vadd.f32 1.0, %v4921_v61 }
 0x353   : > { %v4925_v15 = vpop.eup %4924  ;;  %v4176_v8 = vmul.f32 %v4160_v63, %v6331_v1  ;;  %v4161_v9 = vmul.f32 0.5, %v4145_v0  ;;  %v4152_v12 = vadd.f32 1.0, %v4923_v3 }
 0x354   : > { %v4927_v14 = vpop.eup %4926  ;;  %v4175_v16 = vmul.f32 %v4159_v13, %v6333_v2  ;;  %v4166_v17 = vmul.f32 0.5, %v4150_v7  ;;  %v4151_v19 = vadd.f32 1.0, %v4925_v15 }
 0x355   : > { %v4177_v20 = vmul.f32 %v4161_v9, %v6337_v5  ;;  %v4168_v21 = vmul.f32 0.5, %v4152_v12  ;;  %v4153_v62 = vadd.f32 1.0, %v4927_v14  ;;  %v4267_v5 = vld [vmem:[%s6313_s12] sm:$0xff] (%p5029_p6) }
 0x356   : > { %v4806_v22 = vpack.c.bf16 %v4175_v16, %v4174_v4  ;;  %v4182_v23 = vmul.f32 %v4166_v17, %v6339_v6  ;;  %v4167_v25 = vmul.f32 0.5, %v4151_v19  ;;  %v4269_v6 = vld [vmem:[%s6313_s12 + $0x8] sm:$0xff] (%p5029_p6)  ;;  %4268 = vst [vmem:[%s4254_s27] sm:$0xff] (%p5029_p6), %v4267_v5 }
 0x357   : > { %v4807_v1 = vpack.c.bf16 %v4177_v20, %v4176_v8  ;;  %v4184_v26 = vmul.f32 %v4168_v21, %v6345_v10  ;;  %v4169_v29 = vmul.f32 0.5, %v4153_v62  ;;  %4248 = sbr.rel (!%p5029_p6) target bundleno = 870 (0x366), region = 67  ;;  %4270 = vst [vmem:[%s4254_s27 + $0x8] sm:$0xff] (%p5029_p6), %v4269_v6 }
 0x358   : > { %4236 = vst [vmem:[%s6313_s12 + $0x10] sm:$0xff] %v4806_v22  ;;  %v4183_v30 = vmul.f32 %v4167_v25, %v6347_v11 }
 0x359   : > { %4237 = vst [vmem:[%s6313_s12 + $0x18] sm:$0xff] %v4807_v1  ;;  %v4185_v2 = vmul.f32 %v4169_v29, %v6354_v18  ;;  %v4275_v18 = vld [vmem:[%s6313_s12 + $0x20] sm:$0xff] (%p5029_p6) }
 0x35a   : > { %v4810_v31 = vpack.c.bf16 %v4183_v30, %v4182_v23  ;;  %4276 = vst [vmem:[%s4254_s27 + $0x60] sm:$0xff] (%p5029_p6), %v4275_v18 }
 0x35b   : > { %v4811_v34 = vpack.c.bf16 %v4185_v2, %v4184_v26 }
 0x35c   : > { %4240 = vst [vmem:[%s6313_s12 + $0x30] sm:$0xff] %v4810_v31 }
 0x35d   : > { %4241 = vst [vmem:[%s6313_s12 + $0x38] sm:$0xff] %v4811_v34 }
 0x35f   : > { %v4271_v10 = vld [vmem:[%s6313_s12 + $0x10] sm:$0xff] }
 0x360   : > { %v4273_v11 = vld [vmem:[%s6313_s12 + $0x18] sm:$0xff]  ;;  %4272 = vst [vmem:[%s4254_s27 + $0x10] sm:$0xff] %v4271_v10 }
 0x361   : > { %4274 = vst [vmem:[%s4254_s27 + $0x18] sm:$0xff] %v4273_v11 }
 0x363   : > { %v4279_v36 = vld [vmem:[%s6313_s12 + $0x30] sm:$0xff] }
 0x364   : > { %v4281_v37 = vld [vmem:[%s6313_s12 + $0x38] sm:$0xff]  ;;  %4280 = vst [vmem:[%s4254_s27 + $0x70] sm:$0xff] %v4279_v36 }
 0x365   : > { %4282 = vst [vmem:[%s4254_s27 + $0x78] sm:$0xff] %v4281_v37 }
 0x366 PF: > { %s13_s16 = sadd.s32 1, %s4972_s16   ;;  %s6423_s12 = smov %s4960_s13 }
 0x367   : > { %p10_p12 = scmp.ge.s32.totalorder %s13_s16, 5   ;;  %s6424_s13 = smov %s5034_s22 }
 0x368   : > { %s6425_s14 = smov %s4968_s15  ;;  %s6426_s15 = smov %s6428_s17 }
 0x369   :  { %12 = sbr.rel (!%p10_p12) target bundleno = 3 (0x3), region = 127 }

// kernel: bert_classifier_forward.19
= control target key start
LH: loop header
LB: loop body
LE: loop exit
PB: predicated region body
PF: predicated region fallthrough
CT: control target
= control target key end

     0   :  { %11 = vsyncpa [#allocation4], 0  ;;  %s3341_s21 = smov [#allocation3]   ;;  %s3543_s0 = inlined_call_operand.vmem [shape: bf16[16,768], index: 0, kind: input, shape index: {}]   ;;  %s3544_s1 = inlined_call_operand.hbm [shape: bf16[768,768], index: 1, kind: input, shape index: {}]   ;;  %s3545_s2 = inlined_call_operand.vmem [shape: f32[1,768], index: 2, kind: input, shape index: {}]   ;;  %s3546_s3 = inlined_call_operand.vmem [shape: bf16[16,768], index: 3, kind: input, shape index: {}]   ;;  %s3547_s4 = inlined_call_operand.vmem [shape: f32[1,768], index: 4, kind: input, shape index: {}]   ;;  %s3548_s5 = inlined_call_operand.vmem [shape: f32[1,768], index: 5, kind: input, shape index: {}]   ;;  %s3549_s6 = inlined_call_operand.vmem [shape: bf16[16,768], index: 6, kind: output, shape index: {}]  }
   0x1   :  { %s19_s22 = sshll.u32 %s3341_s21, 4  ;;  %s3317_s25 = scalar_lea.hbm %s3544_s1, 36864  ;;  %s20_s22 = int_to_ptr.vmem [resolvable:$true] %s19_s22 }
   0x2   :  { %p3318_p0 = scmp.ne.s32.totalorder %s3544_s1, %s3317_s25  ;;  %p3321_p1 = scmp.lt.u32.totalorder %s3317_s25, %s3544_s1 }
   0x4   :  { %p3323_p2 = pnand %p3321_p1, %p3318_p0 }
   0x6   :  { %3326 = shalt.err (!%p3323_p2)
}
   0x7   :  { %s3327_s30 = scalar_lea.vmem %s20_s22, 36864  ;;  %p3332_p4 = scmp.lt.s32.totalorder %s20_s22, %s20_s22 }
   0x8   :  { %p3328_p3 = scmp.ne.s32.totalorder %s20_s22, %s3327_s30  ;;  %p3333_p5 = scmp.lt.s32.totalorder %s3327_s30, %s3327_s30 }
   0xa   :  { %p3334_p6 = por %p3333_p5, %p3332_p4 }
   0xc   :  { %p3335_p7 = pnand %p3334_p6, %p3328_p3 }
   0xe   :  { %3338 = shalt.err (!%p3335_p7)
}
   0xf   :  { %s3342_s7 = smov 384   ;;  %s3343_s8 = smov 24  }
  0x10   :  { %25 = dma.hbm_to_vmem [thread:$0]  %s3544_s1, 36864, %s20_s22, [#allocation4], %s3342_s7, %s3342_s7, %s3343_s8  }
  0x11   :  { %3339 = dma.done.wait [#allocation4], 36864  }
  0x12   :  { %3340 = vsyncadd [#allocation4], 4294930432  ;;  %v2870_v0 = vld [vmem:[#allocation3 + $0x4] ss:$24 sps:$4 sm:$0xff]   ;;  %v2874_v2 = vld [vmem:[#allocation3] ss:$24 sps:$4 sm:$0xff]  }
  0x13   :  { %v2872_v1 = vld [vmem:[#allocation3 + $0x304] ss:$24 sps:$4 sm:$0xff]   ;;  %1829 = vmatprep.subr.bf16.mxu1 %v2870_v0  ;;  %v2875_v3 = vld [vmem:[#allocation3 + $0x300] ss:$24 sps:$4 sm:$0xff]   ;;  %v2876_v4 = vld [vmem:[#allocation3 + $0x34] ss:$24 sps:$4 sm:$0xff]  }
  0x14   :  { %1872 = vmatprep.subr.bf16.mxu0 %v2872_v1  ;;  %1830 = vmatpush1.bf16.msra.mxu1 %v2874_v2  ;;  %v2878_v5 = vld [vmem:[#allocation3 + $0x334] ss:$24 sps:$4 sm:$0xff]   ;;  %v2880_v6 = vld [vmem:[#allocation3 + $0x30] ss:$24 sps:$4 sm:$0xff]   ;;  %v2882_v8 = vld [vmem:[#allocation3 + $0x64] ss:$24 sps:$4 sm:$0xff]  }
  0x15   :  { %1873 = vmatpush1.bf16.msra.mxu0 %v2875_v3  ;;  %1831 = vmatprep.subr.bf16.mxu1 %v2876_v4  ;;  %v2881_v7 = vld [vmem:[#allocation3 + $0x330] ss:$24 sps:$4 sm:$0xff]   ;;  %v2884_v9 = vld [vmem:[#allocation3 + $0x364] ss:$24 sps:$4 sm:$0xff]   ;;  %v2886_v10 = vld [vmem:[#allocation3 + $0x60] ss:$24 sps:$4 sm:$0xff]  }
  0x16   :  { %1874 = vmatprep.subr.bf16.mxu0 %v2878_v5  ;;  %v2887_v11 = vld [vmem:[#allocation3 + $0x360] ss:$24 sps:$4 sm:$0xff]   ;;  %v2888_v12 = vld [vmem:[#allocation3 + $0x94] ss:$24 sps:$4 sm:$0xff]   ;;  %v2892_v14 = vld [vmem:[#allocation3 + $0x90] ss:$24 sps:$4 sm:$0xff]  }
  0x17   :  { %v2890_v13 = vld [vmem:[#allocation3 + $0x394] ss:$24 sps:$4 sm:$0xff]   ;;  %v2893_v15 = vld [vmem:[#allocation3 + $0x390] ss:$24 sps:$4 sm:$0xff]   ;;  %v2894_v16 = vld [vmem:[#allocation3 + $0xc4] ss:$24 sps:$4 sm:$0xff]  }
  0x18   :  { %1832 = vmatpush1.bf16.msra.mxu1 %v2880_v6  ;;  %v2896_v17 = vld [vmem:[#allocation3 + $0x3c4] ss:$24 sps:$4 sm:$0xff]   ;;  %v2898_v18 = vld [vmem:[#allocation3 + $0xc0] ss:$24 sps:$4 sm:$0xff]   ;;  %v2900_v20 = vld [vmem:[#allocation3 + $0xf4] ss:$24 sps:$4 sm:$0xff]  }
  0x19   :  { %1875 = vmatpush1.bf16.msra.mxu0 %v2881_v7  ;;  %1833 = vmatprep.subr.bf16.mxu1 %v2882_v8  ;;  %v2899_v19 = vld [vmem:[#allocation3 + $0x3c0] ss:$24 sps:$4 sm:$0xff]   ;;  %v2902_v21 = vld [vmem:[#allocation3 + $0x3f4] ss:$24 sps:$4 sm:$0xff]   ;;  %v2904_v22 = vld [vmem:[#allocation3 + $0xf0] ss:$24 sps:$4 sm:$0xff]  }
  0x1a   :  { %1876 = vmatprep.subr.bf16.mxu0 %v2884_v9  ;;  %v2905_v23 = vld [vmem:[#allocation3 + $0x3f0] ss:$24 sps:$4 sm:$0xff]   ;;  %v2906_v24 = vld [vmem:[#allocation3 + $0x124] ss:$24 sps:$4 sm:$0xff]   ;;  %v2910_v26 = vld [vmem:[#allocation3 + $0x120] ss:$24 sps:$4 sm:$0xff]  }
  0x1b   :  { %v2908_v25 = vld [vmem:[#allocation3 + $0x424] ss:$24 sps:$4 sm:$0xff]   ;;  %v2911_v27 = vld [vmem:[#allocation3 + $0x420] ss:$24 sps:$4 sm:$0xff]   ;;  %v2912_v28 = vld [vmem:[#allocation3 + $0x154] ss:$24 sps:$4 sm:$0xff]  }
  0x1c   :  { %1834 = vmatpush1.bf16.msra.mxu1 %v2886_v10  ;;  %v2914_v29 = vld [vmem:[#allocation3 + $0x454] ss:$24 sps:$4 sm:$0xff]   ;;  %v2916_v30 = vld [vmem:[#allocation3 + $0x150] ss:$24 sps:$4 sm:$0xff]   ;;  %v2918_v32 = vld [vmem:[#allocation3 + $0x184] ss:$24 sps:$4 sm:$0xff]  }
  0x1d   :  { %1877 = vmatpush1.bf16.msra.mxu0 %v2887_v11  ;;  %1835 = vmatprep.subr.bf16.mxu1 %v2888_v12  ;;  %v2917_v31 = vld [vmem:[#allocation3 + $0x450] ss:$24 sps:$4 sm:$0xff]   ;;  %v2920_v33 = vld [vmem:[#allocation3 + $0x484] ss:$24 sps:$4 sm:$0xff]   ;;  %v2922_v34 = vld [vmem:[#allocation3 + $0x180] ss:$24 sps:$4 sm:$0xff]  }
  0x1e   :  { %1878 = vmatprep.subr.bf16.mxu0 %v2890_v13  ;;  %v2923_v35 = vld [vmem:[#allocation3 + $0x480] ss:$24 sps:$4 sm:$0xff]   ;;  %v2924_v36 = vld [vmem:[#allocation3 + $0x1b4] ss:$24 sps:$4 sm:$0xff]   ;;  %v2928_v38 = vld [vmem:[#allocation3 + $0x1b0] ss:$24 sps:$4 sm:$0xff]  }
  0x1f   :  { %v2926_v37 = vld [vmem:[#allocation3 + $0x4b4] ss:$24 sps:$4 sm:$0xff]   ;;  %v2929_v39 = vld [vmem:[#allocation3 + $0x4b0] ss:$24 sps:$4 sm:$0xff]   ;;  %v2930_v40 = vld [vmem:[#allocation3 + $0x1e4] ss:$24 sps:$4 sm:$0xff]  }
  0x20   :  { %1836 = vmatpush1.bf16.msra.mxu1 %v2892_v14  ;;  %v2932_v41 = vld [vmem:[#allocation3 + $0x4e4] ss:$24 sps:$4 sm:$0xff]   ;;  %v2934_v42 = vld [vmem:[#allocation3 + $0x1e0] ss:$24 sps:$4 sm:$0xff]   ;;  %v2936_v44 = vld [vmem:[#allocation3 + $0x214] ss:$24 sps:$4 sm:$0xff]  }
  0x21   :  { %1879 = vmatpush1.bf16.msra.mxu0 %v2893_v15  ;;  %1837 = vmatprep.subr.bf16.mxu1 %v2894_v16  ;;  %v2935_v43 = vld [vmem:[#allocation3 + $0x4e0] ss:$24 sps:$4 sm:$0xff]   ;;  %v2938_v45 = vld [vmem:[#allocation3 + $0x514] ss:$24 sps:$4 sm:$0xff]   ;;  %v2940_v46 = vld [vmem:[#allocation3 + $0x210] ss:$24 sps:$4 sm:$0xff]  }
  0x22   :  { %1880 = vmatprep.subr.bf16.mxu0 %v2896_v17  ;;  %v2941_v47 = vld [vmem:[#allocation3 + $0x510] ss:$24 sps:$4 sm:$0xff]   ;;  %v3394_v48 = vld [vmem:[%s3543_s0 + $0x4] ss:$24 sps:$4 sm:$0xff]   ;;  %v2946_v52 = vld [vmem:[#allocation3 + $0x240] ss:$24 sps:$4 sm:$0xff]  }
  0x23   :  { %v3399_v49 = vld [vmem:[%s3543_s0 + $0xc] ss:$24 sps:$4 sm:$0xff]   ;;  %1861 = vmatprep.mubr.bf16.mxu1 %v3394_v48  ;;  %v2947_v53 = vld [vmem:[#allocation3 + $0x540] ss:$24 sps:$4 sm:$0xff]   ;;  %v2952_v56 = vld [vmem:[#allocation3 + $0x270] ss:$24 sps:$4 sm:$0xff]  }
  0x24   :  { %1838 = vmatpush1.bf16.msra.mxu1 %v2898_v18  ;;  %v2942_v50 = vld [vmem:[#allocation3 + $0x244] ss:$24 sps:$4 sm:$0xff]   ;;  %1904 = vmatprep.mubr.bf16.mxu0 %v3399_v49  ;;  %v2948_v54 = vld [vmem:[#allocation3 + $0x274] ss:$24 sps:$4 sm:$0xff]   ;;  %v2953_v57 = vld [vmem:[#allocation3 + $0x570] ss:$24 sps:$4 sm:$0xff]  }
  0x25   :  { %1881 = vmatpush1.bf16.msra.mxu0 %v2899_v19  ;;  %1839 = vmatprep.subr.bf16.mxu1 %v2900_v20  ;;  %v2944_v51 = vld [vmem:[#allocation3 + $0x544] ss:$24 sps:$4 sm:$0xff]   ;;  %v2950_v55 = vld [vmem:[#allocation3 + $0x574] ss:$24 sps:$4 sm:$0xff]   ;;  %v2958_v60 = vld [vmem:[#allocation3 + $0x2a0] ss:$24 sps:$4 sm:$0xff]  }
  0x26   :  { %1882 = vmatprep.subr.bf16.mxu0 %v2902_v21  ;;  %v2954_v58 = vld [vmem:[#allocation3 + $0x2a4] ss:$24 sps:$4 sm:$0xff]   ;;  %v2959_v61 = vld [vmem:[#allocation3 + $0x5a0] ss:$24 sps:$4 sm:$0xff]   ;;  %v2960_v62 = vld [vmem:[#allocation3 + $0x2d4] ss:$24 sps:$4 sm:$0xff]  }
  0x27   :  { %v2956_v59 = vld [vmem:[#allocation3 + $0x5a4] ss:$24 sps:$4 sm:$0xff]   ;;  %v2962_v63 = vld [vmem:[#allocation3 + $0x5d4] ss:$24 sps:$4 sm:$0xff]   ;;  %v2964_v0 = vld [vmem:[#allocation3 + $0x2d0] ss:$24 sps:$4 sm:$0xff]  }
  0x28   :  { %1840 = vmatpush1.bf16.msra.mxu1 %v2904_v22  ;;  %v2965_v1 = vld [vmem:[#allocation3 + $0x5d0] ss:$24 sps:$4 sm:$0xff]   ;;  %v2972_v2 = vld [vmem:[#allocation3 + $0x604] ss:$24 sps:$4 sm:$0xff]   ;;  %v2970_v4 = vld [vmem:[#allocation3 + $0x600] ss:$24 sps:$4 sm:$0xff]  }
  0x29   :  { %1883 = vmatpush1.bf16.msra.mxu0 %v2905_v23  ;;  %1841 = vmatprep.subr.bf16.mxu1 %v2906_v24  ;;  %v2975_v3 = vld [vmem:[#allocation3 + $0xc] ss:$24 sps:$4 sm:$0xff]   ;;  %v2973_v5 = vld [vmem:[#allocation3 + $0x8] ss:$24 sps:$4 sm:$0xff]   ;;  %v2983_v9 = vld [vmem:[#allocation3 + $0x3c] ss:$24 sps:$4 sm:$0xff]  }
  0x2a   :  { %1884 = vmatprep.subr.bf16.mxu0 %v2908_v25  ;;  %v3406_v6 = vld [vmem:[%s3543_s0] ss:$24 sps:$4 sm:$0xff]   ;;  %v2980_v8 = vld [vmem:[#allocation3 + $0x634] ss:$24 sps:$4 sm:$0xff]   ;;  %v2978_v10 = vld [vmem:[#allocation3 + $0x630] ss:$24 sps:$4 sm:$0xff]  }
  0x2b   :  { %v3411_v7 = vld [vmem:[%s3543_s0 + $0x8] ss:$24 sps:$4 sm:$0xff]   ;;  %v2981_v11 = vld [vmem:[#allocation3 + $0x38] ss:$24 sps:$4 sm:$0xff]   ;;  %v2986_v12 = vld [vmem:[#allocation3 + $0x664] ss:$24 sps:$4 sm:$0xff]  }
  0x2c   :  { %1842 = vmatpush1.bf16.msra.mxu1 %v2910_v26  ;;  %v2989_v13 = vld [vmem:[#allocation3 + $0x6c] ss:$24 sps:$4 sm:$0xff]   ;;  %v2984_v14 = vld [vmem:[#allocation3 + $0x660] ss:$24 sps:$4 sm:$0xff]   ;;  %v2995_v17 = vld [vmem:[#allocation3 + $0x9c] ss:$24 sps:$4 sm:$0xff]  }
  0x2d   :  { %1885 = vmatpush1.bf16.msra.mxu0 %v2911_v27  ;;  %1843 = vmatprep.subr.bf16.mxu1 %v2912_v28  ;;  %v2987_v15 = vld [vmem:[#allocation3 + $0x68] ss:$24 sps:$4 sm:$0xff]   ;;  %v2992_v16 = vld [vmem:[#allocation3 + $0x694] ss:$24 sps:$4 sm:$0xff]   ;;  %v2993_v19 = vld [vmem:[#allocation3 + $0x98] ss:$24 sps:$4 sm:$0xff]  }
  0x2e   :  { %1886 = vmatprep.subr.bf16.mxu0 %v2914_v29  ;;  %v2990_v18 = vld [vmem:[#allocation3 + $0x690] ss:$24 sps:$4 sm:$0xff]   ;;  %v2998_v20 = vld [vmem:[#allocation3 + $0x6c4] ss:$24 sps:$4 sm:$0xff]   ;;  %v2996_v22 = vld [vmem:[#allocation3 + $0x6c0] ss:$24 sps:$4 sm:$0xff]  }
  0x2f   :  { %v3001_v21 = vld [vmem:[#allocation3 + $0xcc] ss:$24 sps:$4 sm:$0xff]   ;;  %v2999_v23 = vld [vmem:[#allocation3 + $0xc8] ss:$24 sps:$4 sm:$0xff]   ;;  %v3007_v25 = vld [vmem:[#allocation3 + $0xfc] ss:$24 sps:$4 sm:$0xff]  }
  0x30   :  { %1844 = vmatpush1.bf16.msra.mxu1 %v2916_v30  ;;  %v3004_v24 = vld [vmem:[#allocation3 + $0x6f4] ss:$24 sps:$4 sm:$0xff]   ;;  %v3002_v26 = vld [vmem:[#allocation3 + $0x6f0] ss:$24 sps:$4 sm:$0xff]   ;;  %v3010_v28 = vld [vmem:[#allocation3 + $0x724] ss:$24 sps:$4 sm:$0xff]  }
  0x31   :  { %1887 = vmatpush1.bf16.msra.mxu0 %v2917_v31  ;;  %1845 = vmatprep.subr.bf16.mxu1 %v2918_v32  ;;  %v3005_v27 = vld [vmem:[#allocation3 + $0xf8] ss:$24 sps:$4 sm:$0xff]   ;;  %v3013_v29 = vld [vmem:[#allocation3 + $0x12c] ss:$24 sps:$4 sm:$0xff]   ;;  %v3011_v31 = vld [vmem:[#allocation3 + $0x128] ss:$24 sps:$4 sm:$0xff]  }
  0x32   :  { %1888 = vmatprep.subr.bf16.mxu0 %v2920_v33  ;;  %v3008_v30 = vld [vmem:[#allocation3 + $0x720] ss:$24 sps:$4 sm:$0xff]   ;;  %v3016_v32 = vld [vmem:[#allocation3 + $0x754] ss:$24 sps:$4 sm:$0xff]  }
  0x33   :  { %v3019_v33 = vld [vmem:[#allocation3 + $0x15c] ss:$24 sps:$4 sm:$0xff]  }
  0x34   :  { %1846 = vmatpush1.bf16.msra.mxu1 %v2922_v34  ;;  %v3419_v34 = vld [vmem:[%s3543_s0 + $0x14] ss:$24 sps:$4 sm:$0xff]  }
  0x35   :  { %1889 = vmatpush1.bf16.msra.mxu0 %v2923_v35  ;;  %1847 = vmatprep.subr.bf16.mxu1 %v2924_v36  ;;  %v3014_v35 = vld [vmem:[#allocation3 + $0x750] ss:$24 sps:$4 sm:$0xff]  }
  0x36   :  { %1890 = vmatprep.subr.bf16.mxu0 %v2926_v37  ;;  %v3017_v36 = vld [vmem:[#allocation3 + $0x158] ss:$24 sps:$4 sm:$0xff]   ;;  %v3022_v37 = vld [vmem:[#allocation3 + $0x784] ss:$24 sps:$4 sm:$0xff]  }
  0x38   :  { %1848 = vmatpush1.bf16.msra.mxu1 %v2928_v38  ;;  %v3025_v38 = vld [vmem:[#allocation3 + $0x18c] ss:$24 sps:$4 sm:$0xff]  }
  0x39   :  { %1891 = vmatpush1.bf16.msra.mxu0 %v2929_v39  ;;  %1849 = vmatprep.subr.bf16.mxu1 %v2930_v40  ;;  %v3020_v39 = vld [vmem:[#allocation3 + $0x780] ss:$24 sps:$4 sm:$0xff]  }
  0x3a   :  { %1892 = vmatprep.subr.bf16.mxu0 %v2932_v41  ;;  %v3023_v40 = vld [vmem:[#allocation3 + $0x188] ss:$24 sps:$4 sm:$0xff]   ;;  %v3028_v41 = vld [vmem:[#allocation3 + $0x7b4] ss:$24 sps:$4 sm:$0xff]  }
  0x3c   :  { %1850 = vmatpush1.bf16.msra.mxu1 %v2934_v42  ;;  %v3031_v42 = vld [vmem:[#allocation3 + $0x1bc] ss:$24 sps:$4 sm:$0xff]  }
  0x3d   :  { %1893 = vmatpush1.bf16.msra.mxu0 %v2935_v43  ;;  %1851 = vmatprep.subr.bf16.mxu1 %v2936_v44  ;;  %v3026_v43 = vld [vmem:[#allocation3 + $0x7b0] ss:$24 sps:$4 sm:$0xff]  }
  0x3e   :  { %1894 = vmatprep.subr.bf16.mxu0 %v2938_v45  ;;  %v3029_v44 = vld [vmem:[#allocation3 + $0x1b8] ss:$24 sps:$4 sm:$0xff]   ;;  %v3034_v45 = vld [vmem:[#allocation3 + $0x7e4] ss:$24 sps:$4 sm:$0xff]  }
  0x40   :  { %1852 = vmatpush1.bf16.msra.mxu1 %v2940_v46  ;;  %v3037_v46 = vld [vmem:[#allocation3 + $0x1ec] ss:$24 sps:$4 sm:$0xff]  }
  0x41   :  { %1895 = vmatpush1.bf16.msra.mxu0 %v2941_v47  ;;  %1853 = vmatprep.subr.bf16.mxu1 %v2942_v50  ;;  %v3032_v47 = vld [vmem:[#allocation3 + $0x7e0] ss:$24 sps:$4 sm:$0xff]  }
  0x42   :  { %1896 = vmatprep.subr.bf16.mxu0 %v2944_v51  ;;  %v3035_v50 = vld [vmem:[#allocation3 + $0x1e8] ss:$24 sps:$4 sm:$0xff]   ;;  %v3040_v51 = vld [vmem:[#allocation3 + $0x814] ss:$24 sps:$4 sm:$0xff]  }
  0x44   :  { %1854 = vmatpush1.bf16.msra.mxu1 %v2946_v52  ;;  %v3043_v52 = vld [vmem:[#allocation3 + $0x21c] ss:$24 sps:$4 sm:$0xff]  }
  0x45   :  { %1897 = vmatpush1.bf16.msra.mxu0 %v2947_v53  ;;  %1855 = vmatprep.subr.bf16.mxu1 %v2948_v54  ;;  %v3038_v53 = vld [vmem:[#allocation3 + $0x810] ss:$24 sps:$4 sm:$0xff]  }
  0x46   :  { %1898 = vmatprep.subr.bf16.mxu0 %v2950_v55  ;;  %v3041_v54 = vld [vmem:[#allocation3 + $0x218] ss:$24 sps:$4 sm:$0xff]   ;;  %v3046_v55 = vld [vmem:[#allocation3 + $0x844] ss:$24 sps:$4 sm:$0xff]  }
  0x48   :  { %1856 = vmatpush1.bf16.msra.mxu1 %v2952_v56  ;;  %v3049_v56 = vld [vmem:[#allocation3 + $0x24c] ss:$24 sps:$4 sm:$0xff]  }
  0x49   :  { %1899 = vmatpush1.bf16.msra.mxu0 %v2953_v57  ;;  %1857 = vmatprep.subr.bf16.mxu1 %v2954_v58  ;;  %v3044_v57 = vld [vmem:[#allocation3 + $0x840] ss:$24 sps:$4 sm:$0xff]  }
  0x4a   :  { %1900 = vmatprep.subr.bf16.mxu0 %v2956_v59  ;;  %v3047_v58 = vld [vmem:[#allocation3 + $0x248] ss:$24 sps:$4 sm:$0xff]   ;;  %v3052_v59 = vld [vmem:[#allocation3 + $0x874] ss:$24 sps:$4 sm:$0xff]  }
  0x4c   :  { %1858 = vmatpush1.bf16.msra.mxu1 %v2958_v60  ;;  %v3055_v60 = vld [vmem:[#allocation3 + $0x27c] ss:$24 sps:$4 sm:$0xff]  }
  0x4d   :  { %1901 = vmatpush1.bf16.msra.mxu0 %v2959_v61  ;;  %1859 = vmatprep.subr.bf16.mxu1 %v2960_v62  ;;  %v3050_v61 = vld [vmem:[#allocation3 + $0x870] ss:$24 sps:$4 sm:$0xff]  }
  0x4e   :  { %1902 = vmatprep.subr.bf16.mxu0 %v2962_v63  ;;  %v3053_v62 = vld [vmem:[#allocation3 + $0x278] ss:$24 sps:$4 sm:$0xff]   ;;  %v3058_v63 = vld [vmem:[#allocation3 + $0x8a4] ss:$24 sps:$4 sm:$0xff]  }
  0x50   :  { %1860 = vmatpush1.bf16.msra.mxu1 %v2964_v0  ;;  %v3061_v0 = vld [vmem:[#allocation3 + $0x2ac] ss:$24 sps:$4 sm:$0xff]  }
  0x51   :  { %1903 = vmatpush1.bf16.msra.mxu0 %v2965_v1  ;;  %1958 = vmatprep.subr.bf16.mxu1 %v2975_v3  ;;  %v3056_v1 = vld [vmem:[#allocation3 + $0x8a0] ss:$24 sps:$4 sm:$0xff]   ;;  %v3064_v3 = vld [vmem:[#allocation3 + $0x8d4] ss:$24 sps:$4 sm:$0xff]  }
  0x52   :  { %1915 = vmatprep.subr.bf16.mxu0 %v2972_v2  ;;  %v3059_v2 = vld [vmem:[#allocation3 + $0x2a8] ss:$24 sps:$4 sm:$0xff]  }
  0x53   :  { %1862 = vmatmul.mubr.bf16.vlgmr.msra.gmra.mrb[0].mxu1 %v3406_v6 }
  0x54   :  { %1905 = vmatmul.mubr.bf16.vlgmr.msra.gmra.mrb[0].mxu0 %v3411_v7  ;;  %1959 = vmatpush1.bf16.msra.mxu1 %v2973_v5  ;;  %v3062_v5 = vld [vmem:[#allocation3 + $0x8d0] ss:$24 sps:$4 sm:$0xff]  }
  0x55   :  { %1916 = vmatpush1.bf16.msra.mxu0 %v2970_v4  ;;  %1960 = vmatprep.subr.bf16.mxu1 %v2983_v9  ;;  %v3067_v4 = vld [vmem:[#allocation3 + $0x2dc] ss:$24 sps:$4 sm:$0xff]   ;;  %v3073_v9 = vld [vmem:[#allocation3 + $0x30c] ss:$24 sps:$4 sm:$0xff]  }
  0x56   :  { %1917 = vmatprep.subr.bf16.mxu0 %v2980_v8  ;;  %1990 = vmatprep.mubr.bf16.mxu1 %v3394_v48  ;;  %v3065_v8 = vld [vmem:[#allocation3 + $0x2d8] ss:$24 sps:$4 sm:$0xff]  }
  0x57   :  { %1947 = vmatprep.mubr.bf16.mxu0 %v3419_v34 }
  0x58   :  { %1961 = vmatpush1.bf16.msra.mxu1 %v2981_v11  ;;  %v3425_v11 = vld [vmem:[%s3543_s0 + $0x10] ss:$24 sps:$4 sm:$0xff]  }
  0x59   :  { %1918 = vmatpush1.bf16.msra.mxu0 %v2978_v10  ;;  %1962 = vmatprep.subr.bf16.mxu1 %v2989_v13  ;;  %v3076_v10 = vld [vmem:[#allocation3 + $0x14] ss:$24 sps:$4 sm:$0xff]   ;;  %v3074_v13 = vld [vmem:[#allocation3 + $0x10] ss:$24 sps:$4 sm:$0xff]  }
  0x5a   :  { %1919 = vmatprep.subr.bf16.mxu0 %v2986_v12  ;;  %v3071_v12 = vld [vmem:[#allocation3 + $0x308] ss:$24 sps:$4 sm:$0xff]  }
  0x5c   :  { %1963 = vmatpush1.bf16.msra.mxu1 %v2987_v15  ;;  %v3082_v15 = vld [vmem:[#allocation3 + $0x44] ss:$24 sps:$4 sm:$0xff]  }
  0x5d   :  { %1920 = vmatpush1.bf16.msra.mxu0 %v2984_v14  ;;  %1964 = vmatprep.subr.bf16.mxu1 %v2995_v17  ;;  %v3079_v14 = vld [vmem:[#allocation3 + $0x33c] ss:$24 sps:$4 sm:$0xff]   ;;  %v3080_v17 = vld [vmem:[#allocation3 + $0x40] ss:$24 sps:$4 sm:$0xff]  }
  0x5e   :  { %1921 = vmatprep.subr.bf16.mxu0 %v2992_v16  ;;  %v3077_v16 = vld [vmem:[#allocation3 + $0x338] ss:$24 sps:$4 sm:$0xff]  }
  0x60   :  { %1965 = vmatpush1.bf16.msra.mxu1 %v2993_v19  ;;  %v3088_v19 = vld [vmem:[#allocation3 + $0x74] ss:$24 sps:$4 sm:$0xff]  }
  0x61   :  { %1922 = vmatpush1.bf16.msra.mxu0 %v2990_v18  ;;  %1966 = vmatprep.subr.bf16.mxu1 %v3001_v21  ;;  %v3085_v18 = vld [vmem:[#allocation3 + $0x36c] ss:$24 sps:$4 sm:$0xff]   ;;  %v3086_v21 = vld [vmem:[#allocation3 + $0x70] ss:$24 sps:$4 sm:$0xff]  }
  0x62   :  { %1923 = vmatprep.subr.bf16.mxu0 %v2998_v20  ;;  %v3083_v20 = vld [vmem:[#allocation3 + $0x368] ss:$24 sps:$4 sm:$0xff]  }
  0x64   :  { %1967 = vmatpush1.bf16.msra.mxu1 %v2999_v23  ;;  %v3094_v23 = vld [vmem:[#allocation3 + $0xa4] ss:$24 sps:$4 sm:$0xff]  }
  0x65   :  { %1924 = vmatpush1.bf16.msra.mxu0 %v2996_v22  ;;  %1968 = vmatprep.subr.bf16.mxu1 %v3007_v25  ;;  %v3091_v22 = vld [vmem:[#allocation3 + $0x39c] ss:$24 sps:$4 sm:$0xff]   ;;  %v3092_v25 = vld [vmem:[#allocation3 + $0xa0] ss:$24 sps:$4 sm:$0xff]  }
  0x66   :  { %1925 = vmatprep.subr.bf16.mxu0 %v3004_v24  ;;  %v3089_v24 = vld [vmem:[#allocation3 + $0x398] ss:$24 sps:$4 sm:$0xff]  }
  0x68   :  { %1969 = vmatpush1.bf16.msra.mxu1 %v3005_v27  ;;  %v3100_v27 = vld [vmem:[#allocation3 + $0xd4] ss:$24 sps:$4 sm:$0xff]  }
  0x69   :  { %1926 = vmatpush1.bf16.msra.mxu0 %v3002_v26  ;;  %1970 = vmatprep.subr.bf16.mxu1 %v3013_v29  ;;  %v3097_v26 = vld [vmem:[#allocation3 + $0x3cc] ss:$24 sps:$4 sm:$0xff]  }
  0x6a   :  { %1927 = vmatprep.subr.bf16.mxu0 %v3010_v28  ;;  %v3095_v28 = vld [vmem:[#allocation3 + $0x3c8] ss:$24 sps:$4 sm:$0xff]   ;;  %v3106_v29 = vld [vmem:[#allocation3 + $0x104] ss:$24 sps:$4 sm:$0xff]  }
  0x6c   :  { %1971 = vmatpush1.bf16.msra.mxu1 %v3011_v31  ;;  %v3104_v31 = vld [vmem:[#allocation3 + $0x100] ss:$24 sps:$4 sm:$0xff]  }
  0x6d   :  { %1928 = vmatpush1.bf16.msra.mxu0 %v3008_v30  ;;  %1972 = vmatprep.subr.bf16.mxu1 %v3019_v33  ;;  %v3101_v30 = vld [vmem:[#allocation3 + $0x3f8] ss:$24 sps:$4 sm:$0xff]   ;;  %v3112_v33 = vld [vmem:[#allocation3 + $0x134] ss:$24 sps:$4 sm:$0xff]  }
  0x6e   :  { %1929 = vmatprep.subr.bf16.mxu0 %v3016_v32  ;;  %v3109_v32 = vld [vmem:[#allocation3 + $0x42c] ss:$24 sps:$4 sm:$0xff]  }
  0x70   :  { %1973 = vmatpush1.bf16.msra.mxu1 %v3017_v36  ;;  %v3110_v36 = vld [vmem:[#allocation3 + $0x130] ss:$24 sps:$4 sm:$0xff]  }
  0x71   :  { %1930 = vmatpush1.bf16.msra.mxu0 %v3014_v35  ;;  %1974 = vmatprep.subr.bf16.mxu1 %v3025_v38  ;;  %v3107_v35 = vld [vmem:[#allocation3 + $0x428] ss:$24 sps:$4 sm:$0xff]   ;;  %v3118_v38 = vld [vmem:[#allocation3 + $0x164] ss:$24 sps:$4 sm:$0xff]  }
  0x72   :  { %1931 = vmatprep.subr.bf16.mxu0 %v3022_v37  ;;  %v3115_v37 = vld [vmem:[#allocation3 + $0x45c] ss:$24 sps:$4 sm:$0xff]  }
  0x74   :  { %1975 = vmatpush1.bf16.msra.mxu1 %v3023_v40  ;;  %v3116_v40 = vld [vmem:[#allocation3 + $0x160] ss:$24 sps:$4 sm:$0xff]  }
  0x75   :  { %1932 = vmatpush1.bf16.msra.mxu0 %v3020_v39  ;;  %1976 = vmatprep.subr.bf16.mxu1 %v3031_v42  ;;  %v3113_v39 = vld [vmem:[#allocation3 + $0x458] ss:$24 sps:$4 sm:$0xff]   ;;  %v3124_v42 = vld [vmem:[#allocation3 + $0x194] ss:$24 sps:$4 sm:$0xff]  }
  0x76   :  { %1933 = vmatprep.subr.bf16.mxu0 %v3028_v41  ;;  %v3121_v41 = vld [vmem:[#allocation3 + $0x48c] ss:$24 sps:$4 sm:$0xff]  }
  0x78   :  { %1977 = vmatpush1.bf16.msra.mxu1 %v3029_v44  ;;  %v3122_v44 = vld [vmem:[#allocation3 + $0x190] ss:$24 sps:$4 sm:$0xff]  }
  0x79   :  { %1934 = vmatpush1.bf16.msra.mxu0 %v3026_v43  ;;  %1978 = vmatprep.subr.bf16.mxu1 %v3037_v46  ;;  %v3119_v43 = vld [vmem:[#allocation3 + $0x488] ss:$24 sps:$4 sm:$0xff]   ;;  %v3130_v46 = vld [vmem:[#allocation3 + $0x1c4] ss:$24 sps:$4 sm:$0xff]  }
  0x7a   :  { %1935 = vmatprep.subr.bf16.mxu0 %v3034_v45  ;;  %v3127_v45 = vld [vmem:[#allocation3 + $0x4bc] ss:$24 sps:$4 sm:$0xff]  }
  0x7c   :  { %1979 = vmatpush1.bf16.msra.mxu1 %v3035_v50  ;;  %v3128_v50 = vld [vmem:[#allocation3 + $0x1c0] ss:$24 sps:$4 sm:$0xff]  }
  0x7d   :  { %1936 = vmatpush1.bf16.msra.mxu0 %v3032_v47  ;;  %1980 = vmatprep.subr.bf16.mxu1 %v3043_v52  ;;  %v3125_v47 = vld [vmem:[#allocation3 + $0x4b8] ss:$24 sps:$4 sm:$0xff]   ;;  %v3136_v52 = vld [vmem:[#allocation3 + $0x1f4] ss:$24 sps:$4 sm:$0xff]  }
  0x7e   :  { %1937 = vmatprep.subr.bf16.mxu0 %v3040_v51  ;;  %v3133_v51 = vld [vmem:[#allocation3 + $0x4ec] ss:$24 sps:$4 sm:$0xff]  }
  0x80   :  { %1981 = vmatpush1.bf16.msra.mxu1 %v3041_v54  ;;  %v3134_v54 = vld [vmem:[#allocation3 + $0x1f0] ss:$24 sps:$4 sm:$0xff]  }
  0x81   :  { %1938 = vmatpush1.bf16.msra.mxu0 %v3038_v53  ;;  %1982 = vmatprep.subr.bf16.mxu1 %v3049_v56  ;;  %v3131_v53 = vld [vmem:[#allocation3 + $0x4e8] ss:$24 sps:$4 sm:$0xff]   ;;  %v3142_v56 = vld [vmem:[#allocation3 + $0x224] ss:$24 sps:$4 sm:$0xff]  }
  0x82   :  { %1939 = vmatprep.subr.bf16.mxu0 %v3046_v55  ;;  %v3139_v55 = vld [vmem:[#allocation3 + $0x51c] ss:$24 sps:$4 sm:$0xff]  }
  0x84   :  { %1983 = vmatpush1.bf16.msra.mxu1 %v3047_v58  ;;  %v3140_v58 = vld [vmem:[#allocation3 + $0x220] ss:$24 sps:$4 sm:$0xff]  }
  0x85   :  { %1940 = vmatpush1.bf16.msra.mxu0 %v3044_v57  ;;  %1984 = vmatprep.subr.bf16.mxu1 %v3055_v60  ;;  %v3137_v57 = vld [vmem:[#allocation3 + $0x518] ss:$24 sps:$4 sm:$0xff]   ;;  %v3148_v60 = vld [vmem:[#allocation3 + $0x254] ss:$24 sps:$4 sm:$0xff]  }
  0x86   :  { %1941 = vmatprep.subr.bf16.mxu0 %v3052_v59  ;;  %v3145_v59 = vld [vmem:[#allocation3 + $0x54c] ss:$24 sps:$4 sm:$0xff]  }
  0x88   :  { %1985 = vmatpush1.bf16.msra.mxu1 %v3053_v62  ;;  %v3146_v62 = vld [vmem:[#allocation3 + $0x250] ss:$24 sps:$4 sm:$0xff]  }
  0x89   :  { %1942 = vmatpush1.bf16.msra.mxu0 %v3050_v61  ;;  %1986 = vmatprep.subr.bf16.mxu1 %v3061_v0  ;;  %v3143_v61 = vld [vmem:[#allocation3 + $0x548] ss:$24 sps:$4 sm:$0xff]   ;;  %v3154_v0 = vld [vmem:[#allocation3 + $0x284] ss:$24 sps:$4 sm:$0xff]  }
  0x8a   :  { %1943 = vmatprep.subr.bf16.mxu0 %v3058_v63  ;;  %v3151_v63 = vld [vmem:[#allocation3 + $0x57c] ss:$24 sps:$4 sm:$0xff]  }
  0x8c   :  { %1987 = vmatpush1.bf16.msra.mxu1 %v3059_v2  ;;  %v3152_v2 = vld [vmem:[#allocation3 + $0x280] ss:$24 sps:$4 sm:$0xff]  }
  0x8d   :  { %1944 = vmatpush1.bf16.msra.mxu0 %v3056_v1  ;;  %1988 = vmatprep.subr.bf16.mxu1 %v3067_v4  ;;  %v3149_v1 = vld [vmem:[#allocation3 + $0x578] ss:$24 sps:$4 sm:$0xff]   ;;  %v3160_v4 = vld [vmem:[#allocation3 + $0x2b4] ss:$24 sps:$4 sm:$0xff]  }
  0x8e   :  { %1945 = vmatprep.subr.bf16.mxu0 %v3064_v3  ;;  %v3157_v3 = vld [vmem:[#allocation3 + $0x5ac] ss:$24 sps:$4 sm:$0xff]  }
  0x90   :  { %1989 = vmatpush1.bf16.msra.mxu1 %v3065_v8  ;;  %v3158_v8 = vld [vmem:[#allocation3 + $0x2b0] ss:$24 sps:$4 sm:$0xff]  }
  0x91   :  { %1946 = vmatpush1.bf16.msra.mxu0 %v3062_v5  ;;  %2001 = vmatprep.subr.bf16.mxu1 %v3073_v9  ;;  %v3155_v5 = vld [vmem:[#allocation3 + $0x5a8] ss:$24 sps:$4 sm:$0xff]   ;;  %v3163_v9 = vld [vmem:[#allocation3 + $0x5dc] ss:$24 sps:$4 sm:$0xff]  }
  0x92   :  { %2087 = vmatprep.subr.bf16.mxu0 %v3076_v10  ;;  %v3166_v10 = vld [vmem:[#allocation3 + $0x2e4] ss:$24 sps:$4 sm:$0xff]  }
  0x93   :  { %1991 = vmatmul.mubr.bf16.vlgmr.msra.gmra.mrb[4].mxu1 %v3406_v6 }
  0x94   :  { %1948 = vmatmul.mubr.bf16.vlgmr.msra.gmra.mrb[0].mxu0 %v3425_v11  ;;  %2002 = vmatpush1.bf16.msra.mxu1 %v3071_v12  ;;  %v3161_v12 = vld [vmem:[#allocation3 + $0x5d8] ss:$24 sps:$4 sm:$0xff]  }
  0x95   :  { %2088 = vmatpush1.bf16.msra.mxu0 %v3074_v13  ;;  %2003 = vmatprep.subr.bf16.mxu1 %v3079_v14  ;;  %v3164_v13 = vld [vmem:[#allocation3 + $0x2e0] ss:$24 sps:$4 sm:$0xff]   ;;  %v3169_v14 = vld [vmem:[#allocation3 + $0x60c] ss:$24 sps:$4 sm:$0xff]  }
  0x96   :  { %2089 = vmatprep.subr.bf16.mxu0 %v3082_v15  ;;  %2033 = vmatprep.mubr.bf16.mxu1 %v3399_v49  ;;  %v3098_v49 = vld [vmem:[#allocation3 + $0xd0] ss:$24 sps:$4 sm:$0xff]   ;;  %v3172_v15 = vld [vmem:[#allocation3 + $0x314] ss:$24 sps:$4 sm:$0xff]  }
  0x97   :  { %2119 = vmatprep.mubr.bf16.mxu0 %v3394_v48  ;;  %v3103_v48 = vld [vmem:[#allocation3 + $0x3fc] ss:$24 sps:$4 sm:$0xff]  }
  0x98   :  { %2004 = vmatpush1.bf16.msra.mxu1 %v3077_v16  ;;  %v3167_v16 = vld [vmem:[#allocation3 + $0x608] ss:$24 sps:$4 sm:$0xff]  }
  0x99   :  { %2090 = vmatpush1.bf16.msra.mxu0 %v3080_v17  ;;  %2005 = vmatprep.subr.bf16.mxu1 %v3085_v18  ;;  %v3170_v17 = vld [vmem:[#allocation3 + $0x310] ss:$24 sps:$4 sm:$0xff]   ;;  %v3175_v18 = vld [vmem:[#allocation3 + $0x63c] ss:$24 sps:$4 sm:$0xff]  }
  0x9a   :  { %2091 = vmatprep.subr.bf16.mxu0 %v3088_v19  ;;  %v3178_v19 = vld [vmem:[#allocation3 + $0x344] ss:$24 sps:$4 sm:$0xff]  }
  0x9c   :  { %2006 = vmatpush1.bf16.msra.mxu1 %v3083_v20  ;;  %v3173_v20 = vld [vmem:[#allocation3 + $0x638] ss:$24 sps:$4 sm:$0xff]  }
  0x9d   :  { %2092 = vmatpush1.bf16.msra.mxu0 %v3086_v21  ;;  %2007 = vmatprep.subr.bf16.mxu1 %v3091_v22  ;;  %v3176_v21 = vld [vmem:[#allocation3 + $0x340] ss:$24 sps:$4 sm:$0xff]   ;;  %v3181_v22 = vld [vmem:[#allocation3 + $0x66c] ss:$24 sps:$4 sm:$0xff]  }
  0x9e   :  { %2093 = vmatprep.subr.bf16.mxu0 %v3094_v23  ;;  %v3184_v23 = vld [vmem:[#allocation3 + $0x374] ss:$24 sps:$4 sm:$0xff]  }
  0xa0   :  { %2008 = vmatpush1.bf16.msra.mxu1 %v3089_v24  ;;  %v3315_v24 = vld [vmem:[%s3543_s0 + $0xc] ss:$24 sps:$4 sm:$0xff]  }
  0xa1   :  { %2094 = vmatpush1.bf16.msra.mxu0 %v3092_v25  ;;  %2009 = vmatprep.subr.bf16.mxu1 %v3097_v26  ;;  %v3182_v25 = vld [vmem:[#allocation3 + $0x370] ss:$24 sps:$4 sm:$0xff]   ;;  %v3190_v26 = vld [vmem:[#allocation3 + $0x3a4] ss:$24 sps:$4 sm:$0xff]  }
  0xa2   :  { %2095 = vmatprep.subr.bf16.mxu0 %v3100_v27  ;;  %v3185_v27 = vld [vmem:[#allocation3 + $0x698] ss:$24 sps:$4 sm:$0xff]  }
  0xa4   :  { %2010 = vmatpush1.bf16.msra.mxu1 %v3095_v28  ;;  %v3188_v28 = vld [vmem:[#allocation3 + $0x3a0] ss:$24 sps:$4 sm:$0xff]  }
  0xa5   :  { %2096 = vmatpush1.bf16.msra.mxu0 %v3098_v49  ;;  %2011 = vmatprep.subr.bf16.mxu1 %v3103_v48  ;;  %v3193_v49 = vld [vmem:[#allocation3 + $0x6cc] ss:$24 sps:$4 sm:$0xff]  }
  0xa6   :  { %2097 = vmatprep.subr.bf16.mxu0 %v3106_v29  ;;  %v3196_v48 = vld [vmem:[#allocation3 + $0x3d4] ss:$24 sps:$4 sm:$0xff]   ;;  %v3191_v29 = vld [vmem:[#allocation3 + $0x6c8] ss:$24 sps:$4 sm:$0xff]  }
  0xa8   :  { %2012 = vmatpush1.bf16.msra.mxu1 %v3101_v30  ;;  %v3194_v30 = vld [vmem:[#allocation3 + $0x3d0] ss:$24 sps:$4 sm:$0xff]  }
  0xa9   :  { %2098 = vmatpush1.bf16.msra.mxu0 %v3104_v31  ;;  %2013 = vmatprep.subr.bf16.mxu1 %v3109_v32  ;;  %v3199_v31 = vld [vmem:[#allocation3 + $0x6fc] ss:$24 sps:$4 sm:$0xff]  }
  0xaa   :  { %2099 = vmatprep.subr.bf16.mxu0 %v3112_v33  ;;  %v3202_v32 = vld [vmem:[#allocation3 + $0x404] ss:$24 sps:$4 sm:$0xff]   ;;  %v3197_v33 = vld [vmem:[#allocation3 + $0x6f8] ss:$24 sps:$4 sm:$0xff]  }
  0xac   :  { %2014 = vmatpush1.bf16.msra.mxu1 %v3107_v35  ;;  %v3200_v35 = vld [vmem:[#allocation3 + $0x400] ss:$24 sps:$4 sm:$0xff]  }
  0xad   :  { %2100 = vmatpush1.bf16.msra.mxu0 %v3110_v36  ;;  %2015 = vmatprep.subr.bf16.mxu1 %v3115_v37  ;;  %v3205_v36 = vld [vmem:[#allocation3 + $0x72c] ss:$24 sps:$4 sm:$0xff]  }
  0xae   :  { %2101 = vmatprep.subr.bf16.mxu0 %v3118_v38  ;;  %v3208_v37 = vld [vmem:[#allocation3 + $0x434] ss:$24 sps:$4 sm:$0xff]   ;;  %v3203_v38 = vld [vmem:[#allocation3 + $0x728] ss:$24 sps:$4 sm:$0xff]  }
  0xb0   :  { %2016 = vmatpush1.bf16.msra.mxu1 %v3113_v39  ;;  %v3206_v39 = vld [vmem:[#allocation3 + $0x430] ss:$24 sps:$4 sm:$0xff]  }
  0xb1   :  { %2102 = vmatpush1.bf16.msra.mxu0 %v3116_v40  ;;  %2017 = vmatprep.subr.bf16.mxu1 %v3121_v41  ;;  %v3211_v40 = vld [vmem:[#allocation3 + $0x75c] ss:$24 sps:$4 sm:$0xff]  }
  0xb2   :  { %2103 = vmatprep.subr.bf16.mxu0 %v3124_v42  ;;  %v3214_v41 = vld [vmem:[#allocation3 + $0x464] ss:$24 sps:$4 sm:$0xff]   ;;  %v3209_v42 = vld [vmem:[#allocation3 + $0x758] ss:$24 sps:$4 sm:$0xff]  }
  0xb4   :  { %2018 = vmatpush1.bf16.msra.mxu1 %v3119_v43  ;;  %v3212_v43 = vld [vmem:[#allocation3 + $0x460] ss:$24 sps:$4 sm:$0xff]  }
  0xb5   :  { %2104 = vmatpush1.bf16.msra.mxu0 %v3122_v44  ;;  %2019 = vmatprep.subr.bf16.mxu1 %v3127_v45  ;;  %v3217_v44 = vld [vmem:[#allocation3 + $0x78c] ss:$24 sps:$4 sm:$0xff]  }
  0xb6   :  { %2105 = vmatprep.subr.bf16.mxu0 %v3130_v46  ;;  %v3220_v45 = vld [vmem:[#allocation3 + $0x494] ss:$24 sps:$4 sm:$0xff]   ;;  %v3215_v46 = vld [vmem:[#allocation3 + $0x788] ss:$24 sps:$4 sm:$0xff]  }
  0xb8   :  { %2020 = vmatpush1.bf16.msra.mxu1 %v3125_v47  ;;  %v3218_v47 = vld [vmem:[#allocation3 + $0x490] ss:$24 sps:$4 sm:$0xff]  }
  0xb9   :  { %2106 = vmatpush1.bf16.msra.mxu0 %v3128_v50  ;;  %2021 = vmatprep.subr.bf16.mxu1 %v3133_v51  ;;  %v3223_v50 = vld [vmem:[#allocation3 + $0x7bc] ss:$24 sps:$4 sm:$0xff]  }
  0xba   :  { %2107 = vmatprep.subr.bf16.mxu0 %v3136_v52  ;;  %v3226_v51 = vld [vmem:[#allocation3 + $0x4c4] ss:$24 sps:$4 sm:$0xff]   ;;  %v3221_v52 = vld [vmem:[#allocation3 + $0x7b8] ss:$24 sps:$4 sm:$0xff]  }
  0xbc   :  { %2022 = vmatpush1.bf16.msra.mxu1 %v3131_v53  ;;  %v3224_v53 = vld [vmem:[#allocation3 + $0x4c0] ss:$24 sps:$4 sm:$0xff]  }
  0xbd   :  { %2108 = vmatpush1.bf16.msra.mxu0 %v3134_v54  ;;  %2023 = vmatprep.subr.bf16.mxu1 %v3139_v55  ;;  %v3229_v54 = vld [vmem:[#allocation3 + $0x7ec] ss:$24 sps:$4 sm:$0xff]  }
  0xbe   :  { %2109 = vmatprep.subr.bf16.mxu0 %v3142_v56  ;;  %v3232_v55 = vld [vmem:[#allocation3 + $0x4f4] ss:$24 sps:$4 sm:$0xff]   ;;  %v3227_v56 = vld [vmem:[#allocation3 + $0x7e8] ss:$24 sps:$4 sm:$0xff]  }
  0xc0   :  { %2024 = vmatpush1.bf16.msra.mxu1 %v3137_v57  ;;  %v3230_v57 = vld [vmem:[#allocation3 + $0x4f0] ss:$24 sps:$4 sm:$0xff]  }
  0xc1   :  { %2110 = vmatpush1.bf16.msra.mxu0 %v3140_v58  ;;  %2025 = vmatprep.subr.bf16.mxu1 %v3145_v59  ;;  %v3235_v58 = vld [vmem:[#allocation3 + $0x81c] ss:$24 sps:$4 sm:$0xff]  }
  0xc2   :  { %2111 = vmatprep.subr.bf16.mxu0 %v3148_v60  ;;  %v3238_v59 = vld [vmem:[#allocation3 + $0x524] ss:$24 sps:$4 sm:$0xff]   ;;  %v3233_v60 = vld [vmem:[#allocation3 + $0x818] ss:$24 sps:$4 sm:$0xff]  }
  0xc4   :  { %2026 = vmatpush1.bf16.msra.mxu1 %v3143_v61  ;;  %v3236_v61 = vld [vmem:[#allocation3 + $0x520] ss:$24 sps:$4 sm:$0xff]  }
  0xc5   :  { %2112 = vmatpush1.bf16.msra.mxu0 %v3146_v62  ;;  %2027 = vmatprep.subr.bf16.mxu1 %v3151_v63  ;;  %v3241_v62 = vld [vmem:[#allocation3 + $0x84c] ss:$24 sps:$4 sm:$0xff]  }
  0xc6   :  { %2113 = vmatprep.subr.bf16.mxu0 %v3154_v0  ;;  %v3244_v63 = vld [vmem:[#allocation3 + $0x554] ss:$24 sps:$4 sm:$0xff]   ;;  %v3239_v0 = vld [vmem:[#allocation3 + $0x848] ss:$24 sps:$4 sm:$0xff]  }
  0xc8   :  { %2028 = vmatpush1.bf16.msra.mxu1 %v3149_v1  ;;  %v3242_v1 = vld [vmem:[#allocation3 + $0x550] ss:$24 sps:$4 sm:$0xff]  }
  0xc9   :  { %2114 = vmatpush1.bf16.msra.mxu0 %v3152_v2  ;;  %2029 = vmatprep.subr.bf16.mxu1 %v3157_v3  ;;  %v3247_v2 = vld [vmem:[#allocation3 + $0x87c] ss:$24 sps:$4 sm:$0xff]  }
  0xca   :  { %2115 = vmatprep.subr.bf16.mxu0 %v3160_v4  ;;  %v3250_v3 = vld [vmem:[#allocation3 + $0x584] ss:$24 sps:$4 sm:$0xff]   ;;  %v3245_v4 = vld [vmem:[#allocation3 + $0x878] ss:$24 sps:$4 sm:$0xff]  }
  0xcc   :  { %2030 = vmatpush1.bf16.msra.mxu1 %v3155_v5  ;;  %v3248_v5 = vld [vmem:[#allocation3 + $0x580] ss:$24 sps:$4 sm:$0xff]  }
  0xcd   :  { %2116 = vmatpush1.bf16.msra.mxu0 %v3158_v8  ;;  %2031 = vmatprep.subr.bf16.mxu1 %v3163_v9  ;;  %v3253_v8 = vld [vmem:[#allocation3 + $0x8ac] ss:$24 sps:$4 sm:$0xff]  }
  0xce   :  { %2117 = vmatprep.subr.bf16.mxu0 %v3166_v10  ;;  %v3256_v9 = vld [vmem:[#allocation3 + $0x5b4] ss:$24 sps:$4 sm:$0xff]   ;;  %v3251_v10 = vld [vmem:[#allocation3 + $0x8a8] ss:$24 sps:$4 sm:$0xff]  }
  0xd0   :  { %2032 = vmatpush1.bf16.msra.mxu1 %v3161_v12  ;;  %v3254_v12 = vld [vmem:[#allocation3 + $0x5b0] ss:$24 sps:$4 sm:$0xff]  }
  0xd1   :  { %2118 = vmatpush1.bf16.msra.mxu0 %v3164_v13  ;;  %2044 = vmatprep.subr.bf16.mxu1 %v3169_v14  ;;  %v3259_v13 = vld [vmem:[#allocation3 + $0x8dc] ss:$24 sps:$4 sm:$0xff]  }
  0xd2   :  { %2130 = vmatprep.subr.bf16.mxu0 %v3172_v15  ;;  %v3262_v14 = vld [vmem:[#allocation3 + $0x5e4] ss:$24 sps:$4 sm:$0xff]   ;;  %v3257_v15 = vld [vmem:[#allocation3 + $0x8d8] ss:$24 sps:$4 sm:$0xff]  }
  0xd3   :  { %2034 = vmatmul.mubr.bf16.vlgmr.msra.gmra.mrb[4].mxu1 %v3411_v7  ;;  %v3179_v7 = vld [vmem:[#allocation3 + $0x668] ss:$24 sps:$4 sm:$0xff]  }
  0xd4   :  { %2120 = vmatmul.mubr.bf16.vlgmr.msra.gmra.mrb[4].mxu0 %v3406_v6  ;;  %2045 = vmatpush1.bf16.msra.mxu1 %v3167_v16  ;;  %v3187_v6 = vld [vmem:[#allocation3 + $0x69c] ss:$24 sps:$4 sm:$0xff]   ;;  %v3260_v16 = vld [vmem:[#allocation3 + $0x5e0] ss:$24 sps:$4 sm:$0xff]  }
  0xd5   :  { %2131 = vmatpush1.bf16.msra.mxu0 %v3170_v17  ;;  %2046 = vmatprep.subr.bf16.mxu1 %v3175_v18  ;;  %v3265_v17 = vld [vmem:[#allocation3 + $0x614] ss:$24 sps:$4 sm:$0xff]   ;;  %v3263_v18 = vld [vmem:[#allocation3 + $0x610] ss:$24 sps:$4 sm:$0xff]  }
  0xd6   :  { %2132 = vmatprep.subr.bf16.mxu0 %v3178_v19  ;;  %2076 = vmatprep.mubr.bf16.mxu1 %v3419_v34  ;;  %v3268_v19 = vld [vmem:[#allocation3 + $0x644] ss:$24 sps:$4 sm:$0xff]  }
  0xd7   :  { %2162 = vmatprep.mubr.bf16.mxu0 %v3315_v24  ;;  %v3274_v24 = vld [vmem:[#allocation3 + $0x6a4] ss:$24 sps:$4 sm:$0xff]  }
  0xd8   :  { %2047 = vmatpush1.bf16.msra.mxu1 %v3173_v20  ;;  %v3316_v20 = vld [vmem:[%s3543_s0 + $0x8] ss:$24 sps:$4 sm:$0xff]  }
  0xd9   :  { %2133 = vmatpush1.bf16.msra.mxu0 %v3176_v21  ;;  %2048 = vmatprep.subr.bf16.mxu1 %v3181_v22  ;;  %v3266_v21 = vld [vmem:[#allocation3 + $0x640] ss:$24 sps:$4 sm:$0xff]   ;;  %v3271_v22 = vld [vmem:[#allocation3 + $0x674] ss:$24 sps:$4 sm:$0xff]  }
  0xda   :  { %2134 = vmatprep.subr.bf16.mxu0 %v3184_v23  ;;  %v3269_v23 = vld [vmem:[#allocation3 + $0x670] ss:$24 sps:$4 sm:$0xff]  }
  0xdc   :  { %2049 = vmatpush1.bf16.msra.mxu1 %v3179_v7  ;;  %v3272_v7 = vld [vmem:[#allocation3 + $0x6a0] ss:$24 sps:$4 sm:$0xff]  }
  0xdd   :  { %2135 = vmatpush1.bf16.msra.mxu0 %v3182_v25  ;;  %2050 = vmatprep.subr.bf16.mxu1 %v3187_v6  ;;  %v3277_v25 = vld [vmem:[#allocation3 + $0x6d4] ss:$24 sps:$4 sm:$0xff]   ;;  %v3275_v6 = vld [vmem:[#allocation3 + $0x6d0] ss:$24 sps:$4 sm:$0xff]  }
  0xde   :  { %2136 = vmatprep.subr.bf16.mxu0 %v3190_v26  ;;  %v3280_v26 = vld [vmem:[#allocation3 + $0x704] ss:$24 sps:$4 sm:$0xff]  }
  0xe0   :  { %2051 = vmatpush1.bf16.msra.mxu1 %v3185_v27  ;;  %v3278_v27 = vld [vmem:[#allocation3 + $0x700] ss:$24 sps:$4 sm:$0xff]  }
  0xe1   :  { %2137 = vmatpush1.bf16.msra.mxu0 %v3188_v28  ;;  %2052 = vmatprep.subr.bf16.mxu1 %v3193_v49  ;;  %v3283_v28 = vld [vmem:[#allocation3 + $0x734] ss:$24 sps:$4 sm:$0xff]  }
  0xe2   :  { %2138 = vmatprep.subr.bf16.mxu0 %v3196_v48  ;;  %v3281_v48 = vld [vmem:[#allocation3 + $0x730] ss:$24 sps:$4 sm:$0xff]  }
  0xe4   :  { %2053 = vmatpush1.bf16.msra.mxu1 %v3191_v29 }
  0xe5   :  { %2139 = vmatpush1.bf16.msra.mxu0 %v3194_v30  ;;  %2054 = vmatprep.subr.bf16.mxu1 %v3199_v31  ;;  %v3286_v30 = vld [vmem:[#allocation3 + $0x764] ss:$24 sps:$4 sm:$0xff]  }
  0xe6   :  { %2140 = vmatprep.subr.bf16.mxu0 %v3202_v32  ;;  %v3284_v32 = vld [vmem:[#allocation3 + $0x760] ss:$24 sps:$4 sm:$0xff]  }
  0xe8   :  { %2055 = vmatpush1.bf16.msra.mxu1 %v3197_v33  ;;  %v3289_v33 = vld [vmem:[#allocation3 + $0x794] ss:$24 sps:$4 sm:$0xff]  }
  0xe9   :  { %2141 = vmatpush1.bf16.msra.mxu0 %v3200_v35  ;;  %2056 = vmatprep.subr.bf16.mxu1 %v3205_v36  ;;  %v3287_v35 = vld [vmem:[#allocation3 + $0x790] ss:$24 sps:$4 sm:$0xff]   ;;  %v3292_v36 = vld [vmem:[#allocation3 + $0x7c4] ss:$24 sps:$4 sm:$0xff]  }
  0xea   :  { %2142 = vmatprep.subr.bf16.mxu0 %v3208_v37  ;;  %v3290_v37 = vld [vmem:[#allocation3 + $0x7c0] ss:$24 sps:$4 sm:$0xff]  }
  0xec   :  { %2057 = vmatpush1.bf16.msra.mxu1 %v3203_v38  ;;  %v3295_v38 = vld [vmem:[#allocation3 + $0x7f4] ss:$24 sps:$4 sm:$0xff]  }
  0xed   :  { %2143 = vmatpush1.bf16.msra.mxu0 %v3206_v39  ;;  %2058 = vmatprep.subr.bf16.mxu1 %v3211_v40  ;;  %v3293_v39 = vld [vmem:[#allocation3 + $0x7f0] ss:$24 sps:$4 sm:$0xff]   ;;  %v3298_v40 = vld [vmem:[#allocation3 + $0x824] ss:$24 sps:$4 sm:$0xff]  }
  0xee   :  { %2144 = vmatprep.subr.bf16.mxu0 %v3214_v41  ;;  %v3296_v41 = vld [vmem:[#allocation3 + $0x820] ss:$24 sps:$4 sm:$0xff]  }
  0xf0   :  { %2059 = vmatpush1.bf16.msra.mxu1 %v3209_v42  ;;  %v3301_v42 = vld [vmem:[#allocation3 + $0x854] ss:$24 sps:$4 sm:$0xff]  }
  0xf1   :  { %2145 = vmatpush1.bf16.msra.mxu0 %v3212_v43  ;;  %2060 = vmatprep.subr.bf16.mxu1 %v3217_v44  ;;  %v3299_v43 = vld [vmem:[#allocation3 + $0x850] ss:$24 sps:$4 sm:$0xff]   ;;  %v3304_v44 = vld [vmem:[#allocation3 + $0x884] ss:$24 sps:$4 sm:$0xff]  }
  0xf2   :  { %2146 = vmatprep.subr.bf16.mxu0 %v3220_v45  ;;  %v3302_v45 = vld [vmem:[#allocation3 + $0x880] ss:$24 sps:$4 sm:$0xff]  }
  0xf4   :  { %2061 = vmatpush1.bf16.msra.mxu1 %v3215_v46  ;;  %v3307_v46 = vld [vmem:[#allocation3 + $0x8b4] ss:$24 sps:$4 sm:$0xff]  }
  0xf5   :  { %2147 = vmatpush1.bf16.msra.mxu0 %v3218_v47  ;;  %2062 = vmatprep.subr.bf16.mxu1 %v3223_v50  ;;  %v3305_v47 = vld [vmem:[#allocation3 + $0x8b0] ss:$24 sps:$4 sm:$0xff]   ;;  %v3310_v50 = vld [vmem:[#allocation3 + $0x8e4] ss:$24 sps:$4 sm:$0xff]  }
  0xf6   :  { %2148 = vmatprep.subr.bf16.mxu0 %v3226_v51  ;;  %v3308_v51 = vld [vmem:[#allocation3 + $0x8e0] ss:$24 sps:$4 sm:$0xff]  }
  0xf8   :  { %2063 = vmatpush1.bf16.msra.mxu1 %v3221_v52 }
  0xf9   :  { %2149 = vmatpush1.bf16.msra.mxu0 %v3224_v53  ;;  %2064 = vmatprep.subr.bf16.mxu1 %v3229_v54 }
  0xfa   :  { %2150 = vmatprep.subr.bf16.mxu0 %v3232_v55 }
  0xfc   :  { %2065 = vmatpush1.bf16.msra.mxu1 %v3227_v56 }
  0xfd   :  { %2151 = vmatpush1.bf16.msra.mxu0 %v3230_v57  ;;  %2066 = vmatprep.subr.bf16.mxu1 %v3235_v58 }
  0xfe   :  { %2152 = vmatprep.subr.bf16.mxu0 %v3238_v59 }
 0x100   :  { %2067 = vmatpush1.bf16.msra.mxu1 %v3233_v60 }
 0x101   :  { %2153 = vmatpush1.bf16.msra.mxu0 %v3236_v61  ;;  %2068 = vmatprep.subr.bf16.mxu1 %v3241_v62 }
 0x102   :  { %2154 = vmatprep.subr.bf16.mxu0 %v3244_v63 }
 0x104   :  { %2069 = vmatpush1.bf16.msra.mxu1 %v3239_v0  ;;  %v2257_v0 = vlaneseq }
 0x105   :  { %2155 = vmatpush1.bf16.msra.mxu0 %v3242_v1  ;;  %2070 = vmatprep.subr.bf16.mxu1 %v3247_v2 }
 0x106   :  { %2156 = vmatprep.subr.bf16.mxu0 %v3250_v3  ;;  %v2258_v1 = vshrl.u32 %v2257_v0, 7 }
 0x108   :  { %2071 = vmatpush1.bf16.msra.mxu1 %v3245_v4  ;;  %v3443_v2 = vsub.s32 0, %v2258_v1  ;;  %v3445_v3 = vsub.s32 1, %v2258_v1  ;;  %v3450_v4 = vsub.s32 2, %v2258_v1 }
 0x109   :  { %2157 = vmatpush1.bf16.msra.mxu0 %v3248_v5  ;;  %2072 = vmatprep.subr.bf16.mxu1 %v3253_v8 }
 0x10a   :  { %2158 = vmatprep.subr.bf16.mxu0 %v3256_v9  ;;  %v2299_v9 = vld [vmem:[%s3546_s3] sm:$0xff] }
 0x10c   :  { %2073 = vmatpush1.bf16.msra.mxu1 %v3251_v10  ;;  %v3457_v10 = vsub.s32 3, %v2258_v1 }
 0x10d   :  { %2159 = vmatpush1.bf16.msra.mxu0 %v3254_v12  ;;  %2074 = vmatprep.subr.bf16.mxu1 %v3259_v13  ;;  %v2302_v12 = vld [vmem:[%s3546_s3 + $0x18] sm:$0xff] }
 0x10e   :  { %2160 = vmatprep.subr.bf16.mxu0 %v3262_v14  ;;  %v2300_v14 = vld [vmem:[%s3546_s3 + $0x8] sm:$0xff] }
 0x110   :  { %2075 = vmatpush1.bf16.msra.mxu1 %v3257_v15 }
 0x111   :  { %2161 = vmatpush1.bf16.msra.mxu0 %v3260_v16  ;;  %v2305_v16 = vunpack.c.l.bf16 %v2299_v9 }
 0x112   :  { %2173 = vmatprep.subr.bf16.mxu0 %v3265_v17 }
 0x113   :  { %2077 = vmatmul.mubr.bf16.vlgmr.msra.gmra.mrb[4].mxu1 %v3425_v11 }
 0x114   :  { %2163 = vmatmul.mubr.bf16.vlgmr.msra.gmra.mrb[4].mxu0 %v3316_v20  ;;  %v2311_v20 = vunpack.c.l.bf16 %v2302_v12 }
 0x115   :  { %2174 = vmatpush1.bf16.msra.mxu0 %v3263_v18  ;;  %2205 = vmatprep.mubr.bf16.mxu0 %v3419_v34  ;;  %v2306_v18 = vunpack.c.h.bf16 %v2299_v9 }
 0x116   :  { %2175 = vmatprep.subr.bf16.mxu0 %v3268_v19  ;;  %v2303_v19 = vld [vmem:[%s3546_s3 + $0x20] sm:$0xff] }
 0x119   :  { %2176 = vmatpush1.bf16.msra.mxu0 %v3266_v21  ;;  %v2312_v21 = vunpack.c.h.bf16 %v2302_v12 }
 0x11a   :  { %2177 = vmatprep.subr.bf16.mxu0 %v3271_v22 }
 0x11d   :  { %2178 = vmatpush1.bf16.msra.mxu0 %v3269_v23 }
 0x11e   :  { %2179 = vmatprep.subr.bf16.mxu0 %v3274_v24 }
 0x121   :  { %2180 = vmatpush1.bf16.msra.mxu0 %v3272_v7 }
 0x122   :  { %2181 = vmatprep.subr.bf16.mxu0 %v3277_v25  ;;  %v2307_v25 = vunpack.c.l.bf16 %v2300_v14 }
 0x125   :  { %2182 = vmatpush1.bf16.msra.mxu0 %v3275_v6  ;;  %v2313_v6 = vunpack.c.l.bf16 %v2303_v19 }
 0x126   :  { %2183 = vmatprep.subr.bf16.mxu0 %v3280_v26  ;;  %v1863_v49 = vpop.f32.mrb[0].mxu1 }
 0x127   :  { %v1865_v34 = vpop.f32.mrb[1].mxu1 }
 0x128   :  { %v1867_v29 = vpop.f32.mrb[2].mxu1 }
 0x129   :  { %2184 = vmatpush1.bf16.msra.mxu0 %v3278_v27  ;;  %v1869_v31 = vpop.f32.mrb[3].mxu1 }
 0x12a   :  { %2185 = vmatprep.subr.bf16.mxu0 %v3283_v28 }
 0x12d   :  { %2186 = vmatpush1.bf16.msra.mxu0 %v3281_v48  ;;  %v3472_v48 = vsub.s32 5, %v2258_v1 }
 0x12e   :  { %2187 = vmatprep.subr.bf16.mxu0 %v3286_v30 }
 0x131   :  { %2188 = vmatpush1.bf16.msra.mxu0 %v3284_v32 }
 0x132   :  { %2189 = vmatprep.subr.bf16.mxu0 %v3289_v33  ;;  %v2314_v33 = vunpack.c.h.bf16 %v2303_v19 }
 0x135   :  { %2190 = vmatpush1.bf16.msra.mxu0 %v3287_v35  ;;  %v2301_v35 = vld [vmem:[%s3546_s3 + $0x10] sm:$0xff] }
 0x136   :  { %2191 = vmatprep.subr.bf16.mxu0 %v3292_v36 }
 0x139   :  { %2192 = vmatpush1.bf16.msra.mxu0 %v3290_v37 }
 0x13a   :  { %2193 = vmatprep.subr.bf16.mxu0 %v3295_v38 }
 0x13d   :  { %2194 = vmatpush1.bf16.msra.mxu0 %v3293_v39 }
 0x13e   :  { %2195 = vmatprep.subr.bf16.mxu0 %v3298_v40 }
 0x141   :  { %2196 = vmatpush1.bf16.msra.mxu0 %v3296_v41  ;;  %v2304_v41 = vld [vmem:[%s3546_s3 + $0x28] sm:$0xff] }
 0x142   :  { %2197 = vmatprep.subr.bf16.mxu0 %v3301_v42 }
 0x145   :  { %2198 = vmatpush1.bf16.msra.mxu0 %v3299_v43 }
 0x146   :  { %2199 = vmatprep.subr.bf16.mxu0 %v3304_v44 }
 0x149   :  { %2200 = vmatpush1.bf16.msra.mxu0 %v3302_v45  ;;  %v2309_v45 = vunpack.c.l.bf16 %v2301_v35 }
 0x14a   :  { %2201 = vmatprep.subr.bf16.mxu0 %v3307_v46 }
 0x14d   :  { %2202 = vmatpush1.bf16.msra.mxu0 %v3305_v47  ;;  %v2310_v47 = vunpack.c.h.bf16 %v2301_v35 }
 0x14e   :  { %2203 = vmatprep.subr.bf16.mxu0 %v3310_v50 }
 0x151   :  { %2204 = vmatpush1.bf16.msra.mxu0 %v3308_v51 }
 0x154   :  { %2206 = vmatmul.mubr.bf16.vlgmr.msra.gmra.mrb[4].mxu0 %v3425_v11  ;;  %v2255_v11 = vld [vmem:[%s3545_s2] sm:$0x3f] }
 0x155   :  { %v2260_v5 = vrot.slane %v2255_v11, %v3443_v2  ;;  %v2264_v8 = vrot.slane %v2255_v11, %v3445_v3  ;;  %v2268_v13 = vrot.slane %v2255_v11, %v3450_v4  ;;  %v2272_v22 = vrot.slane %v2255_v11, %v3457_v10 }
 0x156   :  { %v2280_v40 = vrot.slane %v2255_v11, %v3472_v48 }
 0x167   :  { %v1949_v52 = vpop.f32.mrb[0].mxu0 }
 0x168   :  { %v2843_v53 = vadd.f32 %v1949_v52, %v1863_v49  ;;  %v1951_v54 = vpop.f32.mrb[1].mxu0  ;;  %v3470_v49 = vsub.s32 4, %v2258_v1 }
 0x169   :  { %v2844_v55 = vadd.f32 %v1951_v54, %v1865_v34  ;;  %v1953_v56 = vpop.f32.mrb[2].mxu0  ;;  %v2308_v34 = vunpack.c.h.bf16 %v2300_v14  ;;  %v2315_v54 = vunpack.c.l.bf16 %v2304_v41 }
 0x16a   :  { %v2845_v57 = vadd.f32 %v1953_v56, %v1867_v29  ;;  %v1955_v58 = vpop.f32.mrb[3].mxu0  ;;  %v2287_v15 = vadd.f32 %v2843_v53, %v2260_v5  ;;  %v2276_v39 = vrot.slane %v2255_v11, %v3470_v49 }
 0x16b   :  { %v2846_v59 = vadd.f32 %v1955_v58, %v1869_v31  ;;  %v2288_v17 = vadd.f32 %v2844_v55, %v2264_v8 }
 0x16c   :  { %v2293_v23 = vadd.f32 %v2845_v57, %v2260_v5  ;;  %v2317_v26 = vadd.f32 %v2305_v16, %v2287_v15 }
 0x16d   :  { %v2294_v24 = vadd.f32 %v2846_v59, %v2264_v8  ;;  %v2318_v27 = vadd.f32 %v2306_v18, %v2288_v17 }
 0x16e   :  { %v2323_v29 = vadd.f32 %v2311_v20, %v2293_v23 }
 0x16f   :  { %v2324_v30 = vadd.f32 %v2312_v21, %v2294_v24  ;;  %v2329_v36 = vadd.f32 %v2318_v27, %v2317_v26 }
 0x171   :  { %v2336_v44 = vadd.f32 %v2324_v30, %v2323_v29 }
 0x1e6   :  { %v2078_v60 = vpop.f32.mrb[4].mxu1 }
 0x1e7   :  { %v2080_v61 = vpop.f32.mrb[5].mxu1  ;;  %v2289_v7 = vadd.f32 %v2268_v13, %v2078_v60  ;;  %v2316_v60 = vunpack.c.h.bf16 %v2304_v41 }
 0x1e8   :  { %v2082_v62 = vpop.f32.mrb[6].mxu1  ;;  %v2290_v32 = vadd.f32 %v2272_v22, %v2080_v61 }
 0x1e9   :  { %v2084_v63 = vpop.f32.mrb[7].mxu1  ;;  %v2295_v28 = vadd.f32 %v2268_v13, %v2082_v62  ;;  %v2319_v31 = vadd.f32 %v2307_v25, %v2289_v7 }
 0x1ea   :  { %v2296_v38 = vadd.f32 %v2272_v22, %v2084_v63  ;;  %v2320_v43 = vadd.f32 %v2308_v34, %v2290_v32 }
 0x1eb   :  { %v2325_v37 = vadd.f32 %v2313_v6, %v2295_v28  ;;  %v2330_v42 = vadd.f32 %v2329_v36, %v2319_v31 }
 0x1ec   :  { %v2326_v51 = vadd.f32 %v2314_v33, %v2296_v38 }
 0x1ed   :  { %v2337_v50 = vadd.f32 %v2336_v44, %v2325_v37  ;;  %v2331_v61 = vadd.f32 %v2330_v42, %v2320_v43 }
 0x1ef   :  { %v2338_v0 = vadd.f32 %v2337_v50, %v2326_v51 }
 0x227   :  { %v2207_v46 = vpop.f32.mrb[4].mxu0 }
 0x228   :  { %v2291_v52 = vadd.f32 %v2276_v39, %v2207_v46  ;;  %v2209_v53 = vpop.f32.mrb[5].mxu0 }
 0x229   :  { %v2292_v55 = vadd.f32 %v2280_v40, %v2209_v53  ;;  %v2211_v56 = vpop.f32.mrb[6].mxu0 }
 0x22a   :  { %v2321_v57 = vadd.f32 %v2309_v45, %v2291_v52  ;;  %v2297_v58 = vadd.f32 %v2276_v39, %v2211_v56  ;;  %v2213_v59 = vpop.f32.mrb[7].mxu0 }
 0x22b   :  { %v2298_v62 = vadd.f32 %v2280_v40, %v2213_v59  ;;  %v2322_v63 = vadd.f32 %v2310_v47, %v2292_v55 }
 0x22c   :  { %v2327_v1 = vadd.f32 %v2315_v54, %v2297_v58  ;;  %v2332_v11 = vadd.f32 %v2331_v61, %v2321_v57  ;;  %v2446_v58 = vld [vmem:[%s3548_s5] sm:$0x3f] }
 0x22d   :  { %v2328_v5 = vadd.f32 %v2316_v60, %v2298_v62  ;;  %v2451_v60 = vrot.slane %v2446_v58, %v3443_v2  ;;  %v2455_v62 = vrot.slane %v2446_v58, %v3445_v3 }
 0x22e   :  { %v2333_v8 = vadd.f32 %v2332_v11, %v2322_v63  ;;  %v2339_v9 = vadd.f32 %v2338_v0, %v2327_v1  ;;  %v2459_v11 = vrot.slane %v2446_v58, %v3450_v4 }
 0x230   :  { %2334 = vadd.xlane.f32.xlu0 %v2333_v8  ;;  %v2340_v12 = vadd.f32 %v2339_v9, %v2328_v5 }
 0x234   :  { %2341 = vadd.xlane.f32.xlu0 %v2340_v12 }
 0x2bd   :  { %v2335_v13 = vpop.xlane.xlu0 %2334 }
 0x2be   :  { %v2344_v14 = vmul.f32 0.0013020834, %v2335_v13 }
 0x2c0   :  { %v2346_v15 = vsub.f32 %v2317_v26, %v2344_v14  ;;  %v2347_v16 = vsub.f32 %v2318_v27, %v2344_v14  ;;  %v2348_v17 = vsub.f32 %v2319_v31, %v2344_v14  ;;  %v2349_v19 = vsub.f32 %v2320_v43, %v2344_v14 }
 0x2c1   :  { %v2342_v18 = vpop.xlane.xlu0 %2341  ;;  %v2350_v23 = vsub.f32 %v2321_v57, %v2344_v14  ;;  %v2351_v34 = vsub.f32 %v2322_v63, %v2344_v14  ;;  %v2402_v57 = vld [vmem:[%s3547_s4] sm:$0x3f] }
 0x2c2   :  { %v2345_v20 = vmul.f32 0.0013020834, %v2342_v18  ;;  %v2358_v21 = vmul.f32 %v2346_v15, %v2346_v15  ;;  %v2359_v22 = vmul.f32 %v2347_v16, %v2347_v16  ;;  %v2360_v24 = vmul.f32 %v2348_v17, %v2348_v17 }
 0x2c3   :  { %v2361_v32 = vmul.f32 %v2349_v19, %v2349_v19  ;;  %v2362_v35 = vmul.f32 %v2350_v23, %v2350_v23  ;;  %v2407_v59 = vrot.slane %v2402_v57, %v3443_v2  ;;  %v2411_v61 = vrot.slane %v2402_v57, %v3445_v3 }
 0x2c4   :  { %v2370_v7 = vadd.f32 %v2359_v22, %v2358_v21  ;;  %v3482_v25 = vsub.f32 %v2323_v29, %v2345_v20  ;;  %v3484_v6 = vsub.f32 %v2324_v30, %v2345_v20  ;;  %v3486_v28 = vsub.f32 %v2325_v37, %v2345_v20 }
 0x2c5   :  { %v3488_v26 = vsub.f32 %v2326_v51, %v2345_v20  ;;  %v3494_v38 = vsub.f32 %v2327_v1, %v2345_v20  ;;  %v2363_v37 = vmul.f32 %v2351_v34, %v2351_v34  ;;  %v2357_v40 = vsub.f32 %v2328_v5, %v2345_v20 }
 0x2c6   :  { %v2371_v33 = vadd.f32 %v2370_v7, %v2360_v24  ;;  %v2364_v27 = vmul.f32 %v3482_v25, %v3482_v25  ;;  %v2365_v31 = vmul.f32 %v3484_v6, %v3484_v6  ;;  %v2366_v29 = vmul.f32 %v3486_v28, %v3486_v28 }
 0x2c7   :  { %v2367_v41 = vmul.f32 %v3488_v26, %v3488_v26  ;;  %v2368_v44 = vmul.f32 %v3494_v38, %v3494_v38  ;;  %v2369_v46 = vmul.f32 %v2357_v40, %v2357_v40  ;;  %v2415_v63 = vrot.slane %v2402_v57, %v3450_v4 }
 0x2c8   :  { %v2372_v36 = vadd.f32 %v2371_v33, %v2361_v32  ;;  %v2377_v30 = vadd.f32 %v2365_v31, %v2364_v27  ;;  %v2419_v0 = vrot.slane %v2402_v57, %v3457_v10  ;;  %v2463_v5 = vrot.slane %v2446_v58, %v3457_v10 }
 0x2c9   :  { %v2423_v8 = vrot.slane %v2402_v57, %v3470_v49  ;;  %v2427_v9 = vrot.slane %v2402_v57, %v3472_v48  ;;  %v2467_v18 = vrot.slane %v2446_v58, %v3470_v49  ;;  %v2471_v3 = vrot.slane %v2446_v58, %v3472_v48 }
 0x2ca   :  { %v2373_v39 = vadd.f32 %v2372_v36, %v2362_v35  ;;  %v2378_v42 = vadd.f32 %v2377_v30, %v2366_v29 }
 0x2cc   :  { %v2374_v43 = vadd.f32 %v2373_v39, %v2363_v37  ;;  %v2379_v45 = vadd.f32 %v2378_v42, %v2367_v41 }
 0x2ce   :  { %2375 = vadd.xlane.f32.xlu1 %v2374_v43  ;;  %v2380_v47 = vadd.f32 %v2379_v45, %v2368_v44 }
 0x2d0   :  { %v2381_v50 = vadd.f32 %v2380_v47, %v2369_v46 }
 0x2d2   :  { %2382 = vadd.xlane.f32.xlu1 %v2381_v50 }
 0x35b   :  { %v2376_v51 = vpop.xlane.xlu1 %2375 }
 0x35c   :  { %v2384_v52 = vmul.f32 0.0013020834, %v2376_v51 }
 0x35e   :  { %v2386_v53 = vadd.f32 1e-05, %v2384_v52 }
 0x35f   :  { %v2383_v54 = vpop.xlane.xlu1 %2382 }
 0x360   :  { %3311 = vrsqrt.f32 %v2386_v53  ;;  %v2385_v55 = vmul.f32 0.0013020834, %v2383_v54 }
 0x362   :  { %v2387_v56 = vadd.f32 1e-05, %v2385_v55 }
 0x364   :  { %3313 = vrsqrt.f32 %v2387_v56 }
 0x36a   :  { %v3312_v1 = vpop.eup %3311 }
 0x36b   :  { %v2390_v12 = vmul.f32 %v3312_v1, %v2346_v15  ;;  %v2391_v13 = vmul.f32 %v3312_v1, %v2347_v16  ;;  %v2392_v2 = vmul.f32 %v3312_v1, %v2348_v17  ;;  %v2393_v14 = vmul.f32 %v3312_v1, %v2349_v19 }
 0x36c   :  { %v2394_v20 = vmul.f32 %v3312_v1, %v2350_v23  ;;  %v2395_v21 = vmul.f32 %v3312_v1, %v2351_v34 }
 0x36d   :  { %v2434_v22 = vmul.f32 %v2407_v59, %v2390_v12  ;;  %v2435_v24 = vmul.f32 %v2411_v61, %v2391_v13  ;;  %v2436_v7 = vmul.f32 %v2415_v63, %v2392_v2  ;;  %v2437_v4 = vmul.f32 %v2419_v0, %v2393_v14 }
 0x36e   :  { %v3314_v32 = vpop.eup %3313  ;;  %v2438_v10 = vmul.f32 %v2423_v8, %v2394_v20  ;;  %v2439_v33 = vmul.f32 %v2427_v9, %v2395_v21 }
 0x36f   :  { %v2478_v27 = vadd.f32 %v2451_v60, %v2434_v22  ;;  %v2479_v31 = vadd.f32 %v2455_v62, %v2435_v24  ;;  %v2480_v35 = vadd.f32 %v2459_v11, %v2436_v7  ;;  %v2481_v15 = vadd.f32 %v2463_v5, %v2437_v4 }
 0x370   :  { %v2482_v16 = vadd.f32 %v2467_v18, %v2438_v10  ;;  %v2483_v17 = vadd.f32 %v2471_v3, %v2439_v33  ;;  %v2396_v19 = vmul.f32 %v3314_v32, %v3482_v25  ;;  %v2397_v49 = vmul.f32 %v3314_v32, %v3484_v6 }
 0x371   :  { %v2837_v48 = vpack.c.bf16 %v2479_v31, %v2478_v27  ;;  %v2838_v23 = vpack.c.bf16 %v2481_v15, %v2480_v35  ;;  %v2398_v34 = vmul.f32 %v3314_v32, %v3486_v28  ;;  %v2399_v36 = vmul.f32 %v3314_v32, %v3488_v26 }
 0x372   :  { %v2839_v29 = vpack.c.bf16 %v2483_v17, %v2482_v16  ;;  %v2400_v30 = vmul.f32 %v3314_v32, %v3494_v38  ;;  %v2401_v37 = vmul.f32 %v3314_v32, %v2357_v40  ;;  %v2440_v39 = vmul.f32 %v2407_v59, %v2396_v19 }
 0x373   :  { %2526 = vst [vmem:[%s3549_s6] sm:$0xff] %v2837_v48  ;;  %2527 = vst [vmem:[%s3549_s6 + $0x8] sm:$0xff] %v2838_v23  ;;  %v2441_v25 = vmul.f32 %v2411_v61, %v2397_v49  ;;  %v2442_v6 = vmul.f32 %v2415_v63, %v2398_v34  ;;  %v2443_v41 = vmul.f32 %v2419_v0, %v2399_v36 }
 0x374   :  { %2528 = vst [vmem:[%s3549_s6 + $0x10] sm:$0xff] %v2839_v29  ;;  %v2444_v28 = vmul.f32 %v2423_v8, %v2400_v30  ;;  %v2445_v26 = vmul.f32 %v2427_v9, %v2401_v37  ;;  %v2484_v38 = vadd.f32 %v2451_v60, %v2440_v39 }
 0x375   :  { %v2485_v40 = vadd.f32 %v2455_v62, %v2441_v25  ;;  %v2486_v42 = vadd.f32 %v2459_v11, %v2442_v6  ;;  %v2487_v43 = vadd.f32 %v2463_v5, %v2443_v41 }
 0x376   :  { %v2488_v44 = vadd.f32 %v2467_v18, %v2444_v28  ;;  %v2489_v45 = vadd.f32 %v2471_v3, %v2445_v26 }
 0x377   :  { %v2840_v46 = vpack.c.bf16 %v2485_v40, %v2484_v38  ;;  %v2841_v47 = vpack.c.bf16 %v2487_v43, %v2486_v42 }
 0x378   :  { %v2842_v50 = vpack.c.bf16 %v2489_v45, %v2488_v44 }
 0x379   :  { %2529 = vst [vmem:[%s3549_s6 + $0x18] sm:$0xff] %v2840_v46  ;;  %2530 = vst [vmem:[%s3549_s6 + $0x20] sm:$0xff] %v2841_v47 }
 0x37a   :  { %2531 = vst [vmem:[%s3549_s6 + $0x28] sm:$0xff] %v2842_v50 }
 0x37b   :  { %2536 = vsyncpa [#allocation4], 1 }

</bundles_post_ra>
